<compile_context>
chip_gen: v7x
topology: tpu7x:2x2x1
jax: 0.10.0
libtpu: 0.0.40
codegen_flags: <defaults>
</compile_context>

<pallas_src>
import functools
import numpy as np
import jax
import jax.numpy as jnp
from jax import lax
from jax.experimental import pallas as pl
from jax.experimental.pallas import tpu as pltpu

LEAKY_SLOPE = 0.01   # nn.LeakyReLU() default negative_slope
BN_EPS = 1e-5        # nn.BatchNorm2d default eps


def _round_up(a, b):
    return (a + b - 1) // b * b


# ----------------------------------------------------------------------------
# Fused ConvBlock kernel
# ----------------------------------------------------------------------------
def _block_kernel(x_ref, w1_ref, s1_ref, b1_ref, w2_ref, s2_ref, b2_ref,
                  o_ref, xpad_ref, mpad_ref, *, pool, Hc, Wc, Wpa, Hpa):
    """[optional 2x2 maxpool] -> (conv3x3 + BN + LeakyReLU) x 2, all in VMEM.

    Padded scratch layout: pad[p, q, :] holds padded pixel (p, q); the flat
    view (Hpa*Wpa, C) lets tap (kh, kw) be the contiguous row window starting
    at kh*Wpa + kw.  Wpa is a multiple of 8 so the flatten/unflatten reshapes
    are free; Hpa = Hc + 3 gives the junk-column tap windows an in-bounds
    guard row.  Junk columns (q > Wc) are never propagated: they are dropped
    by the (Hc, Wpa, C)[:, :Wc, :] slice after each conv.
    """
    R = Hc * Wpa                                   # matmul rows (incl. junk cols)

    # ---- stage 0: load input block, optionally fuse the 2x2 max-pool -------
    xall = x_ref[...]
    if pool:
        # Block (1, Hc, 2, Wc, 2*Cin): lane dim packs (w-parity, channel).
        cin = xall.shape[-1] // 2
        xv = jnp.maximum(xall[0, :, 0, :, :], xall[0, :, 1, :, :])   # vertical max
        xin = jnp.maximum(xv[:, :, :cin], xv[:, :, cin:])            # horizontal max
    else:
        xin = xall[0]                                                # (Hc, Wc, Cin)

    def scatter_padded(pad_ref, interior):
        """Write `interior` (Hc, Wc, C) into the zero-padded scratch."""
        c = pad_ref.shape[-1]
        # Border-only zeroing: the interior is fully overwritten below.
        pad_ref[0:1, :, :] = jnp.zeros((1, Wpa, c), pad_ref.dtype)
        pad_ref[Hc + 1:Hpa, :, :] = jnp.zeros((Hpa - Hc - 1, Wpa, c), pad_ref.dtype)
        pad_ref[1:Hc + 1, 0:1, :] = jnp.zeros((Hc, 1, c), pad_ref.dtype)
        pad_ref[1:Hc + 1, Wc + 1:Wpa, :] = jnp.zeros((Hc, Wpa - Wc - 1, c),
                                                     pad_ref.dtype)
        pad_ref[1:Hc + 1, 1:Wc + 1, :] = interior.astype(pad_ref.dtype)

    def conv(pad_ref, w_ref, s_ref, b_ref):
        c_in = pad_ref.shape[-1]
        c_out = w_ref.shape[-1]
        flat = pad_ref[...].reshape(Hpa * Wpa, c_in)       # free (Wpa % 8 == 0)
        taps = [flat[kh * Wpa + kw: kh * Wpa + kw + R, :]
                for kh in range(3) for kw in range(3)]
        a = jnp.concatenate(taps, axis=-1)                 # (R, 9*Cin) im2col
        acc = jnp.dot(a, w_ref[...],                       # single MXU dot, K=9*Cin
                      preferred_element_type=jnp.float32)
        y = acc * s_ref[...] + b_ref[...]                  # folded BN (f32 epilogue)
        y = jnp.where(y >= 0, y, LEAKY_SLOPE * y)          # LeakyReLU
        return y.reshape(Hc, Wpa, c_out)[:, :Wc, :]        # drop junk columns

    scatter_padded(xpad_ref, xin)
    y1 = conv(xpad_ref, w1_ref, s1_ref, b1_ref)
    # TODO(synk): nn.Dropout between the two convs is identity (eval mode).
    scatter_padded(mpad_ref, y1)
    y2 = conv(mpad_ref, w2_ref, s2_ref, b2_ref)
    o_ref[0, :, :, :] = y2.astype(o_ref.dtype)             # single bulk store


# ----------------------------------------------------------------------------
# Wrapper: one pallas_call per ConvBlock / DownBlock
# ----------------------------------------------------------------------------
def conv_block_fused(x_nhwc, p1, p2, *, pool):
    N, H, W, Cin = x_nhwc.shape
    Cout = p1['w'].shape[-1]

    if pool:
        assert H % 2 == 0 and W % 2 == 0, "MaxPool2d(2) requires even H and W"
        Hc, Wc = H // 2, W // 2
        # Metadata-only reshape; trailing block dims stay (Wc, 2*Cin) -> dense DMA.
        x_in = x_nhwc.reshape(N, Hc, 2, Wc, 2 * Cin)
        in_block = (1, Hc, 2, Wc, 2 * Cin)
        in_map = lambda b: (b, 0, 0, 0, 0)
    else:
        Hc, Wc = H, W
        x_in = x_nhwc
        in_block = (1, H, W, Cin)
        in_map = lambda b: (b, 0, 0, 0)

    Wpa = _round_up(Wc + 2, 8)     # sublane-aligned padded row stride
    Hpa = Hc + 3                   # top + bottom border + guard row

    # Tap-folded weights: (3,3,Cin,Cout) -> (9*Cin, Cout); bf16 MXU operands.
    w1 = p1['w'].astype(jnp.bfloat16).reshape(9 * Cin, Cout)
    w2 = p2['w'].astype(jnp.bfloat16).reshape(9 * Cout, Cout)
    s1 = p1['scale'].reshape(1, Cout).astype(jnp.float32)
    b1 = p1['bias'].reshape(1, Cout).astype(jnp.float32)
    s2 = p2['scale'].reshape(1, Cout).astype(jnp.float32)
    b2 = p2['bias'].reshape(1, Cout).astype(jnp.float32)

    kern = functools.partial(_block_kernel, pool=pool,
                             Hc=Hc, Wc=Wc, Wpa=Wpa, Hpa=Hpa)

    return pl.pallas_call(
        kern,
        out_shape=jax.ShapeDtypeStruct((N, Hc, Wc, Cout), jnp.bfloat16),
        grid=(N,),
        in_specs=[
            pl.BlockSpec(in_block, in_map),
            pl.BlockSpec((9 * Cin, Cout), lambda b: (0, 0)),
            pl.BlockSpec((1, Cout), lambda b: (0, 0)),
            pl.BlockSpec((1, Cout), lambda b: (0, 0)),
            pl.BlockSpec((9 * Cout, Cout), lambda b: (0, 0)),
            pl.BlockSpec((1, Cout), lambda b: (0, 0)),
            pl.BlockSpec((1, Cout), lambda b: (0, 0)),
        ],
        out_specs=pl.BlockSpec((1, Hc, Wc, Cout), lambda b: (b, 0, 0, 0)),
        scratch_shapes=[pltpu.VMEM((Hpa, Wpa, Cin), jnp.bfloat16),
                        pltpu.VMEM((Hpa, Wpa, Cout), jnp.bfloat16)],
        compiler_params=pltpu.CompilerParams(
            dimension_semantics=("parallel",)),
    )(x_in, w1, s1, b1, w2, s2, b2)


# ----------------------------------------------------------------------------
# Parameter construction (matches nn.Conv2d / nn.BatchNorm2d shapes, eval fold)
# ----------------------------------------------------------------------------
def init_conv_bn(key, cin, cout):
    k1, k2, k3, k4 = jax.random.split(key, 4)
    fan_in = 9 * cin
    w = jax.random.normal(k1, (3, 3, cin, cout), jnp.float32) / np.sqrt(fan_in)
    b = 0.01 * jax.random.normal(k2, (cout,), jnp.float32)
    gamma = 1.0 + 0.1 * jax.random.normal(k3, (cout,), jnp.float32)
    beta = 0.1 * jax.random.normal(k4, (cout,), jnp.float32)
    r_mean = jnp.zeros((cout,), jnp.float32)
    r_var = jnp.ones((cout,), jnp.float32)
    scale = gamma / jnp.sqrt(r_var + BN_EPS)
    bias = beta + (b - r_mean) * scale
    return dict(w=w, b=b, gamma=gamma, beta=beta, mean=r_mean, var=r_var,
                scale=scale, bias=bias)


def init_encoder(key, in_chns, ft_chns):
    assert len(ft_chns) == 5
    chans = [(in_chns, ft_chns[0]), (ft_chns[0], ft_chns[1]),
             (ft_chns[1], ft_chns[2]), (ft_chns[2], ft_chns[3]),
             (ft_chns[3], ft_chns[4])]
    params = []
    keys = jax.random.split(key, 10)
    for blk, (ci, co) in enumerate(chans):
        p1 = init_conv_bn(keys[2 * blk], ci, co)
        p2 = init_conv_bn(keys[2 * blk + 1], co, co)
        params.append((p1, p2))
    return params


# ----------------------------------------------------------------------------
# Encoder forward (Pallas) and a pure-JAX reference for verification
# ----------------------------------------------------------------------------
@jax.jit
def encoder_forward(x_nchw, params):
    x = jnp.transpose(x_nchw, (0, 2, 3, 1)).astype(jnp.float32)  # NCHW -> NHWC
    feats = []
    h = conv_block_fused(x, *params[0], pool=False)      # in_conv
    feats.append(h)
    for blk in range(1, 5):                               # down1..down4
        h = conv_block_fused(h, *params[blk], pool=True)
        feats.append(h)
    # bf16 block outputs -> user-facing f32 NCHW features, like PyTorch.
    return [jnp.transpose(f, (0, 3, 1, 2)).astype(jnp.float32) for f in feats]


def _ref_conv_bn_lrelu(x, p):
    y = lax.conv_general_dilated(
        x, p['w'], window_strides=(1, 1), padding='SAME',
        dimension_numbers=('NHWC', 'HWIO', 'NHWC'),
        precision=lax.Precision.HIGHEST)
    y = y + p['b']
    y = (y - p['mean']) / jnp.sqrt(p['var'] + BN_EPS) * p['gamma'] + p['beta']
    return jnp.where(y >= 0, y, LEAKY_SLOPE * y)


def _ref_maxpool(x):
    N, H, W, C = x.shape
    return x.reshape(N, H // 2, 2, W // 2, 2, C).max(axis=(2, 4))


def encoder_reference(x_nchw, params):
    x = jnp.transpose(x_nchw, (0, 2, 3, 1)).astype(jnp.float32)
    feats = []
    xi = _ref_conv_bn_lrelu(x, params[0][0])
    xi = _ref_conv_bn_lrelu(xi, params[0][1])
    feats.append(xi)
    for blk in range(1, 5):
        xi = _ref_maxpool(xi)
        xi = _ref_conv_bn_lrelu(xi, params[blk][0])
        xi = _ref_conv_bn_lrelu(xi, params[blk][1])
        feats.append(xi)
    return [jnp.transpose(f, (0, 3, 1, 2)) for f in feats]


# ----------------------------------------------------------------------------
if __name__ == "__main__":
    module_params = {
        'in_chns': 4,
        'feature_chns': [8, 16, 32, 32, 64],
        'class_num': 2,
        'dropout': [0.05, 0.1, 0.2, 0.3, 0.5],
    }

    key = jax.random.PRNGKey(0)
    kx, kp = jax.random.split(key)
    x = jax.random.normal(kx, (2, module_params['in_chns'], 16, 16),
                          jnp.float32)  # NCHW, like the PyTorch module

    params = init_encoder(kp, module_params['in_chns'],
                          module_params['feature_chns'])

    outs = encoder_forward(x, params)
    outs = [jax.block_until_ready(o) for o in outs]

    refs = encoder_reference(x, params)
    refs = [jax.block_until_ready(r) for r in refs]

    # bf16 MXU operands + bf16 block outputs (f32 accumulation/epilogue)
    # -> allow ~1-2% relative error vs. the f32 reference.
    for o, r in zip(outs, refs):
        assert o.shape == r.shape, (o.shape, r.shape)
        np.testing.assert_allclose(np.asarray(o), np.asarray(r),
                                   rtol=5e-2, atol=2e-2)

    print("KERNEL_OK")
</pallas_src>

<mosaic_0001>
module attributes {stable_mosaic.version = 11 : i64} {
  func.func @_block_kernel(%arg0: i32, %arg1: memref<1x16x16x4xf32, #tpu.memory_space<vmem>>, %arg2: memref<36x8xbf16, #tpu.memory_space<vmem>>, %arg3: memref<1x8xf32, #tpu.memory_space<vmem>>, %arg4: memref<1x8xf32, #tpu.memory_space<vmem>>, %arg5: memref<72x8xbf16, #tpu.memory_space<vmem>>, %arg6: memref<1x8xf32, #tpu.memory_space<vmem>>, %arg7: memref<1x8xf32, #tpu.memory_space<vmem>>, %arg8: memref<1x16x16x8xbf16, #tpu.memory_space<vmem>>, %arg9: memref<19x24x4xbf16, #tpu.memory_space<vmem>>, %arg10: memref<19x24x8xbf16, #tpu.memory_space<vmem>>) attributes {dimension_semantics = [#tpu.dimension_semantics<parallel>], iteration_bounds = array<i64: 2>, scalar_prefetch = 0 : i64, scratch_operands = 2 : i64, tpu.core_type = #tpu.core_type<tc>, window_params = [{transform_indices = @transform_0, window_bounds = array<i64: 1, 16, 16, 4>}, {pipeline_mode = #tpu.pipeline_mode<synchronous>, transform_indices = @transform_1, window_bounds = array<i64: 36, 8>}, {pipeline_mode = #tpu.pipeline_mode<synchronous>, transform_indices = @transform_2, window_bounds = array<i64: 1, 8>}, {pipeline_mode = #tpu.pipeline_mode<synchronous>, transform_indices = @transform_3, window_bounds = array<i64: 1, 8>}, {pipeline_mode = #tpu.pipeline_mode<synchronous>, transform_indices = @transform_4, window_bounds = array<i64: 72, 8>}, {pipeline_mode = #tpu.pipeline_mode<synchronous>, transform_indices = @transform_5, window_bounds = array<i64: 1, 8>}, {pipeline_mode = #tpu.pipeline_mode<synchronous>, transform_indices = @transform_6, window_bounds = array<i64: 1, 8>}, {transform_indices = @transform_7, window_bounds = array<i64: 1, 16, 16, 8>}]} {
    %c0 = arith.constant 0 : index
    %c0_0 = arith.constant 0 : index
    %c0_1 = arith.constant 0 : index
    %c0_2 = arith.constant 0 : index
    %0 = vector.load %arg1[%c0, %c0_0, %c0_1, %c0_2] : memref<1x16x16x4xf32, #tpu.memory_space<vmem>>, vector<1x16x16x4xf32>
    %1 = vector.shape_cast %0 : vector<1x16x16x4xf32> to vector<16x16x4xf32>
    %cst = arith.constant 0.000000e+00 : bf16
    %2 = vector.broadcast %cst : bf16 to vector<1x24x4xbf16>
    %c0_3 = arith.constant 0 : index
    %c0_4 = arith.constant 0 : index
    %c0_5 = arith.constant 0 : index
    %3 = vector.load %arg9[%c0_3, %c0_4, %c0_5] : memref<19x24x4xbf16, #tpu.memory_space<vmem>>, vector<1x24x4xbf16>
    tpu.vector_store %arg9[%c0_3, %c0_4, %c0_5], %2 {strides = array<i32>} : memref<19x24x4xbf16, #tpu.memory_space<vmem>>, vector<1x24x4xbf16>,
    %cst_6 = arith.constant 0.000000e+00 : bf16
    %4 = vector.broadcast %cst_6 : bf16 to vector<2x24x4xbf16>
    %c17 = arith.constant 17 : index
    %c0_7 = arith.constant 0 : index
    %c0_8 = arith.constant 0 : index
    %5 = vector.load %arg9[%c17, %c0_7, %c0_8] : memref<19x24x4xbf16, #tpu.memory_space<vmem>>, vector<2x24x4xbf16>
    tpu.vector_store %arg9[%c17, %c0_7, %c0_8], %4 {strides = array<i32>} : memref<19x24x4xbf16, #tpu.memory_space<vmem>>, vector<2x24x4xbf16>,
    %cst_9 = arith.constant 0.000000e+00 : bf16
    %6 = vector.broadcast %cst_9 : bf16 to vector<16x1x4xbf16>
    %c1 = arith.constant 1 : index
    %c0_10 = arith.constant 0 : index
    %c0_11 = arith.constant 0 : index
    %7 = vector.load %arg9[%c1, %c0_10, %c0_11] : memref<19x24x4xbf16, #tpu.memory_space<vmem>>, vector<16x1x4xbf16>
    tpu.vector_store %arg9[%c1, %c0_10, %c0_11], %6 {strides = array<i32>} : memref<19x24x4xbf16, #tpu.memory_space<vmem>>, vector<16x1x4xbf16>,
    %cst_12 = arith.constant 0.000000e+00 : bf16
    %8 = vector.broadcast %cst_12 : bf16 to vector<16x7x4xbf16>
    %c1_13 = arith.constant 1 : index
    %c17_14 = arith.constant 17 : index
    %c0_15 = arith.constant 0 : index
    %9 = vector.load %arg9[%c1_13, %c17_14, %c0_15] : memref<19x24x4xbf16, #tpu.memory_space<vmem>>, vector<16x7x4xbf16>
    tpu.vector_store %arg9[%c1_13, %c17_14, %c0_15], %8 {strides = array<i32>} : memref<19x24x4xbf16, #tpu.memory_space<vmem>>, vector<16x7x4xbf16>,
    %10 = arith.truncf %1 : vector<16x16x4xf32> to vector<16x16x4xbf16>
    %c1_16 = arith.constant 1 : index
    %c1_17 = arith.constant 1 : index
    %c0_18 = arith.constant 0 : index
    %11 = vector.load %arg9[%c1_16, %c1_17, %c0_18] : memref<19x24x4xbf16, #tpu.memory_space<vmem>>, vector<16x16x4xbf16>
    tpu.vector_store %arg9[%c1_16, %c1_17, %c0_18], %10 {strides = array<i32>} : memref<19x24x4xbf16, #tpu.memory_space<vmem>>, vector<16x16x4xbf16>,
    %c0_19 = arith.constant 0 : index
    %c0_20 = arith.constant 0 : index
    %c0_21 = arith.constant 0 : index
    %12 = vector.load %arg9[%c0_19, %c0_20, %c0_21] : memref<19x24x4xbf16, #tpu.memory_space<vmem>>, vector<19x24x4xbf16>
    %13 = vector.shape_cast %12 : vector<19x24x4xbf16> to vector<456x4xbf16>
    %14 = vector.extract_strided_slice %13 {offsets = [0, 0], sizes = [384, 4], strides = [1, 1]} : vector<456x4xbf16> to vector<384x4xbf16>
    %15 = vector.extract_strided_slice %13 {offsets = [1, 0], sizes = [384, 4], strides = [1, 1]} : vector<456x4xbf16> to vector<384x4xbf16>
    %16 = vector.extract_strided_slice %13 {offsets = [2, 0], sizes = [384, 4], strides = [1, 1]} : vector<456x4xbf16> to vector<384x4xbf16>
    %17 = vector.extract_strided_slice %13 {offsets = [24, 0], sizes = [384, 4], strides = [1, 1]} : vector<456x4xbf16> to vector<384x4xbf16>
    %18 = vector.extract_strided_slice %13 {offsets = [25, 0], sizes = [384, 4], strides = [1, 1]} : vector<456x4xbf16> to vector<384x4xbf16>
    %19 = vector.extract_strided_slice %13 {offsets = [26, 0], sizes = [384, 4], strides = [1, 1]} : vector<456x4xbf16> to vector<384x4xbf16>
    %20 = vector.extract_strided_slice %13 {offsets = [48, 0], sizes = [384, 4], strides = [1, 1]} : vector<456x4xbf16> to vector<384x4xbf16>
    %21 = vector.extract_strided_slice %13 {offsets = [49, 0], sizes = [384, 4], strides = [1, 1]} : vector<456x4xbf16> to vector<384x4xbf16>
    %22 = vector.extract_strided_slice %13 {offsets = [50, 0], sizes = [384, 4], strides = [1, 1]} : vector<456x4xbf16> to vector<384x4xbf16>
    %23 = tpu.concatenate %14, %15, %16, %17, %18, %19, %20, %21, %22 in 1 : vector<384x4xbf16>, vector<384x4xbf16>, vector<384x4xbf16>, vector<384x4xbf16>, vector<384x4xbf16>, vector<384x4xbf16>, vector<384x4xbf16>, vector<384x4xbf16>, vector<384x4xbf16> -> vector<384x36xbf16>
    %c0_22 = arith.constant 0 : index
    %c0_23 = arith.constant 0 : index
    %24 = vector.load %arg2[%c0_22, %c0_23] : memref<36x8xbf16, #tpu.memory_space<vmem>>, vector<36x8xbf16>
    %cst_24 = arith.constant dense<0.000000e+00> : vector<384x8xf32>
    %25 = tpu.matmul %23, %24, %cst_24 {dimension_numbers = #tpu.dot_dimension_numbers<[1], [0], [0], [1], [0, 0, 1, 1], [], []>} : vector<384x36xbf16>, vector<36x8xbf16>, vector<384x8xf32> -> vector<384x8xf32>
    %c0_25 = arith.constant 0 : index
    %c0_26 = arith.constant 0 : index
    %26 = vector.load %arg3[%c0_25, %c0_26] : memref<1x8xf32, #tpu.memory_space<vmem>>, vector<1x8xf32>
    %27 = vector.broadcast %26 : vector<1x8xf32> to vector<384x8xf32>
    %28 = arith.mulf %25, %27 : vector<384x8xf32>
    %c0_27 = arith.constant 0 : index
    %c0_28 = arith.constant 0 : index
    %29 = vector.load %arg4[%c0_27, %c0_28] : memref<1x8xf32, #tpu.memory_space<vmem>>, vector<1x8xf32>
    %30 = vector.broadcast %29 : vector<1x8xf32> to vector<384x8xf32>
    %31 = arith.addf %28, %30 : vector<384x8xf32>
    %cst_29 = arith.constant 0.000000e+00 : f32
    %32 = vector.broadcast %cst_29 : f32 to vector<384x8xf32>
    %33 = arith.cmpf oge, %31, %32 : vector<384x8xf32>
    %cst_30 = arith.constant 0.00999999977 : f32
    %34 = vector.broadcast %cst_30 : f32 to vector<384x8xf32>
    %35 = arith.mulf %34, %31 : vector<384x8xf32>
    %36 = arith.select %33, %31, %35 : vector<384x8xi1>, vector<384x8xf32>
    %37 = vector.shape_cast %36 : vector<384x8xf32> to vector<16x24x8xf32>
    %38 = vector.extract_strided_slice %37 {offsets = [0, 0, 0], sizes = [16, 16, 8], strides = [1, 1, 1]} : vector<16x24x8xf32> to vector<16x16x8xf32>
    %cst_31 = arith.constant 0.000000e+00 : bf16
    %39 = vector.broadcast %cst_31 : bf16 to vector<1x24x8xbf16>
    %c0_32 = arith.constant 0 : index
    %c0_33 = arith.constant 0 : index
    %c0_34 = arith.constant 0 : index
    %40 = vector.load %arg10[%c0_32, %c0_33, %c0_34] : memref<19x24x8xbf16, #tpu.memory_space<vmem>>, vector<1x24x8xbf16>
    tpu.vector_store %arg10[%c0_32, %c0_33, %c0_34], %39 {strides = array<i32>} : memref<19x24x8xbf16, #tpu.memory_space<vmem>>, vector<1x24x8xbf16>,
    %cst_35 = arith.constant 0.000000e+00 : bf16
    %41 = vector.broadcast %cst_35 : bf16 to vector<2x24x8xbf16>
    %c17_36 = arith.constant 17 : index
    %c0_37 = arith.constant 0 : index
    %c0_38 = arith.constant 0 : index
    %42 = vector.load %arg10[%c17_36, %c0_37, %c0_38] : memref<19x24x8xbf16, #tpu.memory_space<vmem>>, vector<2x24x8xbf16>
    tpu.vector_store %arg10[%c17_36, %c0_37, %c0_38], %41 {strides = array<i32>} : memref<19x24x8xbf16, #tpu.memory_space<vmem>>, vector<2x24x8xbf16>,
    %cst_39 = arith.constant 0.000000e+00 : bf16
    %43 = vector.broadcast %cst_39 : bf16 to vector<16x1x8xbf16>
    %c1_40 = arith.constant 1 : index
    %c0_41 = arith.constant 0 : index
    %c0_42 = arith.constant 0 : index
    %44 = vector.load %arg10[%c1_40, %c0_41, %c0_42] : memref<19x24x8xbf16, #tpu.memory_space<vmem>>, vector<16x1x8xbf16>
    tpu.vector_store %arg10[%c1_40, %c0_41, %c0_42], %43 {strides = array<i32>} : memref<19x24x8xbf16, #tpu.memory_space<vmem>>, vector<16x1x8xbf16>,
    %cst_43 = arith.constant 0.000000e+00 : bf16
    %45 = vector.broadcast %cst_43 : bf16 to vector<16x7x8xbf16>
    %c1_44 = arith.constant 1 : index
    %c17_45 = arith.constant 17 : index
    %c0_46 = arith.constant 0 : index
    %46 = vector.load %arg10[%c1_44, %c17_45, %c0_46] : memref<19x24x8xbf16, #tpu.memory_space<vmem>>, vector<16x7x8xbf16>
    tpu.vector_store %arg10[%c1_44, %c17_45, %c0_46], %45 {strides = array<i32>} : memref<19x24x8xbf16, #tpu.memory_space<vmem>>, vector<16x7x8xbf16>,
    %47 = arith.truncf %38 : vector<16x16x8xf32> to vector<16x16x8xbf16>
    %c1_47 = arith.constant 1 : index
    %c1_48 = arith.constant 1 : index
    %c0_49 = arith.constant 0 : index
    %48 = vector.load %arg10[%c1_47, %c1_48, %c0_49] : memref<19x24x8xbf16, #tpu.memory_space<vmem>>, vector<16x16x8xbf16>
    tpu.vector_store %arg10[%c1_47, %c1_48, %c0_49], %47 {strides = array<i32>} : memref<19x24x8xbf16, #tpu.memory_space<vmem>>, vector<16x16x8xbf16>,
    %c0_50 = arith.constant 0 : index
    %c0_51 = arith.constant 0 : index
    %c0_52 = arith.constant 0 : index
    %49 = vector.load %arg10[%c0_50, %c0_51, %c0_52] : memref<19x24x8xbf16, #tpu.memory_space<vmem>>, vector<19x24x8xbf16>
    %50 = vector.shape_cast %49 : vector<19x24x8xbf16> to vector<456x8xbf16>
    %51 = vector.extract_strided_slice %50 {offsets = [0, 0], sizes = [384, 8], strides = [1, 1]} : vector<456x8xbf16> to vector<384x8xbf16>
    %52 = vector.extract_strided_slice %50 {offsets = [1, 0], sizes = [384, 8], strides = [1, 1]} : vector<456x8xbf16> to vector<384x8xbf16>
    %53 = vector.extract_strided_slice %50 {offsets = [2, 0], sizes = [384, 8], strides = [1, 1]} : vector<456x8xbf16> to vector<384x8xbf16>
    %54 = vector.extract_strided_slice %50 {offsets = [24, 0], sizes = [384, 8], strides = [1, 1]} : vector<456x8xbf16> to vector<384x8xbf16>
    %55 = vector.extract_strided_slice %50 {offsets = [25, 0], sizes = [384, 8], strides = [1, 1]} : vector<456x8xbf16> to vector<384x8xbf16>
    %56 = vector.extract_strided_slice %50 {offsets = [26, 0], sizes = [384, 8], strides = [1, 1]} : vector<456x8xbf16> to vector<384x8xbf16>
    %57 = vector.extract_strided_slice %50 {offsets = [48, 0], sizes = [384, 8], strides = [1, 1]} : vector<456x8xbf16> to vector<384x8xbf16>
    %58 = vector.extract_strided_slice %50 {offsets = [49, 0], sizes = [384, 8], strides = [1, 1]} : vector<456x8xbf16> to vector<384x8xbf16>
    %59 = vector.extract_strided_slice %50 {offsets = [50, 0], sizes = [384, 8], strides = [1, 1]} : vector<456x8xbf16> to vector<384x8xbf16>
    %60 = tpu.concatenate %51, %52, %53, %54, %55, %56, %57, %58, %59 in 1 : vector<384x8xbf16>, vector<384x8xbf16>, vector<384x8xbf16>, vector<384x8xbf16>, vector<384x8xbf16>, vector<384x8xbf16>, vector<384x8xbf16>, vector<384x8xbf16>, vector<384x8xbf16> -> vector<384x72xbf16>
    %c0_53 = arith.constant 0 : index
    %c0_54 = arith.constant 0 : index
    %61 = vector.load %arg5[%c0_53, %c0_54] : memref<72x8xbf16, #tpu.memory_space<vmem>>, vector<72x8xbf16>
    %cst_55 = arith.constant dense<0.000000e+00> : vector<384x8xf32>
    %62 = tpu.matmul %60, %61, %cst_55 {dimension_numbers = #tpu.dot_dimension_numbers<[1], [0], [0], [1], [0, 0, 1, 1], [], []>} : vector<384x72xbf16>, vector<72x8xbf16>, vector<384x8xf32> -> vector<384x8xf32>
    %c0_56 = arith.constant 0 : index
    %c0_57 = arith.constant 0 : index
    %63 = vector.load %arg6[%c0_56, %c0_57] : memref<1x8xf32, #tpu.memory_space<vmem>>, vector<1x8xf32>
    %64 = vector.broadcast %63 : vector<1x8xf32> to vector<384x8xf32>
    %65 = arith.mulf %62, %64 : vector<384x8xf32>
    %c0_58 = arith.constant 0 : index
    %c0_59 = arith.constant 0 : index
    %66 = vector.load %arg7[%c0_58, %c0_59] : memref<1x8xf32, #tpu.memory_space<vmem>>, vector<1x8xf32>
    %67 = vector.broadcast %66 : vector<1x8xf32> to vector<384x8xf32>
    %68 = arith.addf %65, %67 : vector<384x8xf32>
    %cst_60 = arith.constant 0.000000e+00 : f32
    %69 = vector.broadcast %cst_60 : f32 to vector<384x8xf32>
    %70 = arith.cmpf oge, %68, %69 : vector<384x8xf32>
    %cst_61 = arith.constant 0.00999999977 : f32
    %71 = vector.broadcast %cst_61 : f32 to vector<384x8xf32>
    %72 = arith.mulf %71, %68 : vector<384x8xf32>
    %73 = arith.select %70, %68, %72 : vector<384x8xi1>, vector<384x8xf32>
    %74 = vector.shape_cast %73 : vector<384x8xf32> to vector<16x24x8xf32>
    %75 = vector.extract_strided_slice %74 {offsets = [0, 0, 0], sizes = [16, 16, 8], strides = [1, 1, 1]} : vector<16x24x8xf32> to vector<16x16x8xf32>
    %76 = arith.truncf %75 : vector<16x16x8xf32> to vector<16x16x8xbf16>
    %c0_62 = arith.constant 0 : index
    %c0_63 = arith.constant 0 : index
    %c0_64 = arith.constant 0 : index
    %c0_65 = arith.constant 0 : index
    %77 = vector.load %arg8[%c0_62, %c0_63, %c0_64, %c0_65] : memref<1x16x16x8xbf16, #tpu.memory_space<vmem>>, vector<1x16x16x8xbf16>
    %78 = vector.shape_cast %77 : vector<1x16x16x8xbf16> to vector<16x16x8xbf16>
    %79 = vector.shape_cast %76 : vector<16x16x8xbf16> to vector<1x16x16x8xbf16>
    tpu.vector_store %arg8[%c0_62, %c0_63, %c0_64, %c0_65], %79 {strides = array<i32>} : memref<1x16x16x8xbf16, #tpu.memory_space<vmem>>, vector<1x16x16x8xbf16>,
    return
  }
  func.func @transform_0(%arg0: i32) -> (i32, i32, i32, i32) {
    %c0_i32 = arith.constant 0 : i32
    %c0_i32_0 = arith.constant 0 : i32
    %c0_i32_1 = arith.constant 0 : i32
    %c0_i32_2 = arith.constant 0 : i32
    return %arg0, %c0_i32, %c0_i32_0, %c0_i32_1 : i32, i32, i32, i32
  }
  func.func @transform_1(%arg0: i32) -> (i32, i32) {
    %c0_i32 = arith.constant 0 : i32
    %c0_i32_0 = arith.constant 0 : i32
    %c0_i32_1 = arith.constant 0 : i32
    return %c0_i32, %c0_i32_0 : i32, i32
  }
  func.func @transform_2(%arg0: i32) -> (i32, i32) {
    %c0_i32 = arith.constant 0 : i32
    %c0_i32_0 = arith.constant 0 : i32
    %c0_i32_1 = arith.constant 0 : i32
    return %c0_i32, %c0_i32_0 : i32, i32
  }
  func.func @transform_3(%arg0: i32) -> (i32, i32) {
    %c0_i32 = arith.constant 0 : i32
    %c0_i32_0 = arith.constant 0 : i32
    %c0_i32_1 = arith.constant 0 : i32
    return %c0_i32, %c0_i32_0 : i32, i32
  }
  func.func @transform_4(%arg0: i32) -> (i32, i32) {
    %c0_i32 = arith.constant 0 : i32
    %c0_i32_0 = arith.constant 0 : i32
    %c0_i32_1 = arith.constant 0 : i32
    return %c0_i32, %c0_i32_0 : i32, i32
  }
  func.func @transform_5(%arg0: i32) -> (i32, i32) {
    %c0_i32 = arith.constant 0 : i32
    %c0_i32_0 = arith.constant 0 : i32
    %c0_i32_1 = arith.constant 0 : i32
    return %c0_i32, %c0_i32_0 : i32, i32
  }
  func.func @transform_6(%arg0: i32) -> (i32, i32) {
    %c0_i32 = arith.constant 0 : i32
    %c0_i32_0 = arith.constant 0 : i32
    %c0_i32_1 = arith.constant 0 : i32
    return %c0_i32, %c0_i32_0 : i32, i32
  }
  func.func @transform_7(%arg0: i32) -> (i32, i32, i32, i32) {
    %c0_i32 = arith.constant 0 : i32
    %c0_i32_0 = arith.constant 0 : i32
    %c0_i32_1 = arith.constant 0 : i32
    %c0_i32_2 = arith.constant 0 : i32
    return %arg0, %c0_i32, %c0_i32_0, %c0_i32_1 : i32, i32, i32, i32
  }
}

module attributes {stable_mosaic.version = 11 : i64} {
  func.func @_block_kernel(%arg0: i32, %arg1: memref<1x8x2x8x16xbf16, #tpu.memory_space<vmem>>, %arg2: memref<72x16xbf16, #tpu.memory_space<vmem>>, %arg3: memref<1x16xf32, #tpu.memory_space<vmem>>, %arg4: memref<1x16xf32, #tpu.memory_space<vmem>>, %arg5: memref<144x16xbf16, #tpu.memory_space<vmem>>, %arg6: memref<1x16xf32, #tpu.memory_space<vmem>>, %arg7: memref<1x16xf32, #tpu.memory_space<vmem>>, %arg8: memref<1x8x8x16xbf16, #tpu.memory_space<vmem>>, %arg9: memref<11x16x8xbf16, #tpu.memory_space<vmem>>, %arg10: memref<11x16x16xbf16, #tpu.memory_space<vmem>>) attributes {dimension_semantics = [#tpu.dimension_semantics<parallel>], iteration_bounds = array<i64: 2>, scalar_prefetch = 0 : i64, scratch_operands = 2 : i64, tpu.core_type = #tpu.core_type<tc>, window_params = [{transform_indices = @transform_0, window_bounds = array<i64: 1, 8, 2, 8, 16>}, {pipeline_mode = #tpu.pipeline_mode<synchronous>, transform_indices = @transform_1, window_bounds = array<i64: 72, 16>}, {pipeline_mode = #tpu.pipeline_mode<synchronous>, transform_indices = @transform_2, window_bounds = array<i64: 1, 16>}, {pipeline_mode = #tpu.pipeline_mode<synchronous>, transform_indices = @transform_3, window_bounds = array<i64: 1, 16>}, {pipeline_mode = #tpu.pipeline_mode<synchronous>, transform_indices = @transform_4, window_bounds = array<i64: 144, 16>}, {pipeline_mode = #tpu.pipeline_mode<synchronous>, transform_indices = @transform_5, window_bounds = array<i64: 1, 16>}, {pipeline_mode = #tpu.pipeline_mode<synchronous>, transform_indices = @transform_6, window_bounds = array<i64: 1, 16>}, {transform_indices = @transform_7, window_bounds = array<i64: 1, 8, 8, 16>}]} {
    %c0 = arith.constant 0 : index
    %c0_0 = arith.constant 0 : index
    %c0_1 = arith.constant 0 : index
    %c0_2 = arith.constant 0 : index
    %c0_3 = arith.constant 0 : index
    %0 = vector.load %arg1[%c0, %c0_0, %c0_1, %c0_2, %c0_3] : memref<1x8x2x8x16xbf16, #tpu.memory_space<vmem>>, vector<1x8x2x8x16xbf16>
    %1 = vector.extract_strided_slice %0 {offsets = [0, 0, 0, 0, 0], sizes = [1, 8, 1, 8, 16], strides = [1, 1, 1, 1, 1]} : vector<1x8x2x8x16xbf16> to vector<1x8x1x8x16xbf16>
    %2 = vector.shape_cast %1 : vector<1x8x1x8x16xbf16> to vector<8x8x16xbf16>
    %3 = vector.extract_strided_slice %0 {offsets = [0, 0, 1, 0, 0], sizes = [1, 8, 1, 8, 16], strides = [1, 1, 1, 1, 1]} : vector<1x8x2x8x16xbf16> to vector<1x8x1x8x16xbf16>
    %4 = vector.shape_cast %3 : vector<1x8x1x8x16xbf16> to vector<8x8x16xbf16>
    %5 = arith.maximumf %2, %4 : vector<8x8x16xbf16>
    %6 = vector.extract_strided_slice %5 {offsets = [0, 0, 0], sizes = [8, 8, 8], strides = [1, 1, 1]} : vector<8x8x16xbf16> to vector<8x8x8xbf16>
    %7 = vector.extract_strided_slice %5 {offsets = [0, 0, 8], sizes = [8, 8, 8], strides = [1, 1, 1]} : vector<8x8x16xbf16> to vector<8x8x8xbf16>
    %8 = arith.maximumf %6, %7 : vector<8x8x8xbf16>
    %cst = arith.constant 0.000000e+00 : bf16
    %9 = vector.broadcast %cst : bf16 to vector<1x16x8xbf16>
    %c0_4 = arith.constant 0 : index
    %c0_5 = arith.constant 0 : index
    %c0_6 = arith.constant 0 : index
    %10 = vector.load %arg9[%c0_4, %c0_5, %c0_6] : memref<11x16x8xbf16, #tpu.memory_space<vmem>>, vector<1x16x8xbf16>
    tpu.vector_store %arg9[%c0_4, %c0_5, %c0_6], %9 {strides = array<i32>} : memref<11x16x8xbf16, #tpu.memory_space<vmem>>, vector<1x16x8xbf16>,
    %cst_7 = arith.constant 0.000000e+00 : bf16
    %11 = vector.broadcast %cst_7 : bf16 to vector<2x16x8xbf16>
    %c9 = arith.constant 9 : index
    %c0_8 = arith.constant 0 : index
    %c0_9 = arith.constant 0 : index
    %12 = vector.load %arg9[%c9, %c0_8, %c0_9] : memref<11x16x8xbf16, #tpu.memory_space<vmem>>, vector<2x16x8xbf16>
    tpu.vector_store %arg9[%c9, %c0_8, %c0_9], %11 {strides = array<i32>} : memref<11x16x8xbf16, #tpu.memory_space<vmem>>, vector<2x16x8xbf16>,
    %cst_10 = arith.constant 0.000000e+00 : bf16
    %13 = vector.broadcast %cst_10 : bf16 to vector<8x1x8xbf16>
    %c1 = arith.constant 1 : index
    %c0_11 = arith.constant 0 : index
    %c0_12 = arith.constant 0 : index
    %14 = vector.load %arg9[%c1, %c0_11, %c0_12] : memref<11x16x8xbf16, #tpu.memory_space<vmem>>, vector<8x1x8xbf16>
    tpu.vector_store %arg9[%c1, %c0_11, %c0_12], %13 {strides = array<i32>} : memref<11x16x8xbf16, #tpu.memory_space<vmem>>, vector<8x1x8xbf16>,
    %cst_13 = arith.constant 0.000000e+00 : bf16
    %15 = vector.broadcast %cst_13 : bf16 to vector<8x7x8xbf16>
    %c1_14 = arith.constant 1 : index
    %c9_15 = arith.constant 9 : index
    %c0_16 = arith.constant 0 : index
    %16 = vector.load %arg9[%c1_14, %c9_15, %c0_16] : memref<11x16x8xbf16, #tpu.memory_space<vmem>>, vector<8x7x8xbf16>
    tpu.vector_store %arg9[%c1_14, %c9_15, %c0_16], %15 {strides = array<i32>} : memref<11x16x8xbf16, #tpu.memory_space<vmem>>, vector<8x7x8xbf16>,
    %c1_17 = arith.constant 1 : index
    %c1_18 = arith.constant 1 : index
    %c0_19 = arith.constant 0 : index
    %17 = vector.load %arg9[%c1_17, %c1_18, %c0_19] : memref<11x16x8xbf16, #tpu.memory_space<vmem>>, vector<8x8x8xbf16>
    tpu.vector_store %arg9[%c1_17, %c1_18, %c0_19], %8 {strides = array<i32>} : memref<11x16x8xbf16, #tpu.memory_space<vmem>>, vector<8x8x8xbf16>,
    %c0_20 = arith.constant 0 : index
    %c0_21 = arith.constant 0 : index
    %c0_22 = arith.constant 0 : index
    %18 = vector.load %arg9[%c0_20, %c0_21, %c0_22] : memref<11x16x8xbf16, #tpu.memory_space<vmem>>, vector<11x16x8xbf16>
    %19 = vector.shape_cast %18 : vector<11x16x8xbf16> to vector<176x8xbf16>
    %20 = vector.extract_strided_slice %19 {offsets = [0, 0], sizes = [128, 8], strides = [1, 1]} : vector<176x8xbf16> to vector<128x8xbf16>
    %21 = vector.extract_strided_slice %19 {offsets = [1, 0], sizes = [128, 8], strides = [1, 1]} : vector<176x8xbf16> to vector<128x8xbf16>
    %22 = vector.extract_strided_slice %19 {offsets = [2, 0], sizes = [128, 8], strides = [1, 1]} : vector<176x8xbf16> to vector<128x8xbf16>
    %23 = vector.extract_strided_slice %19 {offsets = [16, 0], sizes = [128, 8], strides = [1, 1]} : vector<176x8xbf16> to vector<128x8xbf16>
    %24 = vector.extract_strided_slice %19 {offsets = [17, 0], sizes = [128, 8], strides = [1, 1]} : vector<176x8xbf16> to vector<128x8xbf16>
    %25 = vector.extract_strided_slice %19 {offsets = [18, 0], sizes = [128, 8], strides = [1, 1]} : vector<176x8xbf16> to vector<128x8xbf16>
    %26 = vector.extract_strided_slice %19 {offsets = [32, 0], sizes = [128, 8], strides = [1, 1]} : vector<176x8xbf16> to vector<128x8xbf16>
    %27 = vector.extract_strided_slice %19 {offsets = [33, 0], sizes = [128, 8], strides = [1, 1]} : vector<176x8xbf16> to vector<128x8xbf16>
    %28 = vector.extract_strided_slice %19 {offsets = [34, 0], sizes = [128, 8], strides = [1, 1]} : vector<176x8xbf16> to vector<128x8xbf16>
    %29 = tpu.concatenate %20, %21, %22, %23, %24, %25, %26, %27, %28 in 1 : vector<128x8xbf16>, vector<128x8xbf16>, vector<128x8xbf16>, vector<128x8xbf16>, vector<128x8xbf16>, vector<128x8xbf16>, vector<128x8xbf16>, vector<128x8xbf16>, vector<128x8xbf16> -> vector<128x72xbf16>
    %c0_23 = arith.constant 0 : index
    %c0_24 = arith.constant 0 : index
    %30 = vector.load %arg2[%c0_23, %c0_24] : memref<72x16xbf16, #tpu.memory_space<vmem>>, vector<72x16xbf16>
    %cst_25 = arith.constant dense<0.000000e+00> : vector<128x16xf32>
    %31 = tpu.matmul %29, %30, %cst_25 {dimension_numbers = #tpu.dot_dimension_numbers<[1], [0], [0], [1], [0, 0, 1, 1], [], []>} : vector<128x72xbf16>, vector<72x16xbf16>, vector<128x16xf32> -> vector<128x16xf32>
    %c0_26 = arith.constant 0 : index
    %c0_27 = arith.constant 0 : index
    %32 = vector.load %arg3[%c0_26, %c0_27] : memref<1x16xf32, #tpu.memory_space<vmem>>, vector<1x16xf32>
    %33 = vector.broadcast %32 : vector<1x16xf32> to vector<128x16xf32>
    %34 = arith.mulf %31, %33 : vector<128x16xf32>
    %c0_28 = arith.constant 0 : index
    %c0_29 = arith.constant 0 : index
    %35 = vector.load %arg4[%c0_28, %c0_29] : memref<1x16xf32, #tpu.memory_space<vmem>>, vector<1x16xf32>
    %36 = vector.broadcast %35 : vector<1x16xf32> to vector<128x16xf32>
    %37 = arith.addf %34, %36 : vector<128x16xf32>
    %cst_30 = arith.constant 0.000000e+00 : f32
    %38 = vector.broadcast %cst_30 : f32 to vector<128x16xf32>
    %39 = arith.cmpf oge, %37, %38 : vector<128x16xf32>
    %cst_31 = arith.constant 0.00999999977 : f32
    %40 = vector.broadcast %cst_31 : f32 to vector<128x16xf32>
    %41 = arith.mulf %40, %37 : vector<128x16xf32>
    %42 = arith.select %39, %37, %41 : vector<128x16xi1>, vector<128x16xf32>
    %43 = vector.shape_cast %42 : vector<128x16xf32> to vector<8x16x16xf32>
    %44 = vector.extract_strided_slice %43 {offsets = [0, 0, 0], sizes = [8, 8, 16], strides = [1, 1, 1]} : vector<8x16x16xf32> to vector<8x8x16xf32>
    %cst_32 = arith.constant 0.000000e+00 : bf16
    %45 = vector.broadcast %cst_32 : bf16 to vector<1x16x16xbf16>
    %c0_33 = arith.constant 0 : index
    %c0_34 = arith.constant 0 : index
    %c0_35 = arith.constant 0 : index
    %46 = vector.load %arg10[%c0_33, %c0_34, %c0_35] : memref<11x16x16xbf16, #tpu.memory_space<vmem>>, vector<1x16x16xbf16>
    tpu.vector_store %arg10[%c0_33, %c0_34, %c0_35], %45 {strides = array<i32>} : memref<11x16x16xbf16, #tpu.memory_space<vmem>>, vector<1x16x16xbf16>,
    %cst_36 = arith.constant 0.000000e+00 : bf16
    %47 = vector.broadcast %cst_36 : bf16 to vector<2x16x16xbf16>
    %c9_37 = arith.constant 9 : index
    %c0_38 = arith.constant 0 : index
    %c0_39 = arith.constant 0 : index
    %48 = vector.load %arg10[%c9_37, %c0_38, %c0_39] : memref<11x16x16xbf16, #tpu.memory_space<vmem>>, vector<2x16x16xbf16>
    tpu.vector_store %arg10[%c9_37, %c0_38, %c0_39], %47 {strides = array<i32>} : memref<11x16x16xbf16, #tpu.memory_space<vmem>>, vector<2x16x16xbf16>,
    %cst_40 = arith.constant 0.000000e+00 : bf16
    %49 = vector.broadcast %cst_40 : bf16 to vector<8x1x16xbf16>
    %c1_41 = arith.constant 1 : index
    %c0_42 = arith.constant 0 : index
    %c0_43 = arith.constant 0 : index
    %50 = vector.load %arg10[%c1_41, %c0_42, %c0_43] : memref<11x16x16xbf16, #tpu.memory_space<vmem>>, vector<8x1x16xbf16>
    tpu.vector_store %arg10[%c1_41, %c0_42, %c0_43], %49 {strides = array<i32>} : memref<11x16x16xbf16, #tpu.memory_space<vmem>>, vector<8x1x16xbf16>,
    %cst_44 = arith.constant 0.000000e+00 : bf16
    %51 = vector.broadcast %cst_44 : bf16 to vector<8x7x16xbf16>
    %c1_45 = arith.constant 1 : index
    %c9_46 = arith.constant 9 : index
    %c0_47 = arith.constant 0 : index
    %52 = vector.load %arg10[%c1_45, %c9_46, %c0_47] : memref<11x16x16xbf16, #tpu.memory_space<vmem>>, vector<8x7x16xbf16>
    tpu.vector_store %arg10[%c1_45, %c9_46, %c0_47], %51 {strides = array<i32>} : memref<11x16x16xbf16, #tpu.memory_space<vmem>>, vector<8x7x16xbf16>,
    %53 = arith.truncf %44 : vector<8x8x16xf32> to vector<8x8x16xbf16>
    %c1_48 = arith.constant 1 : index
    %c1_49 = arith.constant 1 : index
    %c0_50 = arith.constant 0 : index
    %54 = vector.load %arg10[%c1_48, %c1_49, %c0_50] : memref<11x16x16xbf16, #tpu.memory_space<vmem>>, vector<8x8x16xbf16>
    tpu.vector_store %arg10[%c1_48, %c1_49, %c0_50], %53 {strides = array<i32>} : memref<11x16x16xbf16, #tpu.memory_space<vmem>>, vector<8x8x16xbf16>,
    %c0_51 = arith.constant 0 : index
    %c0_52 = arith.constant 0 : index
    %c0_53 = arith.constant 0 : index
    %55 = vector.load %arg10[%c0_51, %c0_52, %c0_53] : memref<11x16x16xbf16, #tpu.memory_space<vmem>>, vector<11x16x16xbf16>
    %56 = vector.shape_cast %55 : vector<11x16x16xbf16> to vector<176x16xbf16>
    %57 = vector.extract_strided_slice %56 {offsets = [0, 0], sizes = [128, 16], strides = [1, 1]} : vector<176x16xbf16> to vector<128x16xbf16>
    %58 = vector.extract_strided_slice %56 {offsets = [1, 0], sizes = [128, 16], strides = [1, 1]} : vector<176x16xbf16> to vector<128x16xbf16>
    %59 = vector.extract_strided_slice %56 {offsets = [2, 0], sizes = [128, 16], strides = [1, 1]} : vector<176x16xbf16> to vector<128x16xbf16>
    %60 = vector.extract_strided_slice %56 {offsets = [16, 0], sizes = [128, 16], strides = [1, 1]} : vector<176x16xbf16> to vector<128x16xbf16>
    %61 = vector.extract_strided_slice %56 {offsets = [17, 0], sizes = [128, 16], strides = [1, 1]} : vector<176x16xbf16> to vector<128x16xbf16>
    %62 = vector.extract_strided_slice %56 {offsets = [18, 0], sizes = [128, 16], strides = [1, 1]} : vector<176x16xbf16> to vector<128x16xbf16>
    %63 = vector.extract_strided_slice %56 {offsets = [32, 0], sizes = [128, 16], strides = [1, 1]} : vector<176x16xbf16> to vector<128x16xbf16>
    %64 = vector.extract_strided_slice %56 {offsets = [33, 0], sizes = [128, 16], strides = [1, 1]} : vector<176x16xbf16> to vector<128x16xbf16>
    %65 = vector.extract_strided_slice %56 {offsets = [34, 0], sizes = [128, 16], strides = [1, 1]} : vector<176x16xbf16> to vector<128x16xbf16>
    %66 = tpu.concatenate %57, %58, %59, %60, %61, %62, %63, %64, %65 in 1 : vector<128x16xbf16>, vector<128x16xbf16>, vector<128x16xbf16>, vector<128x16xbf16>, vector<128x16xbf16>, vector<128x16xbf16>, vector<128x16xbf16>, vector<128x16xbf16>, vector<128x16xbf16> -> vector<128x144xbf16>
    %c0_54 = arith.constant 0 : index
    %c0_55 = arith.constant 0 : index
    %67 = vector.load %arg5[%c0_54, %c0_55] : memref<144x16xbf16, #tpu.memory_space<vmem>>, vector<144x16xbf16>
    %cst_56 = arith.constant dense<0.000000e+00> : vector<128x16xf32>
    %68 = tpu.matmul %66, %67, %cst_56 {dimension_numbers = #tpu.dot_dimension_numbers<[1], [0], [0], [1], [0, 0, 1, 1], [], []>} : vector<128x144xbf16>, vector<144x16xbf16>, vector<128x16xf32> -> vector<128x16xf32>
    %c0_57 = arith.constant 0 : index
    %c0_58 = arith.constant 0 : index
    %69 = vector.load %arg6[%c0_57, %c0_58] : memref<1x16xf32, #tpu.memory_space<vmem>>, vector<1x16xf32>
    %70 = vector.broadcast %69 : vector<1x16xf32> to vector<128x16xf32>
    %71 = arith.mulf %68, %70 : vector<128x16xf32>
    %c0_59 = arith.constant 0 : index
    %c0_60 = arith.constant 0 : index
    %72 = vector.load %arg7[%c0_59, %c0_60] : memref<1x16xf32, #tpu.memory_space<vmem>>, vector<1x16xf32>
    %73 = vector.broadcast %72 : vector<1x16xf32> to vector<128x16xf32>
    %74 = arith.addf %71, %73 : vector<128x16xf32>
    %cst_61 = arith.constant 0.000000e+00 : f32
    %75 = vector.broadcast %cst_61 : f32 to vector<128x16xf32>
    %76 = arith.cmpf oge, %74, %75 : vector<128x16xf32>
    %cst_62 = arith.constant 0.00999999977 : f32
    %77 = vector.broadcast %cst_62 : f32 to vector<128x16xf32>
    %78 = arith.mulf %77, %74 : vector<128x16xf32>
    %79 = arith.select %76, %74, %78 : vector<128x16xi1>, vector<128x16xf32>
    %80 = vector.shape_cast %79 : vector<128x16xf32> to vector<8x16x16xf32>
    %81 = vector.extract_strided_slice %80 {offsets = [0, 0, 0], sizes = [8, 8, 16], strides = [1, 1, 1]} : vector<8x16x16xf32> to vector<8x8x16xf32>
    %82 = arith.truncf %81 : vector<8x8x16xf32> to vector<8x8x16xbf16>
    %c0_63 = arith.constant 0 : index
    %c0_64 = arith.constant 0 : index
    %c0_65 = arith.constant 0 : index
    %c0_66 = arith.constant 0 : index
    %83 = vector.load %arg8[%c0_63, %c0_64, %c0_65, %c0_66] : memref<1x8x8x16xbf16, #tpu.memory_space<vmem>>, vector<1x8x8x16xbf16>
    %84 = vector.shape_cast %83 : vector<1x8x8x16xbf16> to vector<8x8x16xbf16>
    %85 = vector.shape_cast %82 : vector<8x8x16xbf16> to vector<1x8x8x16xbf16>
    tpu.vector_store %arg8[%c0_63, %c0_64, %c0_65, %c0_66], %85 {strides = array<i32>} : memref<1x8x8x16xbf16, #tpu.memory_space<vmem>>, vector<1x8x8x16xbf16>,
    return
  }
  func.func @transform_0(%arg0: i32) -> (i32, i32, i32, i32, i32) {
    %c0_i32 = arith.constant 0 : i32
    %c0_i32_0 = arith.constant 0 : i32
    %c0_i32_1 = arith.constant 0 : i32
    %c0_i32_2 = arith.constant 0 : i32
    %c0_i32_3 = arith.constant 0 : i32
    return %arg0, %c0_i32, %c0_i32_0, %c0_i32_1, %c0_i32_2 : i32, i32, i32, i32, i32
  }
  func.func @transform_1(%arg0: i32) -> (i32, i32) {
    %c0_i32 = arith.constant 0 : i32
    %c0_i32_0 = arith.constant 0 : i32
    %c0_i32_1 = arith.constant 0 : i32
    return %c0_i32, %c0_i32_0 : i32, i32
  }
  func.func @transform_2(%arg0: i32) -> (i32, i32) {
    %c0_i32 = arith.constant 0 : i32
    %c0_i32_0 = arith.constant 0 : i32
    %c0_i32_1 = arith.constant 0 : i32
    return %c0_i32, %c0_i32_0 : i32, i32
  }
  func.func @transform_3(%arg0: i32) -> (i32, i32) {
    %c0_i32 = arith.constant 0 : i32
    %c0_i32_0 = arith.constant 0 : i32
    %c0_i32_1 = arith.constant 0 : i32
    return %c0_i32, %c0_i32_0 : i32, i32
  }
  func.func @transform_4(%arg0: i32) -> (i32, i32) {
    %c0_i32 = arith.constant 0 : i32
    %c0_i32_0 = arith.constant 0 : i32
    %c0_i32_1 = arith.constant 0 : i32
    return %c0_i32, %c0_i32_0 : i32, i32
  }
  func.func @transform_5(%arg0: i32) -> (i32, i32) {
    %c0_i32 = arith.constant 0 : i32
    %c0_i32_0 = arith.constant 0 : i32
    %c0_i32_1 = arith.constant 0 : i32
    return %c0_i32, %c0_i32_0 : i32, i32
  }
  func.func @transform_6(%arg0: i32) -> (i32, i32) {
    %c0_i32 = arith.constant 0 : i32
    %c0_i32_0 = arith.constant 0 : i32
    %c0_i32_1 = arith.constant 0 : i32
    return %c0_i32, %c0_i32_0 : i32, i32
  }
  func.func @transform_7(%arg0: i32) -> (i32, i32, i32, i32) {
    %c0_i32 = arith.constant 0 : i32
    %c0_i32_0 = arith.constant 0 : i32
    %c0_i32_1 = arith.constant 0 : i32
    %c0_i32_2 = arith.constant 0 : i32
    return %arg0, %c0_i32, %c0_i32_0, %c0_i32_1 : i32, i32, i32, i32
  }
}

module attributes {stable_mosaic.version = 11 : i64} {
  func.func @_block_kernel(%arg0: i32, %arg1: memref<1x4x2x4x32xbf16, #tpu.memory_space<vmem>>, %arg2: memref<144x32xbf16, #tpu.memory_space<vmem>>, %arg3: memref<1x32xf32, #tpu.memory_space<vmem>>, %arg4: memref<1x32xf32, #tpu.memory_space<vmem>>, %arg5: memref<288x32xbf16, #tpu.memory_space<vmem>>, %arg6: memref<1x32xf32, #tpu.memory_space<vmem>>, %arg7: memref<1x32xf32, #tpu.memory_space<vmem>>, %arg8: memref<1x4x4x32xbf16, #tpu.memory_space<vmem>>, %arg9: memref<7x8x16xbf16, #tpu.memory_space<vmem>>, %arg10: memref<7x8x32xbf16, #tpu.memory_space<vmem>>) attributes {dimension_semantics = [#tpu.dimension_semantics<parallel>], iteration_bounds = array<i64: 2>, scalar_prefetch = 0 : i64, scratch_operands = 2 : i64, tpu.core_type = #tpu.core_type<tc>, window_params = [{transform_indices = @transform_0, window_bounds = array<i64: 1, 4, 2, 4, 32>}, {pipeline_mode = #tpu.pipeline_mode<synchronous>, transform_indices = @transform_1, window_bounds = array<i64: 144, 32>}, {pipeline_mode = #tpu.pipeline_mode<synchronous>, transform_indices = @transform_2, window_bounds = array<i64: 1, 32>}, {pipeline_mode = #tpu.pipeline_mode<synchronous>, transform_indices = @transform_3, window_bounds = array<i64: 1, 32>}, {pipeline_mode = #tpu.pipeline_mode<synchronous>, transform_indices = @transform_4, window_bounds = array<i64: 288, 32>}, {pipeline_mode = #tpu.pipeline_mode<synchronous>, transform_indices = @transform_5, window_bounds = array<i64: 1, 32>}, {pipeline_mode = #tpu.pipeline_mode<synchronous>, transform_indices = @transform_6, window_bounds = array<i64: 1, 32>}, {transform_indices = @transform_7, window_bounds = array<i64: 1, 4, 4, 32>}]} {
    %c0 = arith.constant 0 : index
    %c0_0 = arith.constant 0 : index
    %c0_1 = arith.constant 0 : index
    %c0_2 = arith.constant 0 : index
    %c0_3 = arith.constant 0 : index
    %0 = vector.load %arg1[%c0, %c0_0, %c0_1, %c0_2, %c0_3] : memref<1x4x2x4x32xbf16, #tpu.memory_space<vmem>>, vector<1x4x2x4x32xbf16>
    %1 = vector.extract_strided_slice %0 {offsets = [0, 0, 0, 0, 0], sizes = [1, 4, 1, 4, 32], strides = [1, 1, 1, 1, 1]} : vector<1x4x2x4x32xbf16> to vector<1x4x1x4x32xbf16>
    %2 = vector.shape_cast %1 : vector<1x4x1x4x32xbf16> to vector<4x4x32xbf16>
    %3 = vector.extract_strided_slice %0 {offsets = [0, 0, 1, 0, 0], sizes = [1, 4, 1, 4, 32], strides = [1, 1, 1, 1, 1]} : vector<1x4x2x4x32xbf16> to vector<1x4x1x4x32xbf16>
    %4 = vector.shape_cast %3 : vector<1x4x1x4x32xbf16> to vector<4x4x32xbf16>
    %5 = arith.maximumf %2, %4 : vector<4x4x32xbf16>
    %6 = vector.extract_strided_slice %5 {offsets = [0, 0, 0], sizes = [4, 4, 16], strides = [1, 1, 1]} : vector<4x4x32xbf16> to vector<4x4x16xbf16>
    %7 = vector.extract_strided_slice %5 {offsets = [0, 0, 16], sizes = [4, 4, 16], strides = [1, 1, 1]} : vector<4x4x32xbf16> to vector<4x4x16xbf16>
    %8 = arith.maximumf %6, %7 : vector<4x4x16xbf16>
    %cst = arith.constant 0.000000e+00 : bf16
    %9 = vector.broadcast %cst : bf16 to vector<1x8x16xbf16>
    %c0_4 = arith.constant 0 : index
    %c0_5 = arith.constant 0 : index
    %c0_6 = arith.constant 0 : index
    %10 = vector.load %arg9[%c0_4, %c0_5, %c0_6] : memref<7x8x16xbf16, #tpu.memory_space<vmem>>, vector<1x8x16xbf16>
    tpu.vector_store %arg9[%c0_4, %c0_5, %c0_6], %9 {strides = array<i32>} : memref<7x8x16xbf16, #tpu.memory_space<vmem>>, vector<1x8x16xbf16>,
    %cst_7 = arith.constant 0.000000e+00 : bf16
    %11 = vector.broadcast %cst_7 : bf16 to vector<2x8x16xbf16>
    %c5 = arith.constant 5 : index
    %c0_8 = arith.constant 0 : index
    %c0_9 = arith.constant 0 : index
    %12 = vector.load %arg9[%c5, %c0_8, %c0_9] : memref<7x8x16xbf16, #tpu.memory_space<vmem>>, vector<2x8x16xbf16>
    tpu.vector_store %arg9[%c5, %c0_8, %c0_9], %11 {strides = array<i32>} : memref<7x8x16xbf16, #tpu.memory_space<vmem>>, vector<2x8x16xbf16>,
    %cst_10 = arith.constant 0.000000e+00 : bf16
    %13 = vector.broadcast %cst_10 : bf16 to vector<4x1x16xbf16>
    %c1 = arith.constant 1 : index
    %c0_11 = arith.constant 0 : index
    %c0_12 = arith.constant 0 : index
    %14 = vector.load %arg9[%c1, %c0_11, %c0_12] : memref<7x8x16xbf16, #tpu.memory_space<vmem>>, vector<4x1x16xbf16>
    tpu.vector_store %arg9[%c1, %c0_11, %c0_12], %13 {strides = array<i32>} : memref<7x8x16xbf16, #tpu.memory_space<vmem>>, vector<4x1x16xbf16>,
    %cst_13 = arith.constant 0.000000e+00 : bf16
    %15 = vector.broadcast %cst_13 : bf16 to vector<4x3x16xbf16>
    %c1_14 = arith.constant 1 : index
    %c5_15 = arith.constant 5 : index
    %c0_16 = arith.constant 0 : index
    %16 = vector.load %arg9[%c1_14, %c5_15, %c0_16] : memref<7x8x16xbf16, #tpu.memory_space<vmem>>, vector<4x3x16xbf16>
    tpu.vector_store %arg9[%c1_14, %c5_15, %c0_16], %15 {strides = array<i32>} : memref<7x8x16xbf16, #tpu.memory_space<vmem>>, vector<4x3x16xbf16>,
    %c1_17 = arith.constant 1 : index
    %c1_18 = arith.constant 1 : index
    %c0_19 = arith.constant 0 : index
    %17 = vector.load %arg9[%c1_17, %c1_18, %c0_19] : memref<7x8x16xbf16, #tpu.memory_space<vmem>>, vector<4x4x16xbf16>
    tpu.vector_store %arg9[%c1_17, %c1_18, %c0_19], %8 {strides = array<i32>} : memref<7x8x16xbf16, #tpu.memory_space<vmem>>, vector<4x4x16xbf16>,
    %c0_20 = arith.constant 0 : index
    %c0_21 = arith.constant 0 : index
    %c0_22 = arith.constant 0 : index
    %18 = vector.load %arg9[%c0_20, %c0_21, %c0_22] : memref<7x8x16xbf16, #tpu.memory_space<vmem>>, vector<7x8x16xbf16>
    %19 = vector.shape_cast %18 : vector<7x8x16xbf16> to vector<56x16xbf16>
    %20 = vector.extract_strided_slice %19 {offsets = [0, 0], sizes = [32, 16], strides = [1, 1]} : vector<56x16xbf16> to vector<32x16xbf16>
    %21 = vector.extract_strided_slice %19 {offsets = [1, 0], sizes = [32, 16], strides = [1, 1]} : vector<56x16xbf16> to vector<32x16xbf16>
    %22 = vector.extract_strided_slice %19 {offsets = [2, 0], sizes = [32, 16], strides = [1, 1]} : vector<56x16xbf16> to vector<32x16xbf16>
    %23 = vector.extract_strided_slice %19 {offsets = [8, 0], sizes = [32, 16], strides = [1, 1]} : vector<56x16xbf16> to vector<32x16xbf16>
    %24 = vector.extract_strided_slice %19 {offsets = [9, 0], sizes = [32, 16], strides = [1, 1]} : vector<56x16xbf16> to vector<32x16xbf16>
    %25 = vector.extract_strided_slice %19 {offsets = [10, 0], sizes = [32, 16], strides = [1, 1]} : vector<56x16xbf16> to vector<32x16xbf16>
    %26 = vector.extract_strided_slice %19 {offsets = [16, 0], sizes = [32, 16], strides = [1, 1]} : vector<56x16xbf16> to vector<32x16xbf16>
    %27 = vector.extract_strided_slice %19 {offsets = [17, 0], sizes = [32, 16], strides = [1, 1]} : vector<56x16xbf16> to vector<32x16xbf16>
    %28 = vector.extract_strided_slice %19 {offsets = [18, 0], sizes = [32, 16], strides = [1, 1]} : vector<56x16xbf16> to vector<32x16xbf16>
    %29 = tpu.concatenate %20, %21, %22, %23, %24, %25, %26, %27, %28 in 1 : vector<32x16xbf16>, vector<32x16xbf16>, vector<32x16xbf16>, vector<32x16xbf16>, vector<32x16xbf16>, vector<32x16xbf16>, vector<32x16xbf16>, vector<32x16xbf16>, vector<32x16xbf16> -> vector<32x144xbf16>
    %c0_23 = arith.constant 0 : index
    %c0_24 = arith.constant 0 : index
    %30 = vector.load %arg2[%c0_23, %c0_24] : memref<144x32xbf16, #tpu.memory_space<vmem>>, vector<144x32xbf16>
    %cst_25 = arith.constant dense<0.000000e+00> : vector<32x32xf32>
    %31 = tpu.matmul %29, %30, %cst_25 {dimension_numbers = #tpu.dot_dimension_numbers<[1], [0], [0], [1], [0, 0, 1, 1], [], []>} : vector<32x144xbf16>, vector<144x32xbf16>, vector<32x32xf32> -> vector<32x32xf32>
    %c0_26 = arith.constant 0 : index
    %c0_27 = arith.constant 0 : index
    %32 = vector.load %arg3[%c0_26, %c0_27] : memref<1x32xf32, #tpu.memory_space<vmem>>, vector<1x32xf32>
    %33 = vector.broadcast %32 : vector<1x32xf32> to vector<32x32xf32>
    %34 = arith.mulf %31, %33 : vector<32x32xf32>
    %c0_28 = arith.constant 0 : index
    %c0_29 = arith.constant 0 : index
    %35 = vector.load %arg4[%c0_28, %c0_29] : memref<1x32xf32, #tpu.memory_space<vmem>>, vector<1x32xf32>
    %36 = vector.broadcast %35 : vector<1x32xf32> to vector<32x32xf32>
    %37 = arith.addf %34, %36 : vector<32x32xf32>
    %cst_30 = arith.constant 0.000000e+00 : f32
    %38 = vector.broadcast %cst_30 : f32 to vector<32x32xf32>
    %39 = arith.cmpf oge, %37, %38 : vector<32x32xf32>
    %cst_31 = arith.constant 0.00999999977 : f32
    %40 = vector.broadcast %cst_31 : f32 to vector<32x32xf32>
    %41 = arith.mulf %40, %37 : vector<32x32xf32>
    %42 = arith.select %39, %37, %41 : vector<32x32xi1>, vector<32x32xf32>
    %43 = vector.shape_cast %42 : vector<32x32xf32> to vector<4x8x32xf32>
    %44 = vector.extract_strided_slice %43 {offsets = [0, 0, 0], sizes = [4, 4, 32], strides = [1, 1, 1]} : vector<4x8x32xf32> to vector<4x4x32xf32>
    %cst_32 = arith.constant 0.000000e+00 : bf16
    %45 = vector.broadcast %cst_32 : bf16 to vector<1x8x32xbf16>
    %c0_33 = arith.constant 0 : index
    %c0_34 = arith.constant 0 : index
    %c0_35 = arith.constant 0 : index
    %46 = vector.load %arg10[%c0_33, %c0_34, %c0_35] : memref<7x8x32xbf16, #tpu.memory_space<vmem>>, vector<1x8x32xbf16>
    tpu.vector_store %arg10[%c0_33, %c0_34, %c0_35], %45 {strides = array<i32>} : memref<7x8x32xbf16, #tpu.memory_space<vmem>>, vector<1x8x32xbf16>,
    %cst_36 = arith.constant 0.000000e+00 : bf16
    %47 = vector.broadcast %cst_36 : bf16 to vector<2x8x32xbf16>
    %c5_37 = arith.constant 5 : index
    %c0_38 = arith.constant 0 : index
    %c0_39 = arith.constant 0 : index
    %48 = vector.load %arg10[%c5_37, %c0_38, %c0_39] : memref<7x8x32xbf16, #tpu.memory_space<vmem>>, vector<2x8x32xbf16>
    tpu.vector_store %arg10[%c5_37, %c0_38, %c0_39], %47 {strides = array<i32>} : memref<7x8x32xbf16, #tpu.memory_space<vmem>>, vector<2x8x32xbf16>,
    %cst_40 = arith.constant 0.000000e+00 : bf16
    %49 = vector.broadcast %cst_40 : bf16 to vector<4x1x32xbf16>
    %c1_41 = arith.constant 1 : index
    %c0_42 = arith.constant 0 : index
    %c0_43 = arith.constant 0 : index
    %50 = vector.load %arg10[%c1_41, %c0_42, %c0_43] : memref<7x8x32xbf16, #tpu.memory_space<vmem>>, vector<4x1x32xbf16>
    tpu.vector_store %arg10[%c1_41, %c0_42, %c0_43], %49 {strides = array<i32>} : memref<7x8x32xbf16, #tpu.memory_space<vmem>>, vector<4x1x32xbf16>,
    %cst_44 = arith.constant 0.000000e+00 : bf16
    %51 = vector.broadcast %cst_44 : bf16 to vector<4x3x32xbf16>
    %c1_45 = arith.constant 1 : index
    %c5_46 = arith.constant 5 : index
    %c0_47 = arith.constant 0 : index
    %52 = vector.load %arg10[%c1_45, %c5_46, %c0_47] : memref<7x8x32xbf16, #tpu.memory_space<vmem>>, vector<4x3x32xbf16>
    tpu.vector_store %arg10[%c1_45, %c5_46, %c0_47], %51 {strides = array<i32>} : memref<7x8x32xbf16, #tpu.memory_space<vmem>>, vector<4x3x32xbf16>,
    %53 = arith.truncf %44 : vector<4x4x32xf32> to vector<4x4x32xbf16>
    %c1_48 = arith.constant 1 : index
    %c1_49 = arith.constant 1 : index
    %c0_50 = arith.constant 0 : index
    %54 = vector.load %arg10[%c1_48, %c1_49, %c0_50] : memref<7x8x32xbf16, #tpu.memory_space<vmem>>, vector<4x4x32xbf16>
    tpu.vector_store %arg10[%c1_48, %c1_49, %c0_50], %53 {strides = array<i32>} : memref<7x8x32xbf16, #tpu.memory_space<vmem>>, vector<4x4x32xbf16>,
    %c0_51 = arith.constant 0 : index
    %c0_52 = arith.constant 0 : index
    %c0_53 = arith.constant 0 : index
    %55 = vector.load %arg10[%c0_51, %c0_52, %c0_53] : memref<7x8x32xbf16, #tpu.memory_space<vmem>>, vector<7x8x32xbf16>
    %56 = vector.shape_cast %55 : vector<7x8x32xbf16> to vector<56x32xbf16>
    %57 = vector.extract_strided_slice %56 {offsets = [0, 0], sizes = [32, 32], strides = [1, 1]} : vector<56x32xbf16> to vector<32x32xbf16>
    %58 = vector.extract_strided_slice %56 {offsets = [1, 0], sizes = [32, 32], strides = [1, 1]} : vector<56x32xbf16> to vector<32x32xbf16>
    %59 = vector.extract_strided_slice %56 {offsets = [2, 0], sizes = [32, 32], strides = [1, 1]} : vector<56x32xbf16> to vector<32x32xbf16>
    %60 = vector.extract_strided_slice %56 {offsets = [8, 0], sizes = [32, 32], strides = [1, 1]} : vector<56x32xbf16> to vector<32x32xbf16>
    %61 = vector.extract_strided_slice %56 {offsets = [9, 0], sizes = [32, 32], strides = [1, 1]} : vector<56x32xbf16> to vector<32x32xbf16>
    %62 = vector.extract_strided_slice %56 {offsets = [10, 0], sizes = [32, 32], strides = [1, 1]} : vector<56x32xbf16> to vector<32x32xbf16>
    %63 = vector.extract_strided_slice %56 {offsets = [16, 0], sizes = [32, 32], strides = [1, 1]} : vector<56x32xbf16> to vector<32x32xbf16>
    %64 = vector.extract_strided_slice %56 {offsets = [17, 0], sizes = [32, 32], strides = [1, 1]} : vector<56x32xbf16> to vector<32x32xbf16>
    %65 = vector.extract_strided_slice %56 {offsets = [18, 0], sizes = [32, 32], strides = [1, 1]} : vector<56x32xbf16> to vector<32x32xbf16>
    %66 = tpu.concatenate %57, %58, %59, %60, %61, %62, %63, %64, %65 in 1 : vector<32x32xbf16>, vector<32x32xbf16>, vector<32x32xbf16>, vector<32x32xbf16>, vector<32x32xbf16>, vector<32x32xbf16>, vector<32x32xbf16>, vector<32x32xbf16>, vector<32x32xbf16> -> vector<32x288xbf16>
    %c0_54 = arith.constant 0 : index
    %c0_55 = arith.constant 0 : index
    %67 = vector.load %arg5[%c0_54, %c0_55] : memref<288x32xbf16, #tpu.memory_space<vmem>>, vector<288x32xbf16>
    %cst_56 = arith.constant dense<0.000000e+00> : vector<32x32xf32>
    %68 = tpu.matmul %66, %67, %cst_56 {dimension_numbers = #tpu.dot_dimension_numbers<[1], [0], [0], [1], [0, 0, 1, 1], [], []>} : vector<32x288xbf16>, vector<288x32xbf16>, vector<32x32xf32> -> vector<32x32xf32>
    %c0_57 = arith.constant 0 : index
    %c0_58 = arith.constant 0 : index
    %69 = vector.load %arg6[%c0_57, %c0_58] : memref<1x32xf32, #tpu.memory_space<vmem>>, vector<1x32xf32>
    %70 = vector.broadcast %69 : vector<1x32xf32> to vector<32x32xf32>
    %71 = arith.mulf %68, %70 : vector<32x32xf32>
    %c0_59 = arith.constant 0 : index
    %c0_60 = arith.constant 0 : index
    %72 = vector.load %arg7[%c0_59, %c0_60] : memref<1x32xf32, #tpu.memory_space<vmem>>, vector<1x32xf32>
    %73 = vector.broadcast %72 : vector<1x32xf32> to vector<32x32xf32>
    %74 = arith.addf %71, %73 : vector<32x32xf32>
    %cst_61 = arith.constant 0.000000e+00 : f32
    %75 = vector.broadcast %cst_61 : f32 to vector<32x32xf32>
    %76 = arith.cmpf oge, %74, %75 : vector<32x32xf32>
    %cst_62 = arith.constant 0.00999999977 : f32
    %77 = vector.broadcast %cst_62 : f32 to vector<32x32xf32>
    %78 = arith.mulf %77, %74 : vector<32x32xf32>
    %79 = arith.select %76, %74, %78 : vector<32x32xi1>, vector<32x32xf32>
    %80 = vector.shape_cast %79 : vector<32x32xf32> to vector<4x8x32xf32>
    %81 = vector.extract_strided_slice %80 {offsets = [0, 0, 0], sizes = [4, 4, 32], strides = [1, 1, 1]} : vector<4x8x32xf32> to vector<4x4x32xf32>
    %82 = arith.truncf %81 : vector<4x4x32xf32> to vector<4x4x32xbf16>
    %c0_63 = arith.constant 0 : index
    %c0_64 = arith.constant 0 : index
    %c0_65 = arith.constant 0 : index
    %c0_66 = arith.constant 0 : index
    %83 = vector.load %arg8[%c0_63, %c0_64, %c0_65, %c0_66] : memref<1x4x4x32xbf16, #tpu.memory_space<vmem>>, vector<1x4x4x32xbf16>
    %84 = vector.shape_cast %83 : vector<1x4x4x32xbf16> to vector<4x4x32xbf16>
    %85 = vector.shape_cast %82 : vector<4x4x32xbf16> to vector<1x4x4x32xbf16>
    tpu.vector_store %arg8[%c0_63, %c0_64, %c0_65, %c0_66], %85 {strides = array<i32>} : memref<1x4x4x32xbf16, #tpu.memory_space<vmem>>, vector<1x4x4x32xbf16>,
    return
  }
  func.func @transform_0(%arg0: i32) -> (i32, i32, i32, i32, i32) {
    %c0_i32 = arith.constant 0 : i32
    %c0_i32_0 = arith.constant 0 : i32
    %c0_i32_1 = arith.constant 0 : i32
    %c0_i32_2 = arith.constant 0 : i32
    %c0_i32_3 = arith.constant 0 : i32
    return %arg0, %c0_i32, %c0_i32_0, %c0_i32_1, %c0_i32_2 : i32, i32, i32, i32, i32
  }
  func.func @transform_1(%arg0: i32) -> (i32, i32) {
    %c0_i32 = arith.constant 0 : i32
    %c0_i32_0 = arith.constant 0 : i32
    %c0_i32_1 = arith.constant 0 : i32
    return %c0_i32, %c0_i32_0 : i32, i32
  }
  func.func @transform_2(%arg0: i32) -> (i32, i32) {
    %c0_i32 = arith.constant 0 : i32
    %c0_i32_0 = arith.constant 0 : i32
    %c0_i32_1 = arith.constant 0 : i32
    return %c0_i32, %c0_i32_0 : i32, i32
  }
  func.func @transform_3(%arg0: i32) -> (i32, i32) {
    %c0_i32 = arith.constant 0 : i32
    %c0_i32_0 = arith.constant 0 : i32
    %c0_i32_1 = arith.constant 0 : i32
    return %c0_i32, %c0_i32_0 : i32, i32
  }
  func.func @transform_4(%arg0: i32) -> (i32, i32) {
    %c0_i32 = arith.constant 0 : i32
    %c0_i32_0 = arith.constant 0 : i32
    %c0_i32_1 = arith.constant 0 : i32
    return %c0_i32, %c0_i32_0 : i32, i32
  }
  func.func @transform_5(%arg0: i32) -> (i32, i32) {
    %c0_i32 = arith.constant 0 : i32
    %c0_i32_0 = arith.constant 0 : i32
    %c0_i32_1 = arith.constant 0 : i32
    return %c0_i32, %c0_i32_0 : i32, i32
  }
  func.func @transform_6(%arg0: i32) -> (i32, i32) {
    %c0_i32 = arith.constant 0 : i32
    %c0_i32_0 = arith.constant 0 : i32
    %c0_i32_1 = arith.constant 0 : i32
    return %c0_i32, %c0_i32_0 : i32, i32
  }
  func.func @transform_7(%arg0: i32) -> (i32, i32, i32, i32) {
    %c0_i32 = arith.constant 0 : i32
    %c0_i32_0 = arith.constant 0 : i32
    %c0_i32_1 = arith.constant 0 : i32
    %c0_i32_2 = arith.constant 0 : i32
    return %arg0, %c0_i32, %c0_i32_0, %c0_i32_1 : i32, i32, i32, i32
  }
}

module attributes {stable_mosaic.version = 11 : i64} {
  func.func @_block_kernel(%arg0: i32, %arg1: memref<1x2x2x2x64xbf16, #tpu.memory_space<vmem>>, %arg2: memref<288x32xbf16, #tpu.memory_space<vmem>>, %arg3: memref<1x32xf32, #tpu.memory_space<vmem>>, %arg4: memref<1x32xf32, #tpu.memory_space<vmem>>, %arg5: memref<288x32xbf16, #tpu.memory_space<vmem>>, %arg6: memref<1x32xf32, #tpu.memory_space<vmem>>, %arg7: memref<1x32xf32, #tpu.memory_space<vmem>>, %arg8: memref<1x2x2x32xbf16, #tpu.memory_space<vmem>>, %arg9: memref<5x8x32xbf16, #tpu.memory_space<vmem>>, %arg10: memref<5x8x32xbf16, #tpu.memory_space<vmem>>) attributes {dimension_semantics = [#tpu.dimension_semantics<parallel>], iteration_bounds = array<i64: 2>, scalar_prefetch = 0 : i64, scratch_operands = 2 : i64, tpu.core_type = #tpu.core_type<tc>, window_params = [{transform_indices = @transform_0, window_bounds = array<i64: 1, 2, 2, 2, 64>}, {pipeline_mode = #tpu.pipeline_mode<synchronous>, transform_indices = @transform_1, window_bounds = array<i64: 288, 32>}, {pipeline_mode = #tpu.pipeline_mode<synchronous>, transform_indices = @transform_2, window_bounds = array<i64: 1, 32>}, {pipeline_mode = #tpu.pipeline_mode<synchronous>, transform_indices = @transform_3, window_bounds = array<i64: 1, 32>}, {pipeline_mode = #tpu.pipeline_mode<synchronous>, transform_indices = @transform_4, window_bounds = array<i64: 288, 32>}, {pipeline_mode = #tpu.pipeline_mode<synchronous>, transform_indices = @transform_5, window_bounds = array<i64: 1, 32>}, {pipeline_mode = #tpu.pipeline_mode<synchronous>, transform_indices = @transform_6, window_bounds = array<i64: 1, 32>}, {transform_indices = @transform_7, window_bounds = array<i64: 1, 2, 2, 32>}]} {
    %c0 = arith.constant 0 : index
    %c0_0 = arith.constant 0 : index
    %c0_1 = arith.constant 0 : index
    %c0_2 = arith.constant 0 : index
    %c0_3 = arith.constant 0 : index
    %0 = vector.load %arg1[%c0, %c0_0, %c0_1, %c0_2, %c0_3] : memref<1x2x2x2x64xbf16, #tpu.memory_space<vmem>>, vector<1x2x2x2x64xbf16>
    %1 = vector.extract_strided_slice %0 {offsets = [0, 0, 0, 0, 0], sizes = [1, 2, 1, 2, 64], strides = [1, 1, 1, 1, 1]} : vector<1x2x2x2x64xbf16> to vector<1x2x1x2x64xbf16>
    %2 = vector.shape_cast %1 : vector<1x2x1x2x64xbf16> to vector<2x2x64xbf16>
    %3 = vector.extract_strided_slice %0 {offsets = [0, 0, 1, 0, 0], sizes = [1, 2, 1, 2, 64], strides = [1, 1, 1, 1, 1]} : vector<1x2x2x2x64xbf16> to vector<1x2x1x2x64xbf16>
    %4 = vector.shape_cast %3 : vector<1x2x1x2x64xbf16> to vector<2x2x64xbf16>
    %5 = arith.maximumf %2, %4 : vector<2x2x64xbf16>
    %6 = vector.extract_strided_slice %5 {offsets = [0, 0, 0], sizes = [2, 2, 32], strides = [1, 1, 1]} : vector<2x2x64xbf16> to vector<2x2x32xbf16>
    %7 = vector.extract_strided_slice %5 {offsets = [0, 0, 32], sizes = [2, 2, 32], strides = [1, 1, 1]} : vector<2x2x64xbf16> to vector<2x2x32xbf16>
    %8 = arith.maximumf %6, %7 : vector<2x2x32xbf16>
    %cst = arith.constant 0.000000e+00 : bf16
    %9 = vector.broadcast %cst : bf16 to vector<1x8x32xbf16>
    %c0_4 = arith.constant 0 : index
    %c0_5 = arith.constant 0 : index
    %c0_6 = arith.constant 0 : index
    %10 = vector.load %arg9[%c0_4, %c0_5, %c0_6] : memref<5x8x32xbf16, #tpu.memory_space<vmem>>, vector<1x8x32xbf16>
    tpu.vector_store %arg9[%c0_4, %c0_5, %c0_6], %9 {strides = array<i32>} : memref<5x8x32xbf16, #tpu.memory_space<vmem>>, vector<1x8x32xbf16>,
    %cst_7 = arith.constant 0.000000e+00 : bf16
    %11 = vector.broadcast %cst_7 : bf16 to vector<2x8x32xbf16>
    %c3 = arith.constant 3 : index
    %c0_8 = arith.constant 0 : index
    %c0_9 = arith.constant 0 : index
    %12 = vector.load %arg9[%c3, %c0_8, %c0_9] : memref<5x8x32xbf16, #tpu.memory_space<vmem>>, vector<2x8x32xbf16>
    tpu.vector_store %arg9[%c3, %c0_8, %c0_9], %11 {strides = array<i32>} : memref<5x8x32xbf16, #tpu.memory_space<vmem>>, vector<2x8x32xbf16>,
    %cst_10 = arith.constant 0.000000e+00 : bf16
    %13 = vector.broadcast %cst_10 : bf16 to vector<2x1x32xbf16>
    %c1 = arith.constant 1 : index
    %c0_11 = arith.constant 0 : index
    %c0_12 = arith.constant 0 : index
    %14 = vector.load %arg9[%c1, %c0_11, %c0_12] : memref<5x8x32xbf16, #tpu.memory_space<vmem>>, vector<2x1x32xbf16>
    tpu.vector_store %arg9[%c1, %c0_11, %c0_12], %13 {strides = array<i32>} : memref<5x8x32xbf16, #tpu.memory_space<vmem>>, vector<2x1x32xbf16>,
    %cst_13 = arith.constant 0.000000e+00 : bf16
    %15 = vector.broadcast %cst_13 : bf16 to vector<2x5x32xbf16>
    %c1_14 = arith.constant 1 : index
    %c3_15 = arith.constant 3 : index
    %c0_16 = arith.constant 0 : index
    %16 = vector.load %arg9[%c1_14, %c3_15, %c0_16] : memref<5x8x32xbf16, #tpu.memory_space<vmem>>, vector<2x5x32xbf16>
    tpu.vector_store %arg9[%c1_14, %c3_15, %c0_16], %15 {strides = array<i32>} : memref<5x8x32xbf16, #tpu.memory_space<vmem>>, vector<2x5x32xbf16>,
    %c1_17 = arith.constant 1 : index
    %c1_18 = arith.constant 1 : index
    %c0_19 = arith.constant 0 : index
    %17 = vector.load %arg9[%c1_17, %c1_18, %c0_19] : memref<5x8x32xbf16, #tpu.memory_space<vmem>>, vector<2x2x32xbf16>
    tpu.vector_store %arg9[%c1_17, %c1_18, %c0_19], %8 {strides = array<i32>} : memref<5x8x32xbf16, #tpu.memory_space<vmem>>, vector<2x2x32xbf16>,
    %c0_20 = arith.constant 0 : index
    %c0_21 = arith.constant 0 : index
    %c0_22 = arith.constant 0 : index
    %18 = vector.load %arg9[%c0_20, %c0_21, %c0_22] : memref<5x8x32xbf16, #tpu.memory_space<vmem>>, vector<5x8x32xbf16>
    %19 = vector.shape_cast %18 : vector<5x8x32xbf16> to vector<40x32xbf16>
    %20 = vector.extract_strided_slice %19 {offsets = [0, 0], sizes = [16, 32], strides = [1, 1]} : vector<40x32xbf16> to vector<16x32xbf16>
    %21 = vector.extract_strided_slice %19 {offsets = [1, 0], sizes = [16, 32], strides = [1, 1]} : vector<40x32xbf16> to vector<16x32xbf16>
    %22 = vector.extract_strided_slice %19 {offsets = [2, 0], sizes = [16, 32], strides = [1, 1]} : vector<40x32xbf16> to vector<16x32xbf16>
    %23 = vector.extract_strided_slice %19 {offsets = [8, 0], sizes = [16, 32], strides = [1, 1]} : vector<40x32xbf16> to vector<16x32xbf16>
    %24 = vector.extract_strided_slice %19 {offsets = [9, 0], sizes = [16, 32], strides = [1, 1]} : vector<40x32xbf16> to vector<16x32xbf16>
    %25 = vector.extract_strided_slice %19 {offsets = [10, 0], sizes = [16, 32], strides = [1, 1]} : vector<40x32xbf16> to vector<16x32xbf16>
    %26 = vector.extract_strided_slice %19 {offsets = [16, 0], sizes = [16, 32], strides = [1, 1]} : vector<40x32xbf16> to vector<16x32xbf16>
    %27 = vector.extract_strided_slice %19 {offsets = [17, 0], sizes = [16, 32], strides = [1, 1]} : vector<40x32xbf16> to vector<16x32xbf16>
    %28 = vector.extract_strided_slice %19 {offsets = [18, 0], sizes = [16, 32], strides = [1, 1]} : vector<40x32xbf16> to vector<16x32xbf16>
    %29 = tpu.concatenate %20, %21, %22, %23, %24, %25, %26, %27, %28 in 1 : vector<16x32xbf16>, vector<16x32xbf16>, vector<16x32xbf16>, vector<16x32xbf16>, vector<16x32xbf16>, vector<16x32xbf16>, vector<16x32xbf16>, vector<16x32xbf16>, vector<16x32xbf16> -> vector<16x288xbf16>
    %c0_23 = arith.constant 0 : index
    %c0_24 = arith.constant 0 : index
    %30 = vector.load %arg2[%c0_23, %c0_24] : memref<288x32xbf16, #tpu.memory_space<vmem>>, vector<288x32xbf16>
    %cst_25 = arith.constant dense<0.000000e+00> : vector<16x32xf32>
    %31 = tpu.matmul %29, %30, %cst_25 {dimension_numbers = #tpu.dot_dimension_numbers<[1], [0], [0], [1], [0, 0, 1, 1], [], []>} : vector<16x288xbf16>, vector<288x32xbf16>, vector<16x32xf32> -> vector<16x32xf32>
    %c0_26 = arith.constant 0 : index
    %c0_27 = arith.constant 0 : index
    %32 = vector.load %arg3[%c0_26, %c0_27] : memref<1x32xf32, #tpu.memory_space<vmem>>, vector<1x32xf32>
    %33 = vector.broadcast %32 : vector<1x32xf32> to vector<16x32xf32>
    %34 = arith.mulf %31, %33 : vector<16x32xf32>
    %c0_28 = arith.constant 0 : index
    %c0_29 = arith.constant 0 : index
    %35 = vector.load %arg4[%c0_28, %c0_29] : memref<1x32xf32, #tpu.memory_space<vmem>>, vector<1x32xf32>
    %36 = vector.broadcast %35 : vector<1x32xf32> to vector<16x32xf32>
    %37 = arith.addf %34, %36 : vector<16x32xf32>
    %cst_30 = arith.constant 0.000000e+00 : f32
    %38 = vector.broadcast %cst_30 : f32 to vector<16x32xf32>
    %39 = arith.cmpf oge, %37, %38 : vector<16x32xf32>
    %cst_31 = arith.constant 0.00999999977 : f32
    %40 = vector.broadcast %cst_31 : f32 to vector<16x32xf32>
    %41 = arith.mulf %40, %37 : vector<16x32xf32>
    %42 = arith.select %39, %37, %41 : vector<16x32xi1>, vector<16x32xf32>
    %43 = vector.shape_cast %42 : vector<16x32xf32> to vector<2x8x32xf32>
    %44 = vector.extract_strided_slice %43 {offsets = [0, 0, 0], sizes = [2, 2, 32], strides = [1, 1, 1]} : vector<2x8x32xf32> to vector<2x2x32xf32>
    %cst_32 = arith.constant 0.000000e+00 : bf16
    %45 = vector.broadcast %cst_32 : bf16 to vector<1x8x32xbf16>
    %c0_33 = arith.constant 0 : index
    %c0_34 = arith.constant 0 : index
    %c0_35 = arith.constant 0 : index
    %46 = vector.load %arg10[%c0_33, %c0_34, %c0_35] : memref<5x8x32xbf16, #tpu.memory_space<vmem>>, vector<1x8x32xbf16>
    tpu.vector_store %arg10[%c0_33, %c0_34, %c0_35], %45 {strides = array<i32>} : memref<5x8x32xbf16, #tpu.memory_space<vmem>>, vector<1x8x32xbf16>,
    %cst_36 = arith.constant 0.000000e+00 : bf16
    %47 = vector.broadcast %cst_36 : bf16 to vector<2x8x32xbf16>
    %c3_37 = arith.constant 3 : index
    %c0_38 = arith.constant 0 : index
    %c0_39 = arith.constant 0 : index
    %48 = vector.load %arg10[%c3_37, %c0_38, %c0_39] : memref<5x8x32xbf16, #tpu.memory_space<vmem>>, vector<2x8x32xbf16>
    tpu.vector_store %arg10[%c3_37, %c0_38, %c0_39], %47 {strides = array<i32>} : memref<5x8x32xbf16, #tpu.memory_space<vmem>>, vector<2x8x32xbf16>,
    %cst_40 = arith.constant 0.000000e+00 : bf16
    %49 = vector.broadcast %cst_40 : bf16 to vector<2x1x32xbf16>
    %c1_41 = arith.constant 1 : index
    %c0_42 = arith.constant 0 : index
    %c0_43 = arith.constant 0 : index
    %50 = vector.load %arg10[%c1_41, %c0_42, %c0_43] : memref<5x8x32xbf16, #tpu.memory_space<vmem>>, vector<2x1x32xbf16>
    tpu.vector_store %arg10[%c1_41, %c0_42, %c0_43], %49 {strides = array<i32>} : memref<5x8x32xbf16, #tpu.memory_space<vmem>>, vector<2x1x32xbf16>,
    %cst_44 = arith.constant 0.000000e+00 : bf16
    %51 = vector.broadcast %cst_44 : bf16 to vector<2x5x32xbf16>
    %c1_45 = arith.constant 1 : index
    %c3_46 = arith.constant 3 : index
    %c0_47 = arith.constant 0 : index
    %52 = vector.load %arg10[%c1_45, %c3_46, %c0_47] : memref<5x8x32xbf16, #tpu.memory_space<vmem>>, vector<2x5x32xbf16>
    tpu.vector_store %arg10[%c1_45, %c3_46, %c0_47], %51 {strides = array<i32>} : memref<5x8x32xbf16, #tpu.memory_space<vmem>>, vector<2x5x32xbf16>,
    %53 = arith.truncf %44 : vector<2x2x32xf32> to vector<2x2x32xbf16>
    %c1_48 = arith.constant 1 : index
    %c1_49 = arith.constant 1 : index
    %c0_50 = arith.constant 0 : index
    %54 = vector.load %arg10[%c1_48, %c1_49, %c0_50] : memref<5x8x32xbf16, #tpu.memory_space<vmem>>, vector<2x2x32xbf16>
    tpu.vector_store %arg10[%c1_48, %c1_49, %c0_50], %53 {strides = array<i32>} : memref<5x8x32xbf16, #tpu.memory_space<vmem>>, vector<2x2x32xbf16>,
    %c0_51 = arith.constant 0 : index
    %c0_52 = arith.constant 0 : index
    %c0_53 = arith.constant 0 : index
    %55 = vector.load %arg10[%c0_51, %c0_52, %c0_53] : memref<5x8x32xbf16, #tpu.memory_space<vmem>>, vector<5x8x32xbf16>
    %56 = vector.shape_cast %55 : vector<5x8x32xbf16> to vector<40x32xbf16>
    %57 = vector.extract_strided_slice %56 {offsets = [0, 0], sizes = [16, 32], strides = [1, 1]} : vector<40x32xbf16> to vector<16x32xbf16>
    %58 = vector.extract_strided_slice %56 {offsets = [1, 0], sizes = [16, 32], strides = [1, 1]} : vector<40x32xbf16> to vector<16x32xbf16>
    %59 = vector.extract_strided_slice %56 {offsets = [2, 0], sizes = [16, 32], strides = [1, 1]} : vector<40x32xbf16> to vector<16x32xbf16>
    %60 = vector.extract_strided_slice %56 {offsets = [8, 0], sizes = [16, 32], strides = [1, 1]} : vector<40x32xbf16> to vector<16x32xbf16>
    %61 = vector.extract_strided_slice %56 {offsets = [9, 0], sizes = [16, 32], strides = [1, 1]} : vector<40x32xbf16> to vector<16x32xbf16>
    %62 = vector.extract_strided_slice %56 {offsets = [10, 0], sizes = [16, 32], strides = [1, 1]} : vector<40x32xbf16> to vector<16x32xbf16>
    %63 = vector.extract_strided_slice %56 {offsets = [16, 0], sizes = [16, 32], strides = [1, 1]} : vector<40x32xbf16> to vector<16x32xbf16>
    %64 = vector.extract_strided_slice %56 {offsets = [17, 0], sizes = [16, 32], strides = [1, 1]} : vector<40x32xbf16> to vector<16x32xbf16>
    %65 = vector.extract_strided_slice %56 {offsets = [18, 0], sizes = [16, 32], strides = [1, 1]} : vector<40x32xbf16> to vector<16x32xbf16>
    %66 = tpu.concatenate %57, %58, %59, %60, %61, %62, %63, %64, %65 in 1 : vector<16x32xbf16>, vector<16x32xbf16>, vector<16x32xbf16>, vector<16x32xbf16>, vector<16x32xbf16>, vector<16x32xbf16>, vector<16x32xbf16>, vector<16x32xbf16>, vector<16x32xbf16> -> vector<16x288xbf16>
    %c0_54 = arith.constant 0 : index
    %c0_55 = arith.constant 0 : index
    %67 = vector.load %arg5[%c0_54, %c0_55] : memref<288x32xbf16, #tpu.memory_space<vmem>>, vector<288x32xbf16>
    %cst_56 = arith.constant dense<0.000000e+00> : vector<16x32xf32>
    %68 = tpu.matmul %66, %67, %cst_56 {dimension_numbers = #tpu.dot_dimension_numbers<[1], [0], [0], [1], [0, 0, 1, 1], [], []>} : vector<16x288xbf16>, vector<288x32xbf16>, vector<16x32xf32> -> vector<16x32xf32>
    %c0_57 = arith.constant 0 : index
    %c0_58 = arith.constant 0 : index
    %69 = vector.load %arg6[%c0_57, %c0_58] : memref<1x32xf32, #tpu.memory_space<vmem>>, vector<1x32xf32>
    %70 = vector.broadcast %69 : vector<1x32xf32> to vector<16x32xf32>
    %71 = arith.mulf %68, %70 : vector<16x32xf32>
    %c0_59 = arith.constant 0 : index
    %c0_60 = arith.constant 0 : index
    %72 = vector.load %arg7[%c0_59, %c0_60] : memref<1x32xf32, #tpu.memory_space<vmem>>, vector<1x32xf32>
    %73 = vector.broadcast %72 : vector<1x32xf32> to vector<16x32xf32>
    %74 = arith.addf %71, %73 : vector<16x32xf32>
    %cst_61 = arith.constant 0.000000e+00 : f32
    %75 = vector.broadcast %cst_61 : f32 to vector<16x32xf32>
    %76 = arith.cmpf oge, %74, %75 : vector<16x32xf32>
    %cst_62 = arith.constant 0.00999999977 : f32
    %77 = vector.broadcast %cst_62 : f32 to vector<16x32xf32>
    %78 = arith.mulf %77, %74 : vector<16x32xf32>
    %79 = arith.select %76, %74, %78 : vector<16x32xi1>, vector<16x32xf32>
    %80 = vector.shape_cast %79 : vector<16x32xf32> to vector<2x8x32xf32>
    %81 = vector.extract_strided_slice %80 {offsets = [0, 0, 0], sizes = [2, 2, 32], strides = [1, 1, 1]} : vector<2x8x32xf32> to vector<2x2x32xf32>
    %82 = arith.truncf %81 : vector<2x2x32xf32> to vector<2x2x32xbf16>
    %c0_63 = arith.constant 0 : index
    %c0_64 = arith.constant 0 : index
    %c0_65 = arith.constant 0 : index
    %c0_66 = arith.constant 0 : index
    %83 = vector.load %arg8[%c0_63, %c0_64, %c0_65, %c0_66] : memref<1x2x2x32xbf16, #tpu.memory_space<vmem>>, vector<1x2x2x32xbf16>
    %84 = vector.shape_cast %83 : vector<1x2x2x32xbf16> to vector<2x2x32xbf16>
    %85 = vector.shape_cast %82 : vector<2x2x32xbf16> to vector<1x2x2x32xbf16>
    tpu.vector_store %arg8[%c0_63, %c0_64, %c0_65, %c0_66], %85 {strides = array<i32>} : memref<1x2x2x32xbf16, #tpu.memory_space<vmem>>, vector<1x2x2x32xbf16>,
    return
  }
  func.func @transform_0(%arg0: i32) -> (i32, i32, i32, i32, i32) {
    %c0_i32 = arith.constant 0 : i32
    %c0_i32_0 = arith.constant 0 : i32
    %c0_i32_1 = arith.constant 0 : i32
    %c0_i32_2 = arith.constant 0 : i32
    %c0_i32_3 = arith.constant 0 : i32
    return %arg0, %c0_i32, %c0_i32_0, %c0_i32_1, %c0_i32_2 : i32, i32, i32, i32, i32
  }
  func.func @transform_1(%arg0: i32) -> (i32, i32) {
    %c0_i32 = arith.constant 0 : i32
    %c0_i32_0 = arith.constant 0 : i32
    %c0_i32_1 = arith.constant 0 : i32
    return %c0_i32, %c0_i32_0 : i32, i32
  }
  func.func @transform_2(%arg0: i32) -> (i32, i32) {
    %c0_i32 = arith.constant 0 : i32
    %c0_i32_0 = arith.constant 0 : i32
    %c0_i32_1 = arith.constant 0 : i32
    return %c0_i32, %c0_i32_0 : i32, i32
  }
  func.func @transform_3(%arg0: i32) -> (i32, i32) {
    %c0_i32 = arith.constant 0 : i32
    %c0_i32_0 = arith.constant 0 : i32
    %c0_i32_1 = arith.constant 0 : i32
    return %c0_i32, %c0_i32_0 : i32, i32
  }
  func.func @transform_4(%arg0: i32) -> (i32, i32) {
    %c0_i32 = arith.constant 0 : i32
    %c0_i32_0 = arith.constant 0 : i32
    %c0_i32_1 = arith.constant 0 : i32
    return %c0_i32, %c0_i32_0 : i32, i32
  }
  func.func @transform_5(%arg0: i32) -> (i32, i32) {
    %c0_i32 = arith.constant 0 : i32
    %c0_i32_0 = arith.constant 0 : i32
    %c0_i32_1 = arith.constant 0 : i32
    return %c0_i32, %c0_i32_0 : i32, i32
  }
  func.func @transform_6(%arg0: i32) -> (i32, i32) {
    %c0_i32 = arith.constant 0 : i32
    %c0_i32_0 = arith.constant 0 : i32
    %c0_i32_1 = arith.constant 0 : i32
    return %c0_i32, %c0_i32_0 : i32, i32
  }
  func.func @transform_7(%arg0: i32) -> (i32, i32, i32, i32) {
    %c0_i32 = arith.constant 0 : i32
    %c0_i32_0 = arith.constant 0 : i32
    %c0_i32_1 = arith.constant 0 : i32
    %c0_i32_2 = arith.constant 0 : i32
    return %arg0, %c0_i32, %c0_i32_0, %c0_i32_1 : i32, i32, i32, i32
  }
}

module attributes {stable_mosaic.version = 11 : i64} {
  func.func @_block_kernel(%arg0: i32, %arg1: memref<1x1x2x1x64xbf16, #tpu.memory_space<vmem>>, %arg2: memref<288x64xbf16, #tpu.memory_space<vmem>>, %arg3: memref<1x64xf32, #tpu.memory_space<vmem>>, %arg4: memref<1x64xf32, #tpu.memory_space<vmem>>, %arg5: memref<576x64xbf16, #tpu.memory_space<vmem>>, %arg6: memref<1x64xf32, #tpu.memory_space<vmem>>, %arg7: memref<1x64xf32, #tpu.memory_space<vmem>>, %arg8: memref<1x1x1x64xbf16, #tpu.memory_space<vmem>>, %arg9: memref<4x8x32xbf16, #tpu.memory_space<vmem>>, %arg10: memref<4x8x64xbf16, #tpu.memory_space<vmem>>) attributes {dimension_semantics = [#tpu.dimension_semantics<parallel>], iteration_bounds = array<i64: 2>, scalar_prefetch = 0 : i64, scratch_operands = 2 : i64, tpu.core_type = #tpu.core_type<tc>, window_params = [{transform_indices = @transform_0, window_bounds = array<i64: 1, 1, 2, 1, 64>}, {pipeline_mode = #tpu.pipeline_mode<synchronous>, transform_indices = @transform_1, window_bounds = array<i64: 288, 64>}, {pipeline_mode = #tpu.pipeline_mode<synchronous>, transform_indices = @transform_2, window_bounds = array<i64: 1, 64>}, {pipeline_mode = #tpu.pipeline_mode<synchronous>, transform_indices = @transform_3, window_bounds = array<i64: 1, 64>}, {pipeline_mode = #tpu.pipeline_mode<synchronous>, transform_indices = @transform_4, window_bounds = array<i64: 576, 64>}, {pipeline_mode = #tpu.pipeline_mode<synchronous>, transform_indices = @transform_5, window_bounds = array<i64: 1, 64>}, {pipeline_mode = #tpu.pipeline_mode<synchronous>, transform_indices = @transform_6, window_bounds = array<i64: 1, 64>}, {transform_indices = @transform_7, window_bounds = array<i64: 1, 1, 1, 64>}]} {
    %c0 = arith.constant 0 : index
    %c0_0 = arith.constant 0 : index
    %c0_1 = arith.constant 0 : index
    %c0_2 = arith.constant 0 : index
    %c0_3 = arith.constant 0 : index
    %0 = vector.load %arg1[%c0, %c0_0, %c0_1, %c0_2, %c0_3] : memref<1x1x2x1x64xbf16, #tpu.memory_space<vmem>>, vector<1x1x2x1x64xbf16>
    %1 = vector.extract_strided_slice %0 {offsets = [0, 0, 0, 0, 0], sizes = [1, 1, 1, 1, 64], strides = [1, 1, 1, 1, 1]} : vector<1x1x2x1x64xbf16> to vector<1x1x1x1x64xbf16>
    %2 = vector.shape_cast %1 : vector<1x1x1x1x64xbf16> to vector<1x1x64xbf16>
    %3 = vector.extract_strided_slice %0 {offsets = [0, 0, 1, 0, 0], sizes = [1, 1, 1, 1, 64], strides = [1, 1, 1, 1, 1]} : vector<1x1x2x1x64xbf16> to vector<1x1x1x1x64xbf16>
    %4 = vector.shape_cast %3 : vector<1x1x1x1x64xbf16> to vector<1x1x64xbf16>
    %5 = arith.maximumf %2, %4 : vector<1x1x64xbf16>
    %6 = vector.extract_strided_slice %5 {offsets = [0, 0, 0], sizes = [1, 1, 32], strides = [1, 1, 1]} : vector<1x1x64xbf16> to vector<1x1x32xbf16>
    %7 = vector.extract_strided_slice %5 {offsets = [0, 0, 32], sizes = [1, 1, 32], strides = [1, 1, 1]} : vector<1x1x64xbf16> to vector<1x1x32xbf16>
    %8 = arith.maximumf %6, %7 : vector<1x1x32xbf16>
    %cst = arith.constant 0.000000e+00 : bf16
    %9 = vector.broadcast %cst : bf16 to vector<1x8x32xbf16>
    %c0_4 = arith.constant 0 : index
    %c0_5 = arith.constant 0 : index
    %c0_6 = arith.constant 0 : index
    %10 = vector.load %arg9[%c0_4, %c0_5, %c0_6] : memref<4x8x32xbf16, #tpu.memory_space<vmem>>, vector<1x8x32xbf16>
    tpu.vector_store %arg9[%c0_4, %c0_5, %c0_6], %9 {strides = array<i32>} : memref<4x8x32xbf16, #tpu.memory_space<vmem>>, vector<1x8x32xbf16>,
    %cst_7 = arith.constant 0.000000e+00 : bf16
    %11 = vector.broadcast %cst_7 : bf16 to vector<2x8x32xbf16>
    %c2 = arith.constant 2 : index
    %c0_8 = arith.constant 0 : index
    %c0_9 = arith.constant 0 : index
    %12 = vector.load %arg9[%c2, %c0_8, %c0_9] : memref<4x8x32xbf16, #tpu.memory_space<vmem>>, vector<2x8x32xbf16>
    tpu.vector_store %arg9[%c2, %c0_8, %c0_9], %11 {strides = array<i32>} : memref<4x8x32xbf16, #tpu.memory_space<vmem>>, vector<2x8x32xbf16>,
    %cst_10 = arith.constant 0.000000e+00 : bf16
    %13 = vector.broadcast %cst_10 : bf16 to vector<1x1x32xbf16>
    %c1 = arith.constant 1 : index
    %c0_11 = arith.constant 0 : index
    %c0_12 = arith.constant 0 : index
    %14 = vector.load %arg9[%c1, %c0_11, %c0_12] : memref<4x8x32xbf16, #tpu.memory_space<vmem>>, vector<1x1x32xbf16>
    tpu.vector_store %arg9[%c1, %c0_11, %c0_12], %13 {strides = array<i32>} : memref<4x8x32xbf16, #tpu.memory_space<vmem>>, vector<1x1x32xbf16>,
    %cst_13 = arith.constant 0.000000e+00 : bf16
    %15 = vector.broadcast %cst_13 : bf16 to vector<1x6x32xbf16>
    %c1_14 = arith.constant 1 : index
    %c2_15 = arith.constant 2 : index
    %c0_16 = arith.constant 0 : index
    %16 = vector.load %arg9[%c1_14, %c2_15, %c0_16] : memref<4x8x32xbf16, #tpu.memory_space<vmem>>, vector<1x6x32xbf16>
    tpu.vector_store %arg9[%c1_14, %c2_15, %c0_16], %15 {strides = array<i32>} : memref<4x8x32xbf16, #tpu.memory_space<vmem>>, vector<1x6x32xbf16>,
    %c1_17 = arith.constant 1 : index
    %c1_18 = arith.constant 1 : index
    %c0_19 = arith.constant 0 : index
    %17 = vector.load %arg9[%c1_17, %c1_18, %c0_19] : memref<4x8x32xbf16, #tpu.memory_space<vmem>>, vector<1x1x32xbf16>
    tpu.vector_store %arg9[%c1_17, %c1_18, %c0_19], %8 {strides = array<i32>} : memref<4x8x32xbf16, #tpu.memory_space<vmem>>, vector<1x1x32xbf16>,
    %c0_20 = arith.constant 0 : index
    %c0_21 = arith.constant 0 : index
    %c0_22 = arith.constant 0 : index
    %18 = vector.load %arg9[%c0_20, %c0_21, %c0_22] : memref<4x8x32xbf16, #tpu.memory_space<vmem>>, vector<4x8x32xbf16>
    %19 = vector.shape_cast %18 : vector<4x8x32xbf16> to vector<32x32xbf16>
    %20 = vector.extract_strided_slice %19 {offsets = [0, 0], sizes = [8, 32], strides = [1, 1]} : vector<32x32xbf16> to vector<8x32xbf16>
    %21 = vector.extract_strided_slice %19 {offsets = [1, 0], sizes = [8, 32], strides = [1, 1]} : vector<32x32xbf16> to vector<8x32xbf16>
    %22 = vector.extract_strided_slice %19 {offsets = [2, 0], sizes = [8, 32], strides = [1, 1]} : vector<32x32xbf16> to vector<8x32xbf16>
    %23 = vector.extract_strided_slice %19 {offsets = [8, 0], sizes = [8, 32], strides = [1, 1]} : vector<32x32xbf16> to vector<8x32xbf16>
    %24 = vector.extract_strided_slice %19 {offsets = [9, 0], sizes = [8, 32], strides = [1, 1]} : vector<32x32xbf16> to vector<8x32xbf16>
    %25 = vector.extract_strided_slice %19 {offsets = [10, 0], sizes = [8, 32], strides = [1, 1]} : vector<32x32xbf16> to vector<8x32xbf16>
    %26 = vector.extract_strided_slice %19 {offsets = [16, 0], sizes = [8, 32], strides = [1, 1]} : vector<32x32xbf16> to vector<8x32xbf16>
    %27 = vector.extract_strided_slice %19 {offsets = [17, 0], sizes = [8, 32], strides = [1, 1]} : vector<32x32xbf16> to vector<8x32xbf16>
    %28 = vector.extract_strided_slice %19 {offsets = [18, 0], sizes = [8, 32], strides = [1, 1]} : vector<32x32xbf16> to vector<8x32xbf16>
    %29 = tpu.concatenate %20, %21, %22, %23, %24, %25, %26, %27, %28 in 1 : vector<8x32xbf16>, vector<8x32xbf16>, vector<8x32xbf16>, vector<8x32xbf16>, vector<8x32xbf16>, vector<8x32xbf16>, vector<8x32xbf16>, vector<8x32xbf16>, vector<8x32xbf16> -> vector<8x288xbf16>
    %c0_23 = arith.constant 0 : index
    %c0_24 = arith.constant 0 : index
    %30 = vector.load %arg2[%c0_23, %c0_24] : memref<288x64xbf16, #tpu.memory_space<vmem>>, vector<288x64xbf16>
    %cst_25 = arith.constant dense<0.000000e+00> : vector<8x64xf32>
    %31 = tpu.matmul %29, %30, %cst_25 {dimension_numbers = #tpu.dot_dimension_numbers<[1], [0], [0], [1], [0, 0, 1, 1], [], []>} : vector<8x288xbf16>, vector<288x64xbf16>, vector<8x64xf32> -> vector<8x64xf32>
    %c0_26 = arith.constant 0 : index
    %c0_27 = arith.constant 0 : index
    %32 = vector.load %arg3[%c0_26, %c0_27] : memref<1x64xf32, #tpu.memory_space<vmem>>, vector<1x64xf32>
    %33 = vector.broadcast %32 : vector<1x64xf32> to vector<8x64xf32>
    %34 = arith.mulf %31, %33 : vector<8x64xf32>
    %c0_28 = arith.constant 0 : index
    %c0_29 = arith.constant 0 : index
    %35 = vector.load %arg4[%c0_28, %c0_29] : memref<1x64xf32, #tpu.memory_space<vmem>>, vector<1x64xf32>
    %36 = vector.broadcast %35 : vector<1x64xf32> to vector<8x64xf32>
    %37 = arith.addf %34, %36 : vector<8x64xf32>
    %cst_30 = arith.constant 0.000000e+00 : f32
    %38 = vector.broadcast %cst_30 : f32 to vector<8x64xf32>
    %39 = arith.cmpf oge, %37, %38 : vector<8x64xf32>
    %cst_31 = arith.constant 0.00999999977 : f32
    %40 = vector.broadcast %cst_31 : f32 to vector<8x64xf32>
    %41 = arith.mulf %40, %37 : vector<8x64xf32>
    %42 = arith.select %39, %37, %41 : vector<8x64xi1>, vector<8x64xf32>
    %43 = vector.shape_cast %42 : vector<8x64xf32> to vector<1x8x64xf32>
    %44 = vector.extract_strided_slice %43 {offsets = [0, 0, 0], sizes = [1, 1, 64], strides = [1, 1, 1]} : vector<1x8x64xf32> to vector<1x1x64xf32>
    %cst_32 = arith.constant 0.000000e+00 : bf16
    %45 = vector.broadcast %cst_32 : bf16 to vector<1x8x64xbf16>
    %c0_33 = arith.constant 0 : index
    %c0_34 = arith.constant 0 : index
    %c0_35 = arith.constant 0 : index
    %46 = vector.load %arg10[%c0_33, %c0_34, %c0_35] : memref<4x8x64xbf16, #tpu.memory_space<vmem>>, vector<1x8x64xbf16>
    tpu.vector_store %arg10[%c0_33, %c0_34, %c0_35], %45 {strides = array<i32>} : memref<4x8x64xbf16, #tpu.memory_space<vmem>>, vector<1x8x64xbf16>,
    %cst_36 = arith.constant 0.000000e+00 : bf16
    %47 = vector.broadcast %cst_36 : bf16 to vector<2x8x64xbf16>
    %c2_37 = arith.constant 2 : index
    %c0_38 = arith.constant 0 : index
    %c0_39 = arith.constant 0 : index
    %48 = vector.load %arg10[%c2_37, %c0_38, %c0_39] : memref<4x8x64xbf16, #tpu.memory_space<vmem>>, vector<2x8x64xbf16>
    tpu.vector_store %arg10[%c2_37, %c0_38, %c0_39], %47 {strides = array<i32>} : memref<4x8x64xbf16, #tpu.memory_space<vmem>>, vector<2x8x64xbf16>,
    %cst_40 = arith.constant 0.000000e+00 : bf16
    %49 = vector.broadcast %cst_40 : bf16 to vector<1x1x64xbf16>
    %c1_41 = arith.constant 1 : index
    %c0_42 = arith.constant 0 : index
    %c0_43 = arith.constant 0 : index
    %50 = vector.load %arg10[%c1_41, %c0_42, %c0_43] : memref<4x8x64xbf16, #tpu.memory_space<vmem>>, vector<1x1x64xbf16>
    tpu.vector_store %arg10[%c1_41, %c0_42, %c0_43], %49 {strides = array<i32>} : memref<4x8x64xbf16, #tpu.memory_space<vmem>>, vector<1x1x64xbf16>,
    %cst_44 = arith.constant 0.000000e+00 : bf16
    %51 = vector.broadcast %cst_44 : bf16 to vector<1x6x64xbf16>
    %c1_45 = arith.constant 1 : index
    %c2_46 = arith.constant 2 : index
    %c0_47 = arith.constant 0 : index
    %52 = vector.load %arg10[%c1_45, %c2_46, %c0_47] : memref<4x8x64xbf16, #tpu.memory_space<vmem>>, vector<1x6x64xbf16>
    tpu.vector_store %arg10[%c1_45, %c2_46, %c0_47], %51 {strides = array<i32>} : memref<4x8x64xbf16, #tpu.memory_space<vmem>>, vector<1x6x64xbf16>,
    %53 = arith.truncf %44 : vector<1x1x64xf32> to vector<1x1x64xbf16>
    %c1_48 = arith.constant 1 : index
    %c1_49 = arith.constant 1 : index
    %c0_50 = arith.constant 0 : index
    %54 = vector.load %arg10[%c1_48, %c1_49, %c0_50] : memref<4x8x64xbf16, #tpu.memory_space<vmem>>, vector<1x1x64xbf16>
    tpu.vector_store %arg10[%c1_48, %c1_49, %c0_50], %53 {strides = array<i32>} : memref<4x8x64xbf16, #tpu.memory_space<vmem>>, vector<1x1x64xbf16>,
    %c0_51 = arith.constant 0 : index
    %c0_52 = arith.constant 0 : index
    %c0_53 = arith.constant 0 : index
    %55 = vector.load %arg10[%c0_51, %c0_52, %c0_53] : memref<4x8x64xbf16, #tpu.memory_space<vmem>>, vector<4x8x64xbf16>
    %56 = vector.shape_cast %55 : vector<4x8x64xbf16> to vector<32x64xbf16>
    %57 = vector.extract_strided_slice %56 {offsets = [0, 0], sizes = [8, 64], strides = [1, 1]} : vector<32x64xbf16> to vector<8x64xbf16>
    %58 = vector.extract_strided_slice %56 {offsets = [1, 0], sizes = [8, 64], strides = [1, 1]} : vector<32x64xbf16> to vector<8x64xbf16>
    %59 = vector.extract_strided_slice %56 {offsets = [2, 0], sizes = [8, 64], strides = [1, 1]} : vector<32x64xbf16> to vector<8x64xbf16>
    %60 = vector.extract_strided_slice %56 {offsets = [8, 0], sizes = [8, 64], strides = [1, 1]} : vector<32x64xbf16> to vector<8x64xbf16>
    %61 = vector.extract_strided_slice %56 {offsets = [9, 0], sizes = [8, 64], strides = [1, 1]} : vector<32x64xbf16> to vector<8x64xbf16>
    %62 = vector.extract_strided_slice %56 {offsets = [10, 0], sizes = [8, 64], strides = [1, 1]} : vector<32x64xbf16> to vector<8x64xbf16>
    %63 = vector.extract_strided_slice %56 {offsets = [16, 0], sizes = [8, 64], strides = [1, 1]} : vector<32x64xbf16> to vector<8x64xbf16>
    %64 = vector.extract_strided_slice %56 {offsets = [17, 0], sizes = [8, 64], strides = [1, 1]} : vector<32x64xbf16> to vector<8x64xbf16>
    %65 = vector.extract_strided_slice %56 {offsets = [18, 0], sizes = [8, 64], strides = [1, 1]} : vector<32x64xbf16> to vector<8x64xbf16>
    %66 = tpu.concatenate %57, %58, %59, %60, %61, %62, %63, %64, %65 in 1 : vector<8x64xbf16>, vector<8x64xbf16>, vector<8x64xbf16>, vector<8x64xbf16>, vector<8x64xbf16>, vector<8x64xbf16>, vector<8x64xbf16>, vector<8x64xbf16>, vector<8x64xbf16> -> vector<8x576xbf16>
    %c0_54 = arith.constant 0 : index
    %c0_55 = arith.constant 0 : index
    %67 = vector.load %arg5[%c0_54, %c0_55] : memref<576x64xbf16, #tpu.memory_space<vmem>>, vector<576x64xbf16>
    %cst_56 = arith.constant dense<0.000000e+00> : vector<8x64xf32>
    %68 = tpu.matmul %66, %67, %cst_56 {dimension_numbers = #tpu.dot_dimension_numbers<[1], [0], [0], [1], [0, 0, 1, 1], [], []>} : vector<8x576xbf16>, vector<576x64xbf16>, vector<8x64xf32> -> vector<8x64xf32>
    %c0_57 = arith.constant 0 : index
    %c0_58 = arith.constant 0 : index
    %69 = vector.load %arg6[%c0_57, %c0_58] : memref<1x64xf32, #tpu.memory_space<vmem>>, vector<1x64xf32>
    %70 = vector.broadcast %69 : vector<1x64xf32> to vector<8x64xf32>
    %71 = arith.mulf %68, %70 : vector<8x64xf32>
    %c0_59 = arith.constant 0 : index
    %c0_60 = arith.constant 0 : index
    %72 = vector.load %arg7[%c0_59, %c0_60] : memref<1x64xf32, #tpu.memory_space<vmem>>, vector<1x64xf32>
    %73 = vector.broadcast %72 : vector<1x64xf32> to vector<8x64xf32>
    %74 = arith.addf %71, %73 : vector<8x64xf32>
    %cst_61 = arith.constant 0.000000e+00 : f32
    %75 = vector.broadcast %cst_61 : f32 to vector<8x64xf32>
    %76 = arith.cmpf oge, %74, %75 : vector<8x64xf32>
    %cst_62 = arith.constant 0.00999999977 : f32
    %77 = vector.broadcast %cst_62 : f32 to vector<8x64xf32>
    %78 = arith.mulf %77, %74 : vector<8x64xf32>
    %79 = arith.select %76, %74, %78 : vector<8x64xi1>, vector<8x64xf32>
    %80 = vector.shape_cast %79 : vector<8x64xf32> to vector<1x8x64xf32>
    %81 = vector.extract_strided_slice %80 {offsets = [0, 0, 0], sizes = [1, 1, 64], strides = [1, 1, 1]} : vector<1x8x64xf32> to vector<1x1x64xf32>
    %82 = arith.truncf %81 : vector<1x1x64xf32> to vector<1x1x64xbf16>
    %c0_63 = arith.constant 0 : index
    %c0_64 = arith.constant 0 : index
    %c0_65 = arith.constant 0 : index
    %c0_66 = arith.constant 0 : index
    %83 = vector.load %arg8[%c0_63, %c0_64, %c0_65, %c0_66] : memref<1x1x1x64xbf16, #tpu.memory_space<vmem>>, vector<1x1x1x64xbf16>
    %84 = vector.shape_cast %83 : vector<1x1x1x64xbf16> to vector<1x1x64xbf16>
    %85 = vector.shape_cast %82 : vector<1x1x64xbf16> to vector<1x1x1x64xbf16>
    tpu.vector_store %arg8[%c0_63, %c0_64, %c0_65, %c0_66], %85 {strides = array<i32>} : memref<1x1x1x64xbf16, #tpu.memory_space<vmem>>, vector<1x1x1x64xbf16>,
    return
  }
  func.func @transform_0(%arg0: i32) -> (i32, i32, i32, i32, i32) {
    %c0_i32 = arith.constant 0 : i32
    %c0_i32_0 = arith.constant 0 : i32
    %c0_i32_1 = arith.constant 0 : i32
    %c0_i32_2 = arith.constant 0 : i32
    %c0_i32_3 = arith.constant 0 : i32
    return %arg0, %c0_i32, %c0_i32_0, %c0_i32_1, %c0_i32_2 : i32, i32, i32, i32, i32
  }
  func.func @transform_1(%arg0: i32) -> (i32, i32) {
    %c0_i32 = arith.constant 0 : i32
    %c0_i32_0 = arith.constant 0 : i32
    %c0_i32_1 = arith.constant 0 : i32
    return %c0_i32, %c0_i32_0 : i32, i32
  }
  func.func @transform_2(%arg0: i32) -> (i32, i32) {
    %c0_i32 = arith.constant 0 : i32
    %c0_i32_0 = arith.constant 0 : i32
    %c0_i32_1 = arith.constant 0 : i32
    return %c0_i32, %c0_i32_0 : i32, i32
  }
  func.func @transform_3(%arg0: i32) -> (i32, i32) {
    %c0_i32 = arith.constant 0 : i32
    %c0_i32_0 = arith.constant 0 : i32
    %c0_i32_1 = arith.constant 0 : i32
    return %c0_i32, %c0_i32_0 : i32, i32
  }
  func.func @transform_4(%arg0: i32) -> (i32, i32) {
    %c0_i32 = arith.constant 0 : i32
    %c0_i32_0 = arith.constant 0 : i32
    %c0_i32_1 = arith.constant 0 : i32
    return %c0_i32, %c0_i32_0 : i32, i32
  }
  func.func @transform_5(%arg0: i32) -> (i32, i32) {
    %c0_i32 = arith.constant 0 : i32
    %c0_i32_0 = arith.constant 0 : i32
    %c0_i32_1 = arith.constant 0 : i32
    return %c0_i32, %c0_i32_0 : i32, i32
  }
  func.func @transform_6(%arg0: i32) -> (i32, i32) {
    %c0_i32 = arith.constant 0 : i32
    %c0_i32_0 = arith.constant 0 : i32
    %c0_i32_1 = arith.constant 0 : i32
    return %c0_i32, %c0_i32_0 : i32, i32
  }
  func.func @transform_7(%arg0: i32) -> (i32, i32, i32, i32) {
    %c0_i32 = arith.constant 0 : i32
    %c0_i32_0 = arith.constant 0 : i32
    %c0_i32_1 = arith.constant 0 : i32
    %c0_i32_2 = arith.constant 0 : i32
    return %arg0, %c0_i32, %c0_i32_0, %c0_i32_1 : i32, i32, i32, i32
  }
}

</mosaic_0001>

<bundles_post_ra>
// kernel: encoder_forward.8
= control target key start
LH: loop header
LB: loop body
LE: loop exit
PB: predicated region body
PF: predicated region fallthrough
CT: control target
= control target key end

     0   :  { %s1421_s24 = smov 0   ;;  %s1655_s0 = inlined_call_operand.vmem [shape: bf16[2,2,2,2,64], index: 0, kind: input, shape index: {}]   ;;  %s1656_s1 = inlined_call_operand.vmem [shape: bf16[288,32], index: 1, kind: input, shape index: {}]   ;;  %s1657_s2 = inlined_call_operand.vmem [shape: f32[1,32], index: 2, kind: input, shape index: {}]   ;;  %s1658_s3 = inlined_call_operand.vmem [shape: f32[1,32], index: 3, kind: input, shape index: {}]   ;;  %s1659_s4 = inlined_call_operand.vmem [shape: bf16[288,32], index: 4, kind: input, shape index: {}]   ;;  %s1660_s5 = inlined_call_operand.vmem [shape: f32[1,32], index: 5, kind: input, shape index: {}]   ;;  %s1661_s6 = inlined_call_operand.vmem [shape: f32[1,32], index: 6, kind: input, shape index: {}]   ;;  %s1662_s7 = inlined_call_operand.vmem [shape: bf16[2,2,2,32], index: 7, kind: output, shape index: {}]  }
   0x1 LB: > { %s1172_s25 = sadd.s32 4294967295, %s1372_s24   ;;  %p1176_p0 = scmp.ge.s32.totalorder %s1372_s24, 1  ;;  %s1372_s24 = sphi %s1421_s24, %s17_s24  }
   0x2   : > { %p236_p1 = scmp.lt.s32.totalorder %s1372_s24, 3 }
   0x4   : > { %p237_p2 = pnand %p1176_p0, %p236_p1 }
   0x5   : > { %p266_p3 = scmp.lt.s32.totalorder (!%p237_p2), %s1172_s25, 1  ;;  %vm297_vm0 = vcmask (!%p237_p2), 253952   ;;  %vm298_vm1 = vsmask.f32 (!%p237_p2), 256  ;;  %vm306_vm2 = vcmask (!%p237_p2), 257025   ;;  %vm291_vm6 = vcmask (!%p237_p2), 257024  }
   0x6   : > { %240 = sbr.rel (%p237_p2) target bundleno = 893 (0x37d), region = 48  ;;  %vm1430_vm3 = vmand (!%p237_p2), %vm297_vm0, %vm298_vm1  ;;  %v300_v1 = vld [vmem:[#allocation2 + $0x4] sm:$0x1] (!%p237_p2)  ;;  %vm307_vm4 = vsmask.f32 (!%p237_p2), 7942  ;;  %s1374_s30 = smov (!%p237_p2), 96   ;;  %v320_v30 = vlaneseq (!%p237_p2) }
   0x7   : > { %v309_v2 = vld [vmem:[#allocation2 + $0x4] sm:$0xe] (!%p237_p2)  ;;  %v301_v3 = vsel (!%p237_p2), %vm1430_vm3, 0, %v300_v1  ;;  %vm1438_vm5 = vmand (!%p237_p2), %vm306_vm2, %vm307_vm4  ;;  %v303_v6 = vld [vmem:[#allocation2 + $0x8] sm:$0x1] (!%p237_p2)  ;;  %v1375_v16 = vmov (!%p237_p2), 0  }
   0x8   : > { %302 = vst [vmem:[#allocation2 + $0x4] sm:$0x1] (!%p237_p2), %v301_v3  ;;  %v310_v5 = vsel (!%p237_p2), %vm1438_vm5, 0, %v309_v2  ;;  %v304_v7 = vsel (!%p237_p2), %vm1430_vm3, 0, %v303_v6  ;;  %v312_v8 = vld [vmem:[#allocation2 + $0x8] sm:$0xe] (!%p237_p2) }
   0x9   : > { %311 = vst [vmem:[#allocation2 + $0x4] sm:$0xe] (!%p237_p2), %v310_v5  ;;  %305 = vst [vmem:[#allocation2 + $0x8] sm:$0x1] (!%p237_p2), %v304_v7  ;;  %v313_v9 = vsel (!%p237_p2), %vm1438_vm5, 0, %v312_v8  ;;  %v1320_v17 = vld [vmem:[%s1656_s1 + $0x80] sm:$0xff] (!%p237_p2)  }
   0xa   : > { %314 = vst [vmem:[#allocation2 + $0x8] sm:$0xe] (!%p237_p2), %v313_v9  ;;  %292 = vst.msk [vmem:[#allocation2] sm:$0xf] (!%p237_p2), %vm291_vm6, %v1375_v16  ;;  %v1321_v18 = vld [vmem:[%s1656_s1 + $0x88] sm:$0xff] (!%p237_p2)   ;;  %v1376_v19 = vmov (!%p237_p2), 0.0  }
   0xb   : > { %294 = vst.msk [vmem:[#allocation2 + $0xc] sm:$0xf] (!%p237_p2), %vm291_vm6, %v1375_v16  ;;  %295 = vst.msk [vmem:[#allocation2 + $0x10] sm:$0xf] (!%p237_p2), %vm291_vm6, %v1375_v16  ;;  %1289 = vmatprep.subr.bf16.mxu1 (!%p237_p2), %v1376_v19  ;;  %vm1377_vm7 = vmmov (!%p237_p2), 0   ;;  %v1326_v20 = vld [vmem:[%s1656_s1 + $0x40] sm:$0xff] (!%p237_p2)  }
   0xc   : > { %721 = vst.msk [vmem:[#allocation3] sm:$0xf] (!%p237_p2), %vm291_vm6, %v1375_v16  ;;  %723 = vst.msk [vmem:[#allocation3 + $0xc] sm:$0xf] (!%p237_p2), %vm291_vm6, %v1375_v16  ;;  %1290 = vmatpush3.bf16.msra.mxu1 (!%p237_p2), %v1320_v17  ;;  %1293 = vmatprep.mubr.msk.bf16.mxu1 (!%p237_p2), %vm1377_vm7, %v1376_v19  ;;  %v1327_v21 = vld [vmem:[%s1656_s1] sm:$0xff] (!%p237_p2)   ;;  %v1328_v22 = vld [vmem:[%s1656_s1 + $0x48] sm:$0xff] (!%p237_p2)  }
   0xd   : > { %s1670_s25 = smov (!%p266_p3, %s1172_s25), 1  ;;  %724 = vst.msk [vmem:[#allocation3 + $0x10] sm:$0xf] %vm291_vm6, %v1375_v16  ;;  %1291 = vmatprep.subr.bf16.mxu1 %v1376_v19  ;;  %1239 = vmatprep.subr.bf16.mxu0 %v1326_v20  ;;  %v1329_v23 = vld [vmem:[%s1656_s1 + $0x8] sm:$0xff]   ;;  %v1330_v24 = vld [vmem:[%s1656_s1 + $0x50] sm:$0xff]   ;;  %v1332_v26 = vld [vmem:[%s1656_s1 + $0x58] sm:$0xff]  }
   0xe   : > { %s1177_s26 = sshll.u32 %s1670_s25, 2  ;;  %1240 = vmatpush3.bf16.msra.mxu0 %v1327_v21  ;;  %v1331_v25 = vld [vmem:[%s1656_s1 + $0x10] sm:$0xff]   ;;  %v1333_v27 = vld [vmem:[%s1656_s1 + $0x18] sm:$0xff]   ;;  %v1378_v28 = vmov 1935823168   ;;  %v321_v32 = vshrl.u32 %v320_v30, 7 }
   0xf   : > { %s269_s29 = scalar_lea.vmem %s1655_s0, %s1177_s26  ;;  %1241 = vmatprep.subr.bf16.mxu0 %v1328_v22  ;;  %v318_v29 = vunpack.c.l.s4 %v1378_v28  ;;  %vm361_vm8 = vcmask 254976   ;;  %vm362_vm9 = vsmask.f32 1282  ;;  %v1334_v53 = vld [vmem:[%s1656_s1 + $0x60] sm:$0xff]   ;;  %v1336_v57 = vld [vmem:[%s1656_s1 + $0x68] sm:$0xff]   ;;  %v1338_v63 = vld [vmem:[%s1656_s1 + $0x70] sm:$0xff]  }
  0x10   : > { %v275_v10 = vld [vmem:[%s269_s29] sm:$0x1]  ;;  %v276_v11 = vld [vmem:[%s269_s29 + $0x1] sm:$0x1]  ;;  %v277_v12 = vld [vmem:[%s269_s29 + $0x2] sm:$0x1]  ;;  %1292 = vmatpush3.bf16.msra.mxu1 %v1321_v18 }
  0x11   : > { %v279_v13 = vmax.bf16 %v276_v11, %v275_v10  ;;  %v278_v14 = vld [vmem:[%s269_s29 + $0x3] sm:$0x1]  ;;  %v319_v31 = vunpack.c.0.s8 %v318_v29  ;;  %vm1488_vm10 = vmand %vm361_vm8, %vm362_vm9  ;;  %v364_v46 = vld [vmem:[#allocation2 + $0x4] sm:$0x3]  ;;  %vm398_vm11 = vcmask 1046528   ;;  %vm450_vm12 = vcmask 261120  }
  0x12   : > { %v280_v15 = vmax.bf16 %v278_v14, %v277_v12  ;;  %1242 = vmatpush3.bf16.msra.mxu0 %v1329_v23  ;;  %v367_v52 = vld [vmem:[#allocation2 + $0x8] sm:$0x3]  ;;  %v1335_v54 = vld [vmem:[%s1656_s1 + $0x20] sm:$0xff]   ;;  %v373_v59 = vld [vmem:[#allocation2 + $0xc] sm:$0xf]  ;;  %s1379_s26 = smov 64  }
  0x13   : > { %283 = vrot.lane.b32.xlu0 %v279_v13, %s1374_s30  ;;  %1243 = vmatprep.subr.bf16.mxu0 %v1330_v24  ;;  %v322_v33 = vsub.s32 %v319_v31, %v321_v32  ;;  %v1337_v58 = vld [vmem:[%s1656_s1 + $0x28] sm:$0xff]   ;;  %v370_v60 = vld [vmem:[#allocation2] sm:$0xf]  ;;  %v1325_v62 = vld [vmem:[#allocation2 + $0x10] ss:$0 sps:$4 sm:$0xff]   ;;  %v1182_v1 = vcombine.low %v373_v59, %v373_v59  ;;  %s1380_s27 = smov 32  }
  0x14   : > { %v1339_v2 = vld [vmem:[%s1656_s1 + $0x30] sm:$0xff]   ;;  %v448_v6 = vrot.slane %v1325_v62, 1  ;;  %v441_v7 = vshll.u32 %v1325_v62, 16  ;;  %v1340_v12 = vld [vmem:[%s1656_s1 + $0x78] sm:$0xff]   ;;  %vm383_vm13 = vsmask.f32 7424 }
  0x15   : > { %v423_v10 = vrot.slane %v1182_v1, 1  ;;  %v418_v14 = vshll.u32 %v1182_v1, 16  ;;  %vm453_vm14 = vcmask 523264   ;;  %vm456_vm15 = vcmask 785408   ;;  %v735_v1 = vld [vmem:[#allocation3 + $0x8] sm:$0xe] }
  0x16   : > { %1244 = vmatpush3.bf16.msra.mxu0 %v1331_v25  ;;  %v443_v21 = vrot.slane %v441_v7, 1  ;;  %v1350_v0 = vld [vmem:[%s1659_s4 + $0x40] sm:$0xff]   ;;  %v1352_v7 = vld [vmem:[%s1659_s4 + $0x48] sm:$0xff]   ;;  %v1364_v45 = vld [vmem:[%s1659_s4 + $0x78] sm:$0xff]   ;;  %s1178_s11 = sshll.u32 %s1670_s25, 1 }
  0x17   : > { %285 = vrot.lane.b32.xlu0 %v280_v15, %s1374_s30  ;;  %1245 = vmatprep.subr.bf16.mxu0 %v1332_v26  ;;  %v420_v29 = vrot.slane %v418_v14, 1  ;;  %v1351_v4 = vld [vmem:[%s1659_s4] sm:$0xff]   ;;  %s273_s14 = scalar_lea.vmem %s1662_s7, %s1178_s11 }
  0x18   : > { %1264 = vmatprep.subr.bf16.mxu1 %v1350_v0 }
  0x1a   : > { %1246 = vmatpush3.bf16.msra.mxu0 %v1333_v27 }
  0x1b   : > { %1247 = vmatprep.subr.bf16.mxu0 %v1334_v53 }
  0x1e   : > { %1248 = vmatpush3.bf16.msra.mxu0 %v1335_v54 }
  0x1f   : > { %1249 = vmatprep.subr.bf16.mxu0 %v1336_v57 }
  0x22   : > { %1250 = vmatpush3.bf16.msra.mxu0 %v1337_v58 }
  0x23   : > { %1251 = vmatprep.subr.bf16.mxu0 %v1338_v63  ;;  %v729_v63 = vld [vmem:[#allocation3 + $0x8] sm:$0x1] }
  0x26   : > { %1252 = vmatpush3.bf16.msra.mxu0 %v1339_v2  ;;  %v730_v2 = vsel %vm1430_vm3, 0, %v729_v63 }
  0x27   : > { %1253 = vmatprep.subr.bf16.mxu0 %v1340_v12  ;;  %731 = vst [vmem:[#allocation3 + $0x8] sm:$0x1] %v730_v2  ;;  %v1358_v12 = vld [vmem:[%s1659_s4 + $0x60] sm:$0xff]  }
  0x85   : > { %v284_v34 = vpop.permute.xlu0 %283 }
  0x86   : > { %v289_v35 = vmax.bf16 %v284_v34, %v279_v13  ;;  %v1341_v13 = vld [vmem:[%s1656_s1 + $0x38] sm:$0xff]  }
  0x87   : > { %1254 = vmatpush3.bf16.msra.mxu0 %v1341_v13  ;;  %v1359_v13 = vld [vmem:[%s1659_s4 + $0x20] sm:$0xff]  }
  0x88   : > { %v323_v36 = vrot.slane %v289_v35, %v322_v33  ;;  %1297 = vmatprep.subr.bf16.mxu0 %v1376_v19 }
  0x89   : > { %v286_v37 = vpop.permute.xlu0 %285 }
  0x8a   : > { %v330_v38 = vrot.slane %v323_v36, %v322_v33  ;;  %v290_v39 = vmax.bf16 %v286_v37, %v280_v15 }
  0x8c   : > { %v346_v40 = vshrl.u32 %v330_v38, 16  ;;  %v337_v41 = vrot.slane %v290_v39, %v322_v33  ;;  %v349_v43 = vshll.u32 %v330_v38, 16 }
  0x8e   : > { %v348_v42 = vrot.slane %v346_v40, 7  ;;  %v344_v44 = vrot.slane %v337_v41, %v322_v33 }
  0x90   : > { %v351_v47 = vor.u32 %v349_v43, %v348_v42  ;;  %v353_v48 = vshrl.u32 %v344_v44, 16  ;;  %v356_v51 = vshll.u32 %v344_v44, 16 }
  0x92   : > { %v365_v49 = vsel %vm1488_vm10, %v351_v47, %v364_v46  ;;  %v355_v50 = vrot.slane %v353_v48, 7 }
  0x93   : > { %366 = vst [vmem:[#allocation2 + $0x4] sm:$0x3] %v365_v49 }
  0x94   : > { %v358_v55 = vor.u32 %v356_v51, %v355_v50 }
  0x96   : > { %v368_v56 = vsel %vm1488_vm10, %v358_v55, %v367_v52 }
  0x97   : > { %369 = vst [vmem:[#allocation2 + $0x8] sm:$0x3] %v368_v56 }
  0x9a   : > { %v371_v61 = vld [vmem:[#allocation2 + $0x4] sm:$0xf] }
  0x9b   : > { %v1514_v3 = vcombine.low %v370_v60, %v371_v61  ;;  %v732_v60 = vld [vmem:[#allocation3 + $0x4] sm:$0xe] }
  0x9c   : > { %v733_v62 = vsel %vm1438_vm5, 0, %v732_v60 }
  0x9d   : > { %v387_v18 = vshll.u32 %v1514_v3, 16  ;;  %v399_v28 = vrot.slane %v1514_v3, 1  ;;  %v385_v34 = vshrl.u32 %v1514_v3, 16  ;;  %734 = vst [vmem:[#allocation3 + $0x4] sm:$0xe] %v733_v62 }
  0x9e   : > { %v372_v5 = vld [vmem:[#allocation2 + $0x8] sm:$0xf] }
  0x9f   : > { %v1183_v8 = vcombine.low %v372_v5, %v373_v59  ;;  %v1181_v9 = vcombine.low %v371_v61, %v372_v5  ;;  %v1180_v11 = vcombine.low %v372_v5, %v372_v5  ;;  %v389_v31 = vrot.slane %v387_v18, 1  ;;  %v726_v59 = vld [vmem:[#allocation3 + $0x4] sm:$0x1]  ;;  %v1342_v5 = vld [vmem:[%s1659_s4 + $0x80] sm:$0xff]  }
  0xa0   : > { %v727_v61 = vsel %vm1430_vm3, 0, %v726_v59  ;;  %v1204_v18 = vld [vmem:[%s1657_s2] ss:$0 sm:$0xff] }
  0xa1   : > { %428 = vrot.lane.b32.xlu0 %v1183_v8, %s1379_s26  ;;  %v447_v15 = vrot.slane %v1183_v8, 1  ;;  %v422_v16 = vrot.slane %v1181_v9, 1  ;;  %v436_v17 = vshll.u32 %v1183_v8, 16  ;;  %v434_v20 = vshrl.u32 %v1183_v8, 16  ;;  %728 = vst [vmem:[#allocation3 + $0x4] sm:$0x1] %v727_v61 }
  0xa2   : > { %v400_v22 = vrot.slane %v1180_v11, 1  ;;  %v392_v23 = vshll.u32 %v1180_v11, 16  ;;  %v413_v27 = vshll.u32 %v1181_v9, 16  ;;  %v411_v32 = vshrl.u32 %v1181_v9, 16  ;;  %v1353_v8 = vld [vmem:[%s1659_s4 + $0x8] sm:$0xff]   ;;  %v1357_v11 = vld [vmem:[%s1659_s4 + $0x18] sm:$0xff]  }
  0xa3   : > { %v449_v24 = vsel %vm398_vm11, %v447_v15, %v448_v6  ;;  %v424_v25 = vsel %vm398_vm11, %v422_v16, %v423_v10  ;;  %v438_v26 = vrot.slane %v436_v17, 1  ;;  %v390_v39 = vor.u32 %v389_v31, %v385_v34  ;;  %v1343_v6 = vld [vmem:[%s1659_s4 + $0x88] sm:$0xff]   ;;  %v1356_v10 = vld [vmem:[%s1659_s4 + $0x58] sm:$0xff]  }
  0xa4   : > { %1294 = vmatmul.mubr.msk.bf16.vlgmr.msra.gmra.mrb[0].mxu1 %vm450_vm12, %v449_v24  ;;  %425 = vrot.lane.b32.xlu1 %v424_v25, %s1380_s27  ;;  %v415_v33 = vrot.slane %v413_v27, 1  ;;  %v401_v36 = vsel %vm398_vm11, %v399_v28, %v400_v22  ;;  %v394_v37 = vrot.slane %v392_v23, 1  ;;  %v1205_v23 = vld [vmem:[%s1658_s3] ss:$0 sm:$0xff] }
  0xa5   : > { %v439_v30 = vor.u32 %v438_v26, %v434_v20  ;;  %1265 = vmatpush3.bf16.msra.mxu1 %v1351_v4 }
  0xa6   : > { %v416_v38 = vor.u32 %v415_v33, %v411_v32  ;;  %v395_v41 = vsel %vm383_vm13, %v390_v39, %v394_v37  ;;  %1266 = vmatprep.subr.bf16.mxu1 %v1352_v7 }
  0xa7   : > { %v444_v35 = vsel %vm383_vm13, %v439_v30, %v443_v21 }
  0xa8   : > { %445 = vrot.lane.b32.xlu0 %v444_v35, %s1374_s30  ;;  %402 = vrot.lane.b32.xlu1 %v401_v36, %s1379_s26  ;;  %v421_v40 = vsel %vm383_vm13, %v416_v38, %v420_v29  ;;  %v762_v39 = vld [vmem:[#allocation3 + $0x4] sm:$0x3] }
  0xa9   : > { %1267 = vmatpush3.bf16.msra.mxu1 %v1353_v8 }
  0xac   : > { %396 = vrot.lane.b32.xlu1 %v395_v41, %s1380_s27 }
  0xb0   : > { %405 = vrot.lane.b32.xlu1 %v1181_v9, %s1374_s30  ;;  %v1355_v9 = vld [vmem:[%s1659_s4 + $0x10] sm:$0xff]  }
 0x113   : > { %v429_v42 = vpop.permute.xlu0 %428 }
 0x116   : > { %v426_v43 = vpop.permute.xlu1 %425 }
 0x117   : > { %v462_v44 = vsel %vm450_vm12, %v421_v40, %v426_v43 }
 0x118   : > { %v464_v48 = vsel %vm453_vm14, %v462_v44, %v429_v42  ;;  %v1360_v44 = vld [vmem:[%s1659_s4 + $0x68] sm:$0xff]  }
 0x11a   : > { %v446_v46 = vpop.permute.xlu0 %445  ;;  %v403_v47 = vpop.permute.xlu1 %402 }
 0x11b   : > { %v466_v49 = vsel %vm456_vm15, %v464_v48, %v446_v46  ;;  %v1361_v46 = vld [vmem:[%s1659_s4 + $0x28] sm:$0xff]  }
 0x11c   : > { %647 = vmatprep.mubr.bf16.mxu0 %v466_v49 }
 0x11e   : > { %v397_v50 = vpop.permute.xlu1 %396 }
 0x11f   : > { %v452_v51 = vsel %vm450_vm12, %v1514_v3, %v397_v50  ;;  %v736_v3 = vsel %vm1438_vm5, 0, %v735_v1  ;;  %v771_v50 = vld [vmem:[#allocation3 + $0xc] sm:$0xf] }
 0x120   : > { %v455_v53 = vsel %vm453_vm14, %v452_v51, %v403_v47  ;;  %737 = vst [vmem:[#allocation3 + $0x8] sm:$0xe] %v736_v3  ;;  %v1362_v51 = vld [vmem:[%s1659_s4 + $0x70] sm:$0xff]  }
 0x122   : > { %v406_v52 = vpop.permute.xlu1 %405 }
 0x123   : > { %v458_v54 = vsel %vm456_vm15, %v455_v53, %v406_v52  ;;  %v1363_v52 = vld [vmem:[%s1659_s4 + $0x30] sm:$0xff]  }
 0x124   : > { %648 = vmatmul.mubr.bf16.vlgmr.msra.gmra.mrb[0].mxu0 %v458_v54  ;;  %v768_v53 = vld [vmem:[#allocation3] sm:$0xf]  ;;  %v1347_v54 = vld [vmem:[#allocation3 + $0x10] ss:$0 sps:$4 sm:$0xff]  }
 0x125   : > { %1301 = vmatprep.mubr.msk.bf16.mxu0 %vm1377_vm7, %v1376_v19  ;;  %1298 = vmatpush3.bf16.msra.mxu0 %v1342_v5  ;;  %v844_v60 = vrot.slane %v1347_v54, 1  ;;  %v837_v61 = vshll.u32 %v1347_v54, 16  ;;  %v1234_v54 = vld [vmem:[%s1661_s6] ss:$0 sm:$0xff] }
 0x126   : > { %1299 = vmatprep.subr.bf16.mxu0 %v1376_v19  ;;  %v1354_v19 = vld [vmem:[%s1659_s4 + $0x50] sm:$0xff]  }
 0x127   : > { %1268 = vmatprep.subr.bf16.mxu1 %v1354_v19  ;;  %v765_v43 = vld [vmem:[#allocation3 + $0x8] sm:$0x3] }
 0x128   : > { %1269 = vmatpush3.bf16.msra.mxu1 %v1355_v9 }
 0x129   : > { %1300 = vmatpush3.bf16.msra.mxu0 %v1343_v6  ;;  %1270 = vmatprep.subr.bf16.mxu1 %v1356_v10 }
 0x12c   : > { %1271 = vmatpush3.bf16.msra.mxu1 %v1357_v11  ;;  %v839_v11 = vrot.slane %v837_v61, 1 }
 0x12d   : > { %1272 = vmatprep.subr.bf16.mxu1 %v1358_v12 }
 0x130   : > { %1273 = vmatpush3.bf16.msra.mxu1 %v1359_v13 }
 0x131   : > { %1274 = vmatprep.subr.bf16.mxu1 %v1360_v44 }
 0x134   : > { %1275 = vmatpush3.bf16.msra.mxu1 %v1361_v46 }
 0x135   : > { %1276 = vmatprep.subr.bf16.mxu1 %v1362_v51 }
 0x138   : > { %1277 = vmatpush3.bf16.msra.mxu1 %v1363_v52 }
 0x139   : > { %1278 = vmatprep.subr.bf16.mxu1 %v1364_v45 }
 0x177   : > { %v690_v55 = vpop.f32.mrb[0].mxu1 }
 0x178   : > { %v1295_v56 = vpop.f32.mrb[1].mxu1 }
 0x179   : > { %v693_v57 = vpop.f32.mrb[2].mxu1  ;;  %v1365_v56 = vld [vmem:[%s1659_s4 + $0x38] sm:$0xff]  }
 0x17a   : > { %v1296_v58 = vpop.f32.mrb[3].mxu1  ;;  %1279 = vmatpush3.bf16.msra.mxu1 %v1365_v56 }
 0x1f7   : > { %v1255_v14 = vpop.f32.mrb[0].mxu0 }
 0x1f8   : > { %v1256_v15 = vpop.f32.mrb[1].mxu0 }
 0x1f9   : > { %v1257_v16 = vadd.f32 %v1256_v15, %v1255_v14  ;;  %v1258_v17 = vpop.f32.mrb[2].mxu0 }
 0x1fa   : > { %v1259_v20 = vpop.f32.mrb[3].mxu0 }
 0x1fb   : > { %v691_v21 = vadd.f32 %v1257_v16, %v690_v55  ;;  %v1260_v22 = vadd.f32 %v1259_v20, %v1258_v17  ;;  %v1211_v55 = vcombine.low %v771_v50, %v771_v50 }
 0x1fd   : > { %v704_v24 = vmul.f32 %v1204_v18, %v691_v21  ;;  %v694_v25 = vadd.f32 %v1260_v22, %v693_v57  ;;  %v819_v2 = vrot.slane %v1211_v55, 1  ;;  %v814_v6 = vshll.u32 %v1211_v55, 16 }
 0x1ff   : > { %v713_v26 = vadd.f32 %v1205_v23, %v704_v24  ;;  %v705_v27 = vmul.f32 %v1204_v18, %v694_v25  ;;  %v816_v22 = vrot.slane %v814_v6, 1 }
 0x201   : > { %vm715_vm1 = vcmp.ge.f32.partialorder %v713_v26, 0.0  ;;  %v717_v28 = vmul.f32 0.01, %v713_v26  ;;  %v714_v29 = vadd.f32 %v1205_v23, %v705_v27 }
 0x203   : > { %v719_v30 = vsel %vm715_vm1, %v713_v26, %v717_v28  ;;  %vm716_vm2 = vcmp.ge.f32.partialorder %v714_v29, 0.0  ;;  %v718_v31 = vmul.f32 0.01, %v714_v29 }
 0x204   : > { %v1237_v32 = vpack.c.bf16 %v719_v30, %v719_v30 }
 0x205   : > { %v720_v33 = vsel %vm716_vm2, %v714_v29, %v718_v31 }
 0x206   : > { %v747_v34 = vshrl.u32 %v1237_v32, 16  ;;  %v1238_v35 = vpack.c.bf16 %v720_v33, %v720_v33  ;;  %v750_v37 = vshll.u32 %v1237_v32, 16 }
 0x208   : > { %v749_v36 = vrot.slane %v747_v34, 7  ;;  %v754_v38 = vshrl.u32 %v1238_v35, 16  ;;  %v757_v42 = vshll.u32 %v1238_v35, 16 }
 0x20a   : > { %v752_v40 = vor.u32 %v750_v37, %v749_v36  ;;  %v756_v41 = vrot.slane %v754_v38, 7 }
 0x20c   : > { %v763_v47 = vsel %vm1488_vm10, %v752_v40, %v762_v39  ;;  %v759_v48 = vor.u32 %v757_v42, %v756_v41 }
 0x20d   : > { %764 = vst [vmem:[#allocation3 + $0x4] sm:$0x3] %v763_v47 }
 0x20e   : > { %v766_v49 = vsel %vm1488_vm10, %v759_v48, %v765_v43 }
 0x20f   : > { %767 = vst [vmem:[#allocation3 + $0x8] sm:$0x3] %v766_v49 }
 0x214   : > { %v769_v57 = vld [vmem:[#allocation3 + $0x4] sm:$0xf] }
 0x215   : > { %v1208_v58 = vcombine.low %v768_v53, %v769_v57 }
 0x216   : > { %v770_v59 = vld [vmem:[#allocation3 + $0x8] sm:$0xf] }
 0x217   : > { %v1212_v62 = vcombine.low %v770_v59, %v771_v50  ;;  %v1210_v63 = vcombine.low %v769_v57, %v770_v59  ;;  %v1209_v1 = vcombine.low %v770_v59, %v770_v59  ;;  %v795_v3 = vrot.slane %v1208_v58, 1  ;;  %v1233_v50 = vld [vmem:[%s1660_s5] ss:$0 sm:$0xff] }
 0x218   : > { %v784_v5 = vshll.u32 %v1208_v58, 16  ;;  %v782_v19 = vshrl.u32 %v1208_v58, 16 }
 0x219   : > { %824 = vrot.lane.b32.xlu0 %v1212_v62, %s1379_s26  ;;  %v843_v0 = vrot.slane %v1212_v62, 1  ;;  %v796_v4 = vrot.slane %v1209_v1, 1  ;;  %v818_v7 = vrot.slane %v1210_v63, 1  ;;  %v789_v8 = vshll.u32 %v1209_v1, 16 }
 0x21a   : > { %v786_v9 = vrot.slane %v784_v5, 1  ;;  %v832_v10 = vshll.u32 %v1212_v62, 16  ;;  %v830_v17 = vshrl.u32 %v1212_v62, 16  ;;  %v809_v20 = vshll.u32 %v1210_v63, 16 }
 0x21b   : > { %v845_v12 = vsel %vm398_vm11, %v843_v0, %v844_v60  ;;  %v797_v13 = vsel %vm398_vm11, %v795_v3, %v796_v4  ;;  %v820_v14 = vsel %vm398_vm11, %v818_v7, %v819_v2  ;;  %v791_v15 = vrot.slane %v789_v8, 1 }
 0x21c   : > { %1302 = vmatmul.mubr.msk.bf16.vlgmr.msra.gmra.mrb[4].mxu0 %vm450_vm12, %v845_v12  ;;  %798 = vrot.lane.b32.xlu1 %v797_v13, %s1379_s26  ;;  %v787_v16 = vor.u32 %v786_v9, %v782_v19  ;;  %v834_v18 = vrot.slane %v832_v10, 1  ;;  %v807_v23 = vshrl.u32 %v1210_v63, 16  ;;  %v811_v24 = vrot.slane %v809_v20, 1 }
 0x21d   : > { %821 = vrot.lane.b32.xlu0 %v820_v14, %s1380_s27 }
 0x21e   : > { %v835_v21 = vor.u32 %v834_v18, %v830_v17  ;;  %v792_v25 = vsel %vm383_vm13, %v787_v16, %v791_v15  ;;  %v812_v27 = vor.u32 %v811_v24, %v807_v23 }
 0x220   : > { %793 = vrot.lane.b32.xlu1 %v792_v25, %s1380_s27  ;;  %v840_v26 = vsel %vm383_vm13, %v835_v21, %v839_v11  ;;  %v817_v28 = vsel %vm383_vm13, %v812_v27, %v816_v22 }
 0x221   : > { %841 = vrot.lane.b32.xlu0 %v840_v26, %s1374_s30 }
 0x224   : > { %801 = vrot.lane.b32.xlu1 %v1210_v63, %s1374_s30 }
 0x28b   : > { %v825_v29 = vpop.permute.xlu0 %824 }
 0x28e   : > { %v799_v30 = vpop.permute.xlu1 %798 }
 0x28f   : > { %v822_v31 = vpop.permute.xlu0 %821 }
 0x290   : > { %v855_v32 = vsel %vm450_vm12, %v817_v28, %v822_v31 }
 0x291   : > { %v857_v36 = vsel %vm453_vm14, %v855_v32, %v825_v29 }
 0x292   : > { %v794_v33 = vpop.permute.xlu1 %793 }
 0x293   : > { %v847_v34 = vsel %vm450_vm12, %v1208_v58, %v794_v33  ;;  %v842_v35 = vpop.permute.xlu0 %841 }
 0x294   : > { %v859_v37 = vsel %vm456_vm15, %v857_v36, %v842_v35  ;;  %v849_v38 = vsel %vm453_vm14, %v847_v34, %v799_v30 }
 0x295   : > { %1040 = vmatprep.mubr.bf16.mxu1 %v859_v37 }
 0x296   : > { %v802_v39 = vpop.permute.xlu1 %801 }
 0x297   : > { %v851_v40 = vsel %vm456_vm15, %v849_v38, %v802_v39 }
 0x298   : > { %1041 = vmatmul.mubr.bf16.vlgmr.msra.gmra.mrb[4].mxu1 %v851_v40 }
 0x2ef   : > { %v1083_v41 = vpop.f32.mrb[4].mxu0 }
 0x2f0   : > { %v1303_v42 = vpop.f32.mrb[5].mxu0 }
 0x2f1   : > { %v1086_v43 = vpop.f32.mrb[6].mxu0 }
 0x2f2   : > { %v1304_v44 = vpop.f32.mrb[7].mxu0 }
 0x36b   : > { %v1280_v46 = vpop.f32.mrb[4].mxu1 }
 0x36c   : > { %v1281_v47 = vpop.f32.mrb[5].mxu1 }
 0x36d   : > { %v1282_v48 = vadd.f32 %v1281_v47, %v1280_v46  ;;  %v1283_v49 = vpop.f32.mrb[6].mxu1 }
 0x36e   : > { %v1284_v51 = vpop.f32.mrb[7].mxu1 }
 0x36f   : > { %v1084_v52 = vadd.f32 %v1282_v48, %v1083_v41  ;;  %v1285_v53 = vadd.f32 %v1284_v51, %v1283_v49 }
 0x371   : > { %v1097_v55 = vmul.f32 %v1233_v50, %v1084_v52  ;;  %v1087_v45 = vadd.f32 %v1285_v53, %v1086_v43 }
 0x373   : > { %v1106_v56 = vadd.f32 %v1234_v54, %v1097_v55  ;;  %v1098_v57 = vmul.f32 %v1233_v50, %v1087_v45 }
 0x375   : > { %vm1108_vm3 = vcmp.ge.f32.partialorder %v1106_v56, 0.0  ;;  %v1110_v58 = vmul.f32 0.01, %v1106_v56  ;;  %v1107_v59 = vadd.f32 %v1234_v54, %v1098_v57 }
 0x377   : > { %v1112_v60 = vsel %vm1108_vm3, %v1106_v56, %v1110_v58  ;;  %vm1109_vm4 = vcmp.ge.f32.partialorder %v1107_v59, 0.0  ;;  %v1111_v61 = vmul.f32 0.01, %v1107_v59 }
 0x378   : > { %v1114_v62 = vpack.c.bf16 %v1112_v60, %v1112_v60 }
 0x379   : > { %v1113_v63 = vsel %vm1109_vm4, %v1107_v59, %v1111_v61 }
 0x37a   : > { %1117 = vst.msk [vmem:[%s273_s14] sm:$0x1] %vm297_vm0, %v1114_v62  ;;  %v1115_v1 = vpack.c.bf16 %v1113_v63, %v1113_v63 }
 0x37c   : > { %1118 = vst.msk [vmem:[%s273_s14 + $0x1] sm:$0x1] %vm297_vm0, %v1115_v1 }
 0x37d PF: > { %s17_s24 = sadd.s32 1, %s1372_s24  }
 0x37e   : > { %p14_p4 = scmp.ge.s32.totalorder %s17_s24, 4  }
 0x380   :  { %16 = sbr.rel (!%p14_p4) target bundleno = 1 (0x1), region = 82 }

// kernel: encoder_forward.7
= control target key start
LH: loop header
LB: loop body
LE: loop exit
PB: predicated region body
PF: predicated region fallthrough
CT: control target
= control target key end

     0   :  { %s1568_s24 = smov 0   ;;  %s1907_s0 = inlined_call_operand.vmem [shape: bf16[2,4,2,4,32], index: 0, kind: input, shape index: {}]   ;;  %s1908_s1 = inlined_call_operand.vmem [shape: bf16[144,32], index: 1, kind: input, shape index: {}]   ;;  %s1909_s2 = inlined_call_operand.vmem [shape: f32[1,32], index: 2, kind: input, shape index: {}]   ;;  %s1910_s3 = inlined_call_operand.vmem [shape: f32[1,32], index: 3, kind: input, shape index: {}]   ;;  %s1911_s4 = inlined_call_operand.vmem [shape: bf16[288,32], index: 4, kind: input, shape index: {}]   ;;  %s1912_s5 = inlined_call_operand.vmem [shape: f32[1,32], index: 5, kind: input, shape index: {}]   ;;  %s1913_s6 = inlined_call_operand.vmem [shape: f32[1,32], index: 6, kind: input, shape index: {}]   ;;  %s1914_s7 = inlined_call_operand.vmem [shape: bf16[2,4,4,32], index: 7, kind: output, shape index: {}]  }
   0x1 LB: > { %s1343_s25 = sadd.s32 4294967295, %s1517_s24   ;;  %p1347_p0 = scmp.ge.s32.totalorder %s1517_s24, 1  ;;  %s1517_s24 = sphi %s1568_s24, %s17_s24  }
   0x2   : > { %p237_p1 = scmp.lt.s32.totalorder %s1517_s24, 3 }
   0x4   : > { %p238_p2 = pnand %p1347_p0, %p237_p1 }
   0x5   : > { %p269_p3 = scmp.lt.s32.totalorder (!%p238_p2), %s1343_s25, 1  ;;  %vm318_vm0 = vcmask (!%p238_p2), 122880   ;;  %vm319_vm1 = vsmask.f32 (!%p238_p2), 256  ;;  %vm333_vm2 = vcmask (!%p238_p2), 125954   ;;  %s1519_s30 = smov (!%p238_p2), 112   ;;  %v355_v38 = vlaneseq (!%p238_p2) }
   0x6   : > { %241 = sbr.rel (%p238_p2) target bundleno = 913 (0x391), region = 48  ;;  %vm1577_vm3 = vmand (!%p238_p2), %vm318_vm0, %vm319_vm1  ;;  %v327_v1 = vld [vmem:[#allocation2 + $0xc] sm:$0x1] (!%p238_p2)  ;;  %vm334_vm4 = vsmask.f32 (!%p238_p2), 7946  ;;  %vm312_vm6 = vcmask (!%p238_p2), 125952  }
   0x7   : > { %v342_v2 = vld [vmem:[#allocation2 + $0xc] sm:$0xc] (!%p238_p2)  ;;  %v328_v3 = vsel (!%p238_p2), %vm1577_vm3, 0, %v327_v1  ;;  %vm1586_vm5 = vmand (!%p238_p2), %vm333_vm2, %vm334_vm4  ;;  %v321_v6 = vld [vmem:[#allocation2 + $0x4] sm:$0x1] (!%p238_p2)  ;;  %v1520_v30 = vmov (!%p238_p2), 0  }
   0x8   : > { %329 = vst [vmem:[#allocation2 + $0xc] sm:$0x1] (!%p238_p2), %v328_v3  ;;  %v343_v5 = vsel (!%p238_p2), %vm1586_vm5, 0, %v342_v2  ;;  %v322_v7 = vsel (!%p238_p2), %vm1577_vm3, 0, %v321_v6  ;;  %v336_v8 = vld [vmem:[#allocation2 + $0x4] sm:$0xc] (!%p238_p2)  ;;  %668 = vmatprep.subr.bf16.mxu0 (!%p238_p2), %v1520_v30 }
   0x9   : > { %344 = vst [vmem:[#allocation2 + $0xc] sm:$0xc] (!%p238_p2), %v343_v5  ;;  %323 = vst [vmem:[#allocation2 + $0x4] sm:$0x1] (!%p238_p2), %v322_v7  ;;  %v337_v9 = vsel (!%p238_p2), %vm1586_vm5, 0, %v336_v8  ;;  %v1478_v31 = vld [vmem:[%s1908_s1] sm:$0xff] (!%p238_p2)  }
   0xa   : > { %v330_v10 = vld [vmem:[#allocation2 + $0x10] sm:$0x1] (!%p238_p2)  ;;  %v345_v11 = vld [vmem:[#allocation2 + $0x10] sm:$0xc] (!%p238_p2)  ;;  %338 = vst [vmem:[#allocation2 + $0x4] sm:$0xc] (!%p238_p2), %v337_v9  ;;  %669 = vmatpush1.bf16.msra.mxu0 (!%p238_p2), %v1478_v31 }
   0xb   : > { %v331_v22 = vsel (!%p238_p2), %vm1577_vm3, 0, %v330_v10  ;;  %v346_v23 = vsel (!%p238_p2), %vm1586_vm5, 0, %v345_v11  ;;  %v324_v25 = vld [vmem:[#allocation2 + $0x8] sm:$0x1] (!%p238_p2)  ;;  %v339_v26 = vld [vmem:[#allocation2 + $0x8] sm:$0xc] (!%p238_p2)  ;;  %670 = vmatprep.subr.bf16.mxu0 (!%p238_p2), %v1520_v30 }
   0xc   : > { %332 = vst [vmem:[#allocation2 + $0x10] sm:$0x1] (!%p238_p2), %v331_v22  ;;  %347 = vst [vmem:[#allocation2 + $0x10] sm:$0xc] (!%p238_p2), %v346_v23  ;;  %v325_v28 = vsel (!%p238_p2), %vm1577_vm3, 0, %v324_v25  ;;  %v340_v29 = vsel (!%p238_p2), %vm1586_vm5, 0, %v339_v26 }
   0xd   : > { %s1928_s25 = smov (!%p269_p3, %s1343_s25), 1  ;;  %313 = vst.msk [vmem:[#allocation2] sm:$0xf] %vm312_vm6, %v1520_v30  ;;  %315 = vst.msk [vmem:[#allocation2 + $0x14] sm:$0xf] %vm312_vm6, %v1520_v30  ;;  %v1479_v32 = vld [vmem:[%s1908_s1 + $0x8] sm:$0xff]  }
   0xe   : > { %s1409_s26 = sshll.u32 %s1928_s25, 4  ;;  %316 = vst.msk [vmem:[#allocation2 + $0x18] sm:$0xf] %vm312_vm6, %v1520_v30  ;;  %326 = vst [vmem:[#allocation2 + $0x8] sm:$0x1] %v325_v28  ;;  %671 = vmatpush1.bf16.msra.mxu0 %v1479_v32  ;;  %v1480_v33 = vld [vmem:[%s1908_s1 + $0x10] sm:$0xff]  }
   0xf   : > { %s273_s29 = scalar_lea.vmem %s1907_s0, %s1409_s26  ;;  %341 = vst [vmem:[#allocation2 + $0x8] sm:$0xc] %v340_v29  ;;  %672 = vmatprep.subr.bf16.mxu0 %v1520_v30  ;;  %v1481_v34 = vld [vmem:[%s1908_s1 + $0x18] sm:$0xff]   ;;  %v1482_v35 = vld [vmem:[%s1908_s1 + $0x20] sm:$0xff]   ;;  %v1521_v36 = vmov 1983009808  }
  0x10   : > { %v284_v12 = vld [vmem:[%s273_s29 + $0x8] sm:$0x3]  ;;  %v285_v13 = vld [vmem:[%s273_s29 + $0xa] sm:$0x3]  ;;  %v280_v14 = vld [vmem:[%s273_s29] sm:$0x3]  ;;  %v353_v37 = vunpack.c.l.s4 %v1521_v36 }
  0x11   : > { %v290_v15 = vmax.bf16 %v285_v13, %v284_v12  ;;  %v281_v16 = vld [vmem:[%s273_s29 + $0x2] sm:$0x3]  ;;  %v286_v17 = vld [vmem:[%s273_s29 + $0xc] sm:$0x3]  ;;  %v287_v18 = vld [vmem:[%s273_s29 + $0xe] sm:$0x3] }
  0x12   : > { %v288_v19 = vmax.bf16 %v281_v16, %v280_v14  ;;  %v282_v20 = vld [vmem:[%s273_s29 + $0x4] sm:$0x3]  ;;  %v283_v21 = vld [vmem:[%s273_s29 + $0x6] sm:$0x3]  ;;  %v291_v24 = vmax.bf16 %v287_v18, %v286_v17  ;;  %673 = vmatpush1.bf16.msra.mxu0 %v1480_v33  ;;  %v354_v39 = vunpack.c.0.s8 %v353_v37  ;;  %v356_v40 = vshrl.u32 %v355_v38, 7  ;;  %v1483_v12 = vld [vmem:[%s1908_s1 + $0x28] sm:$0xff]  }
  0x13   : > { %300 = vrot.lane.b32.xlu1 %v290_v15, %s1519_s30  ;;  %v289_v27 = vmax.bf16 %v283_v21, %v282_v20  ;;  %674 = vmatprep.subr.bf16.mxu0 %v1520_v30  ;;  %vm412_vm7 = vcmask 124928   ;;  %vm413_vm8 = vsmask.f32 2306  ;;  %v421_v58 = vld [vmem:[#allocation2 + $0xc] sm:$0x7]  ;;  %v1484_v16 = vld [vmem:[%s1908_s1 + $0x30] sm:$0xff]  }
  0x14   : > { %296 = vrot.lane.b32.xlu0 %v288_v19, %s1519_s30  ;;  %v357_v41 = vsub.s32 %v354_v39, %v356_v40  ;;  %vm1637_vm9 = vmand %vm412_vm7, %vm413_vm8  ;;  %v415_v63 = vld [vmem:[#allocation2 + $0x4] sm:$0x7]  ;;  %v424_v7 = vld [vmem:[#allocation2 + $0x10] sm:$0x7]  ;;  %vm472_vm10 = vcmask 1046528   ;;  %vm553_vm11 = vcmask 130048  }
  0x15   : > { %v427_v17 = vld [vmem:[#allocation2] sm:$0xf]  ;;  %v432_v20 = vld [vmem:[#allocation2 + $0x14] sm:$0xf]  ;;  %v1485_v23 = vld [vmem:[%s1908_s1 + $0x38] sm:$0xff]   ;;  %s1522_s26 = smov 48  }
  0x16   : > { %675 = vmatpush1.bf16.msra.mxu0 %v1481_v34  ;;  %v418_v11 = vld [vmem:[#allocation2 + $0x8] sm:$0x7]  ;;  %v1671_v33 = vld [vmem:[#allocation2 + $0x18] ss:$0 sps:$4 sm:$0xff]   ;;  %s1523_s27 = smov 96   ;;  %v1486_v38 = vld [vmem:[%s1908_s1 + $0x40] sm:$0xff]  }
  0x17   : > { %302 = vrot.lane.b32.xlu1 %v291_v24, %s1519_s30  ;;  %676 = vmatprep.subr.bf16.mxu0 %v1520_v30  ;;  %s1524_s8 = smov 80   ;;  %s1525_s9 = smov 32   ;;  %vm447_vm12 = vsmask.f32 7424  ;;  %vm558_vm13 = vcmask 261120   ;;  %vm563_vm14 = vcmask 392192  }
  0x18   : > { %298 = vrot.lane.b32.xlu0 %v289_v27, %s1519_s30  ;;  %s1526_s10 = smov 16   ;;  %s1527_s11 = smov 64   ;;  %vm568_vm15 = vcmask 523264   ;;  %vm573_vm0 = vcmask 654336   ;;  %vm578_vm2 = vcmask 785408   ;;  %vm583_vm3 = vcmask 916480  }
  0x19   : > { %vm757_vm5 = vcmask 253952   ;;  %vm771_vm6 = vcmask 257026   ;;  %s1410_s16 = sshll.u32 %s1928_s25, 3 }
  0x1a   : > { %677 = vmatpush1.bf16.msra.mxu0 %v1482_v35  ;;  %vm1738_vm7 = vmand %vm757_vm5, %vm319_vm1  ;;  %vm751_vm1 = vcmask 257024   ;;  %s278_s19 = scalar_lea.vmem %s1914_s7, %s1410_s16 }
  0x1b   : > { %678 = vmatprep.subr.bf16.mxu0 %v1520_v30  ;;  %752 = vst.msk [vmem:[#allocation3] sm:$0xf] %vm751_vm1, %v1520_v30  ;;  %754 = vst.msk [vmem:[#allocation3 + $0x14] sm:$0xf] %vm751_vm1, %v1520_v30 }
  0x1c   : > { %755 = vst.msk [vmem:[#allocation3 + $0x18] sm:$0xf] %vm751_vm1, %v1520_v30 }
  0x1e   : > { %679 = vmatpush1.bf16.msra.mxu0 %v1483_v12 }
  0x1f   : > { %680 = vmatprep.subr.bf16.mxu0 %v1520_v30 }
  0x22   : > { %681 = vmatpush1.bf16.msra.mxu0 %v1484_v16 }
  0x23   : > { %682 = vmatprep.subr.bf16.mxu0 %v1520_v30 }
  0x26   : > { %683 = vmatpush1.bf16.msra.mxu0 %v1485_v23 }
  0x27   : > { %684 = vmatprep.subr.bf16.mxu0 %v1520_v30  ;;  %v1495_v30 = vld [vmem:[%s1911_s4 + $0x48] sm:$0xff]  }
  0x2a   : > { %685 = vmatpush1.bf16.msra.mxu0 %v1486_v38 }
  0x85   : > { %v301_v42 = vpop.permute.xlu1 %300 }
  0x86   : > { %v310_v43 = vmax.bf16 %v301_v42, %v290_v15  ;;  %v297_v44 = vpop.permute.xlu0 %296 }
  0x87   : > { %v308_v45 = vmax.bf16 %v297_v44, %v288_v19 }
  0x88   : > { %v372_v46 = vrot.slane %v310_v43, %v357_v41 }
  0x89   : > { %v358_v47 = vrot.slane %v308_v45, %v357_v41  ;;  %v303_v48 = vpop.permute.xlu1 %302 }
  0x8a   : > { %v395_v49 = vshrl.u32 %v372_v46, 16  ;;  %v398_v50 = vshll.u32 %v372_v46, 16  ;;  %v311_v51 = vmax.bf16 %v303_v48, %v291_v24  ;;  %v299_v52 = vpop.permute.xlu0 %298  ;;  %v551_v48 = vrot.slane %v1671_v33, 1 }
  0x8b   : > { %v381_v53 = vshrl.u32 %v358_v47, 16  ;;  %v309_v54 = vmax.bf16 %v299_v52, %v289_v27  ;;  %v384_v60 = vshll.u32 %v358_v47, 16 }
  0x8c   : > { %v397_v55 = vrot.slane %v395_v49, 7  ;;  %v379_v56 = vrot.slane %v311_v51, %v357_v41 }
  0x8d   : > { %v383_v59 = vrot.slane %v381_v53, 7  ;;  %v365_v61 = vrot.slane %v309_v54, %v357_v41 }
  0x8e   : > { %v400_v62 = vor.u32 %v398_v50, %v397_v55  ;;  %v402_v0 = vshrl.u32 %v379_v56, 16  ;;  %v405_v1 = vshll.u32 %v379_v56, 16  ;;  %v1357_v55 = vcombine.low %v432_v20, %v432_v20 }
  0x8f   : > { %v386_v2 = vor.u32 %v384_v60, %v383_v59  ;;  %v388_v3 = vshrl.u32 %v365_v61, 16  ;;  %v391_v9 = vshll.u32 %v365_v61, 16 }
  0x90   : > { %v422_v4 = vsel %vm1637_vm9, %v400_v62, %v421_v58  ;;  %v404_v5 = vrot.slane %v402_v0, 7  ;;  %v507_v0 = vshll.u32 %v1357_v55, 16 }
  0x91   : > { %423 = vst [vmem:[#allocation2 + $0xc] sm:$0x7] %v422_v4  ;;  %v416_v6 = vsel %vm1637_vm9, %v386_v2, %v415_v63  ;;  %v390_v8 = vrot.slane %v388_v3, 7  ;;  %v518_v4 = vrot.slane %v1357_v55, 1  ;;  %v765_v55 = vld [vmem:[#allocation3 + $0xc] sm:$0x1] }
  0x92   : > { %417 = vst [vmem:[#allocation2 + $0x4] sm:$0x7] %v416_v6  ;;  %v407_v10 = vor.u32 %v405_v1, %v404_v5  ;;  %v541_v5 = vshll.u32 %v1671_v33, 16 }
  0x93   : > { %v393_v13 = vor.u32 %v391_v9, %v390_v8  ;;  %v509_v9 = vrot.slane %v507_v0, 1  ;;  %v1494_v0 = vld [vmem:[%s1911_s4] sm:$0xff]  }
  0x94   : > { %v425_v14 = vsel %vm1637_vm9, %v407_v10, %v424_v7 }
  0x95   : > { %426 = vst [vmem:[#allocation2 + $0x10] sm:$0x7] %v425_v14  ;;  %v419_v15 = vsel %vm1637_vm9, %v393_v13, %v418_v11  ;;  %v543_v14 = vrot.slane %v541_v5, 1  ;;  %vm1743_vm9 = vmand %vm771_vm6, %vm334_vm4 }
  0x96   : > { %420 = vst [vmem:[#allocation2 + $0x8] sm:$0x7] %v419_v15 }
  0x98   : > { %v430_v21 = vld [vmem:[#allocation2 + $0xc] sm:$0xf] }
  0x99   : > { %v428_v18 = vld [vmem:[#allocation2 + $0x4] sm:$0xf] }
  0x9a   : > { %v1657_v19 = vcombine.low %v427_v17, %v428_v18 }
  0x9c   : > { %v431_v22 = vld [vmem:[#allocation2 + $0x10] sm:$0xf]  ;;  %v451_v27 = vshll.u32 %v1657_v19, 16  ;;  %v473_v36 = vrot.slane %v1657_v19, 1  ;;  %v449_v44 = vshrl.u32 %v1657_v19, 16 }
  0x9d   : > { %v429_v24 = vld [vmem:[#allocation2 + $0x8] sm:$0xf]  ;;  %v1662_v25 = vcombine.low %v430_v21, %v431_v22  ;;  %v1664_v26 = vcombine.low %v431_v22, %v432_v20  ;;  %v1354_v47 = vcombine.low %v431_v22, %v431_v22 }
  0x9e   : > { %v1355_v28 = vcombine.low %v428_v18, %v429_v24  ;;  %v1667_v29 = vcombine.low %v429_v24, %v430_v21  ;;  %v453_v39 = vrot.slane %v451_v27, 1 }
  0x9f   : > { %v549_v31 = vrot.slane %v1664_v26, 1  ;;  %v516_v32 = vrot.slane %v1662_v25, 1  ;;  %v499_v51 = vshll.u32 %v1662_v25, 16  ;;  %v476_v54 = vrot.slane %v1354_v47, 1 }
  0xa0   : > { %484 = vrot.lane.b32.xlu0 %v1355_v28, %s1522_s26  ;;  %525 = vrot.lane.b32.xlu1 %v1667_v29, %s1523_s27  ;;  %v474_v34 = vrot.slane %v1667_v29, 1  ;;  %v515_v35 = vrot.slane %v1355_v28, 1  ;;  %v456_v37 = vshll.u32 %v1667_v29, 16  ;;  %v494_v40 = vshll.u32 %v1355_v28, 16 }
  0xa1   : > { %v454_v49 = vor.u32 %v453_v39, %v449_v44  ;;  %v492_v50 = vshrl.u32 %v1355_v28, 16  ;;  %v552_v56 = vsel %vm472_vm10, %v549_v31, %v551_v48  ;;  %v501_v57 = vrot.slane %v499_v51, 1  ;;  %v773_v48 = vld [vmem:[#allocation3 + $0x4] sm:$0xc]  ;;  %v762_v51 = vld [vmem:[#allocation3 + $0x8] sm:$0x1] }
  0xa2   : > { %v550_v41 = vsel %vm472_vm10, %v474_v34, %v549_v31  ;;  %v517_v42 = vsel %vm472_vm10, %v515_v35, %v516_v32  ;;  %v475_v43 = vsel %vm472_vm10, %v473_v36, %v474_v34  ;;  %v458_v45 = vrot.slane %v456_v37, 1 }
  0xa3   : > { %1369 = vmatprep.mubr.msk.bf16.mxu0 %vm553_vm11, %v550_v41  ;;  %v496_v46 = vrot.slane %v494_v40, 1  ;;  %v460_v58 = vshrl.u32 %v1667_v29, 16  ;;  %v464_v59 = vshll.u32 %v1354_v47, 16  ;;  %v533_v60 = vshll.u32 %v1664_v26, 16  ;;  %v759_v47 = vld [vmem:[#allocation3 + $0x4] sm:$0x1] }
  0xa4   : > { %520 = vrot.lane.b32.xlu0 %v517_v42, %s1524_s8  ;;  %478 = vrot.lane.b32.xlu1 %v475_v43, %s1525_s9  ;;  %v459_v52 = vsel %vm447_vm12, %v454_v49, %v458_v45  ;;  %v477_v62 = vsel %vm472_vm10, %v474_v34, %v476_v54  ;;  %v503_v3 = vshrl.u32 %v1662_v25, 16  ;;  %v537_v10 = vshrl.u32 %v1664_v26, 16 }
  0xa5   : > { %v497_v53 = vor.u32 %v496_v46, %v492_v50  ;;  %v462_v63 = vor.u32 %v460_v58, %v458_v45  ;;  %v466_v1 = vrot.slane %v464_v59, 1  ;;  %v535_v2 = vrot.slane %v533_v60, 1  ;;  %v768_v59 = vld [vmem:[#allocation3 + $0x10] sm:$0x1]  ;;  %v782_v60 = vld [vmem:[#allocation3 + $0x10] sm:$0xc] }
  0xa6   : > { %v505_v8 = vor.u32 %v503_v3, %v501_v57  ;;  %v519_v11 = vsel %vm472_vm10, %v516_v32, %v518_v4  ;;  %v760_v49 = vsel %vm1738_vm7, 0, %v759_v47  ;;  %v774_v50 = vsel %vm1743_vm9, 0, %v773_v48  ;;  %v1498_v3 = vld [vmem:[%s1911_s4 + $0x10] sm:$0xff]   ;;  %v1371_v4 = vld [vmem:[%s1909_s2] ss:$0 sm:$0xff] }
  0xa7   : > { %v502_v61 = vsel %vm447_vm12, %v497_v53, %v501_v57  ;;  %v467_v6 = vsel %vm447_vm12, %v462_v63, %v466_v1  ;;  %v536_v7 = vsel %vm447_vm12, %v462_v63, %v535_v2  ;;  %v539_v13 = vor.u32 %v537_v10, %v535_v2  ;;  %761 = vst [vmem:[#allocation3 + $0x4] sm:$0x1] %v760_v49  ;;  %v1493_v63 = vld [vmem:[%s1911_s4 + $0x40] sm:$0xff]   ;;  %v1496_v1 = vld [vmem:[%s1911_s4 + $0x8] sm:$0xff]   ;;  %v1497_v2 = vld [vmem:[%s1911_s4 + $0x50] sm:$0xff]  }
  0xa8   : > { %486 = vrot.lane.b32.xlu1 %v1662_v25, %s1522_s26  ;;  %468 = vrot.lane.b32.xlu0 %v459_v52, %s1526_s10  ;;  %v510_v12 = vsel %vm447_vm12, %v505_v8, %v509_v9  ;;  %775 = vst [vmem:[#allocation3 + $0x4] sm:$0xc] %v774_v50  ;;  %v776_v52 = vld [vmem:[#allocation3 + $0x8] sm:$0xc]  ;;  %v763_v53 = vsel %vm1738_vm7, 0, %v762_v51  ;;  %v766_v57 = vsel %vm1738_vm7, 0, %v765_v55 }
  0xa9   : > { %v544_v15 = vsel %vm447_vm12, %v539_v13, %v543_v14  ;;  %v777_v54 = vsel %vm1743_vm9, 0, %v776_v52  ;;  %764 = vst [vmem:[#allocation3 + $0x8] sm:$0x1] %v763_v53  ;;  %767 = vst [vmem:[#allocation3 + $0xc] sm:$0x1] %v766_v57  ;;  %1415 = vmatprep.subr.bf16.mxu1 %v1493_v63  ;;  %v1502_v49 = vld [vmem:[%s1911_s4 + $0x20] sm:$0xff]  }
  0xaa   : > { %778 = vst [vmem:[#allocation3 + $0x8] sm:$0xc] %v777_v54  ;;  %1416 = vmatpush3.bf16.msra.mxu1 %v1494_v0  ;;  %v1503_v57 = vld [vmem:[%s1911_s4 + $0x68] sm:$0xff]  }
  0xab   : > { %1417 = vmatprep.subr.bf16.mxu1 %v1495_v30  ;;  %v1504_v30 = vld [vmem:[%s1911_s4 + $0x28] sm:$0xff]  }
  0xac   : > { %511 = vrot.lane.b32.xlu1 %v502_v61, %s1527_s11  ;;  %480 = vrot.lane.b32.xlu0 %v477_v62, %s1525_s9  ;;  %v769_v61 = vsel %vm1738_vm7, 0, %v768_v59  ;;  %v783_v62 = vsel %vm1743_vm9, 0, %v782_v60 }
  0xad   : > { %770 = vst [vmem:[#allocation3 + $0x10] sm:$0x1] %v769_v61  ;;  %784 = vst [vmem:[#allocation3 + $0x10] sm:$0xc] %v783_v62  ;;  %v847_v61 = vld [vmem:[#allocation3] sm:$0xf] }
  0xae   : > { %1418 = vmatpush3.bf16.msra.mxu1 %v1496_v1 }
  0xaf   : > { %1419 = vmatprep.subr.bf16.mxu1 %v1497_v2 }
  0xb0   : > { %470 = vrot.lane.b32.xlu1 %v467_v6, %s1526_s10  ;;  %545 = vrot.lane.b32.xlu0 %v536_v7, %s1519_s30  ;;  %v1372_v6 = vld [vmem:[%s1910_s3] ss:$0 sm:$0xff] }
  0xb2   : > { %1420 = vmatpush3.bf16.msra.mxu1 %v1498_v3 }
  0xb4   : > { %522 = vrot.lane.b32.xlu1 %v519_v11, %s1524_s8  ;;  %513 = vrot.lane.b32.xlu0 %v510_v12, %s1527_s11  ;;  %v844_v63 = vld [vmem:[#allocation3 + $0x10] sm:$0x7] }
  0xb8   : > { %547 = vrot.lane.b32.xlu1 %v544_v15, %s1519_s30  ;;  %527 = vrot.lane.b32.xlu0 %v1664_v26, %s1523_s27 }
 0x112   : > { %v485_v16 = vpop.permute.xlu0 %484  ;;  %v526_v17 = vpop.permute.xlu1 %525 }
 0x116   : > { %v521_v18 = vpop.permute.xlu0 %520  ;;  %v479_v20 = vpop.permute.xlu1 %478 }
 0x11a   : > { %v487_v21 = vpop.permute.xlu1 %486  ;;  %v469_v22 = vpop.permute.xlu0 %468 }
 0x11b   : > { %v555_v23 = vsel %vm553_vm11, %v1657_v19, %v469_v22 }
 0x11c   : > { %v560_v24 = vsel %vm558_vm13, %v555_v23, %v479_v20 }
 0x11d   : > { %v565_v25 = vsel %vm563_vm14, %v560_v24, %v485_v16 }
 0x11e   : > { %v512_v27 = vpop.permute.xlu1 %511  ;;  %v481_v28 = vpop.permute.xlu0 %480 }
 0x11f   : > { %v570_v26 = vsel %vm568_vm15, %v565_v25, %v512_v27 }
 0x120   : > { %v575_v31 = vsel %vm573_vm0, %v570_v26, %v521_v18 }
 0x121   : > { %v580_v32 = vsel %vm578_vm2, %v575_v31, %v526_v17 }
 0x122   : > { %v471_v33 = vpop.permute.xlu1 %470  ;;  %v546_v34 = vpop.permute.xlu0 %545 }
 0x123   : > { %v557_v19 = vsel %vm553_vm11, %v1667_v29, %v471_v33  ;;  %v585_v35 = vsel %vm583_vm3, %v580_v32, %v546_v34  ;;  %v835_v34 = vld [vmem:[#allocation3 + $0x4] sm:$0x7] }
 0x124   : > { %v562_v36 = vsel %vm558_vm13, %v557_v19, %v481_v28  ;;  %701 = vmatmul.mubr.bf16.vlgmr.msra.gmra.mrb[0].mxu0 %v585_v35 }
 0x125   : > { %1370 = vmatprep.mubr.msk.bf16.mxu0 %vm553_vm11, %v552_v56  ;;  %v567_v37 = vsel %vm563_vm14, %v562_v36, %v487_v21  ;;  %v779_v56 = vld [vmem:[#allocation3 + $0xc] sm:$0xc]  ;;  %vm833_vm14 = vcmask 256000  }
 0x126   : > { %v523_v38 = vpop.permute.xlu1 %522  ;;  %v514_v39 = vpop.permute.xlu0 %513  ;;  %v780_v58 = vsel %vm1743_vm9, 0, %v779_v56 }
 0x127   : > { %v572_v40 = vsel %vm568_vm15, %v567_v37, %v514_v39  ;;  %781 = vst [vmem:[#allocation3 + $0xc] sm:$0xc] %v780_v58 }
 0x128   : > { %v577_v42 = vsel %vm573_vm0, %v572_v40, %v523_v38  ;;  %vm1791_vm0 = vmand %vm833_vm14, %vm413_vm8  ;;  %v838_v38 = vld [vmem:[#allocation3 + $0x8] sm:$0x7] }
 0x12a   : > { %v548_v41 = vpop.permute.xlu1 %547  ;;  %v528_v43 = vpop.permute.xlu0 %527 }
 0x12b   : > { %v582_v44 = vsel %vm578_vm2, %v577_v42, %v528_v43  ;;  %v1500_v42 = vld [vmem:[%s1911_s4 + $0x18] sm:$0xff]   ;;  %v1501_v43 = vld [vmem:[%s1911_s4 + $0x60] sm:$0xff]  }
 0x12c   : > { %v588_v29 = vsel %vm583_vm3, %v582_v44, %v548_v41  ;;  %v1499_v41 = vld [vmem:[%s1911_s4 + $0x58] sm:$0xff]  }
 0x12d   : > { %709 = vmatmul.mubr.bf16.gmra.mrb[4].mxu0 %v588_v29  ;;  %1421 = vmatprep.subr.bf16.mxu1 %v1499_v41 }
 0x12e   : > { %1422 = vmatpush3.bf16.msra.mxu1 %v1500_v42  ;;  %v841_v55 = vld [vmem:[#allocation3 + $0xc] sm:$0x7] }
 0x12f   : > { %1423 = vmatprep.subr.bf16.mxu1 %v1501_v43 }
 0x132   : > { %1424 = vmatpush3.bf16.msra.mxu1 %v1502_v49 }
 0x133   : > { %1425 = vmatprep.subr.bf16.mxu1 %v1503_v57 }
 0x136   : > { %1426 = vmatpush3.bf16.msra.mxu1 %v1504_v30 }
 0x1f7   : > { %v702_v5 = vpop.f32.mrb[0].mxu0 }
 0x1f8   : > { %v724_v7 = vmul.f32 %v1371_v4, %v702_v5  ;;  %v704_v8 = vpop.f32.mrb[1].mxu0 }
 0x1f9   : > { %v705_v9 = vpop.f32.mrb[2].mxu0  ;;  %v1506_v8 = vld [vmem:[%s1911_s4 + $0x30] sm:$0xff]  }
 0x1fa   : > { %v735_v10 = vadd.f32 %v1372_v6, %v724_v7  ;;  %v725_v11 = vmul.f32 %v1371_v4, %v705_v9  ;;  %v707_v12 = vpop.f32.mrb[3].mxu0  ;;  %v852_v7 = vld [vmem:[#allocation3 + $0x14] sm:$0xf] }
 0x1fb   : > { %v1382_v12 = vcombine.low %v852_v7, %v852_v7 }
 0x1fc   : > { %vm739_vm4 = vcmp.ge.f32.partialorder %v735_v10, 0.0  ;;  %v743_v13 = vmul.f32 0.01, %v735_v10  ;;  %v736_v14 = vadd.f32 %v1372_v6, %v725_v11 }
 0x1fe   : > { %v747_v15 = vsel %vm739_vm4, %v735_v10, %v743_v13  ;;  %vm740_vm11 = vcmp.ge.f32.partialorder %v736_v14, 0.0  ;;  %v744_v16 = vmul.f32 0.01, %v736_v14  ;;  %v1507_v13 = vld [vmem:[%s1911_s4 + $0x78] sm:$0xff]  }
 0x1ff   : > { %v1411_v17 = vpack.c.bf16 %v747_v15, %v747_v15 }
 0x200   : > { %v748_v18 = vsel %vm740_vm11, %v736_v14, %v744_v16  ;;  %v710_v20 = vpop.f32.mrb[4].mxu0  ;;  %v1508_v14 = vld [vmem:[%s1911_s4 + $0x38] sm:$0xff]  }
 0x201   : > { %v802_v21 = vshrl.u32 %v1411_v17, 16  ;;  %v1412_v22 = vpack.c.bf16 %v748_v18, %v748_v18  ;;  %v726_v23 = vmul.f32 %v1371_v4, %v710_v20  ;;  %v712_v24 = vpop.f32.mrb[5].mxu0  ;;  %v805_v28 = vshll.u32 %v1411_v17, 16  ;;  %v1492_v17 = vld [vmem:[#allocation3 + $0x18] ss:$0 sps:$4 sm:$0xff]  }
 0x202   : > { %v713_v25 = vpop.f32.mrb[6].mxu0  ;;  %v925_v18 = vshll.u32 %v1382_v12, 16 }
 0x203   : > { %v804_v27 = vrot.slane %v802_v21, 7  ;;  %v809_v26 = vshrl.u32 %v1412_v22, 16  ;;  %v737_v31 = vadd.f32 %v1372_v6, %v726_v23  ;;  %v715_v32 = vpop.f32.mrb[7].mxu0  ;;  %v812_v19 = vshll.u32 %v1412_v22, 16 }
 0x204   : > { %v727_v35 = vmul.f32 %v1371_v4, %v713_v25  ;;  %v927_v41 = vrot.slane %v925_v18, 1  ;;  %v1510_v18 = vld [vmem:[%s1911_s4 + $0x88] sm:$0xff]  }
 0x205   : > { %v807_v36 = vor.u32 %v805_v28, %v804_v27  ;;  %v811_v37 = vrot.slane %v809_v26, 7  ;;  %vm741_vm3 = vcmp.ge.f32.partialorder %v737_v31, 0.0  ;;  %v745_v39 = vmul.f32 0.01, %v737_v31 }
 0x206   : > { %v738_v40 = vadd.f32 %v1372_v6, %v727_v35  ;;  %v1505_v6 = vld [vmem:[%s1911_s4 + $0x70] sm:$0xff]  }
 0x207   : > { %v836_v44 = vsel %vm1791_vm0, %v807_v36, %v835_v34  ;;  %v814_v29 = vor.u32 %v812_v19, %v811_v37  ;;  %v749_v45 = vsel %vm741_vm3, %v737_v31, %v745_v39  ;;  %1427 = vmatprep.subr.bf16.mxu1 %v1505_v6  ;;  %v1849_v34 = vld [vmem:[%s1911_s4 + $0x80] sm:$0xff]   ;;  %v932_v36 = vrot.slane %v1382_v12, 1 }
 0x208   : > { %837 = vst [vmem:[#allocation3 + $0x4] sm:$0x7] %v836_v44  ;;  %v1413_v46 = vpack.c.bf16 %v749_v45, %v749_v45  ;;  %vm742_vm8 = vcmp.ge.f32.partialorder %v738_v40, 0.0  ;;  %v746_v47 = vmul.f32 0.01, %v738_v40  ;;  %1428 = vmatpush3.bf16.msra.mxu1 %v1506_v8  ;;  %v965_v37 = vrot.slane %v1492_v17, 1 }
 0x209   : > { %v839_v48 = vsel %vm1791_vm0, %v814_v29, %v838_v38  ;;  %1429 = vmatprep.subr.bf16.mxu1 %v1507_v13 }
 0x20a   : > { %840 = vst [vmem:[#allocation3 + $0x8] sm:$0x7] %v839_v48  ;;  %v816_v50 = vshrl.u32 %v1413_v46, 16  ;;  %v750_v51 = vsel %vm742_vm8, %v738_v40, %v746_v47  ;;  %v819_v54 = vshll.u32 %v1413_v46, 16 }
 0x20b   : > { %v1414_v52 = vpack.c.bf16 %v750_v51, %v750_v51 }
 0x20c   : > { %v818_v53 = vrot.slane %v816_v50, 7  ;;  %1430 = vmatpush3.bf16.msra.mxu1 %v1508_v14 }
 0x20d   : > { %v823_v56 = vshrl.u32 %v1414_v52, 16  ;;  %v826_v60 = vshll.u32 %v1414_v52, 16  ;;  %1447 = vmatprep.subr.bf16.mxu1 %v1849_v34 }
 0x20e   : > { %v821_v58 = vor.u32 %v819_v54, %v818_v53 }
 0x20f   : > { %v825_v59 = vrot.slane %v823_v56, 7  ;;  %v848_v0 = vld [vmem:[#allocation3 + $0x4] sm:$0xf] }
 0x210   : > { %v842_v62 = vsel %vm1791_vm0, %v821_v58, %v841_v55  ;;  %v1821_v5 = vcombine.low %v847_v61, %v848_v0  ;;  %v955_v61 = vshll.u32 %v1492_v17, 16 }
 0x211   : > { %843 = vst [vmem:[#allocation3 + $0xc] sm:$0x7] %v842_v62  ;;  %v828_v1 = vor.u32 %v826_v60, %v825_v59  ;;  %v849_v2 = vld [vmem:[#allocation3 + $0x8] sm:$0xf] }
 0x212   : > { %v1380_v3 = vcombine.low %v848_v0, %v849_v2  ;;  %v870_v9 = vshll.u32 %v1821_v5, 16  ;;  %v891_v16 = vrot.slane %v1821_v5, 1  ;;  %v868_v31 = vshrl.u32 %v1821_v5, 16 }
 0x213   : > { %v845_v4 = vsel %vm1791_vm0, %v828_v1, %v844_v63  ;;  %v957_v30 = vrot.slane %v955_v61, 1 }
 0x214   : > { %846 = vst [vmem:[#allocation3 + $0x10] sm:$0x7] %v845_v4  ;;  %902 = vrot.lane.b32.xlu1 %v1380_v3, %s1523_s27  ;;  %v912_v10 = vshll.u32 %v1380_v3, 16  ;;  %v872_v22 = vrot.slane %v870_v9, 1  ;;  %v910_v33 = vshrl.u32 %v1380_v3, 16  ;;  %v929_v19 = vrot.slane %v1380_v3, 1 }
 0x216   : > { %v914_v24 = vrot.slane %v912_v10, 1  ;;  %v873_v38 = vor.u32 %v872_v22, %v868_v31 }
 0x218   : > { %v850_v11 = vld [vmem:[#allocation3 + $0xc] sm:$0xf]  ;;  %v915_v39 = vor.u32 %v914_v24, %v910_v33 }
 0x219   : > { %v1837_v15 = vcombine.low %v849_v2, %v850_v11 }
 0x21b   : > { %v851_v20 = vld [vmem:[#allocation3 + $0x10] sm:$0xf]  ;;  %939 = vrot.lane.b32.xlu0 %v1837_v15, %s1527_s11  ;;  %v892_v21 = vrot.slane %v1837_v15, 1  ;;  %v875_v23 = vshll.u32 %v1837_v15, 16  ;;  %v879_v49 = vshrl.u32 %v1837_v15, 16 }
 0x21c   : > { %v1381_v25 = vcombine.low %v850_v11, %v851_v20  ;;  %v1383_v27 = vcombine.low %v851_v20, %v852_v7  ;;  %v1379_v28 = vcombine.low %v851_v20, %v851_v20 }
 0x21d   : > { %v893_v26 = vsel %vm472_vm10, %v891_v16, %v892_v21  ;;  %v877_v32 = vrot.slane %v875_v23, 1 }
 0x21e   : > { %896 = vrot.lane.b32.xlu1 %v893_v26, %s1527_s11  ;;  %v930_v35 = vrot.slane %v1381_v25, 1  ;;  %v917_v40 = vshll.u32 %v1381_v25, 16  ;;  %v894_v43 = vrot.slane %v1379_v28, 1  ;;  %v947_v44 = vshll.u32 %v1383_v27, 16 }
 0x21f   : > { %v883_v29 = vshll.u32 %v1379_v28, 16  ;;  %v878_v45 = vsel %vm447_vm12, %v873_v38, %v877_v32  ;;  %v921_v47 = vshrl.u32 %v1381_v25, 16  ;;  %v963_v48 = vrot.slane %v1383_v27, 1 }
 0x220   : > { %v931_v42 = vsel %vm472_vm10, %v929_v19, %v930_v35  ;;  %v919_v46 = vrot.slane %v917_v40, 1  ;;  %v933_v53 = vsel %vm472_vm10, %v930_v35, %v932_v36  ;;  %v881_v54 = vor.u32 %v879_v49, %v877_v32 }
 0x221   : > { %934 = vrot.lane.b32.xlu0 %v931_v42, %s1525_s9  ;;  %v964_v52 = vsel %vm472_vm10, %v892_v21, %v963_v48  ;;  %v949_v55 = vrot.slane %v947_v44, 1  ;;  %v966_v56 = vsel %vm472_vm10, %v963_v48, %v965_v37  ;;  %v895_v57 = vsel %vm472_vm10, %v892_v21, %v894_v43  ;;  %v1405_v42 = vld [vmem:[%s1912_s5] ss:$0 sm:$0xff] }
 0x222   : > { %887 = vrot.lane.b32.xlu1 %v878_v45, %s1525_s9  ;;  %v920_v50 = vsel %vm447_vm12, %v915_v39, %v919_v46  ;;  %v923_v51 = vor.u32 %v921_v47, %v919_v46  ;;  %v885_v58 = vrot.slane %v883_v29, 1  ;;  %v951_v63 = vshrl.u32 %v1383_v27, 16  ;;  %v1406_v29 = vld [vmem:[%s1913_s6] ss:$0 sm:$0xff] }
 0x223   : > { %v950_v60 = vsel %vm447_vm12, %v881_v54, %v949_v55 }
 0x224   : > { %v928_v59 = vsel %vm447_vm12, %v923_v51, %v927_v41  ;;  %v886_v62 = vsel %vm447_vm12, %v881_v54, %v885_v58  ;;  %v953_v0 = vor.u32 %v951_v63, %v949_v55 }
 0x225   : > { %936 = vrot.lane.b32.xlu0 %v933_v53, %s1525_s9 }
 0x226   : > { %898 = vrot.lane.b32.xlu1 %v895_v57, %s1527_s11  ;;  %v958_v1 = vsel %vm447_vm12, %v953_v0, %v957_v30 }
 0x229   : > { %959 = vrot.lane.b32.xlu0 %v950_v60, %s1523_s27 }
 0x22a   : > { %889 = vrot.lane.b32.xlu1 %v886_v62, %s1525_s9 }
 0x22d   : > { %941 = vrot.lane.b32.xlu0 %v1383_v27, %s1527_s11 }
 0x22e   : > { %904 = vrot.lane.b32.xlu1 %v1381_v25, %s1523_s27 }
 0x231   : > { %961 = vrot.lane.b32.xlu0 %v958_v1, %s1523_s27 }
 0x286   : > { %v903_v2 = vpop.permute.xlu1 %902 }
 0x28d   : > { %v940_v3 = vpop.permute.xlu0 %939 }
 0x290   : > { %v897_v4 = vpop.permute.xlu1 %896 }
 0x293   : > { %v935_v6 = vpop.permute.xlu0 %934 }
 0x294   : > { %v888_v7 = vpop.permute.xlu1 %887  ;;  %v983_v10 = vsel %vm558_vm13, %v920_v50, %v935_v6 }
 0x295   : > { %v968_v8 = vsel %vm558_vm13, %v1821_v5, %v888_v7  ;;  %v988_v14 = vsel %vm568_vm15, %v983_v10, %v940_v3 }
 0x296   : > { %v972_v12 = vsel %vm568_vm15, %v968_v8, %v897_v4 }
 0x297   : > { %v937_v9 = vpop.permute.xlu0 %936  ;;  %v976_v20 = vsel %vm578_vm2, %v972_v12, %v903_v2 }
 0x298   : > { %v899_v11 = vpop.permute.xlu1 %898  ;;  %v986_v22 = vsel %vm558_vm13, %v928_v59, %v937_v9 }
 0x29b   : > { %v960_v13 = vpop.permute.xlu0 %959 }
 0x29c   : > { %v992_v16 = vsel %vm578_vm2, %v988_v14, %v960_v13  ;;  %v890_v17 = vpop.permute.xlu1 %889 }
 0x29d   : > { %1179 = vmatprep.mubr.bf16.mxu1 %v992_v16  ;;  %v970_v21 = vsel %vm558_vm13, %v1837_v15, %v890_v17 }
 0x29e   : > { %1180 = vmatmul.mubr.bf16.vlgmr.msra.gmra.mrb[0].mxu1 %v976_v20  ;;  %v974_v28 = vsel %vm568_vm15, %v970_v21, %v899_v11 }
 0x29f   : > { %1448 = vmatpush3.bf16.msra.mxu1 %v1849_v34  ;;  %v942_v5 = vpop.permute.xlu0 %941 }
 0x2a0   : > { %1449 = vmatprep.subr.bf16.mxu1 %v1510_v18  ;;  %v905_v23 = vpop.permute.xlu1 %904  ;;  %v990_v24 = vsel %vm568_vm15, %v986_v22, %v942_v5 }
 0x2a1   : > { %v979_v26 = vsel %vm578_vm2, %v974_v28, %v905_v23 }
 0x2a3   : > { %v962_v25 = vpop.permute.xlu0 %961  ;;  %1450 = vmatpush3.bf16.msra.mxu1 %v1510_v18 }
 0x2a4   : > { %v995_v27 = vsel %vm578_vm2, %v990_v24, %v962_v25 }
 0x2a5   : > { %1187 = vmatprep.mubr.bf16.mxu1 %v995_v27 }
 0x2a6   : > { %1188 = vmatmul.mubr.bf16.gmra.mrb[4].mxu1 %v979_v26 }
 0x2a7   : > { %1451 = vmatprep.mubr.msk.bf16.mxu1 %vm558_vm13, %v964_v52 }
 0x2ae   : > { %1452 = vmatmul.mubr.msk.bf16.vlgmr.msra.gmra.mrb[8].mxu1 %vm558_vm13, %v966_v56  ;;  %vm1283_vm13 = vcmask 254976  }
 0x371   : > { %v1431_v15 = vpop.f32.mrb[0].mxu1 }
 0x372   : > { %v1432_v31 = vpop.f32.mrb[1].mxu1 }
 0x373   : > { %v1433_v32 = vadd.f32 %v1432_v31, %v1431_v15  ;;  %v1434_v33 = vpop.f32.mrb[2].mxu1 }
 0x374   : > { %v1435_v34 = vpop.f32.mrb[3].mxu1 }
 0x375   : > { %v1436_v19 = vadd.f32 %v1435_v34, %v1434_v33 }
 0x379   : > { %v1437_v35 = vpop.f32.mrb[4].mxu1 }
 0x37a   : > { %v1438_v36 = vpop.f32.mrb[5].mxu1 }
 0x37b   : > { %v1439_v37 = vadd.f32 %v1438_v36, %v1437_v35  ;;  %v1440_v38 = vpop.f32.mrb[6].mxu1 }
 0x37c   : > { %v1441_v39 = vpop.f32.mrb[7].mxu1 }
 0x37d   : > { %v1442_v40 = vadd.f32 %v1441_v39, %v1440_v38 }
 0x381   : > { %v1453_v41 = vpop.f32.mrb[8].mxu1 }
 0x382   : > { %v1239_v43 = vadd.f32 %v1453_v41, %v1439_v37  ;;  %v1230_v44 = vpop.f32.mrb[9].mxu1 }
 0x383   : > { %v1231_v45 = vadd.f32 %v1433_v32, %v1230_v44  ;;  %v1454_v46 = vpop.f32.mrb[10].mxu1 }
 0x384   : > { %v1254_v47 = vmul.f32 %v1405_v42, %v1239_v43  ;;  %v1242_v48 = vadd.f32 %v1454_v46, %v1442_v40  ;;  %v1233_v49 = vpop.f32.mrb[11].mxu1 }
 0x385   : > { %v1252_v50 = vmul.f32 %v1405_v42, %v1231_v45  ;;  %v1234_v51 = vadd.f32 %v1436_v19, %v1233_v49 }
 0x386   : > { %v1265_v52 = vadd.f32 %v1406_v29, %v1254_v47  ;;  %v1255_v53 = vmul.f32 %v1405_v42, %v1242_v48 }
 0x387   : > { %v1263_v54 = vadd.f32 %v1406_v29, %v1252_v50  ;;  %v1253_v55 = vmul.f32 %v1405_v42, %v1234_v51 }
 0x388   : > { %vm1269_vm10 = vcmp.ge.f32.partialorder %v1265_v52, 0.0  ;;  %v1273_v56 = vmul.f32 0.01, %v1265_v52  ;;  %v1266_v57 = vadd.f32 %v1406_v29, %v1255_v53 }
 0x389   : > { %vm1267_vm12 = vcmp.ge.f32.partialorder %v1263_v54, 0.0  ;;  %v1271_v58 = vmul.f32 0.01, %v1263_v54  ;;  %v1264_v59 = vadd.f32 %v1406_v29, %v1253_v55 }
 0x38a   : > { %v1277_v60 = vsel %vm1269_vm10, %v1265_v52, %v1273_v56  ;;  %vm1270_vm15 = vcmp.ge.f32.partialorder %v1266_v57, 0.0  ;;  %v1274_v61 = vmul.f32 0.01, %v1266_v57 }
 0x38b   : > { %v1281_v62 = vpack.c.bf16 %v1277_v60, %v1277_v60  ;;  %v1275_v63 = vsel %vm1267_vm12, %v1263_v54, %v1271_v58  ;;  %vm1268_vm2 = vcmp.ge.f32.partialorder %v1264_v59, 0.0  ;;  %v1272_v0 = vmul.f32 0.01, %v1264_v59 }
 0x38c   : > { %v1279_v30 = vpack.c.bf16 %v1275_v63, %v1275_v63  ;;  %v1278_v1 = vsel %vm1270_vm15, %v1266_v57, %v1274_v61 }
 0x38d   : > { %1286 = vst.msk [vmem:[%s278_s19 + $0x4] sm:$0x3] %vm1283_vm13, %v1281_v62  ;;  %v1282_v2 = vpack.c.bf16 %v1278_v1, %v1278_v1  ;;  %v1276_v3 = vsel %vm1268_vm2, %v1264_v59, %v1272_v0 }
 0x38e   : > { %1284 = vst.msk [vmem:[%s278_s19] sm:$0x3] %vm1283_vm13, %v1279_v30  ;;  %v1280_v4 = vpack.c.bf16 %v1276_v3, %v1276_v3 }
 0x38f   : > { %1287 = vst.msk [vmem:[%s278_s19 + $0x6] sm:$0x3] %vm1283_vm13, %v1282_v2 }
 0x390   : > { %1285 = vst.msk [vmem:[%s278_s19 + $0x2] sm:$0x3] %vm1283_vm13, %v1280_v4 }
 0x391 PF: > { %s17_s24 = sadd.s32 1, %s1517_s24  }
 0x392   : > { %p14_p4 = scmp.ge.s32.totalorder %s17_s24, 4  }
 0x394   :  { %16 = sbr.rel (!%p14_p4) target bundleno = 1 (0x1), region = 82 }

// kernel: encoder_forward.6
= control target key start
LH: loop header
LB: loop body
LE: loop exit
PB: predicated region body
PF: predicated region fallthrough
CT: control target
= control target key end

     0   :  { %s2148_s24 = smov 0   ;;  %s3072_s0 = inlined_call_operand.vmem [shape: bf16[2,8,2,8,16], index: 0, kind: input, shape index: {}]   ;;  %s3073_s1 = inlined_call_operand.vmem [shape: bf16[72,16], index: 1, kind: input, shape index: {}]   ;;  %s3074_s2 = inlined_call_operand.vmem [shape: f32[1,16], index: 2, kind: input, shape index: {}]   ;;  %s3075_s3 = inlined_call_operand.vmem [shape: f32[1,16], index: 3, kind: input, shape index: {}]   ;;  %s3076_s4 = inlined_call_operand.vmem [shape: bf16[144,16], index: 4, kind: input, shape index: {}]   ;;  %s3077_s5 = inlined_call_operand.vmem [shape: f32[1,16], index: 5, kind: input, shape index: {}]   ;;  %s3078_s6 = inlined_call_operand.vmem [shape: f32[1,16], index: 6, kind: input, shape index: {}]   ;;  %s3079_s7 = inlined_call_operand.vmem [shape: bf16[2,8,8,16], index: 7, kind: output, shape index: {}]  }
   0x1 LB: > { %s1939_s25 = sadd.s32 4294967295, %s2093_s24   ;;  %p1943_p0 = scmp.ge.s32.totalorder %s2093_s24, 1  ;;  %s2093_s24 = sphi %s2148_s24, %s17_s24  }
   0x2   : > { %p237_p1 = scmp.lt.s32.totalorder %s2093_s24, 3 }
   0x4   : > { %p238_p2 = pnand %p1943_p0, %p237_p1 }
   0x5   : > { %p269_p3 = scmp.lt.s32.totalorder (!%p238_p2), %s1939_s25, 1  ;;  %vm350_vm0 = vcmask (!%p238_p2), 57344   ;;  %vm351_vm1 = vsmask.f32 (!%p238_p2), 256  ;;  %vm377_vm2 = vcmask (!%p238_p2), 64516   ;;  %s2095_s30 = smov (!%p238_p2), 120  }
   0x6   : > { %241 = sbr.rel (%p238_p2) target bundleno = 1049 (0x419), region = 48  ;;  %vm2157_vm3 = vmand (!%p238_p2), %vm350_vm0, %vm351_vm1  ;;  %v353_v1 = vld [vmem:[#allocation2 + $0x8] sm:$0x1] (!%p238_p2)  ;;  %vm378_vm4 = vsmask.f32 (!%p238_p2), 7954  ;;  %vm344_vm6 = vcmask (!%p238_p2), 64512  }
   0x7   : > { %v380_v2 = vld [vmem:[#allocation2 + $0x8] sm:$0xf0] (!%p238_p2)  ;;  %v354_v3 = vsel (!%p238_p2), %vm2157_vm3, 0, %v353_v1  ;;  %vm2166_vm5 = vmand (!%p238_p2), %vm377_vm2, %vm378_vm4  ;;  %v359_v6 = vld [vmem:[#allocation2 + $0x18] sm:$0x1] (!%p238_p2)  ;;  %v2096_v53 = vmov (!%p238_p2), 0  }
   0x8   : > { %355 = vst [vmem:[#allocation2 + $0x8] sm:$0x1] (!%p238_p2), %v354_v3  ;;  %v381_v5 = vsel (!%p238_p2), %vm2166_vm5, 0, %v380_v2  ;;  %v360_v7 = vsel (!%p238_p2), %vm2157_vm3, 0, %v359_v6  ;;  %v386_v8 = vld [vmem:[#allocation2 + $0x18] sm:$0xf0] (!%p238_p2)  ;;  %2033 = vmatprep.subr.bf16.mxu1 (!%p238_p2), %v2096_v53 }
   0x9   : > { %382 = vst [vmem:[#allocation2 + $0x8] sm:$0xf0] (!%p238_p2), %v381_v5  ;;  %v356_v9 = vld [vmem:[#allocation2 + $0x10] sm:$0x1] (!%p238_p2)  ;;  %361 = vst [vmem:[#allocation2 + $0x18] sm:$0x1] (!%p238_p2), %v360_v7 }
   0xa   : > { %v387_v10 = vsel (!%p238_p2), %vm2166_vm5, 0, %v386_v8  ;;  %v357_v11 = vsel (!%p238_p2), %vm2157_vm3, 0, %v356_v9  ;;  %v383_v15 = vld [vmem:[#allocation2 + $0x10] sm:$0xf0] (!%p238_p2)  ;;  %v362_v23 = vld [vmem:[#allocation2 + $0x20] sm:$0x1] (!%p238_p2) }
   0xb   : > { %388 = vst [vmem:[#allocation2 + $0x18] sm:$0xf0] (!%p238_p2), %v387_v10  ;;  %358 = vst [vmem:[#allocation2 + $0x10] sm:$0x1] (!%p238_p2), %v357_v11  ;;  %v384_v30 = vsel (!%p238_p2), %vm2166_vm5, 0, %v383_v15  ;;  %v363_v31 = vsel (!%p238_p2), %vm2157_vm3, 0, %v362_v23 }
   0xc   : > { %385 = vst [vmem:[#allocation2 + $0x10] sm:$0xf0] (!%p238_p2), %v384_v30  ;;  %364 = vst [vmem:[#allocation2 + $0x20] sm:$0x1] (!%p238_p2), %v363_v31  ;;  %v389_v35 = vld [vmem:[#allocation2 + $0x20] sm:$0xf0] (!%p238_p2) }
   0xd   : > { %s3093_s25 = smov (!%p269_p3, %s1939_s25), 1  ;;  %v365_v36 = vld [vmem:[#allocation2 + $0x28] sm:$0x1]  ;;  %v392_v37 = vld [vmem:[#allocation2 + $0x28] sm:$0xf0]  ;;  %v390_v40 = vsel %vm2166_vm5, 0, %v389_v35 }
   0xe   : > { %s1992_s26 = sshll.u32 %s3093_s25, 6  ;;  %v366_v41 = vsel %vm2157_vm3, 0, %v365_v36  ;;  %v393_v42 = vsel %vm2166_vm5, 0, %v392_v37  ;;  %391 = vst [vmem:[#allocation2 + $0x20] sm:$0xf0] %v390_v40  ;;  %345 = vst.msk [vmem:[#allocation2] sm:$0xff] %vm344_vm6, %v2096_v53 }
   0xf   : > { %s2178_s29 = scalar_lea.vmem %s3072_s0, %s1992_s26  ;;  %367 = vst [vmem:[#allocation2 + $0x28] sm:$0x1] %v366_v41  ;;  %394 = vst [vmem:[#allocation2 + $0x28] sm:$0xf0] %v393_v42  ;;  %v368_v44 = vld [vmem:[#allocation2 + $0x30] sm:$0x1] }
  0x10   : > { %v280_v12 = vld [vmem:[%s2178_s29] sm:$0xf]  ;;  %v281_v13 = vld [vmem:[%s2178_s29 + $0x4] sm:$0xf]  ;;  %v284_v14 = vld [vmem:[%s2178_s29 + $0x10] sm:$0xf] }
  0x11   : > { %v2187_v16 = vmax.bf16 %v281_v13, %v280_v12  ;;  %v285_v17 = vld [vmem:[%s2178_s29 + $0x14] sm:$0xf]  ;;  %v282_v18 = vld [vmem:[%s2178_s29 + $0x8] sm:$0xf]  ;;  %v283_v19 = vld [vmem:[%s2178_s29 + $0xc] sm:$0xf] }
  0x12   : > { %v2192_v20 = vmax.bf16 %v285_v17, %v284_v14  ;;  %v286_v21 = vld [vmem:[%s2178_s29 + $0x18] sm:$0xf]  ;;  %v287_v22 = vld [vmem:[%s2178_s29 + $0x1c] sm:$0xf]  ;;  %v2198_v24 = vmax.bf16 %v283_v19, %v282_v18  ;;  %v288_v25 = vld [vmem:[%s2178_s29 + $0x20] sm:$0xf] }
  0x13   : > { %312 = vrot.lane.b32.xlu0 %v2187_v16, %s2095_s30  ;;  %v289_v26 = vld [vmem:[%s2178_s29 + $0x24] sm:$0xf]  ;;  %v2204_v27 = vmax.bf16 %v287_v22, %v286_v21  ;;  %v290_v28 = vld [vmem:[%s2178_s29 + $0x28] sm:$0xf]  ;;  %v291_v29 = vld [vmem:[%s2178_s29 + $0x2c] sm:$0xf] }
  0x14   : > { %316 = vrot.lane.b32.xlu1 %v2192_v20, %s2095_s30  ;;  %v2212_v32 = vmax.bf16 %v289_v26, %v288_v25  ;;  %v292_v33 = vld [vmem:[%s2178_s29 + $0x30] sm:$0xf]  ;;  %v293_v34 = vld [vmem:[%s2178_s29 + $0x34] sm:$0xf]  ;;  %v294_v38 = vld [vmem:[%s2178_s29 + $0x38] sm:$0xf]  ;;  %v2228_v43 = vmax.bf16 %v291_v29, %v290_v28 }
  0x15   : > { %v295_v39 = vld [vmem:[%s2178_s29 + $0x3c] sm:$0xf]  ;;  %v395_v45 = vld [vmem:[#allocation2 + $0x30] sm:$0xf0]  ;;  %v371_v46 = vld [vmem:[#allocation2 + $0x38] sm:$0x1]  ;;  %v2240_v52 = vmax.bf16 %v293_v34, %v292_v33 }
  0x16   : > { %v369_v47 = vsel %vm2157_vm3, 0, %v368_v44  ;;  %v396_v48 = vsel %vm2166_vm5, 0, %v395_v45  ;;  %v372_v49 = vsel %vm2157_vm3, 0, %v371_v46  ;;  %v398_v50 = vld [vmem:[#allocation2 + $0x38] sm:$0xf0]  ;;  %347 = vst.msk [vmem:[#allocation2 + $0x48] sm:$0xff] %vm344_vm6, %v2096_v53  ;;  %v303_v54 = vmax.bf16 %v295_v39, %v294_v38 }
  0x17   : > { %314 = vrot.lane.b32.xlu0 %v2198_v24, %s2095_s30  ;;  %370 = vst [vmem:[#allocation2 + $0x30] sm:$0x1] %v369_v47  ;;  %397 = vst [vmem:[#allocation2 + $0x30] sm:$0xf0] %v396_v48  ;;  %v399_v51 = vsel %vm2166_vm5, 0, %v398_v50  ;;  %vm492_vm7 = vcmask 61440  }
  0x18   : > { %318 = vrot.lane.b32.xlu1 %v2204_v27, %s2095_s30  ;;  %373 = vst [vmem:[#allocation2 + $0x38] sm:$0x1] %v372_v49  ;;  %400 = vst [vmem:[#allocation2 + $0x38] sm:$0xf0] %v399_v51  ;;  %v374_v55 = vld [vmem:[#allocation2 + $0x40] sm:$0x1] }
  0x19   : > { %348 = vst.msk [vmem:[#allocation2 + $0x50] sm:$0xff] %vm344_vm6, %v2096_v53  ;;  %v401_v56 = vld [vmem:[#allocation2 + $0x40] sm:$0xf0]  ;;  %v375_v57 = vsel %vm2157_vm3, 0, %v374_v55  ;;  %vm493_vm8 = vsmask.f32 4354 }
  0x1a   : > { %v402_v58 = vsel %vm2166_vm5, 0, %v401_v56  ;;  %376 = vst [vmem:[#allocation2 + $0x40] sm:$0x1] %v375_v57  ;;  %vm2263_vm9 = vmand %vm492_vm7, %vm493_vm8  ;;  %v495_v12 = vld [vmem:[#allocation2 + $0x8] sm:$0x1f]  ;;  %s2097_s8 = smov 24  }
  0x1b   : > { %320 = vrot.lane.b32.xlu0 %v2212_v32, %s2095_s30  ;;  %403 = vst [vmem:[#allocation2 + $0x40] sm:$0xf0] %v402_v58  ;;  %v501_v17 = vld [vmem:[#allocation2 + $0x18] sm:$0x1f]  ;;  %v498_v30 = vld [vmem:[#allocation2 + $0x10] sm:$0x1f] }
  0x1c   : > { %322 = vrot.lane.b32.xlu1 %v2228_v43, %s2095_s30  ;;  %v504_v35 = vld [vmem:[#allocation2 + $0x20] sm:$0x1f]  ;;  %v507_v48 = vld [vmem:[#allocation2 + $0x28] sm:$0x1f]  ;;  %s2098_s9 = smov 48   ;;  %vm624_vm10 = vcmask 1046528  }
  0x1d   : > { %v2320_v11 = vld [vmem:[#allocation2] sm:$0xff]  ;;  %s2099_s10 = smov 16   ;;  %s2100_s11 = smov 40   ;;  %vm792_vm11 = vcmask 130048   ;;  %vm530_vm12 = vsmask.f32 7424 }
  0x1e   : > { %s2101_s12 = smov 64   ;;  %1111 = vst.msk [vmem:[#allocation3] sm:$0xff] %vm792_vm11, %v2096_v53  ;;  %1113 = vst.msk [vmem:[#allocation3 + $0x48] sm:$0xff] %vm792_vm11, %v2096_v53  ;;  %s2102_s19 = smov 8   ;;  %vm964_vm13 = vcmask 1043456   ;;  %vm809_vm14 = vcmask 195584  }
  0x1f   : > { %324 = vrot.lane.b32.xlu0 %v2240_v52, %s2095_s30  ;;  %1114 = vst.msk [vmem:[#allocation3 + $0x50] sm:$0xff] %vm792_vm11, %v2096_v53  ;;  %s2103_s22 = smov 32   ;;  %s2104_s27 = smov 56   ;;  %vm826_vm15 = vcmask 261120   ;;  %vm843_vm0 = vcmask 326656   ;;  %vm860_vm2 = vcmask 392192  }
  0x20   : > { %326 = vrot.lane.b32.xlu1 %v303_v54, %s2095_s30  ;;  %vm877_vm3 = vcmask 457728   ;;  %vm894_vm5 = vcmask 523264   ;;  %vm947_vm7 = vcmask 588800   ;;  %s2105_s14 = smov 96   ;;  %s2107_s16 = smov 112  }
  0x85   : > { %v313_v59 = vpop.permute.xlu0 %312 }
  0x86   : > { %v336_v60 = vmax.bf16 %v313_v59, %v2187_v16  ;;  %v317_v61 = vpop.permute.xlu1 %316 }
  0x87   : > { %v338_v62 = vmax.bf16 %v317_v61, %v2192_v20 }
  0x88   : > { %v1948_v63 = vcombine.low %v336_v60, %v336_v60 }
  0x89   : > { %v1950_v1 = vcombine.low %v338_v62, %v338_v62  ;;  %v315_v0 = vpop.permute.xlu0 %314 }
  0x8a   : > { %v429_v2 = vshrl.u32 %v1948_v63, 16  ;;  %v337_v3 = vmax.bf16 %v315_v0, %v2198_v24  ;;  %v319_v4 = vpop.permute.xlu1 %318  ;;  %v432_v9 = vshll.u32 %v1948_v63, 16  ;;  %v513_v63 = vld [vmem:[#allocation2 + $0x38] sm:$0x1f] }
  0x8b   : > { %v443_v5 = vshrl.u32 %v1950_v1, 16  ;;  %v446_v6 = vshll.u32 %v1950_v1, 16  ;;  %v339_v7 = vmax.bf16 %v319_v4, %v2204_v27 }
  0x8c   : > { %v431_v8 = vrot.slane %v429_v2, 7  ;;  %v1949_v10 = vcombine.low %v337_v3, %v337_v3  ;;  %v516_v2 = vld [vmem:[#allocation2 + $0x40] sm:$0x1f] }
  0x8d   : > { %v445_v13 = vrot.slane %v443_v5, 7  ;;  %v1951_v14 = vcombine.low %v339_v7, %v339_v7  ;;  %v321_v15 = vpop.permute.xlu0 %320 }
  0x8e   : > { %v434_v16 = vor.u32 %v432_v9, %v431_v8  ;;  %v436_v18 = vshrl.u32 %v1949_v10, 16  ;;  %v340_v19 = vmax.bf16 %v321_v15, %v2212_v32  ;;  %v323_v20 = vpop.permute.xlu1 %322  ;;  %v439_v27 = vshll.u32 %v1949_v10, 16 }
  0x8f   : > { %v448_v21 = vor.u32 %v446_v6, %v445_v13  ;;  %v450_v22 = vshrl.u32 %v1951_v14, 16  ;;  %v453_v23 = vshll.u32 %v1951_v14, 16  ;;  %v341_v24 = vmax.bf16 %v323_v20, %v2228_v43 }
  0x90   : > { %v496_v25 = vsel %vm2263_vm9, %v434_v16, %v495_v12  ;;  %v438_v26 = vrot.slane %v436_v18, 7  ;;  %v1952_v28 = vcombine.low %v340_v19, %v340_v19  ;;  %v625_v13 = vrot.slane %v2320_v11, 1 }
  0x91   : > { %497 = vst [vmem:[#allocation2 + $0x8] sm:$0x1f] %v496_v25  ;;  %v502_v29 = vsel %vm2263_vm9, %v448_v21, %v501_v17  ;;  %v452_v31 = vrot.slane %v450_v22, 7  ;;  %v1953_v33 = vcombine.low %v341_v24, %v341_v24  ;;  %v325_v32 = vpop.permute.xlu0 %324 }
  0x92   : > { %503 = vst [vmem:[#allocation2 + $0x18] sm:$0x1f] %v502_v29  ;;  %v441_v34 = vor.u32 %v439_v27, %v438_v26  ;;  %v457_v36 = vshrl.u32 %v1952_v28, 16  ;;  %v460_v37 = vshll.u32 %v1952_v28, 16  ;;  %v342_v38 = vmax.bf16 %v325_v32, %v2240_v52  ;;  %v327_v39 = vpop.permute.xlu1 %326  ;;  %v510_v52 = vld [vmem:[#allocation2 + $0x30] sm:$0x1f] }
  0x93   : > { %v455_v40 = vor.u32 %v453_v23, %v452_v31  ;;  %v464_v41 = vshrl.u32 %v1953_v33, 16  ;;  %v467_v42 = vshll.u32 %v1953_v33, 16  ;;  %v343_v43 = vmax.bf16 %v327_v39, %v303_v54  ;;  %v2370_v31 = vld [vmem:[#allocation2 + $0x48] sm:$0xff]  ;;  %v2073_v33 = vld [vmem:[%s3073_s1] sm:$0xff]  }
  0x94   : > { %v499_v44 = vsel %vm2263_vm9, %v441_v34, %v498_v30  ;;  %v459_v45 = vrot.slane %v457_v36, 7  ;;  %v1954_v46 = vcombine.low %v342_v38, %v342_v38  ;;  %2007 = vmatprep.subr.bf16.mxu0 %v2073_v33  ;;  %v699_v34 = vrot.slane %v2370_v31, 1  ;;  %v2074_v36 = vld [vmem:[%s3073_s1 + $0x8] sm:$0xff]  }
  0x95   : > { %500 = vst [vmem:[#allocation2 + $0x10] sm:$0x1f] %v499_v44  ;;  %v505_v47 = vsel %vm2263_vm9, %v455_v40, %v504_v35  ;;  %v466_v49 = vrot.slane %v464_v41, 7  ;;  %v1955_v50 = vcombine.low %v343_v43, %v343_v43  ;;  %2008 = vmatpush3.bf16.msra.mxu0 %v2073_v33 }
  0x96   : > { %506 = vst [vmem:[#allocation2 + $0x20] sm:$0x1f] %v505_v47  ;;  %v462_v51 = vor.u32 %v460_v37, %v459_v45  ;;  %v471_v55 = vshrl.u32 %v1954_v46, 16  ;;  %v474_v56 = vshll.u32 %v1954_v46, 16  ;;  %2009 = vmatprep.subr.bf16.mxu0 %v2074_v36  ;;  %v534_v46 = vshll.u32 %v2320_v11, 16 }
  0x97   : > { %v469_v57 = vor.u32 %v467_v42, %v466_v49  ;;  %v478_v58 = vshrl.u32 %v1955_v50, 16  ;;  %v481_v54 = vshll.u32 %v1955_v50, 16  ;;  %v2075_v42 = vld [vmem:[%s3073_s1 + $0x10] sm:$0xff]  }
  0x98   : > { %v508_v59 = vsel %vm2263_vm9, %v462_v51, %v507_v48  ;;  %v473_v60 = vrot.slane %v471_v55, 7  ;;  %v2280_v61 = vld [vmem:[#allocation2 + $0x8] sm:$0xff]  ;;  %v2076_v51 = vld [vmem:[%s3073_s1 + $0x18] sm:$0xff]  }
  0x99   : > { %509 = vst [vmem:[#allocation2 + $0x28] sm:$0x1f] %v508_v59  ;;  %v511_v62 = vsel %vm2263_vm9, %v469_v57, %v510_v52  ;;  %658 = vrot.lane.b32.xlu0 %v2280_v61, %s2097_s8  ;;  %v480_v1 = vrot.slane %v478_v58, 7  ;;  %v2296_v7 = vld [vmem:[#allocation2 + $0x18] sm:$0xff]  ;;  %v626_v14 = vrot.slane %v2280_v61, 1  ;;  %v539_v32 = vshll.u32 %v2280_v61, 16  ;;  %2010 = vmatpush3.bf16.msra.mxu0 %v2074_v36 }
  0x9a   : > { %512 = vst [vmem:[#allocation2 + $0x30] sm:$0x1f] %v511_v62  ;;  %v476_v0 = vor.u32 %v474_v56, %v473_v60  ;;  %v630_v19 = vrot.slane %v2296_v7, 1  ;;  %v543_v39 = vshrl.u32 %v2280_v61, 16  ;;  %v555_v41 = vshll.u32 %v2296_v7, 16  ;;  %2011 = vmatprep.subr.bf16.mxu0 %v2075_v42 }
  0x9b   : > { %v483_v3 = vor.u32 %v481_v54, %v480_v1  ;;  %v627_v15 = vsel %vm624_vm10, %v625_v13, %v626_v14  ;;  %v541_v37 = vrot.slane %v539_v32, 1  ;;  %v559_v45 = vshrl.u32 %v2296_v7, 16  ;;  %v2077_v54 = vld [vmem:[%s3073_s1 + $0x20] ss:$0 sps:$4 sm:$0xff]  }
  0x9c   : > { %v514_v4 = vsel %vm2263_vm9, %v476_v0, %v513_v63  ;;  %v2288_v5 = vld [vmem:[#allocation2 + $0x10] sm:$0xff]  ;;  %v557_v49 = vrot.slane %v555_v41, 1  ;;  %v532_v52 = vshrl.u32 %v2320_v11, 16  ;;  %v536_v58 = vrot.slane %v534_v46, 1 }
  0x9d   : > { %515 = vst [vmem:[#allocation2 + $0x38] sm:$0x1f] %v514_v4  ;;  %v517_v6 = vsel %vm2263_vm9, %v483_v3, %v516_v2  ;;  %717 = vrot.lane.b32.xlu0 %v2288_v5, %s2098_s9  ;;  %660 = vrot.lane.b32.xlu1 %v2288_v5, %s2097_s8  ;;  %v2302_v8 = vld [vmem:[#allocation2 + $0x20] sm:$0xff]  ;;  %v628_v17 = vrot.slane %v2288_v5, 1  ;;  %v547_v35 = vshll.u32 %v2288_v5, 16  ;;  %v545_v43 = vor.u32 %v543_v39, %v541_v37 }
  0x9e   : > { %518 = vst [vmem:[#allocation2 + $0x40] sm:$0x1f] %v517_v6  ;;  %v632_v21 = vrot.slane %v2302_v8, 1  ;;  %v551_v44 = vshrl.u32 %v2288_v5, 16  ;;  %v563_v50 = vshll.u32 %v2302_v8, 16  ;;  %2012 = vmatpush3.bf16.msra.mxu0 %v2075_v42  ;;  %v561_v56 = vor.u32 %v559_v45, %v557_v49 }
  0x9f   : > { %v629_v18 = vsel %vm624_vm10, %v626_v14, %v628_v17  ;;  %v631_v20 = vsel %vm624_vm10, %v628_v17, %v630_v19  ;;  %v549_v40 = vrot.slane %v547_v35, 1  ;;  %2013 = vmatprep.subr.bf16.mxu0 %v2076_v51  ;;  %v537_v60 = vor.u32 %v536_v58, %v532_v52 }
  0xa0   : > { %v2308_v9 = vld [vmem:[#allocation2 + $0x28] sm:$0xff]  ;;  %v633_v22 = vsel %vm624_vm10, %v630_v19, %v632_v21  ;;  %v565_v57 = vrot.slane %v563_v50, 1  ;;  %v966_v62 = vsel %vm964_vm13, %v2077_v54, 0  ;;  %v567_v1 = vshrl.u32 %v2302_v8, 16 }
  0xa1   : > { %662 = vrot.lane.b32.xlu0 %v2296_v7, %s2097_s8  ;;  %719 = vrot.lane.b32.xlu1 %v2296_v7, %s2098_s9  ;;  %v2314_v10 = vld [vmem:[#allocation2 + $0x30] sm:$0xff]  ;;  %v634_v23 = vrot.slane %v2308_v9, 1  ;;  %v550_v47 = vsel %vm530_vm12, %v545_v43, %v549_v40  ;;  %v553_v48 = vor.u32 %v551_v44, %v549_v40  ;;  %v542_v63 = vsel %vm530_vm12, %v537_v60, %v541_v37 }
  0xa2   : > { %v636_v25 = vrot.slane %v2314_v10, 1  ;;  %2014 = vmatpush3.bf16.msra.mxu0 %v2076_v51  ;;  %v566_v59 = vsel %vm530_vm12, %v561_v56, %v565_v57  ;;  %v571_v0 = vshll.u32 %v2308_v9, 16  ;;  %v569_v2 = vor.u32 %v567_v1, %v565_v57 }
  0xa3   : > { %v635_v24 = vsel %vm624_vm10, %v632_v21, %v634_v23  ;;  %v558_v55 = vsel %vm530_vm12, %v553_v48, %v557_v49  ;;  %2051 = vmatprep.subr.msk.bf16.mxu0 %vm964_vm13, %v2077_v54  ;;  %v575_v4 = vshrl.u32 %v2308_v9, 16  ;;  %v579_v6 = vshll.u32 %v2314_v10, 16 }
  0xa4   : > { %v2322_v12 = vld [vmem:[#allocation2 + $0x38] sm:$0xff]  ;;  %v637_v26 = vsel %vm624_vm10, %v634_v23, %v636_v25  ;;  %v573_v3 = vrot.slane %v571_v0, 1  ;;  %vm1142_vm9 = vcmask 130052  }
  0xa5   : > { %721 = vrot.lane.b32.xlu0 %v2302_v8, %s2098_s9  ;;  %664 = vrot.lane.b32.xlu1 %v2302_v8, %s2097_s8  ;;  %v2331_v16 = vld [vmem:[#allocation2 + $0x40] sm:$0xff]  ;;  %v638_v27 = vrot.slane %v2322_v12, 1  ;;  %v587_v19 = vshll.u32 %v2322_v12, 16 }
  0xa6   : > { %v640_v29 = vrot.slane %v2331_v16, 1  ;;  %2016 = vmatpush3.bf16.msra.mxu0 %v966_v62  ;;  %v574_v13 = vsel %vm530_vm12, %v569_v2, %v573_v3  ;;  %v577_v14 = vor.u32 %v575_v4, %v573_v3  ;;  %v595_v23 = vshll.u32 %v2331_v16, 16 }
  0xa7   : > { %v639_v28 = vsel %vm624_vm10, %v636_v25, %v638_v27  ;;  %1724 = vmatprep.subr.bf16.mxu0 %v2096_v53  ;;  %v589_v21 = vrot.slane %v587_v19, 1  ;;  %v674_v37 = vshrl.u32 %v2331_v16, 16 }
  0xa8   : > { %v641_v30 = vsel %vm624_vm10, %v638_v27, %v640_v29  ;;  %v2386_v38 = vsel %vm624_vm10, %v640_v29, %v699_v34  ;;  %v597_v27 = vrot.slane %v595_v23, 1  ;;  %v733_v29 = vshrl.u32 %v2370_v31, 16 }
  0xa9   : > { %666 = vrot.lane.b32.xlu0 %v2308_v9, %s2097_s8  ;;  %723 = vrot.lane.b32.xlu1 %v2308_v9, %s2098_s9 }
  0xaa   : > { %v676_v41 = vor.u32 %v674_v37, %v597_v27 }
  0xad   : > { %725 = vrot.lane.b32.xlu0 %v2314_v10, %s2098_s9  ;;  %668 = vrot.lane.b32.xlu1 %v2314_v10, %s2097_s8 }
  0xb1   : > { %670 = vrot.lane.b32.xlu0 %v2322_v12, %s2097_s8  ;;  %727 = vrot.lane.b32.xlu1 %v2322_v12, %s2098_s9 }
  0xb5   : > { %642 = vrot.lane.b32.xlu0 %v627_v15, %s2099_s10  ;;  %672 = vrot.lane.b32.xlu1 %v2331_v16, %s2097_s8  ;;  %v581_v15 = vrot.slane %v579_v6, 1 }
  0xb7   : > { %v582_v17 = vsel %vm530_vm12, %v577_v14, %v581_v15 }
  0xb9   : > { %701 = vrot.lane.b32.xlu0 %v629_v18, %s2100_s11  ;;  %644 = vrot.lane.b32.xlu1 %v629_v18, %s2099_s10  ;;  %v583_v18 = vshrl.u32 %v2314_v10, 16 }
  0xbd   : > { %760 = vrot.lane.b32.xlu0 %v631_v20, %s2101_s12  ;;  %703 = vrot.lane.b32.xlu1 %v631_v20, %s2100_s11 }
  0xc1   : > { %762 = vrot.lane.b32.xlu0 %v633_v22, %s2101_s12  ;;  %648 = vrot.lane.b32.xlu1 %v633_v22, %s2099_s10 }
  0xc5   : > { %646 = vrot.lane.b32.xlu0 %v631_v20, %s2099_s10  ;;  %707 = vrot.lane.b32.xlu1 %v635_v24, %s2100_s11  ;;  %v585_v20 = vor.u32 %v583_v18, %v581_v15 }
  0xc7   : > { %v590_v25 = vsel %vm530_vm12, %v585_v20, %v589_v21 }
  0xc9   : > { %705 = vrot.lane.b32.xlu0 %v633_v22, %s2100_s11  ;;  %652 = vrot.lane.b32.xlu1 %v637_v26, %s2099_s10  ;;  %v591_v22 = vshrl.u32 %v2322_v12, 16 }
  0xcd   : > { %764 = vrot.lane.b32.xlu0 %v635_v24, %s2101_s12  ;;  %711 = vrot.lane.b32.xlu1 %v639_v28, %s2100_s11 }
  0xd1   : > { %766 = vrot.lane.b32.xlu0 %v637_v26, %s2101_s12  ;;  %770 = vrot.lane.b32.xlu1 %v641_v30, %s2101_s12 }
  0xd5   : > { %650 = vrot.lane.b32.xlu0 %v635_v24, %s2099_s10  ;;  %656 = vrot.lane.b32.xlu1 %v641_v30, %s2099_s10  ;;  %v529_v24 = vld [vmem:[#allocation2 + $0x50] sm:$0xff] }
  0xd9   : > { %709 = vrot.lane.b32.xlu0 %v637_v26, %s2100_s11  ;;  %715 = vrot.lane.b32.xlu1 %v2386_v38, %s2100_s11  ;;  %v593_v26 = vor.u32 %v591_v22, %v589_v21 }
  0xdb   : > { %v598_v33 = vsel %vm530_vm12, %v593_v26, %v597_v27 }
  0xdd   : > { %768 = vrot.lane.b32.xlu0 %v639_v28, %s2101_s12  ;;  %601 = vrot.lane.b32.xlu1 %v550_v47, %s2102_s19 }
  0xe1   : > { %654 = vrot.lane.b32.xlu0 %v639_v28, %s2099_s10  ;;  %684 = vrot.lane.b32.xlu1 %v558_v55, %s2103_s22  ;;  %v678_v28 = vshll.u32 %v2370_v31, 16 }
  0xe3   : > { %v680_v32 = vrot.slane %v678_v28, 1 }
  0xe5   : > { %713 = vrot.lane.b32.xlu0 %v641_v30, %s2100_s11  ;;  %743 = vrot.lane.b32.xlu1 %v566_v59, %s2104_s27  ;;  %v737_v30 = vshll.u32 %v529_v24, 16  ;;  %v735_v35 = vor.u32 %v733_v29, %v680_v32  ;;  %v681_v44 = vsel %vm530_vm12, %v676_v41, %v680_v32 }
  0xe7   : > { %v739_v36 = vrot.slane %v737_v30, 1 }
  0xe9   : > { %599 = vrot.lane.b32.xlu0 %v542_v63, %s2102_s19  ;;  %603 = vrot.lane.b32.xlu1 %v558_v55, %s2102_s19  ;;  %v740_v39 = vsel %vm530_vm12, %v735_v35, %v739_v36 }
  0xed   : > { %682 = vrot.lane.b32.xlu0 %v550_v47, %s2103_s22  ;;  %605 = vrot.lane.b32.xlu1 %v566_v59, %s2102_s19 }
  0xf1   : > { %741 = vrot.lane.b32.xlu0 %v558_v55, %s2104_s27  ;;  %688 = vrot.lane.b32.xlu1 %v574_v13, %s2103_s22 }
  0xf5   : > { %686 = vrot.lane.b32.xlu0 %v566_v59, %s2103_s22  ;;  %747 = vrot.lane.b32.xlu1 %v582_v17, %s2104_s27 }
  0xf9   : > { %745 = vrot.lane.b32.xlu0 %v574_v13, %s2104_s27  ;;  %607 = vrot.lane.b32.xlu1 %v574_v13, %s2102_s19 }
  0xfd   : > { %690 = vrot.lane.b32.xlu0 %v582_v17, %s2103_s22  ;;  %609 = vrot.lane.b32.xlu1 %v582_v17, %s2102_s19 }
 0x101   : > { %749 = vrot.lane.b32.xlu0 %v590_v25, %s2104_s27  ;;  %692 = vrot.lane.b32.xlu1 %v590_v25, %s2103_s22 }
 0x105   : > { %729 = vrot.lane.b32.xlu0 %v2331_v16, %s2098_s9  ;;  %751 = vrot.lane.b32.xlu1 %v598_v33, %s2104_s27  ;;  %v758_v16 = vrot.slane %v529_v24, 1 }
 0x107   : > { %v759_v47 = vsel %vm624_vm10, %v699_v34, %v758_v16 }
 0x109   : > { %611 = vrot.lane.b32.xlu0 %v590_v25, %s2102_s19  ;;  %731 = vrot.lane.b32.xlu1 %v2370_v31, %s2098_s9 }
 0x10b   : > { %v2454_v40 = vpop.permute.xlu0 %658 }
 0x10d   : > { %694 = vrot.lane.b32.xlu0 %v598_v33, %s2103_s22  ;;  %755 = vrot.lane.b32.xlu1 %v740_v39, %s2104_s27 }
 0x10f   : > { %v661_v42 = vpop.permute.xlu1 %660  ;;  %v2458_v43 = vpop.permute.xlu0 %717 }
 0x111   : > { %753 = vrot.lane.b32.xlu0 %v681_v44, %s2104_s27  ;;  %613 = vrot.lane.b32.xlu1 %v598_v33, %s2102_s19  ;;  %s2106_s19 = smov 80  }
 0x113   : > { %v720_v45 = vpop.permute.xlu1 %719  ;;  %v2463_v46 = vpop.permute.xlu0 %662 }
 0x115   : > { %772 = vrot.lane.b32.xlu0 %v2386_v38, %s2101_s12  ;;  %696 = vrot.lane.b32.xlu1 %v681_v44, %s2103_s22 }
 0x117   : > { %v665_v48 = vpop.permute.xlu1 %664  ;;  %v2471_v49 = vpop.permute.xlu0 %721 }
 0x119   : > { %774 = vrot.lane.b32.xlu1 %v759_v47, %s2101_s12 }
 0x11b   : > { %v2474_v50 = vpop.permute.xlu1 %723  ;;  %v2476_v51 = vpop.permute.xlu0 %666 }
 0x11f   : > { %v2478_v52 = vpop.permute.xlu1 %668  ;;  %v2480_v55 = vpop.permute.xlu0 %725 }
 0x123   : > { %v2482_v38 = vpop.permute.xlu1 %727  ;;  %v2484_v56 = vpop.permute.xlu0 %670 }
 0x127   : > { %v2486_v31 = vpop.permute.xlu1 %672  ;;  %v643_v34 = vpop.permute.xlu0 %642 }
 0x12b   : > { %v645_v57 = vpop.permute.xlu1 %644  ;;  %v702_v58 = vpop.permute.xlu0 %701 }
 0x12f   : > { %v704_v54 = vpop.permute.xlu1 %703  ;;  %v761_v59 = vpop.permute.xlu0 %760 }
 0x133   : > { %v649_v60 = vpop.permute.xlu1 %648  ;;  %v763_v62 = vpop.permute.xlu0 %762 }
 0x137   : > { %v708_v63 = vpop.permute.xlu1 %707  ;;  %v647_v1 = vpop.permute.xlu0 %646 }
 0x13b   : > { %v2488_v0 = vpop.permute.xlu1 %652  ;;  %v706_v2 = vpop.permute.xlu0 %705 }
 0x13f   : > { %v2490_v3 = vpop.permute.xlu1 %711  ;;  %v2492_v4 = vpop.permute.xlu0 %764 }
 0x143   : > { %v2494_v6 = vpop.permute.xlu1 %770  ;;  %v2496_v13 = vpop.permute.xlu0 %766 }
 0x147   : > { %v2498_v14 = vpop.permute.xlu1 %656  ;;  %v651_v15 = vpop.permute.xlu0 %650 }
 0x14b   : > { %v2500_v17 = vpop.permute.xlu1 %715  ;;  %v2502_v18 = vpop.permute.xlu0 %709 }
 0x14f   : > { %v602_v19 = vpop.permute.xlu1 %601  ;;  %v2504_v20 = vpop.permute.xlu0 %768 }
 0x150   : > { %v779_v21 = vsel %vm344_vm6, %v2280_v61, %v602_v19 }
 0x151   : > { %v796_v24 = vsel %vm792_vm11, %v779_v21, %v645_v57 }
 0x152   : > { %v813_v25 = vsel %vm809_vm14, %v796_v24, %v661_v42 }
 0x153   : > { %v685_v22 = vpop.permute.xlu1 %684  ;;  %v2508_v23 = vpop.permute.xlu0 %654 }
 0x154   : > { %v830_v28 = vsel %vm826_vm15, %v813_v25, %v685_v22 }
 0x155   : > { %v847_v33 = vsel %vm843_vm0, %v830_v28, %v704_v54 }
 0x156   : > { %v864_v39 = vsel %vm860_vm2, %v847_v33, %v720_v45 }
 0x157   : > { %v744_v26 = vpop.permute.xlu1 %743  ;;  %v2512_v27 = vpop.permute.xlu0 %713 }
 0x158   : > { %v881_v45 = vsel %vm877_vm3, %v864_v39, %v744_v26 }
 0x15b   : > { %v604_v29 = vpop.permute.xlu1 %603  ;;  %v600_v30 = vpop.permute.xlu0 %599 }
 0x15c   : > { %v777_v61 = vsel %vm344_vm6, %v2320_v11, %v600_v30  ;;  %v781_v11 = vsel %vm344_vm6, %v2288_v5, %v604_v29 }
 0x15d   : > { %v794_v32 = vsel %vm792_vm11, %v777_v61, %v643_v34 }
 0x15e   : > { %v811_v35 = vsel %vm809_vm14, %v794_v32, %v2454_v40 }
 0x15f   : > { %v606_v36 = vpop.permute.xlu1 %605  ;;  %v683_v37 = vpop.permute.xlu0 %682 }
 0x160   : > { %v783_v41 = vsel %vm344_vm6, %v2296_v7, %v606_v36  ;;  %v828_v42 = vsel %vm826_vm15, %v811_v35, %v683_v37  ;;  %v798_v7 = vsel %vm792_vm11, %v781_v11, %v647_v1 }
 0x161   : > { %v800_v44 = vsel %vm792_vm11, %v783_v41, %v649_v60  ;;  %v845_v16 = vsel %vm843_vm0, %v828_v42, %v702_v58  ;;  %v815_v19 = vsel %vm809_vm14, %v798_v7, %v2463_v46 }
 0x162   : > { %v817_v47 = vsel %vm809_vm14, %v800_v44, %v665_v48  ;;  %v862_v40 = vsel %vm860_vm2, %v845_v16, %v2458_v43  ;;  %v898_v43 = vsel %vm894_vm5, %v881_v45, %v763_v62 }
 0x163   : > { %v689_v34 = vpop.permute.xlu1 %688  ;;  %v742_v57 = vpop.permute.xlu0 %741 }
 0x164   : > { %v834_v54 = vsel %vm826_vm15, %v817_v47, %v689_v34  ;;  %v879_v5 = vsel %vm877_vm3, %v862_v40, %v742_v57 }
 0x165   : > { %v851_v60 = vsel %vm843_vm0, %v834_v54, %v708_v63  ;;  %v896_v58 = vsel %vm894_vm5, %v879_v5, %v761_v59 }
 0x166   : > { %2017 = vmatprep.mubr.msk.bf16.mxu0 %vm947_vm7, %v896_v58  ;;  %v868_v1 = vsel %vm860_vm2, %v851_v60, %v2474_v50  ;;  %v2086_v58 = vld [vmem:[%s3076_s4 + $0x40] sm:$0xff]  }
 0x167   : > { %v748_v48 = vpop.permute.xlu1 %747  ;;  %2018 = vmatmul.mubr.msk.bf16.vlgmr.msra.gmra.mrb[0].mxu0 %vm947_vm7, %v898_v43  ;;  %v687_v21 = vpop.permute.xlu0 %686  ;;  %v1121_v43 = vld [vmem:[#allocation3 + $0x10] sm:$0x1] }
 0x168   : > { %v832_v22 = vsel %vm826_vm15, %v815_v19, %v687_v21  ;;  %v885_v24 = vsel %vm877_vm3, %v868_v1, %v748_v48  ;;  %v1147_v48 = vld [vmem:[#allocation3 + $0x10] sm:$0xf0]  ;;  %v1118_v1 = vld [vmem:[#allocation3 + $0x8] sm:$0x1] }
 0x169   : > { %v849_v63 = vsel %vm843_vm0, %v832_v22, %v706_v2  ;;  %v902_v2 = vsel %vm894_vm5, %v885_v24, %v2496_v13  ;;  %v1144_v22 = vld [vmem:[#allocation3 + $0x8] sm:$0xf0]  ;;  %v1127_v24 = vld [vmem:[#allocation3 + $0x20] sm:$0x1] }
 0x16a   : > { %v866_v59 = vsel %vm860_vm2, %v849_v63, %v2471_v49 }
 0x16b   : > { %v608_v62 = vpop.permute.xlu1 %607  ;;  %v746_v25 = vpop.permute.xlu0 %745 }
 0x16c   : > { %v785_v26 = vsel %vm344_vm6, %v2302_v8, %v608_v62  ;;  %v883_v46 = vsel %vm877_vm3, %v866_v59, %v746_v25  ;;  %v1153_v62 = vld [vmem:[#allocation3 + $0x20] sm:$0xf0] }
 0x16d   : > { %v802_v28 = vsel %vm792_vm11, %v785_v26, %v651_v15  ;;  %v900_v50 = vsel %vm894_vm5, %v883_v46, %v2492_v4  ;;  %v1124_v46 = vld [vmem:[#allocation3 + $0x18] sm:$0x1] }
 0x16e   : > { %2021 = vmatprep.mubr.msk.bf16.mxu0 %vm947_vm7, %v900_v50  ;;  %v819_v49 = vsel %vm809_vm14, %v802_v28, %v2476_v51  ;;  %v1150_v28 = vld [vmem:[#allocation3 + $0x18] sm:$0xf0] }
 0x16f   : > { %v610_v29 = vpop.permute.xlu1 %609  ;;  %2022 = vmatmul.mubr.msk.bf16.gmra.mrb[4].mxu0 %vm947_vm7, %v902_v2  ;;  %v691_v30 = vpop.permute.xlu0 %690 }
 0x170   : > { %v787_v8 = vsel %vm344_vm6, %v2308_v9, %v610_v29  ;;  %v836_v15 = vsel %vm826_vm15, %v819_v49, %v691_v30  ;;  %v1133_v49 = vld [vmem:[#allocation3 + $0x30] sm:$0x1]  ;;  %v1159_v29 = vld [vmem:[#allocation3 + $0x30] sm:$0xf0] }
 0x171   : > { %v804_v4 = vsel %vm792_vm11, %v787_v8, %v2488_v0  ;;  %v853_v61 = vsel %vm843_vm0, %v836_v15, %v2502_v18  ;;  %v1130_v15 = vld [vmem:[#allocation3 + $0x28] sm:$0x1] }
 0x172   : > { %v821_v13 = vsel %vm809_vm14, %v804_v4, %v2478_v52  ;;  %v870_v51 = vsel %vm860_vm2, %v853_v61, %v2480_v55  ;;  %v1156_v4 = vld [vmem:[#allocation3 + $0x28] sm:$0xf0] }
 0x173   : > { %v693_v33 = vpop.permute.xlu1 %692  ;;  %v750_v32 = vpop.permute.xlu0 %749 }
 0x174   : > { %v838_v35 = vsel %vm826_vm15, %v821_v13, %v693_v33  ;;  %v887_v9 = vsel %vm877_vm3, %v870_v51, %v750_v32  ;;  %v1139_v51 = vld [vmem:[#allocation3 + $0x40] sm:$0x1]  ;;  %v1165_v33 = vld [vmem:[#allocation3 + $0x40] sm:$0xf0] }
 0x175   : > { %v855_v36 = vsel %vm843_vm0, %v838_v35, %v2490_v3  ;;  %v904_v0 = vsel %vm894_vm5, %v887_v9, %v2504_v20  ;;  %v1136_v9 = vld [vmem:[#allocation3 + $0x38] sm:$0x1] }
 0x176   : > { %2025 = vmatprep.mubr.msk.bf16.mxu0 %vm947_vm7, %v904_v0  ;;  %v872_v52 = vsel %vm860_vm2, %v855_v36, %v2482_v38  ;;  %v1162_v36 = vld [vmem:[#allocation3 + $0x38] sm:$0xf0] }
 0x177   : > { %v752_v18 = vpop.permute.xlu1 %751  ;;  %v730_v37 = vpop.permute.xlu0 %729 }
 0x178   : > { %v889_v55 = vsel %vm877_vm3, %v872_v52, %v752_v18  ;;  %v2657_v18 = vld [vmem:[%s3074_s2] ss:$0 sm:$0xff] }
 0x179   : > { %v906_v39 = vsel %vm894_vm5, %v889_v55, %v2494_v6  ;;  %v2662_v55 = vld [vmem:[%s3075_s3] ss:$0 sm:$0xff] }
 0x17a   : > { %2026 = vmatmul.mubr.msk.bf16.gmra.mrb[8].mxu0 %vm947_vm7, %v906_v39 }
 0x17b   : > { %v732_v41 = vpop.permute.xlu1 %731  ;;  %v612_v42 = vpop.permute.xlu0 %611 }
 0x17c   : > { %v789_v3 = vsel %vm344_vm6, %v2314_v10, %v612_v42 }
 0x17d   : > { %v806_v20 = vsel %vm792_vm11, %v789_v3, %v2508_v23 }
 0x17e   : > { %v823_v38 = vsel %vm809_vm14, %v806_v20, %v2484_v56 }
 0x17f   : > { %v756_v11 = vpop.permute.xlu1 %755  ;;  %v695_v44 = vpop.permute.xlu0 %694 }
 0x180   : > { %v840_v16 = vsel %vm826_vm15, %v823_v38, %v695_v44 }
 0x181   : > { %v857_v6 = vsel %vm843_vm0, %v840_v16, %v2512_v27 }
 0x182   : > { %v874_v10 = vsel %vm860_vm2, %v857_v6, %v730_v37 }
 0x183   : > { %v614_v47 = vpop.permute.xlu1 %613  ;;  %v754_v40 = vpop.permute.xlu0 %753 }
 0x184   : > { %v791_v45 = vsel %vm344_vm6, %v2322_v12, %v614_v47  ;;  %v891_v34 = vsel %vm877_vm3, %v874_v10, %v754_v40  ;;  %vm1116_vm6 = vcmask 122880  }
 0x185   : > { %v808_v23 = vsel %vm792_vm11, %v791_v45, %v2498_v14  ;;  %vm2613_vm13 = vmand %vm1116_vm6, %vm351_vm1 }
 0x186   : > { %v825_v56 = vsel %vm809_vm14, %v808_v23, %v2486_v31  ;;  %vm2618_vm14 = vmand %vm1142_vm9, %vm378_vm4  ;;  %v1122_v19 = vsel %vm2613_vm13, 0, %v1121_v43  ;;  %v1119_v63 = vsel %vm2613_vm13, 0, %v1118_v1  ;;  %v1128_v25 = vsel %vm2613_vm13, 0, %v1127_v24 }
 0x187   : > { %v697_v57 = vpop.permute.xlu1 %696  ;;  %v773_v7 = vpop.permute.xlu0 %772  ;;  %v1148_v21 = vsel %vm2618_vm14, 0, %v1147_v48  ;;  %1123 = vst [vmem:[#allocation3 + $0x10] sm:$0x1] %v1122_v19  ;;  %v1145_v59 = vsel %vm2618_vm14, 0, %v1144_v22  ;;  %1120 = vst [vmem:[#allocation3 + $0x8] sm:$0x1] %v1119_v63 }
 0x188   : > { %v842_v54 = vsel %vm826_vm15, %v825_v56, %v697_v57  ;;  %v908_v27 = vsel %vm894_vm5, %v891_v34, %v773_v7  ;;  %1149 = vst [vmem:[#allocation3 + $0x10] sm:$0xf0] %v1148_v21  ;;  %1146 = vst [vmem:[#allocation3 + $0x8] sm:$0xf0] %v1145_v59  ;;  %v1154_v26 = vsel %vm2618_vm14, 0, %v1153_v62  ;;  %v1125_v50 = vsel %vm2613_vm13, 0, %v1124_v46 }
 0x189   : > { %v859_v5 = vsel %vm843_vm0, %v842_v54, %v2500_v17  ;;  %2029 = vmatprep.mubr.msk.bf16.mxu0 %vm947_vm7, %v908_v27  ;;  %1129 = vst [vmem:[#allocation3 + $0x20] sm:$0x1] %v1128_v25  ;;  %1155 = vst [vmem:[#allocation3 + $0x20] sm:$0xf0] %v1154_v26  ;;  %v1151_v2 = vsel %vm2618_vm14, 0, %v1150_v28  ;;  %v1134_v30 = vsel %vm2613_vm13, 0, %v1133_v49 }
 0x18a   : > { %v876_v12 = vsel %vm860_vm2, %v859_v5, %v732_v41  ;;  %1126 = vst [vmem:[#allocation3 + $0x18] sm:$0x1] %v1125_v50  ;;  %1152 = vst [vmem:[#allocation3 + $0x18] sm:$0xf0] %v1151_v2  ;;  %v1160_v8 = vsel %vm2618_vm14, 0, %v1159_v29  ;;  %v1131_v61 = vsel %vm2613_vm13, 0, %v1130_v15 }
 0x18b   : > { %v893_v14 = vsel %vm877_vm3, %v876_v12, %v756_v11  ;;  %v775_v60 = vpop.permute.xlu1 %774  ;;  %1135 = vst [vmem:[#allocation3 + $0x30] sm:$0x1] %v1134_v30  ;;  %1161 = vst [vmem:[#allocation3 + $0x30] sm:$0xf0] %v1160_v8  ;;  %v1157_v13 = vsel %vm2618_vm14, 0, %v1156_v4  ;;  %v1140_v32 = vsel %vm2613_vm13, 0, %v1139_v51 }
 0x18c   : > { %v910_v31 = vsel %vm894_vm5, %v893_v14, %v775_v60  ;;  %1132 = vst [vmem:[#allocation3 + $0x28] sm:$0x1] %v1131_v61  ;;  %1158 = vst [vmem:[#allocation3 + $0x28] sm:$0xf0] %v1157_v13  ;;  %v1166_v35 = vsel %vm2618_vm14, 0, %v1165_v33  ;;  %v1137_v0 = vsel %vm2613_vm13, 0, %v1136_v9 }
 0x18d   : > { %2030 = vmatmul.mubr.msk.bf16.gmra.mrb[12].mxu0 %vm947_vm7, %v910_v31  ;;  %1141 = vst [vmem:[#allocation3 + $0x40] sm:$0x1] %v1140_v32  ;;  %1167 = vst [vmem:[#allocation3 + $0x40] sm:$0xf0] %v1166_v35  ;;  %v1163_v52 = vsel %vm2618_vm14, 0, %v1162_v36  ;;  %vm1240_vm0 = vcmask 126976  }
 0x18e   : > { %1138 = vst [vmem:[#allocation3 + $0x38] sm:$0x1] %v1137_v0  ;;  %1164 = vst [vmem:[#allocation3 + $0x38] sm:$0xf0] %v1163_v52  ;;  %v2078_v0 = vld [vmem:[%s3076_s4] sm:$0xff]  }
 0x18f   : > { %v1245_v60 = vld [vmem:[#allocation3 + $0x10] sm:$0x1f]  ;;  %vm2673_vm3 = vmand %vm1240_vm0, %vm493_vm8  ;;  %v1242_v21 = vld [vmem:[#allocation3 + $0x8] sm:$0x1f]  ;;  %1725 = vmatpush1.bf16.msra.mxu0 %v2078_v0  ;;  %2042 = vmatpush1.bf16.msra.mxu1 %v2078_v0 }
 0x190   : > { %v1251_v8 = vld [vmem:[#allocation3 + $0x20] sm:$0x1f]  ;;  %1726 = vmatprep.subr.bf16.mxu0 %v2096_v53  ;;  %2034 = vmatprep.subr.bf16.mxu1 %v2096_v53  ;;  %v2083_v0 = vld [vmem:[%s3076_s4 + $0x28] sm:$0xff]  }
 0x191   : > { %v1248_v33 = vld [vmem:[#allocation3 + $0x18] sm:$0x1f] }
 0x23a   : > { %v2019_v37 = vpop.f32.mrb[0].mxu0 }
 0x23b   : > { %v1065_v39 = vmul.f32 %v2019_v37, %v2657_v18  ;;  %v1002_v41 = vpop.f32.mrb[1].mxu0 }
 0x23c   : > { %v1064_v42 = vmul.f32 %v2657_v18, %v1002_v41  ;;  %v2020_v3 = vpop.f32.mrb[2].mxu0 }
 0x23d   : > { %v1080_v20 = vadd.f32 %v2662_v55, %v1065_v39  ;;  %v1005_v38 = vpop.f32.mrb[3].mxu0 }
 0x23e   : > { %v1079_v11 = vadd.f32 %v2662_v55, %v1064_v42 }
 0x23f   : > { %vm1088_vm1 = vcmp.ge.f32.partialorder %v1080_v20, 0.0  ;;  %v1096_v44 = vmul.f32 0.01, %v1080_v20 }
 0x240   : > { %vm1087_vm4 = vcmp.ge.f32.partialorder %v1079_v11, 0.0  ;;  %v1095_v16 = vmul.f32 0.01, %v1079_v11 }
 0x241   : > { %v1104_v6 = vsel %vm1088_vm1, %v1080_v20, %v1096_v44  ;;  %v2699_v44 = vld [vmem:[#allocation3] sm:$0xff]  ;;  %vm1586_vm1 = vcmask 785408  }
 0x242   : > { %v1169_v47 = vpack.c.bf16 %v1104_v6, %v1104_v6  ;;  %v1103_v40 = vsel %vm1087_vm4, %v1079_v11, %v1095_v16  ;;  %v2023_v45 = vpop.f32.mrb[4].mxu0  ;;  %v2079_v16 = vld [vmem:[%s3076_s4 + $0x8] sm:$0xff]   ;;  %vm1603_vm4 = vcmask 916480  }
 0x243   : > { %v1168_v10 = vpack.c.bf16 %v1103_v40, %v1103_v40  ;;  %v1067_v23 = vmul.f32 %v2023_v45, %v2657_v18  ;;  %v1016_v56 = vpop.f32.mrb[5].mxu0  ;;  %1727 = vmatpush1.bf16.msra.mxu0 %v2079_v16  ;;  %2043 = vmatpush1.bf16.msra.mxu1 %v2079_v16 }
 0x244   : > { %v1184_v34 = vshrl.u32 %v1169_v47, 16  ;;  %v1066_v57 = vmul.f32 %v2657_v18, %v1016_v56  ;;  %v2024_v7 = vpop.f32.mrb[6].mxu0  ;;  %v1187_v14 = vshll.u32 %v1169_v47, 16  ;;  %v1370_v47 = vrot.slane %v2699_v44, 1  ;;  %1728 = vmatprep.subr.bf16.mxu0 %v2096_v53  ;;  %2035 = vmatprep.subr.bf16.mxu1 %v2096_v53 }
 0x245   : > { %v1177_v54 = vshrl.u32 %v1168_v10, 16  ;;  %v1082_v27 = vadd.f32 %v2662_v55, %v1067_v23  ;;  %v1019_v5 = vpop.f32.mrb[7].mxu0  ;;  %v1180_v43 = vshll.u32 %v1168_v10, 16 }
 0x246   : > { %v1186_v12 = vrot.slane %v1184_v34, 7  ;;  %v1081_v31 = vadd.f32 %v2662_v55, %v1066_v57  ;;  %v1280_v34 = vshll.u32 %v2699_v44, 16  ;;  %v1257_v57 = vld [vmem:[#allocation3 + $0x30] sm:$0x1f] }
 0x247   : > { %v1179_v17 = vrot.slane %v1177_v54, 7  ;;  %vm1090_vm7 = vcmp.ge.f32.partialorder %v1082_v27, 0.0  ;;  %v1098_v48 = vmul.f32 0.01, %v1082_v27 }
 0x248   : > { %v1189_v19 = vor.u32 %v1187_v14, %v1186_v12  ;;  %vm1089_vm6 = vcmp.ge.f32.partialorder %v1081_v31, 0.0  ;;  %v1097_v1 = vmul.f32 0.01, %v1081_v31 }
 0x249   : > { %v1182_v22 = vor.u32 %v1180_v43, %v1179_v17  ;;  %v1106_v63 = vsel %vm1090_vm7, %v1082_v27, %v1098_v48  ;;  %v2080_v17 = vld [vmem:[%s3076_s4 + $0x10] sm:$0xff]  }
 0x24a   : > { %v1246_v59 = vsel %vm2673_vm3, %v1189_v19, %v1245_v60  ;;  %v1171_v24 = vpack.c.bf16 %v1106_v63, %v1106_v63  ;;  %v1105_v62 = vsel %vm1089_vm6, %v1081_v31, %v1097_v1  ;;  %v1254_v60 = vld [vmem:[#allocation3 + $0x28] sm:$0x1f]  ;;  %v1278_v1 = vshrl.u32 %v2699_v44, 16  ;;  %1729 = vmatpush1.bf16.msra.mxu0 %v2080_v17  ;;  %2044 = vmatpush1.bf16.msra.mxu1 %v2080_v17  ;;  %v2085_v17 = vld [vmem:[%s3076_s4 + $0x38] sm:$0xff]  }
 0x24b   : > { %1247 = vst [vmem:[#allocation3 + $0x10] sm:$0x1f] %v1246_v59  ;;  %v1243_v25 = vsel %vm2673_vm3, %v1182_v22, %v1242_v21  ;;  %v1170_v26 = vpack.c.bf16 %v1105_v62, %v1105_v62  ;;  %v1282_v22 = vrot.slane %v1280_v34, 1  ;;  %1730 = vmatprep.subr.bf16.mxu0 %v2096_v53  ;;  %2036 = vmatprep.subr.bf16.mxu1 %v2096_v53 }
 0x24c   : > { %1244 = vst [vmem:[#allocation3 + $0x8] sm:$0x1f] %v1243_v25  ;;  %v1198_v46 = vshrl.u32 %v1171_v24, 16  ;;  %v1201_v49 = vshll.u32 %v1171_v24, 16 }
 0x24d   : > { %v1191_v28 = vshrl.u32 %v1170_v26, 16  ;;  %v2027_v50 = vpop.f32.mrb[8].mxu0  ;;  %v1194_v4 = vshll.u32 %v1170_v26, 16  ;;  %v2081_v26 = vld [vmem:[%s3076_s4 + $0x18] sm:$0xff]  }
 0x24e   : > { %v1200_v2 = vrot.slane %v1198_v46, 7  ;;  %v1069_v29 = vmul.f32 %v2027_v50, %v2657_v18  ;;  %v1030_v30 = vpop.f32.mrb[9].mxu0  ;;  %1731 = vmatpush1.bf16.msra.mxu0 %v2081_v26  ;;  %2045 = vmatpush1.bf16.msra.mxu1 %v2081_v26 }
 0x24f   : > { %v1193_v15 = vrot.slane %v1191_v28, 7  ;;  %v1068_v61 = vmul.f32 %v2657_v18, %v1030_v30  ;;  %v2028_v13 = vpop.f32.mrb[10].mxu0  ;;  %1732 = vmatprep.subr.bf16.mxu0 %v2096_v53  ;;  %2037 = vmatprep.subr.bf16.mxu1 %v2096_v53 }
 0x250   : > { %v1203_v51 = vor.u32 %v1201_v49, %v1200_v2  ;;  %v1084_v32 = vadd.f32 %v2662_v55, %v1069_v29  ;;  %v1033_v35 = vpop.f32.mrb[11].mxu0  ;;  %v1283_v29 = vor.u32 %v1282_v22, %v1278_v1 }
 0x251   : > { %v1196_v9 = vor.u32 %v1194_v4, %v1193_v15  ;;  %v1083_v36 = vadd.f32 %v2662_v55, %v1068_v61  ;;  %v2082_v61 = vld [vmem:[%s3076_s4 + $0x20] sm:$0xff]  }
 0x252   : > { %v1252_v52 = vsel %vm2673_vm3, %v1203_v51, %v1251_v8  ;;  %vm1092_vm8 = vcmp.ge.f32.partialorder %v1084_v32, 0.0  ;;  %v1100_v37 = vmul.f32 0.01, %v1084_v32  ;;  %v2690_v39 = vld [vmem:[#allocation3 + $0x10] sm:$0xff]  ;;  %1733 = vmatpush1.bf16.msra.mxu0 %v2082_v61  ;;  %2046 = vmatpush1.bf16.msra.mxu1 %v2082_v61 }
 0x253   : > { %1253 = vst [vmem:[#allocation3 + $0x20] sm:$0x1f] %v1252_v52  ;;  %v1249_v41 = vsel %vm2673_vm3, %v1196_v9, %v1248_v33  ;;  %vm1091_vm9 = vcmp.ge.f32.partialorder %v1083_v36, 0.0  ;;  %v1099_v42 = vmul.f32 0.01, %v1083_v36  ;;  %1462 = vrot.lane.b32.xlu0 %v2690_v39, %s2105_s14  ;;  %v2696_v3 = vld [vmem:[#allocation3 + $0x8] sm:$0xff]  ;;  %1734 = vmatprep.subr.bf16.mxu0 %v2096_v53 }
 0x254   : > { %1250 = vst [vmem:[#allocation3 + $0x18] sm:$0x1f] %v1249_v41  ;;  %v1108_v20 = vsel %vm1092_vm8, %v1084_v32, %v1100_v37  ;;  %v1371_v40 = vrot.slane %v2696_v3, 1  ;;  %v1373_v12 = vrot.slane %v2690_v39, 1  ;;  %v1285_v63 = vshll.u32 %v2696_v3, 16  ;;  %2038 = vmatprep.subr.bf16.mxu1 %v2096_v53 }
 0x255   : > { %v1173_v38 = vpack.c.bf16 %v1108_v20, %v1108_v20  ;;  %v1107_v11 = vsel %vm1091_vm9, %v1083_v36, %v1099_v42  ;;  %v1289_v32 = vshrl.u32 %v2696_v3, 16  ;;  %v1293_v35 = vshll.u32 %v2690_v39, 16 }
 0x256   : > { %v1172_v6 = vpack.c.bf16 %v1107_v11, %v1107_v11  ;;  %v1372_v27 = vsel %vm624_vm10, %v1370_v47, %v1371_v40  ;;  %v1374_v24 = vsel %vm624_vm10, %v1371_v40, %v1373_v12  ;;  %v1287_v30 = vrot.slane %v1285_v63, 1  ;;  %1735 = vmatpush1.bf16.msra.mxu0 %v2083_v0  ;;  %2047 = vmatpush1.bf16.msra.mxu1 %v2083_v0 }
 0x257   : > { %v1212_v45 = vshrl.u32 %v1173_v38, 16  ;;  %1403 = vrot.lane.b32.xlu0 %v2696_v3, %s2098_s9  ;;  %v1215_v56 = vshll.u32 %v1173_v38, 16  ;;  %1736 = vmatprep.subr.bf16.mxu0 %v2096_v53 }
 0x258   : > { %v1205_v10 = vshrl.u32 %v1172_v6, 16  ;;  %v1208_v54 = vshll.u32 %v1172_v6, 16  ;;  %v1288_v36 = vsel %vm530_vm12, %v1283_v29, %v1287_v30  ;;  %v1291_v41 = vor.u32 %v1289_v32, %v1287_v30  ;;  %2039 = vmatprep.subr.bf16.mxu1 %v2096_v53 }
 0x259   : > { %v1214_v23 = vrot.slane %v1212_v45, 7  ;;  %v1295_v6 = vrot.slane %v1293_v35, 1  ;;  %v2084_v45 = vld [vmem:[%s3076_s4 + $0x30] sm:$0xff]  }
 0x25a   : > { %v1207_v7 = vrot.slane %v1205_v10, 7  ;;  %v2713_v5 = vld [vmem:[#allocation3 + $0x20] sm:$0xff]  ;;  %1737 = vmatpush1.bf16.msra.mxu0 %v2084_v45  ;;  %2048 = vmatpush1.bf16.msra.mxu1 %v2084_v45 }
 0x25b   : > { %v1217_v14 = vor.u32 %v1215_v56, %v1214_v23  ;;  %1387 = vrot.lane.b32.xlu0 %v1372_v27, %s2103_s22  ;;  %1466 = vrot.lane.b32.xlu1 %v2713_v5, %s2105_s14  ;;  %v2719_v31 = vld [vmem:[#allocation3 + $0x18] sm:$0xff]  ;;  %v1309_v50 = vshll.u32 %v2713_v5, 16  ;;  %v1377_v20 = vrot.slane %v2713_v5, 1  ;;  %v1296_v23 = vsel %vm530_vm12, %v1291_v41, %v1295_v6 }
 0x25c   : > { %v1210_v43 = vor.u32 %v1208_v54, %v1207_v7  ;;  %v1375_v48 = vrot.slane %v2719_v31, 1  ;;  %v1301_v19 = vshll.u32 %v2719_v31, 16  ;;  %v1305_v28 = vshrl.u32 %v2719_v31, 16  ;;  %v1263_v7 = vld [vmem:[#allocation3 + $0x40] sm:$0x1f]  ;;  %1738 = vmatprep.subr.bf16.mxu0 %v2096_v53  ;;  %2040 = vmatprep.subr.bf16.mxu1 %v2096_v53 }
 0x25d   : > { %v1258_v21 = vsel %vm2673_vm3, %v1217_v14, %v1257_v57  ;;  %v2765_v33 = vrot.slane %v1309_v50, 1  ;;  %v1260_v14 = vld [vmem:[#allocation3 + $0x38] sm:$0x1f] }
 0x25e   : > { %1259 = vst [vmem:[#allocation3 + $0x30] sm:$0x1f] %v1258_v21  ;;  %v1255_v59 = vsel %vm2673_vm3, %v1210_v43, %v1254_v60  ;;  %v2736_v62 = vsel %vm624_vm10, %v1373_v12, %v1375_v48  ;;  %v2738_v25 = vrot.slane %v1301_v19, 1  ;;  %1739 = vmatpush1.bf16.msra.mxu0 %v2085_v17  ;;  %2049 = vmatpush1.bf16.msra.mxu1 %v2085_v17 }
 0x25f   : > { %1256 = vst [vmem:[#allocation3 + $0x28] sm:$0x1f] %v1255_v59  ;;  %1446 = vrot.lane.b32.xlu0 %v1374_v24, %s2106_s19  ;;  %1409 = vrot.lane.b32.xlu1 %v2713_v5, %s2098_s9  ;;  %v2826_v22 = vsel %vm624_vm10, %v1375_v48, %v1377_v20 }
 0x260   : > { %1980 = vmatprep.mubr.msk.bf16.mxu0 %vm792_vm11, %v2736_v62  ;;  %v2031_v46 = vpop.f32.mrb[12].mxu0  ;;  %v1307_v4 = vor.u32 %v1305_v28, %v2738_v25  ;;  %1740 = vmatprep.subr.bf16.mxu0 %v2096_v53 }
 0x261   : > { %v1071_v2 = vmul.f32 %v2031_v46, %v2657_v18  ;;  %v1044_v49 = vpop.f32.mrb[13].mxu0  ;;  %2041 = vmatprep.subr.bf16.mxu1 %v2096_v53 }
 0x262   : > { %v1070_v8 = vmul.f32 %v2657_v18, %v1044_v49  ;;  %v2032_v15 = vpop.f32.mrb[14].mxu0  ;;  %1741 = vmatpush1.bf16.msra.mxu0 %v2086_v58  ;;  %2050 = vmatpush1.bf16.msra.mxu1 %v2086_v58 }
 0x263   : > { %v1086_v13 = vadd.f32 %v2662_v55, %v1071_v2  ;;  %1389 = vrot.lane.b32.xlu0 %v1374_v24, %s2103_s22  ;;  %1391 = vrot.lane.b32.xlu1 %v2736_v62, %s2103_s22  ;;  %v1047_v51 = vpop.f32.mrb[15].mxu0  ;;  %v1297_v24 = vshrl.u32 %v2690_v39, 16  ;;  %v1313_v15 = vshrl.u32 %v2713_v5, 16 }
 0x264   : > { %v1085_v18 = vadd.f32 %v2662_v55, %v1070_v8  ;;  %v2775_v55 = vsel %vm530_vm12, %v1307_v4, %v2765_v33 }
 0x265   : > { %vm1094_vm13 = vcmp.ge.f32.partialorder %v1086_v13, 0.0  ;;  %v1102_v9 = vmul.f32 0.01, %v1086_v13  ;;  %v2799_v60 = vld [vmem:[#allocation3 + $0x30] sm:$0xff]  ;;  %v1299_v48 = vor.u32 %v1297_v24, %v1295_v6  ;;  %v1315_v4 = vor.u32 %v1313_v15, %v2765_v33  ;;  %v2886_v33 = vld [vmem:[#allocation3 + $0x48] sm:$0xff] }
 0x266   : > { %vm1093_vm14 = vcmp.ge.f32.partialorder %v1085_v18, 0.0  ;;  %v1101_v52 = vmul.f32 0.01, %v1085_v18  ;;  %v2777_v37 = vld [vmem:[#allocation3 + $0x28] sm:$0xff]  ;;  %v1325_v59 = vshll.u32 %v2799_v60, 16  ;;  %v1381_v49 = vrot.slane %v2799_v60, 1 }
 0x267   : > { %v1110_v42 = vsel %vm1094_vm13, %v1086_v13, %v1102_v9  ;;  %1345 = vrot.lane.b32.xlu0 %v1288_v36, %s2099_s10  ;;  %1431 = vrot.lane.b32.xlu1 %v2775_v55, %s2101_s12  ;;  %v1379_v38 = vrot.slane %v2777_v37, 1  ;;  %v1317_v1 = vshll.u32 %v2777_v37, 16  ;;  %v1321_v53 = vshrl.u32 %v2777_v37, 16 }
 0x268   : > { %v1175_v11 = vpack.c.bf16 %v1110_v42, %v1110_v42  ;;  %v1109_v16 = vsel %vm1093_vm14, %v1085_v18, %v1101_v52  ;;  %v1327_v46 = vrot.slane %v1325_v59, 1  ;;  %v1304_v28 = vsel %vm530_vm12, %v1299_v48, %v2738_v25 }
 0x269   : > { %v1174_v47 = vpack.c.bf16 %v1109_v16, %v1109_v16  ;;  %v1380_v40 = vsel %vm624_vm10, %v1377_v20, %v1379_v38  ;;  %v1319_v63 = vrot.slane %v1317_v1, 1  ;;  %v2856_v29 = vsel %vm624_vm10, %v1379_v38, %v1381_v49 }
 0x26a   : > { %v1226_v10 = vshrl.u32 %v1175_v11, 16  ;;  %1982 = vmatprep.mubr.msk.bf16.mxu1 %vm792_vm11, %v1380_v40  ;;  %v1229_v57 = vshll.u32 %v1175_v11, 16  ;;  %v1444_v32 = vrot.slane %v2886_v33, 1  ;;  %v1329_v35 = vshrl.u32 %v2799_v60, 16 }
 0x26b   : > { %v1219_v56 = vshrl.u32 %v1174_v47, 16  ;;  %1427 = vrot.lane.b32.xlu0 %v1296_v23, %s2101_s12  ;;  %1351 = vrot.lane.b32.xlu1 %v2775_v55, %s2099_s10  ;;  %v1222_v27 = vshll.u32 %v1174_v47, 16  ;;  %v1323_v26 = vor.u32 %v1321_v53, %v1319_v63  ;;  %v1320_v61 = vsel %vm530_vm12, %v1315_v4, %v1319_v63 }
 0x26c   : > { %v1228_v34 = vrot.slane %v1226_v10, 7  ;;  %v1331_v0 = vor.u32 %v1329_v35, %v1327_v46  ;;  %v1423_v20 = vshll.u32 %v2886_v33, 16  ;;  %v2916_v10 = vld [vmem:[#allocation3 + $0x50] sm:$0xff] }
 0x26d   : > { %v1221_v54 = vrot.slane %v1219_v56, 7  ;;  %v1328_v50 = vsel %vm530_vm12, %v1323_v26, %v1327_v46  ;;  %v1482_v56 = vshll.u32 %v2916_v10, 16 }
 0x26e   : > { %v1231_v12 = vor.u32 %v1229_v57, %v1228_v34  ;;  %v1425_v16 = vrot.slane %v1423_v20, 1 }
 0x26f   : > { %v1224_v43 = vor.u32 %v1222_v27, %v1221_v54  ;;  %1347 = vrot.lane.b32.xlu0 %v1296_v23, %s2099_s10  ;;  %1470 = vrot.lane.b32.xlu1 %v2799_v60, %s2105_s14  ;;  %v1478_v23 = vshrl.u32 %v2886_v33, 16  ;;  %v1484_v57 = vrot.slane %v1482_v56, 1 }
 0x270   : > { %v1264_v19 = vsel %vm2673_vm3, %v1231_v12, %v1263_v7 }
 0x271   : > { %1265 = vst [vmem:[#allocation3 + $0x40] sm:$0x1f] %v1264_v19  ;;  %v1261_v21 = vsel %vm2673_vm3, %v1224_v43, %v1260_v14  ;;  %v1480_v34 = vor.u32 %v1478_v23, %v1425_v16 }
 0x272   : > { %1262 = vst [vmem:[#allocation3 + $0x38] sm:$0x1f] %v1261_v21 }
 0x273   : > { %1407 = vrot.lane.b32.xlu0 %v2719_v31, %s2098_s9  ;;  %1413 = vrot.lane.b32.xlu1 %v2799_v60, %s2098_s9 }
 0x277   : > { %1450 = vrot.lane.b32.xlu0 %v2826_v22, %s2106_s19  ;;  %1452 = vrot.lane.b32.xlu1 %v1380_v40, %s2106_s19 }
 0x278   : > { %v1274_v2 = vld [vmem:[#allocation3 + $0x40] sm:$0xff] }
 0x279   : > { %v2851_v25 = vld [vmem:[#allocation3 + $0x38] sm:$0xff]  ;;  %v1385_v13 = vrot.slane %v1274_v2, 1  ;;  %v1341_v36 = vshll.u32 %v1274_v2, 16  ;;  %v1419_v38 = vshrl.u32 %v1274_v2, 16 }
 0x27a   : > { %v1383_v30 = vrot.slane %v2851_v25, 1  ;;  %v1333_v18 = vshll.u32 %v2851_v25, 16  ;;  %v1337_v47 = vshrl.u32 %v2851_v25, 16 }
 0x27b   : > { %1393 = vrot.lane.b32.xlu0 %v2826_v22, %s2103_s22  ;;  %1395 = vrot.lane.b32.xlu1 %v1380_v40, %s2103_s22  ;;  %v2896_v52 = vsel %vm624_vm10, %v1385_v13, %v1444_v32  ;;  %v1343_v42 = vrot.slane %v1341_v36, 1 }
 0x27c   : > { %v2864_v8 = vsel %vm624_vm10, %v1381_v49, %v1383_v30  ;;  %v2877_v51 = vsel %vm624_vm10, %v1383_v30, %v1385_v13  ;;  %v1335_v9 = vrot.slane %v1333_v18, 1 }
 0x27d   : > { %v1421_v11 = vor.u32 %v1419_v38, %v1343_v42 }
 0x27e   : > { %v1336_v41 = vsel %vm530_vm12, %v1331_v0, %v1335_v9  ;;  %v1339_v40 = vor.u32 %v1337_v47, %v1335_v9 }
 0x27f   : > { %1349 = vrot.lane.b32.xlu0 %v1304_v28, %s2099_s10  ;;  %1492 = vrot.lane.b32.xlu1 %v1328_v50, %s2107_s16  ;;  %v1426_v6 = vsel %vm530_vm12, %v1421_v11, %v1425_v16 }
 0x280   : > { %v1344_v45 = vsel %vm530_vm12, %v1339_v40, %v1343_v42 }
 0x283   : > { %1486 = vrot.lane.b32.xlu0 %v1304_v28, %s2107_s16  ;;  %1435 = vrot.lane.b32.xlu1 %v1328_v50, %s2101_s12 }
 0x287   : > { %1468 = vrot.lane.b32.xlu0 %v2777_v37, %s2105_s14  ;;  %1355 = vrot.lane.b32.xlu1 %v1328_v50, %s2099_s10 }
 0x28b   : > { %1411 = vrot.lane.b32.xlu0 %v2777_v37, %s2098_s9  ;;  %1474 = vrot.lane.b32.xlu1 %v1274_v2, %s2105_s14 }
 0x28f   : > { %1454 = vrot.lane.b32.xlu0 %v2856_v29, %s2106_s19  ;;  %1415 = vrot.lane.b32.xlu1 %v2851_v25, %s2098_s9 }
 0x293   : > { %1397 = vrot.lane.b32.xlu0 %v2856_v29, %s2103_s22  ;;  %1456 = vrot.lane.b32.xlu1 %v2864_v8, %s2106_s19 }
 0x297   : > { %1490 = vrot.lane.b32.xlu0 %v1320_v61, %s2107_s16  ;;  %1399 = vrot.lane.b32.xlu1 %v2864_v8, %s2103_s22 }
 0x29b   : > { %1433 = vrot.lane.b32.xlu0 %v1320_v61, %s2101_s12  ;;  %1458 = vrot.lane.b32.xlu1 %v2877_v51, %s2106_s19 }
 0x29f   : > { %1353 = vrot.lane.b32.xlu0 %v1320_v61, %s2099_s10  ;;  %1401 = vrot.lane.b32.xlu1 %v2877_v51, %s2103_s22 }
 0x2a3   : > { %1472 = vrot.lane.b32.xlu0 %v2851_v25, %s2105_s14  ;;  %1417 = vrot.lane.b32.xlu1 %v1274_v2, %s2098_s9 }
 0x2a7   : > { %1460 = vrot.lane.b32.xlu1 %v2896_v52, %s2106_s19  ;;  %1494 = vrot.lane.b32.xlu0 %v1336_v41, %s2107_s16 }
 0x2ab   : > { %1357 = vrot.lane.b32.xlu1 %v1336_v41, %s2099_s10  ;;  %1437 = vrot.lane.b32.xlu0 %v1336_v41, %s2101_s12 }
 0x2af   : > { %1498 = vrot.lane.b32.xlu1 %v1426_v6, %s2107_s16  ;;  %1405 = vrot.lane.b32.xlu0 %v2690_v39, %s2098_s9 }
 0x2b3   : > { %1441 = vrot.lane.b32.xlu1 %v1426_v6, %s2101_s12  ;;  %1429 = vrot.lane.b32.xlu0 %v1304_v28, %s2101_s12 }
 0x2b7   : > { %1496 = vrot.lane.b32.xlu1 %v1344_v45, %s2107_s16  ;;  %1448 = vrot.lane.b32.xlu0 %v2736_v62, %s2106_s19  ;;  %v1485_v62 = vsel %vm530_vm12, %v1480_v34, %v1484_v57  ;;  %vm1569_vm12 = vcmask 654336  }
 0x2bb   : > { %1439 = vrot.lane.b32.xlu1 %v1344_v45, %s2101_s12  ;;  %1464 = vrot.lane.b32.xlu0 %v2719_v31, %s2105_s14 }
 0x2bf   : > { %1359 = vrot.lane.b32.xlu1 %v1344_v45, %s2099_s10  ;;  %1488 = vrot.lane.b32.xlu0 %v2775_v55, %s2107_s16 }
 0x2c3   : > { %1476 = vrot.lane.b32.xlu1 %v2886_v33, %s2105_s14  ;;  %s1993_s14 = sshll.u32 %s3093_s25, 5 }
 0x2c4   : > { %s3037_s19 = scalar_lea.vmem %s3079_s7, %s1993_s14 }
 0x2c5   : > { %v1463_v7 = vpop.permute.xlu0 %1462 }
 0x2c7   : > { %1500 = vrot.lane.b32.xlu1 %v1485_v62, %s2107_s16 }
 0x2c9   : > { %v1404_v54 = vpop.permute.xlu0 %1403 }
 0x2cd   : > { %v1467_v27 = vpop.permute.xlu1 %1466  ;;  %v1388_v12 = vpop.permute.xlu0 %1387 }
 0x2d1   : > { %v1410_v14 = vpop.permute.xlu1 %1409  ;;  %v1447_v17 = vpop.permute.xlu0 %1446 }
 0x2d5   : > { %v1392_v43 = vpop.permute.xlu1 %1391  ;;  %v1390_v19 = vpop.permute.xlu0 %1389 }
 0x2d9   : > { %v1432_v21 = vpop.permute.xlu1 %1431  ;;  %v1346_v1 = vpop.permute.xlu0 %1345 }
 0x2da   : > { %v1506_v46 = vsel %vm792_vm11, %v2699_v44, %v1346_v1 }
 0x2db   : > { %v1522_v28 = vsel %vm826_vm15, %v1506_v46, %v1388_v12 }
 0x2dc   : > { %v1538_v49 = vsel %vm860_vm2, %v1522_v28, %v1404_v54 }
 0x2dd   : > { %v1352_v55 = vpop.permute.xlu1 %1351  ;;  %v1428_v58 = vpop.permute.xlu0 %1427 }
 0x2de   : > { %v1512_v23 = vsel %vm792_vm11, %v2719_v31, %v1352_v55 }
 0x2e1   : > { %v2930_v63 = vpop.permute.xlu1 %1470  ;;  %v1348_v53 = vpop.permute.xlu0 %1347 }
 0x2e2   : > { %v1508_v59 = vsel %vm792_vm11, %v2696_v3, %v1348_v53  ;;  %v1554_v3 = vsel %vm894_vm5, %v1538_v49, %v1428_v58 }
 0x2e3   : > { %v2935_v24 = vsel %vm826_vm15, %v1508_v59, %v1390_v19  ;;  %v1571_v13 = vsel %vm1569_vm12, %v1554_v3, %v1447_v17 }
 0x2e4   : > { %v1588_v44 = vsel %vm1586_vm1, %v1571_v13, %v1463_v7 }
 0x2e5   : > { %v2937_v26 = vpop.permute.xlu1 %1413  ;;  %v1408_v48 = vpop.permute.xlu0 %1407 }
 0x2e9   : > { %v1453_v50 = vpop.permute.xlu1 %1452  ;;  %v1451_v2 = vpop.permute.xlu0 %1450 }
 0x2ed   : > { %v1396_v30 = vpop.permute.xlu1 %1395  ;;  %v1394_v15 = vpop.permute.xlu0 %1393 }
 0x2ee   : > { %v1528_v57 = vsel %vm826_vm15, %v1512_v23, %v1394_v15 }
 0x2ef   : > { %v1544_v54 = vsel %vm860_vm2, %v1528_v57, %v1410_v14  ;;  %v3024_v57 = vld [vmem:[%s3077_s5] ss:$0 sm:$0xff] }
 0x2f1   : > { %v1493_v4 = vpop.permute.xlu1 %1492  ;;  %v1350_v61 = vpop.permute.xlu0 %1349 }
 0x2f2   : > { %v1510_v41 = vsel %vm792_vm11, %v2690_v39, %v1350_v61 }
 0x2f3   : > { %v1526_v42 = vsel %vm826_vm15, %v1510_v41, %v1392_v43  ;;  %v1503_v41 = vrot.slane %v2916_v10, 1 }
 0x2f4   : > { %v1542_v11 = vsel %vm860_vm2, %v1526_v42, %v1408_v48 }
 0x2f5   : > { %v1436_v18 = vpop.permute.xlu1 %1435  ;;  %v1487_v35 = vpop.permute.xlu0 %1486  ;;  %v1558_v47 = vsel %vm894_vm5, %v1542_v11, %v1432_v21 }
 0x2f6   : > { %v1605_v9 = vsel %vm1603_vm4, %v1588_v44, %v1487_v35 }
 0x2f7   : > { %1757 = vmatmul.mubr.bf16.vlgmr.msra.gmra.mrb[16].mxu0 %v1605_v9 }
 0x2f8   : > { %1981 = vmatprep.mubr.msk.bf16.mxu0 %vm792_vm11, %v2826_v22  ;;  %v1575_v22 = vsel %vm1569_vm12, %v1558_v47, %v1451_v2 }
 0x2f9   : > { %v1356_v36 = vpop.permute.xlu1 %1355  ;;  %v1469_v0 = vpop.permute.xlu0 %1468  ;;  %v1592_v34 = vsel %vm1586_vm1, %v1575_v22, %v1467_v27 }
 0x2fd   : > { %v2952_v20 = vpop.permute.xlu1 %1474  ;;  %v1412_v38 = vpop.permute.xlu0 %1411 }
 0x301   : > { %v1416_v16 = vpop.permute.xlu1 %1415  ;;  %v1455_v6 = vpop.permute.xlu0 %1454 }
 0x305   : > { %v1457_v40 = vpop.permute.xlu1 %1456  ;;  %v1398_v45 = vpop.permute.xlu0 %1397 }
 0x309   : > { %v1400_v56 = vpop.permute.xlu1 %1399  ;;  %v1491_v39 = vpop.permute.xlu0 %1490 }
 0x30a   : > { %v1611_v62 = vsel %vm1603_vm4, %v1592_v34, %v1491_v39 }
 0x30b   : > { %1771 = vmatmul.mubr.bf16.vlgmr.msra.gmra.mrb[0].mxu1 %v1611_v62 }
 0x30c   : > { %1983 = vmatprep.mubr.msk.bf16.mxu1 %vm792_vm11, %v2856_v29 }
 0x30d   : > { %v1459_v7 = vpop.permute.xlu1 %1458  ;;  %v1434_v12 = vpop.permute.xlu0 %1433 }
 0x30e   : > { %v1560_v17 = vsel %vm894_vm5, %v1544_v54, %v1434_v12 }
 0x30f   : > { %v1577_v31 = vsel %vm1569_vm12, %v1560_v17, %v1453_v50 }
 0x310   : > { %v1594_v43 = vsel %vm1586_vm1, %v1577_v31, %v1469_v0 }
 0x311   : > { %v1402_v19 = vpop.permute.xlu1 %1401  ;;  %v1354_v27 = vpop.permute.xlu0 %1353  ;;  %v1614_v21 = vsel %vm1603_vm4, %v1594_v43, %v1493_v4 }
 0x312   : > { %v1514_v1 = vsel %vm792_vm11, %v2713_v5, %v1354_v27 }
 0x313   : > { %v1530_v55 = vsel %vm826_vm15, %v1514_v1, %v1396_v30  ;;  %1778 = vmatmul.mubr.bf16.gmra.mrb[4].mxu1 %v1614_v21 }
 0x314   : > { %v1546_v29 = vsel %vm860_vm2, %v1530_v55, %v1412_v38  ;;  %1984 = vmatprep.mubr.msk.bf16.mxu1 %vm792_vm11, %v2864_v8  ;;  %v1516_v8 = vsel %vm792_vm11, %v2777_v37, %v1356_v36 }
 0x315   : > { %v1418_v14 = vpop.permute.xlu1 %1417  ;;  %v1473_v58 = vpop.permute.xlu0 %1472  ;;  %v1562_v53 = vsel %vm894_vm5, %v1546_v29, %v1436_v18  ;;  %v1532_v49 = vsel %vm826_vm15, %v1516_v8, %v1398_v45 }
 0x316   : > { %v1579_v59 = vsel %vm1569_vm12, %v1562_v53, %v1455_v6  ;;  %v1548_v3 = vsel %vm860_vm2, %v1532_v49, %v2937_v26 }
 0x317   : > { %v1596_v28 = vsel %vm1586_vm1, %v1579_v59, %v2930_v63 }
 0x319   : > { %v1461_v48 = vpop.permute.xlu1 %1460  ;;  %v1495_v46 = vpop.permute.xlu0 %1494 }
 0x31a   : > { %v1617_v5 = vsel %vm1603_vm4, %v1596_v28, %v1495_v46 }
 0x31b   : > { %1785 = vmatmul.mubr.bf16.gmra.mrb[8].mxu1 %v1617_v5 }
 0x31c   : > { %1985 = vmatprep.mubr.msk.bf16.mxu1 %vm792_vm11, %v2877_v51 }
 0x31d   : > { %v1358_v50 = vpop.permute.xlu1 %1357  ;;  %v1438_v2 = vpop.permute.xlu0 %1437 }
 0x31e   : > { %v1564_v63 = vsel %vm894_vm5, %v1548_v3, %v1438_v2  ;;  %v1518_v51 = vsel %vm792_vm11, %v2799_v60, %v1358_v50 }
 0x31f   : > { %v1581_v13 = vsel %vm1569_vm12, %v1564_v63, %v1457_v40  ;;  %v1534_v35 = vsel %vm826_vm15, %v1518_v51, %v1400_v56 }
 0x320   : > { %v1598_v37 = vsel %vm1586_vm1, %v1581_v13, %v1473_v58  ;;  %v1550_v26 = vsel %vm860_vm2, %v1534_v35, %v1416_v16 }
 0x321   : > { %v1499_v30 = vpop.permute.xlu1 %1498  ;;  %v1406_v15 = vpop.permute.xlu0 %1405 }
 0x322   : > { %v1540_v60 = vsel %vm860_vm2, %v2935_v24, %v1406_v15  ;;  %v1504_v24 = vsel %vm624_vm10, %v1444_v32, %v1503_v41 }
 0x325   : > { %v1442_v4 = vpop.permute.xlu1 %1441  ;;  %v1430_v61 = vpop.permute.xlu0 %1429 }
 0x326   : > { %v1556_v38 = vsel %vm894_vm5, %v1540_v60, %v1430_v61 }
 0x329   : > { %v1497_v18 = vpop.permute.xlu1 %1496  ;;  %v1449_v44 = vpop.permute.xlu0 %1448 }
 0x32a   : > { %v1620_v9 = vsel %vm1603_vm4, %v1598_v37, %v1497_v18  ;;  %v1573_v6 = vsel %vm1569_vm12, %v1556_v38, %v1449_v44 }
 0x32b   : > { %1792 = vmatmul.mubr.bf16.gmra.mrb[12].mxu1 %v1620_v9 }
 0x32c   : > { %1986 = vmatprep.mubr.msk.bf16.mxu1 %vm792_vm11, %v2896_v52 }
 0x32d   : > { %v1440_v36 = vpop.permute.xlu1 %1439  ;;  %v1465_v0 = vpop.permute.xlu0 %1464 }
 0x32e   : > { %v1566_v42 = vsel %vm894_vm5, %v1550_v26, %v1440_v36  ;;  %v1590_v16 = vsel %vm1586_vm1, %v1573_v6, %v1465_v0 }
 0x32f   : > { %v1583_v11 = vsel %vm1569_vm12, %v1566_v42, %v1459_v7  ;;  %v3029_v7 = vld [vmem:[%s3078_s6] ss:$0 sm:$0xff] }
 0x330   : > { %v1600_v52 = vsel %vm1586_vm1, %v1583_v11, %v2952_v20 }
 0x331   : > { %v1360_v47 = vpop.permute.xlu1 %1359  ;;  %v1489_v40 = vpop.permute.xlu0 %1488  ;;  %v1623_v10 = vsel %vm1603_vm4, %v1600_v52, %v1499_v30 }
 0x332   : > { %v1520_v45 = vsel %vm792_vm11, %v2851_v25, %v1360_v47  ;;  %v1608_v22 = vsel %vm1603_vm4, %v1590_v16, %v1489_v40 }
 0x333   : > { %v1536_v23 = vsel %vm826_vm15, %v1520_v45, %v1402_v19  ;;  %1764 = vmatmul.mubr.bf16.gmra.mrb[20].mxu0 %v1608_v22  ;;  %1799 = vmatmul.mubr.bf16.gmra.mrb[16].mxu1 %v1623_v10 }
 0x334   : > { %v1552_v20 = vsel %vm860_vm2, %v1536_v23, %v1418_v14  ;;  %1987 = vmatprep.mubr.msk.bf16.mxu1 %vm792_vm11, %v1504_v24  ;;  %vm1875_vm11 = vcmask 125952  }
 0x335   : > { %v1568_v56 = vsel %vm894_vm5, %v1552_v20, %v1442_v4  ;;  %v1477_v39 = vpop.permute.xlu1 %1476 }
 0x336   : > { %v1585_v33 = vsel %vm1569_vm12, %v1568_v56, %v1461_v48 }
 0x337   : > { %v1602_v32 = vsel %vm1586_vm1, %v1585_v33, %v1477_v39 }
 0x339   : > { %v1501_v34 = vpop.permute.xlu1 %1500 }
 0x33a   : > { %v1626_v25 = vsel %vm1603_vm4, %v1602_v32, %v1501_v34 }
 0x33b   : > { %1806 = vmatmul.mubr.bf16.gmra.mrb[20].mxu1 %v1626_v25 }
 0x3ca   : > { %v1758_v62 = vpop.f32.mrb[16].mxu0 }
 0x3cb   : > { %v1820_v54 = vmul.f32 %v3024_v57, %v1758_v62  ;;  %v1760_v12 = vpop.f32.mrb[17].mxu0 }
 0x3cc   : > { %v1761_v17 = vpop.f32.mrb[18].mxu0 }
 0x3cd   : > { %v1835_v31 = vadd.f32 %v3029_v7, %v1820_v54  ;;  %v1762_v43 = vpop.f32.mrb[19].mxu0 }
 0x3cf   : > { %vm1843_vm10 = vcmp.ge.f32.partialorder %v1835_v31, 0.0  ;;  %v1851_v19 = vmul.f32 0.01, %v1835_v31 }
 0x3d1   : > { %v1859_v27 = vsel %vm1843_vm10, %v1835_v31, %v1851_v19 }
 0x3d2   : > { %v1867_v21 = vpack.c.bf16 %v1859_v27, %v1859_v27 }
 0x3d4   : > { %1876 = vst.msk [vmem:[%s3037_s19] sm:$0xf] %vm1875_vm11, %v1867_v21 }
 0x3de   : > { %v1772_v1 = vpop.f32.mrb[0].mxu1 }
 0x3df   : > { %v1822_v55 = vmul.f32 %v3024_v57, %v1772_v1  ;;  %v1774_v29 = vpop.f32.mrb[1].mxu1 }
 0x3e0   : > { %v1775_v14 = vpop.f32.mrb[2].mxu1 }
 0x3e1   : > { %v1837_v58 = vadd.f32 %v3029_v7, %v1822_v55  ;;  %v1776_v53 = vpop.f32.mrb[3].mxu1 }
 0x3e3   : > { %vm1845_vm15 = vcmp.ge.f32.partialorder %v1837_v58, 0.0  ;;  %v1853_v59 = vmul.f32 0.01, %v1837_v58 }
 0x3e5   : > { %v1861_v48 = vsel %vm1845_vm15, %v1837_v58, %v1853_v59 }
 0x3e6   : > { %v1869_v46 = vpack.c.bf16 %v1861_v48, %v1861_v48  ;;  %v1779_v28 = vpop.f32.mrb[4].mxu1 }
 0x3e7   : > { %v1823_v5 = vmul.f32 %v3024_v57, %v1779_v28  ;;  %v1781_v50 = vpop.f32.mrb[5].mxu1 }
 0x3e8   : > { %1878 = vst.msk [vmem:[%s3037_s19 + $0x8] sm:$0xf] %vm1875_vm11, %v1869_v46  ;;  %v1782_v2 = vpop.f32.mrb[6].mxu1 }
 0x3e9   : > { %v1838_v8 = vadd.f32 %v3029_v7, %v1823_v5  ;;  %v1783_v49 = vpop.f32.mrb[7].mxu1 }
 0x3eb   : > { %vm1846_vm2 = vcmp.ge.f32.partialorder %v1838_v8, 0.0  ;;  %v1854_v30 = vmul.f32 0.01, %v1838_v8 }
 0x3ed   : > { %v1862_v15 = vsel %vm1846_vm2, %v1838_v8, %v1854_v30 }
 0x3ee   : > { %v1870_v3 = vpack.c.bf16 %v1862_v15, %v1862_v15  ;;  %v1786_v63 = vpop.f32.mrb[8].mxu1 }
 0x3ef   : > { %v1824_v4 = vmul.f32 %v3024_v57, %v1786_v63  ;;  %v1788_v61 = vpop.f32.mrb[9].mxu1 }
 0x3f0   : > { %1879 = vst.msk [vmem:[%s3037_s19 + $0xc] sm:$0xf] %vm1875_vm11, %v1870_v3  ;;  %v1789_v13 = vpop.f32.mrb[10].mxu1 }
 0x3f1   : > { %v1839_v51 = vadd.f32 %v3029_v7, %v1824_v4  ;;  %v1790_v18 = vpop.f32.mrb[11].mxu1 }
 0x3f3   : > { %vm1847_vm5 = vcmp.ge.f32.partialorder %v1839_v51, 0.0  ;;  %v1855_v44 = vmul.f32 0.01, %v1839_v51 }
 0x3f5   : > { %v1863_v37 = vsel %vm1847_vm5, %v1839_v51, %v1855_v44 }
 0x3f6   : > { %v1871_v35 = vpack.c.bf16 %v1863_v37, %v1863_v37 }
 0x3f8   : > { %1880 = vst.msk [vmem:[%s3037_s19 + $0x10] sm:$0xf] %vm1875_vm11, %v1871_v35 }
 0x3fe   : > { %v1793_v9 = vpop.f32.mrb[12].mxu1 }
 0x3ff   : > { %v1825_v26 = vmul.f32 %v3024_v57, %v1793_v9  ;;  %v1795_v36 = vpop.f32.mrb[13].mxu1 }
 0x400   : > { %v1796_v0 = vpop.f32.mrb[14].mxu1 }
 0x401   : > { %v1840_v41 = vadd.f32 %v3029_v7, %v1825_v26  ;;  %v1797_v60 = vpop.f32.mrb[15].mxu1 }
 0x403   : > { %vm1848_vm0 = vcmp.ge.f32.partialorder %v1840_v41, 0.0  ;;  %v1856_v42 = vmul.f32 0.01, %v1840_v41 }
 0x405   : > { %v1864_v38 = vsel %vm1848_vm0, %v1840_v41, %v1856_v42 }
 0x406   : > { %v1872_v11 = vpack.c.bf16 %v1864_v38, %v1864_v38  ;;  %v1765_v6 = vpop.f32.mrb[20].mxu0  ;;  %v1800_v52 = vpop.f32.mrb[16].mxu1 }
 0x407   : > { %v1821_v16 = vmul.f32 %v3024_v57, %v1765_v6  ;;  %v1826_v47 = vmul.f32 %v3024_v57, %v1800_v52  ;;  %v1767_v40 = vpop.f32.mrb[21].mxu0  ;;  %v1802_v10 = vpop.f32.mrb[17].mxu1 }
 0x408   : > { %1881 = vst.msk [vmem:[%s3037_s19 + $0x14] sm:$0xf] %vm1875_vm11, %v1872_v11  ;;  %v1768_v24 = vpop.f32.mrb[22].mxu0  ;;  %v1803_v45 = vpop.f32.mrb[18].mxu1 }
 0x409   : > { %v1836_v22 = vadd.f32 %v3029_v7, %v1821_v16  ;;  %v1841_v23 = vadd.f32 %v3029_v7, %v1826_v47  ;;  %v1769_v20 = vpop.f32.mrb[23].mxu0  ;;  %v1804_v56 = vpop.f32.mrb[19].mxu1 }
 0x40b   : > { %vm1844_vm3 = vcmp.ge.f32.partialorder %v1836_v22, 0.0  ;;  %v1852_v39 = vmul.f32 0.01, %v1836_v22  ;;  %vm1849_vm7 = vcmp.ge.f32.partialorder %v1841_v23, 0.0  ;;  %v1857_v33 = vmul.f32 0.01, %v1841_v23 }
 0x40d   : > { %v1860_v32 = vsel %vm1844_vm3, %v1836_v22, %v1852_v39  ;;  %v1865_v34 = vsel %vm1849_vm7, %v1841_v23, %v1857_v33 }
 0x40e   : > { %v1868_v25 = vpack.c.bf16 %v1860_v32, %v1860_v32  ;;  %v1873_v62 = vpack.c.bf16 %v1865_v34, %v1865_v34  ;;  %v1807_v54 = vpop.f32.mrb[20].mxu1 }
 0x40f   : > { %v1827_v12 = vmul.f32 %v3024_v57, %v1807_v54  ;;  %v1809_v17 = vpop.f32.mrb[21].mxu1 }
 0x410   : > { %1877 = vst.msk [vmem:[%s3037_s19 + $0x4] sm:$0xf] %vm1875_vm11, %v1868_v25  ;;  %1882 = vst.msk [vmem:[%s3037_s19 + $0x18] sm:$0xf] %vm1875_vm11, %v1873_v62  ;;  %v1810_v31 = vpop.f32.mrb[22].mxu1 }
 0x411   : > { %v1842_v43 = vadd.f32 %v3029_v7, %v1827_v12  ;;  %v1811_v19 = vpop.f32.mrb[23].mxu1 }
 0x413   : > { %vm1850_vm6 = vcmp.ge.f32.partialorder %v1842_v43, 0.0  ;;  %v1858_v27 = vmul.f32 0.01, %v1842_v43 }
 0x415   : > { %v1866_v21 = vsel %vm1850_vm6, %v1842_v43, %v1858_v27 }
 0x416   : > { %v1874_v1 = vpack.c.bf16 %v1866_v21, %v1866_v21 }
 0x418   : > { %1883 = vst.msk [vmem:[%s3037_s19 + $0x1c] sm:$0xf] %vm1875_vm11, %v1874_v1 }
 0x419 PF: > { %s17_s24 = sadd.s32 1, %s2093_s24  }
 0x41a   : > { %p14_p4 = scmp.ge.s32.totalorder %s17_s24, 4  }
 0x41c   :  { %16 = sbr.rel (!%p14_p4) target bundleno = 1 (0x1), region = 82 }

// kernel: encoder_forward.9
= control target key start
LH: loop header
LB: loop body
LE: loop exit
PB: predicated region body
PF: predicated region fallthrough
CT: control target
= control target key end

     0   :  { %s1511_s24 = smov 0   ;;  %s1769_s0 = inlined_call_operand.vmem [shape: bf16[2,1,2,1,64], index: 0, kind: input, shape index: {}]   ;;  %s1770_s1 = inlined_call_operand.vmem [shape: bf16[288,64], index: 1, kind: input, shape index: {}]   ;;  %s1771_s2 = inlined_call_operand.vmem [shape: f32[1,64], index: 2, kind: input, shape index: {}]   ;;  %s1772_s3 = inlined_call_operand.vmem [shape: f32[1,64], index: 3, kind: input, shape index: {}]   ;;  %s1773_s4 = inlined_call_operand.vmem [shape: bf16[576,64], index: 4, kind: input, shape index: {}]   ;;  %s1774_s5 = inlined_call_operand.vmem [shape: f32[1,64], index: 5, kind: input, shape index: {}]   ;;  %s1775_s6 = inlined_call_operand.vmem [shape: f32[1,64], index: 6, kind: input, shape index: {}]   ;;  %s1776_s7 = inlined_call_operand.vmem [shape: bf16[2,1,1,64], index: 7, kind: output, shape index: {}]  }
   0x1 LB: > { %s1207_s25 = sadd.s32 4294967295, %s1462_s24   ;;  %p1211_p0 = scmp.ge.s32.totalorder %s1462_s24, 1  ;;  %s1462_s24 = sphi %s1511_s24, %s17_s24  }
   0x2   : > { %p236_p1 = scmp.lt.s32.totalorder %s1462_s24, 3 }
   0x4   : > { %p237_p2 = pnand %p1211_p0, %p236_p1 }
   0x5   : > { %p265_p3 = scmp.lt.s32.totalorder (!%p237_p2), %s1207_s25, 1  ;;  %vm287_vm0 = vcmask (!%p237_p2), 253952   ;;  %vm288_vm1 = vsmask.f32 (!%p237_p2), 256  ;;  %vm643_vm2 = vcmask (!%p237_p2), 516096   ;;  %vm281_vm7 = vcmask (!%p237_p2), 257024  }
   0x6   : > { %240 = sbr.rel (%p237_p2) target bundleno = 882 (0x372), region = 48  ;;  %vm289_vm3 = vmand (!%p237_p2), %vm287_vm0, %vm288_vm1  ;;  %v290_v0 = vld [vmem:[#allocation2 + $0x4] sm:$0x1] (!%p237_p2)  ;;  %v645_v2 = vld [vmem:[#allocation3 + $0x4] sm:$0x1] (!%p237_p2)  ;;  %v1464_v6 = vmov (!%p237_p2), 0   ;;  %v299_v26 = vlaneseq (!%p237_p2) }
   0x7   : > { %v291_v1 = vsel (!%p237_p2), %vm289_vm3, 0, %v290_v0  ;;  %vm314_vm4 = vsmask.f32 (!%p237_p2), 7938  ;;  %vm1522_vm5 = vmand (!%p237_p2), %vm643_vm2, %vm288_vm1  ;;  %284 = vst.msk [vmem:[#allocation2 + $0x8] sm:$0xf] (!%p237_p2), %vm281_vm7, %v1464_v6  ;;  %vm293_vm8 = vcmask (!%p237_p2), 257025  }
   0x8   : > { %292 = vst [vmem:[#allocation2 + $0x4] sm:$0x1] (!%p237_p2), %v291_v1  ;;  %v646_v4 = vsel (!%p237_p2), %vm1522_vm5, 0, %v645_v2  ;;  %vm1530_vm6 = vmand (!%p237_p2), %vm643_vm2, %vm314_vm4  ;;  %s1465_s30 = smov (!%p237_p2), 96   ;;  %s1466_s8 = smov (!%p237_p2), 64   ;;  %v1399_v12 = vld [vmem:[%s1770_s1 + $0x40] sm:$0xff] (!%p237_p2)  }
   0x9   : > { %647 = vst [vmem:[#allocation3 + $0x4] sm:$0x1] (!%p237_p2), %v646_v4  ;;  %285 = vst.msk [vmem:[#allocation2 + $0xc] sm:$0xf] (!%p237_p2), %vm281_vm7, %v1464_v6  ;;  %v1400_v13 = vld [vmem:[%s1770_s1] sm:$0xff] (!%p237_p2)   ;;  %v1401_v14 = vld [vmem:[%s1770_s1 + $0x48] sm:$0xff] (!%p237_p2)   ;;  %1286 = vmatprep.subr.bf16.mxu0 (!%p237_p2), %v1399_v12 }
   0xa   : > { %282 = vst.msk [vmem:[#allocation2] sm:$0xf] (!%p237_p2), %vm281_vm7, %v1464_v6  ;;  %1287 = vmatpush3.bf16.msra.mxu0 (!%p237_p2), %v1400_v13  ;;  %v1402_v15 = vld [vmem:[%s1770_s1 + $0x8] sm:$0xff] (!%p237_p2)   ;;  %v1403_v16 = vld [vmem:[%s1770_s1 + $0x50] sm:$0xff] (!%p237_p2)   ;;  %v1405_v18 = vld [vmem:[%s1770_s1 + $0x58] sm:$0xff] (!%p237_p2)   ;;  %v300_v28 = vshrl.u32 (!%p237_p2), %v299_v26, 7 }
   0xb   : > { %294 = vst.msk [vmem:[#allocation2 + $0x4] sm:$0xe] (!%p237_p2), %vm293_vm8, %v1464_v6  ;;  %1288 = vmatprep.subr.bf16.mxu0 (!%p237_p2), %v1401_v14  ;;  %v1404_v17 = vld [vmem:[%s1770_s1 + $0x10] sm:$0xff] (!%p237_p2)   ;;  %v1406_v19 = vld [vmem:[%s1770_s1 + $0x18] sm:$0xff] (!%p237_p2)   ;;  %v1407_v20 = vld [vmem:[%s1770_s1 + $0x60] sm:$0xff] (!%p237_p2)   ;;  %v1468_v40 = vmov (!%p237_p2), 0.0  }
   0xc   : > { %v1408_v21 = vld [vmem:[%s1770_s1 + $0x20] sm:$0xff] (!%p237_p2)   ;;  %v1409_v22 = vld [vmem:[%s1770_s1 + $0x68] sm:$0xff] (!%p237_p2)   ;;  %v1467_v24 = vmov (!%p237_p2), 1935823168   ;;  %vm315_vm9 = vmand (!%p237_p2), %vm287_vm0, %vm314_vm4  ;;  %1360 = vmatprep.subr.bf16.mxu1 (!%p237_p2), %v1468_v40  ;;  %vm1469_vm10 = vmmov (!%p237_p2), 0   ;;  %vm372_vm11 = vcmask (!%p237_p2), 261120  }
   0xd   : > { %s1782_s25 = smov (!%p265_p3, %s1207_s25), 1  ;;  %v1410_v23 = vld [vmem:[%s1770_s1 + $0x28] sm:$0xff]   ;;  %v297_v25 = vunpack.c.l.s4 %v1467_v24  ;;  %v1411_v37 = vld [vmem:[%s1770_s1 + $0x70] sm:$0xff]   ;;  %v1413_v39 = vld [vmem:[%s1770_s1 + $0x80] sm:$0xff]   ;;  %1364 = vmatprep.mubr.msk.bf16.mxu1 %vm1469_vm10, %v1468_v40  ;;  %s1470_s28 = smov 32   ;;  %vm376_vm12 = vcmask 523264  }
   0xe   : > { %s1212_s26 = sshll.u32 %s1782_s25, 1  ;;  %v321_v10 = vld [vmem:[#allocation2 + $0x8] sm:$0xf]  ;;  %1289 = vmatpush3.bf16.msra.mxu0 %v1402_v15  ;;  %v1412_v38 = vld [vmem:[%s1770_s1 + $0x30] sm:$0xff]   ;;  %1361 = vmatpush3.bf16.msra.mxu1 %v1413_v39  ;;  %v1414_v42 = vld [vmem:[%s1770_s1 + $0x78] sm:$0xff]   ;;  %vm379_vm13 = vcmask 785408  }
   0xf   : > { %s268_s29 = scalar_lea.vmem %s1769_s0, %s1212_s26  ;;  %v1216_v11 = vcombine.low %v321_v10, %v321_v10  ;;  %1290 = vmatprep.subr.bf16.mxu0 %v1403_v16  ;;  %v298_v27 = vunpack.c.0.s8 %v297_v25  ;;  %v316_v34 = vld [vmem:[#allocation2 + $0x4] sm:$0x1]  ;;  %1362 = vmatprep.subr.bf16.mxu1 %v1468_v40  ;;  %v1415_v43 = vld [vmem:[%s1770_s1 + $0x38] sm:$0xff]   ;;  %v1416_v44 = vld [vmem:[%s1770_s1 + $0x88] sm:$0xff]   ;;  %vm637_vm14 = vcmask 519168   ;;  %vm648_vm15 = vcmask 519169  }
  0x10   : > { %v273_v7 = vld [vmem:[%s268_s29] sm:$0x1]  ;;  %v274_v8 = vld [vmem:[%s268_s29 + $0x1] sm:$0x1]  ;;  %v322_v41 = vld [vmem:[#allocation2 + $0xc] sm:$0xf]  ;;  %s271_s29 = scalar_lea.vmem %s1776_s7, %s1782_s25 }
  0x11   : > { %v275_v9 = vmax.bf16 %v274_v8, %v273_v7  ;;  %357 = vrot.lane.b32.xlu1 %v1216_v11, %s1466_s8  ;;  %v301_v29 = vsub.s32 %v298_v27, %v300_v28  ;;  %v1217_v45 = vcombine.low %v321_v10, %v322_v41  ;;  %v319_v46 = vld [vmem:[#allocation2] sm:$0xf]  ;;  %638 = vst.msk [vmem:[#allocation3] sm:$0xf] %vm637_vm14, %v1464_v6  ;;  %640 = vst.msk [vmem:[#allocation3 + $0x8] sm:$0xf] %vm637_vm14, %v1464_v6 }
  0x12   : > { %1291 = vmatpush3.bf16.msra.mxu0 %v1404_v17  ;;  %1363 = vmatpush3.bf16.msra.mxu1 %v1416_v44  ;;  %649 = vst.msk [vmem:[#allocation3 + $0x4] sm:$0xe] %vm648_vm15, %v1464_v6  ;;  %v1424_v24 = vld [vmem:[%s1773_s4 + $0xc0] sm:$0xff]   ;;  %v1428_v25 = vld [vmem:[%s1773_s4 + $0xc8] sm:$0xff]   ;;  %v1426_v27 = vld [vmem:[%s1773_s4 + $0x50] sm:$0xff]  }
  0x13   : > { %277 = vrot.lane.b32.xlu0 %v275_v9, %s1465_s30  ;;  %1292 = vmatprep.subr.bf16.mxu0 %v1405_v18  ;;  %v365_v50 = vshll.u32 %v1217_v45, 16  ;;  %v371_v51 = vrot.slane %v1217_v45, 1  ;;  %v363_v56 = vshrl.u32 %v1217_v45, 16  ;;  %641 = vst.msk [vmem:[#allocation3 + $0xc] sm:$0xf] %vm637_vm14, %v1464_v6  ;;  %v1425_v6 = vld [vmem:[%s1773_s4 + $0x80] sm:$0xff]  }
  0x14   : > { %v1423_v26 = vld [vmem:[%s1773_s4 + $0x8] sm:$0xff]   ;;  %v1441_v41 = vld [vmem:[%s1773_s4 + $0xa0] sm:$0xff]   ;;  %v1442_v44 = vld [vmem:[%s1773_s4 + $0x70] sm:$0xff]  }
  0x15   : > { %1365 = vmatmul.mubr.msk.bf16.vlgmr.msra.gmra.mrb[0].mxu1 %vm372_vm11, %v371_v51  ;;  %v367_v57 = vrot.slane %v365_v50, 1  ;;  %v1429_v28 = vld [vmem:[%s1773_s4 + $0x88] sm:$0xff]   ;;  %v1443_v45 = vld [vmem:[%s1773_s4 + $0x30] sm:$0xff]   ;;  %v1237_v50 = vld [vmem:[%s1771_s2] ss:$0 sm:$0xff] }
  0x16   : > { %1293 = vmatpush3.bf16.msra.mxu0 %v1406_v19  ;;  %v1438_v39 = vld [vmem:[%s1773_s4 + $0x68] sm:$0xff]   ;;  %v1452_v5 = vld [vmem:[%s1773_s4 + $0xb8] sm:$0xff]  }
  0x17   : > { %1294 = vmatprep.subr.bf16.mxu0 %v1407_v20  ;;  %v368_v60 = vor.u32 %v367_v57, %v363_v56 }
  0x1a   : > { %1295 = vmatpush3.bf16.msra.mxu0 %v1408_v21  ;;  %v1420_v21 = vld [vmem:[%s1773_s4 + $0x40] sm:$0xff]  }
  0x1b   : > { %1296 = vmatprep.subr.bf16.mxu0 %v1409_v22  ;;  %v1421_v22 = vld [vmem:[%s1773_s4] sm:$0xff]   ;;  %1311 = vmatprep.subr.bf16.mxu1 %v1420_v21 }
  0x1c   : > { %1312 = vmatpush3.bf16.msra.mxu1 %v1421_v22 }
  0x1e   : > { %1297 = vmatpush3.bf16.msra.mxu0 %v1410_v23  ;;  %v1422_v23 = vld [vmem:[%s1773_s4 + $0x48] sm:$0xff]  }
  0x1f   : > { %1298 = vmatprep.subr.bf16.mxu0 %v1411_v37  ;;  %1313 = vmatprep.subr.bf16.mxu1 %v1422_v23  ;;  %v1440_v37 = vld [vmem:[%s1773_s4 + $0xe0] sm:$0xff]  }
  0x20   : > { %1314 = vmatpush3.bf16.msra.mxu1 %v1423_v26 }
  0x21   : > { %1315 = vmatprep.subr.bf16.mxu1 %v1426_v27 }
  0x22   : > { %1299 = vmatpush3.bf16.msra.mxu0 %v1412_v38  ;;  %v1435_v38 = vld [vmem:[%s1773_s4 + $0x20] sm:$0xff]  }
  0x23   : > { %1300 = vmatprep.subr.bf16.mxu0 %v1414_v42  ;;  %v1444_v42 = vld [vmem:[%s1773_s4 + $0xe8] sm:$0xff]  }
  0x26   : > { %1301 = vmatpush3.bf16.msra.mxu0 %v1415_v43  ;;  %v1439_v43 = vld [vmem:[%s1773_s4 + $0x28] sm:$0xff]  }
  0x27   : > { %1333 = vmatprep.subr.bf16.mxu0 %v1424_v24 }
  0x83   : > { %v358_v63 = vpop.permute.xlu1 %357 }
  0x85   : > { %v278_v30 = vpop.permute.xlu0 %277 }
  0x86   : > { %v280_v31 = vmax.bf16 %v278_v30, %v275_v9  ;;  %v1427_v30 = vld [vmem:[%s1773_s4 + $0x10] sm:$0xff]  }
  0x87   : > { %1316 = vmatpush3.bf16.msra.mxu1 %v1427_v30 }
  0x88   : > { %v302_v32 = vrot.slane %v280_v31, %v301_v29  ;;  %v1430_v31 = vld [vmem:[%s1773_s4 + $0x58] sm:$0xff]  }
  0x89   : > { %1317 = vmatprep.subr.bf16.mxu1 %v1430_v31 }
  0x8a   : > { %v309_v33 = vrot.slane %v302_v32, %v301_v29  ;;  %v1432_v29 = vld [vmem:[%s1773_s4 + $0xd0] sm:$0xff]  }
  0x8b   : > { %v1433_v32 = vld [vmem:[%s1773_s4 + $0x90] sm:$0xff]  }
  0x8c   : > { %v311_v35 = vshll.u32 %v309_v33, 16  ;;  %v1436_v33 = vld [vmem:[%s1773_s4 + $0xd8] sm:$0xff]  }
  0x8e   : > { %v317_v36 = vsel %vm315_vm9, %v311_v35, %v316_v34  ;;  %v1431_v34 = vld [vmem:[%s1773_s4 + $0x18] sm:$0xff]   ;;  %v1434_v35 = vld [vmem:[%s1773_s4 + $0x60] sm:$0xff]  }
  0x8f   : > { %318 = vst [vmem:[#allocation2 + $0x4] sm:$0x1] %v317_v36  ;;  %v1437_v36 = vld [vmem:[%s1773_s4 + $0x98] sm:$0xff]   ;;  %1318 = vmatpush3.bf16.msra.mxu1 %v1431_v34 }
  0x90   : > { %1319 = vmatprep.subr.bf16.mxu1 %v1434_v35  ;;  %v1453_v35 = vld [vmem:[%s1773_s4 + $0x108] sm:$0xff]  }
  0x93   : > { %1320 = vmatpush3.bf16.msra.mxu1 %v1435_v38  ;;  %v1454_v38 = vld [vmem:[%s1773_s4 + $0x110] sm:$0xff]  }
  0x94   : > { %1321 = vmatprep.subr.bf16.mxu1 %v1438_v39  ;;  %v1455_v39 = vld [vmem:[%s1773_s4 + $0x118] sm:$0xff]  }
  0x96   : > { %v320_v47 = vld [vmem:[#allocation2 + $0x4] sm:$0xf] }
  0x97   : > { %v1215_v48 = vcombine.low %v320_v47, %v321_v10  ;;  %v1213_v49 = vcombine.low %v319_v46, %v320_v47  ;;  %v1214_v61 = vcombine.low %v320_v47, %v320_v47  ;;  %1322 = vmatpush3.bf16.msra.mxu1 %v1439_v43 }
  0x98   : > { %1323 = vmatprep.subr.bf16.mxu1 %v1442_v44 }
  0x99   : > { %v353_v52 = vrot.slane %v1215_v48, 1  ;;  %v331_v53 = vshll.u32 %v1213_v49, 16  ;;  %v329_v54 = vshrl.u32 %v1213_v49, 16  ;;  %v337_v58 = vrot.slane %v1213_v49, 1 }
  0x9a   : > { %v349_v62 = vshll.u32 %v1215_v48, 16  ;;  %v347_v2 = vshrl.u32 %v1215_v48, 16 }
  0x9b   : > { %354 = vrot.lane.b32.xlu0 %v353_v52, %s1470_s28  ;;  %v333_v55 = vrot.slane %v331_v53, 1  ;;  %1324 = vmatpush3.bf16.msra.mxu1 %v1443_v45  ;;  %v1238_v53 = vld [vmem:[%s1772_s3] ss:$0 sm:$0xff] }
  0x9c   : > { %v351_v0 = vrot.slane %v349_v62, 1 }
  0x9d   : > { %v334_v59 = vor.u32 %v333_v55, %v329_v54 }
  0x9e   : > { %v352_v4 = vor.u32 %v351_v0, %v347_v2  ;;  %v1447_v2 = vld [vmem:[%s1773_s4 + $0x38] sm:$0xff]  }
  0x9f   : > { %338 = vrot.lane.b32.xlu0 %v337_v58, %s1466_s8  ;;  %335 = vrot.lane.b32.xlu1 %v334_v59, %s1470_s28  ;;  %v665_v59 = vld [vmem:[#allocation3 + $0xc] sm:$0xf] }
  0xa3   : > { %341 = vrot.lane.b32.xlu0 %v1214_v61, %s1465_s30  ;;  %369 = vrot.lane.b32.xlu1 %v368_v60, %s1465_s30  ;;  %v659_v60 = vld [vmem:[#allocation3 + $0x4] sm:$0x1]  ;;  %v1445_v61 = vld [vmem:[%s1773_s4 + $0xa8] sm:$0xff]  }
  0xe8   : > { %v1611_v17 = vpop.f32.mrb[0].mxu1 }
  0xe9   : > { %v1366_v18 = vpop.f32.mrb[1].mxu1 }
  0xea   : > { %v615_v19 = vpop.f32.mrb[2].mxu1 }
  0xeb   : > { %v1367_v20 = vpop.f32.mrb[3].mxu1 }
 0x10d   : > { %v355_v1 = vpop.permute.xlu0 %354 }
 0x10e   : > { %v385_v9 = vsel %vm372_vm11, %v352_v4, %v355_v1  ;;  %v1446_v1 = vld [vmem:[%s1773_s4 + $0x78] sm:$0xff]   ;;  %v1448_v4 = vld [vmem:[%s1773_s4 + $0xf0] sm:$0xff]  }
 0x10f   : > { %v387_v13 = vsel %vm376_vm12, %v385_v9, %v358_v63  ;;  %v664_v63 = vld [vmem:[#allocation3 + $0x8] sm:$0xf]  ;;  %1325 = vmatprep.subr.bf16.mxu1 %v1446_v1 }
 0x110   : > { %v1702_v0 = vcombine.low %v664_v63, %v665_v59  ;;  %1326 = vmatpush3.bf16.msra.mxu1 %v1447_v2 }
 0x111   : > { %v339_v7 = vpop.permute.xlu0 %338  ;;  %v336_v8 = vpop.permute.xlu1 %335  ;;  %1368 = vmatprep.subr.bf16.mxu1 %v1468_v40 }
 0x112   : > { %v375_v10 = vsel %vm372_vm11, %v319_v46, %v336_v8  ;;  %v1449_v8 = vld [vmem:[%s1773_s4 + $0xb0] sm:$0xff]   ;;  %v703_v9 = vshll.u32 %v1702_v0, 16 }
 0x113   : > { %v378_v14 = vsel %vm376_vm12, %v375_v10, %v339_v7  ;;  %v1450_v10 = vld [vmem:[%s1773_s4 + $0xf8] sm:$0xff]  }
 0x115   : > { %v342_v11 = vpop.permute.xlu0 %341  ;;  %v370_v12 = vpop.permute.xlu1 %369 }
 0x116   : > { %v389_v15 = vsel %vm379_vm13, %v387_v13, %v370_v12  ;;  %v381_v16 = vsel %vm379_vm13, %v378_v14, %v342_v11  ;;  %v662_v11 = vld [vmem:[#allocation3] sm:$0xf]  ;;  %v701_v12 = vshrl.u32 %v1702_v0, 16  ;;  %v705_v13 = vrot.slane %v703_v9, 1 }
 0x117   : > { %570 = vmatprep.mubr.bf16.mxu0 %v389_v15 }
 0x118   : > { %571 = vmatmul.mubr.bf16.vlgmr.msra.gmra.mrb[0].mxu0 %v381_v16  ;;  %v706_v18 = vor.u32 %v705_v13, %v701_v12 }
 0x119   : > { %1334 = vmatpush3.bf16.msra.mxu0 %v1425_v6 }
 0x11a   : > { %1335 = vmatprep.subr.bf16.mxu0 %v1428_v25 }
 0x11d   : > { %1336 = vmatpush3.bf16.msra.mxu0 %v1429_v28  ;;  %v1451_v28 = vld [vmem:[%s1773_s4 + $0x100] sm:$0xff]  }
 0x11e   : > { %1337 = vmatprep.subr.bf16.mxu0 %v1432_v29 }
 0x121   : > { %1338 = vmatpush3.bf16.msra.mxu0 %v1433_v32 }
 0x122   : > { %1339 = vmatprep.subr.bf16.mxu0 %v1436_v33 }
 0x125   : > { %1340 = vmatpush3.bf16.msra.mxu0 %v1437_v36 }
 0x126   : > { %1341 = vmatprep.subr.bf16.mxu0 %v1440_v37 }
 0x129   : > { %1342 = vmatpush3.bf16.msra.mxu0 %v1441_v41  ;;  %v709_v41 = vrot.slane %v1702_v0, 1 }
 0x12a   : > { %1343 = vmatprep.subr.bf16.mxu0 %v1444_v42 }
 0x12d   : > { %1344 = vmatpush3.bf16.msra.mxu0 %v1445_v61 }
 0x12e   : > { %1345 = vmatprep.subr.bf16.mxu0 %v1448_v4 }
 0x131   : > { %1346 = vmatpush3.bf16.msra.mxu0 %v1449_v8 }
 0x132   : > { %1347 = vmatprep.subr.bf16.mxu0 %v1450_v10 }
 0x135   : > { %1348 = vmatpush3.bf16.msra.mxu0 %v1452_v5 }
 0x1eb   : > { %v1302_v46 = vpop.f32.mrb[0].mxu0 }
 0x1ec   : > { %v1303_v47 = vpop.f32.mrb[1].mxu0 }
 0x1ed   : > { %v1304_v48 = vadd.f32 %v1303_v47, %v1302_v46  ;;  %v1305_v49 = vpop.f32.mrb[2].mxu0 }
 0x1ee   : > { %v1306_v51 = vpop.f32.mrb[3].mxu0 }
 0x1ef   : > { %v613_v52 = vadd.f32 %v1304_v48, %v1611_v17 }
 0x1f1   : > { %v625_v54 = vmul.f32 %v1237_v50, %v613_v52 }
 0x1f3   : > { %v633_v55 = vadd.f32 %v1238_v53, %v625_v54 }
 0x1f5   : > { %vm634_vm0 = vcmp.ge.f32.partialorder %v633_v55, 0.0  ;;  %v635_v56 = vmul.f32 0.01, %v633_v55 }
 0x1f7   : > { %v636_v57 = vsel %vm634_vm0, %v633_v55, %v635_v56  ;;  %v1282_v56 = vld [vmem:[%s1775_s6] ss:$0 sm:$0xff] }
 0x1f8   : > { %v1285_v58 = vpack.c.bf16 %v636_v57, %v636_v57 }
 0x1fa   : > { %v655_v62 = vshll.u32 %v1285_v58, 16 }
 0x1fc   : > { %v660_v7 = vsel %vm1530_vm6, %v655_v62, %v659_v60  ;;  %v1157_v62 = vld [vmem:[%s271_s29] sm:$0x1] }
 0x1fd   : > { %661 = vst [vmem:[#allocation3 + $0x4] sm:$0x1] %v660_v7 }
 0x204   : > { %v663_v14 = vld [vmem:[#allocation3 + $0x4] sm:$0xf] }
 0x205   : > { %v1241_v15 = vcombine.low %v663_v14, %v663_v14  ;;  %v1240_v16 = vcombine.low %v662_v11, %v663_v14  ;;  %v1242_v22 = vcombine.low %v663_v14, %v664_v63 }
 0x207   : > { %682 = vrot.lane.b32.xlu1 %v1241_v15, %s1466_s8  ;;  %v674_v17 = vshll.u32 %v1240_v16, 16  ;;  %v672_v19 = vshrl.u32 %v1240_v16, 16  ;;  %v694_v23 = vrot.slane %v1242_v22, 1  ;;  %v680_v24 = vrot.slane %v1240_v16, 1 }
 0x208   : > { %v690_v26 = vshll.u32 %v1242_v22, 16  ;;  %v688_v33 = vshrl.u32 %v1242_v22, 16 }
 0x209   : > { %v676_v20 = vrot.slane %v674_v17, 1 }
 0x20a   : > { %v692_v29 = vrot.slane %v690_v26, 1 }
 0x20b   : > { %v677_v21 = vor.u32 %v676_v20, %v672_v19  ;;  %707 = vrot.lane.b32.xlu1 %v706_v18, %s1466_s8 }
 0x20c   : > { %v693_v34 = vor.u32 %v692_v29, %v688_v33 }
 0x20d   : > { %678 = vrot.lane.b32.xlu0 %v677_v21, %s1466_s8 }
 0x211   : > { %695 = vrot.lane.b32.xlu0 %v694_v23, %s1466_s8 }
 0x279   : > { %v683_v6 = vpop.permute.xlu1 %682 }
 0x27a   : > { %v716_v25 = vsel %vm376_vm12, %v680_v24, %v683_v6 }
 0x27b   : > { %1049 = vmatprep.mubr.bf16.mxu1 %v716_v25 }
 0x27d   : > { %v708_v27 = vpop.permute.xlu1 %707 }
 0x27e   : > { %v724_v30 = vsel %vm376_vm12, %v664_v63, %v708_v27 }
 0x27f   : > { %v679_v31 = vpop.permute.xlu0 %678  ;;  %1089 = vmatprep.mubr.bf16.mxu0 %v724_v30 }
 0x280   : > { %v712_v32 = vsel %vm376_vm12, %v662_v11, %v679_v31 }
 0x281   : > { %1050 = vmatmul.mubr.bf16.vlgmr.msra.gmra.mrb[4].mxu1 %v712_v32 }
 0x282   : > { %1369 = vmatpush3.bf16.msra.mxu1 %v1451_v28  ;;  %1376 = vmatprep.mubr.msk.bf16.mxu1 %vm1469_vm10, %v1468_v40 }
 0x283   : > { %v696_v36 = vpop.permute.xlu0 %695  ;;  %1370 = vmatprep.subr.bf16.mxu1 %v1468_v40 }
 0x284   : > { %v720_v37 = vsel %vm376_vm12, %v693_v34, %v696_v36 }
 0x285   : > { %1090 = vmatmul.mubr.bf16.vlgmr.msra.gmra.mrb[4].mxu0 %v720_v37 }
 0x286   : > { %1371 = vmatpush3.bf16.msra.mxu1 %v1453_v35 }
 0x287   : > { %1372 = vmatprep.subr.bf16.mxu1 %v1468_v40 }
 0x28a   : > { %1373 = vmatpush3.bf16.msra.mxu1 %v1454_v38 }
 0x28b   : > { %1374 = vmatprep.subr.bf16.mxu1 %v1468_v40  ;;  %v1281_v40 = vld [vmem:[%s1774_s5] ss:$0 sm:$0xff] }
 0x28e   : > { %1375 = vmatpush3.bf16.msra.mxu1 %v1455_v39 }
 0x291   : > { %1377 = vmatmul.mubr.msk.bf16.vlgmr.msra.gmra.mrb[8].mxu1 %vm376_vm12, %v709_v41 }
 0x354   : > { %v1327_v42 = vpop.f32.mrb[4].mxu1 }
 0x355   : > { %v1328_v43 = vpop.f32.mrb[5].mxu1 }
 0x356   : > { %v1329_v44 = vadd.f32 %v1328_v43, %v1327_v42  ;;  %v1330_v45 = vpop.f32.mrb[6].mxu1 }
 0x357   : > { %v1331_v46 = vpop.f32.mrb[7].mxu1 }
 0x358   : > { %v1349_v47 = vpop.f32.mrb[4].mxu0 }
 0x359   : > { %v1350_v48 = vpop.f32.mrb[5].mxu0 }
 0x35a   : > { %v1351_v49 = vadd.f32 %v1350_v48, %v1349_v47  ;;  %v1352_v50 = vpop.f32.mrb[6].mxu0 }
 0x35b   : > { %v1353_v51 = vpop.f32.mrb[7].mxu0 }
 0x35c   : > { %v1092_v52 = vadd.f32 %v1351_v49, %v1329_v44 }
 0x364   : > { %v1131_v53 = vpop.f32.mrb[8].mxu1 }
 0x365   : > { %v1132_v54 = vadd.f32 %v1131_v53, %v1092_v52  ;;  %v1378_v55 = vpop.f32.mrb[9].mxu1 }
 0x366   : > { %v1134_v57 = vpop.f32.mrb[10].mxu1 }
 0x367   : > { %v1144_v58 = vmul.f32 %v1281_v40, %v1132_v54  ;;  %v1379_v59 = vpop.f32.mrb[11].mxu1 }
 0x369   : > { %v1152_v60 = vadd.f32 %v1282_v56, %v1144_v58 }
 0x36b   : > { %vm1153_vm1 = vcmp.ge.f32.partialorder %v1152_v60, 0.0  ;;  %v1154_v61 = vmul.f32 0.01, %v1152_v60 }
 0x36d   : > { %v1155_v63 = vsel %vm1153_vm1, %v1152_v60, %v1154_v61 }
 0x36e   : > { %v1156_v0 = vpack.c.bf16 %v1155_v63, %v1155_v63 }
 0x370   : > { %v1158_v1 = vsel %vm1522_vm5, %v1156_v0, %v1157_v62 }
 0x371   : > { %1159 = vst [vmem:[%s271_s29] sm:$0x1] %v1158_v1 }
 0x372 PF: > { %s17_s24 = sadd.s32 1, %s1462_s24  }
 0x373   : > { %p14_p4 = scmp.ge.s32.totalorder %s17_s24, 4  }
 0x375   :  { %16 = sbr.rel (!%p14_p4) target bundleno = 1 (0x1), region = 82 }

// kernel: encoder_forward.5
= control target key start
LH: loop header
LB: loop body
LE: loop exit
PB: predicated region body
PF: predicated region fallthrough
CT: control target
= control target key end

     0   :  { %s6524_s24 = smov 0   ;;  %s9788_s0 = inlined_call_operand.vmem [shape: f32[2,16,16,4], index: 0, kind: input, shape index: {}]   ;;  %s9789_s1 = inlined_call_operand.vmem [shape: bf16[36,8], index: 1, kind: input, shape index: {}]   ;;  %s9790_s2 = inlined_call_operand.vmem [shape: f32[1,8], index: 2, kind: input, shape index: {}]   ;;  %s9791_s3 = inlined_call_operand.vmem [shape: f32[1,8], index: 3, kind: input, shape index: {}]   ;;  %s9792_s4 = inlined_call_operand.vmem [shape: bf16[72,8], index: 4, kind: input, shape index: {}]   ;;  %s9793_s5 = inlined_call_operand.vmem [shape: f32[1,8], index: 5, kind: input, shape index: {}]   ;;  %s9794_s6 = inlined_call_operand.vmem [shape: f32[1,8], index: 6, kind: input, shape index: {}]   ;;  %s9795_s7 = inlined_call_operand.vmem [shape: bf16[2,16,16,8], index: 7, kind: output, shape index: {}]  }
   0x1 LB: > { %s5781_s25 = sadd.s32 4294967295, %s6469_s24   ;;  %p5785_p0 = scmp.ge.s32.totalorder %s6469_s24, 1  ;;  %s6469_s24 = sphi %s6524_s24, %s17_s24  }
   0x2   : > { %p237_p1 = scmp.lt.s32.totalorder %s6469_s24, 3 }
   0x4   : > { %p238_p2 = pnand %p5785_p0, %p237_p1 }
   0x6   : > { %241 = sbr.rel (%p238_p2) target bundleno = 1292 (0x50c), region = 48 }
   0xd   : > { %p6532_p3 = scmp.lt.s32.totalorder %s5781_s25, 1  ;;  %vm312_vm0 = vcmask 27648   ;;  %vm324_vm1 = vcmask 24576   ;;  %vm325_vm2 = vsmask.f32 256  ;;  %v6471_v0 = vmov 0  }
   0xe   : > { %313 = vst.msk [vmem:[#allocation2] sm:$0xf] %vm312_vm0, %v6471_v0  ;;  %314 = vst.msk [vmem:[#allocation2 + $0x4] sm:$0xf] %vm312_vm0, %v6471_v0  ;;  %v327_v2 = vld [vmem:[#allocation2 + $0xc] sm:$0x1] }
   0xf   : > { %315 = vst.msk [vmem:[#allocation2 + $0x8] sm:$0xf] %vm312_vm0, %v6471_v0  ;;  %vm6540_vm3 = vmand %vm324_vm1, %vm325_vm2  ;;  %vm376_vm4 = vsmask.f32 7938  ;;  %s10050_s25 = smov (!%p6532_p3, %s5781_s25), 1  ;;  %vm9828_vm6 = vcmask 60416  }
  0x10   : > { %317 = vst.msk [vmem:[#allocation2 + $0xcc] sm:$0xf] %vm312_vm0, %v6471_v0  ;;  %318 = vst.msk [vmem:[#allocation2 + $0xd0] sm:$0xf] %vm312_vm0, %v6471_v0  ;;  %v328_v3 = vsel %vm6540_vm3, 0, %v327_v2  ;;  %s6056_s27 = sshll.u32 %s10050_s25, 8 }
  0x11   : > { %319 = vst.msk [vmem:[#allocation2 + $0xd4] sm:$0xf] %vm312_vm0, %v6471_v0  ;;  %320 = vst.msk [vmem:[#allocation2 + $0xd8] sm:$0xf] %vm312_vm0, %v6471_v0  ;;  %v330_v5 = vld [vmem:[#allocation2 + $0x18] sm:$0x1]  ;;  %s6575_s30 = scalar_lea.vmem %s9788_s0, %s6056_s27 }
  0x12   : > { %vm6556_vm5 = vmand %vm312_vm0, %vm376_vm4  ;;  %329 = vst [vmem:[#allocation2 + $0xc] sm:$0x1] %v328_v3  ;;  %v331_v6 = vsel %vm6540_vm3, 0, %v330_v5  ;;  %v378_v7 = vld [vmem:[#allocation2 + $0x14] sm:$0xf]  ;;  %v280_v15 = vld [vmem:[%s6575_s30] sm:$0xff] }
  0x13   : > { %2937 = vst.msk [vmem:[#allocation3] sm:$0xf] %vm9828_vm6, %v6471_v0  ;;  %2938 = vst.msk [vmem:[#allocation3 + $0x4] sm:$0xf] %vm9828_vm6, %v6471_v0  ;;  %v379_v8 = vsel %vm6556_vm5, 0, %v378_v7  ;;  %v281_v16 = vld [vmem:[%s6575_s30 + $0x8] sm:$0xff]  ;;  %v6058_v20 = vpack.c.bf16 %v280_v15, %v280_v15 }
  0x14   : > { %2939 = vst.msk [vmem:[#allocation3 + $0x8] sm:$0xf] %vm9828_vm6, %v6471_v0  ;;  %2941 = vst.msk [vmem:[#allocation3 + $0xcc] sm:$0xf] %vm9828_vm6, %v6471_v0  ;;  %v333_v9 = vld [vmem:[#allocation2 + $0x24] sm:$0x1]  ;;  %v6059_v22 = vpack.c.bf16 %v281_v16, %v281_v16 }
  0x15   : > { %2942 = vst.msk [vmem:[#allocation3 + $0xd0] sm:$0xf] %vm9828_vm6, %v6471_v0  ;;  %2943 = vst.msk [vmem:[#allocation3 + $0xd4] sm:$0xf] %vm9828_vm6, %v6471_v0  ;;  %v381_v10 = vld [vmem:[#allocation2 + $0x20] sm:$0xf] }
  0x16   : > { %2944 = vst.msk [vmem:[#allocation3 + $0xd8] sm:$0xf] %vm9828_vm6, %v6471_v0  ;;  %332 = vst [vmem:[#allocation2 + $0x18] sm:$0x1] %v331_v6  ;;  %v334_v11 = vsel %vm6540_vm3, 0, %v333_v9  ;;  %v382_v12 = vsel %vm6556_vm5, 0, %v381_v10 }
  0x17   : > { %380 = vst [vmem:[#allocation2 + $0x14] sm:$0xf] %v379_v8  ;;  %v384_v13 = vld [vmem:[#allocation2 + $0x2c] sm:$0xf]  ;;  %v336_v14 = vld [vmem:[#allocation2 + $0x30] sm:$0x1] }
  0x18   : > { %v282_v17 = vld [vmem:[%s6575_s30 + $0x10] sm:$0xff]  ;;  %335 = vst [vmem:[#allocation2 + $0x24] sm:$0x1] %v334_v11  ;;  %383 = vst [vmem:[#allocation2 + $0x20] sm:$0xf] %v382_v12  ;;  %v385_v18 = vsel %vm6556_vm5, 0, %v384_v13 }
  0x19   : > { %v337_v19 = vsel %vm6540_vm3, 0, %v336_v14  ;;  %v283_v21 = vld [vmem:[%s6575_s30 + $0x18] sm:$0xff]  ;;  %v6060_v23 = vpack.c.bf16 %v282_v17, %v282_v17  ;;  %v284_v24 = vld [vmem:[%s6575_s30 + $0x20] sm:$0xff]  ;;  %v285_v25 = vld [vmem:[%s6575_s30 + $0x28] sm:$0xff]  ;;  %386 = vst [vmem:[#allocation2 + $0x2c] sm:$0xf] %v385_v18 }
  0x1a   : > { %338 = vst [vmem:[#allocation2 + $0x30] sm:$0x1] %v337_v19  ;;  %v6061_v26 = vpack.c.bf16 %v283_v21, %v283_v21  ;;  %vm522_vm7 = vsmask.f32 4368  ;;  %v6062_v27 = vpack.c.bf16 %v284_v24, %v284_v24  ;;  %v6591_v28 = vpack.c.bf16 %v285_v25, %v285_v25  ;;  %v6345_v31 = vld [vmem:[#allocation2] sm:$0xff]   ;;  %v286_v59 = vld [vmem:[%s6575_s30 + $0x30] sm:$0xff] }
  0x1b   : > { %v525_v29 = vshrl.u32 %v6058_v20, 16  ;;  %v528_v30 = vshll.u32 %v6058_v20, 16  ;;  %v533_v32 = vshrl.u32 %v6059_v22, 16  ;;  %v536_v33 = vshll.u32 %v6059_v22, 16  ;;  %v844_v42 = vld [vmem:[#allocation2 + $0xc] sm:$0xf]  ;;  %vm6595_vm8 = vmor %vm325_vm2, %vm522_vm7 }
  0x1c   : > { %v542_v34 = vshrl.u32 %v6060_v23, 16  ;;  %v545_v35 = vshll.u32 %v6060_v23, 16  ;;  %v550_v36 = vshrl.u32 %v6061_v26, 16  ;;  %v553_v37 = vshll.u32 %v6061_v26, 16  ;;  %v287_v0 = vld [vmem:[%s6575_s30 + $0x38] sm:$0xff]  ;;  %v288_v14 = vld [vmem:[%s6575_s30 + $0x40] sm:$0xff] }
  0x1d   : > { %v527_v38 = vrot.slane %v525_v29, 7  ;;  %v1136_v39 = vshrl.u32 %v6345_v31, 16  ;;  %v1138_v40 = vshll.u32 %v6345_v31, 16  ;;  %v535_v41 = vrot.slane %v533_v32, 7  ;;  %v851_v53 = vld [vmem:[#allocation2 + $0x18] sm:$0xf] }
  0x1e   : > { %v544_v44 = vrot.slane %v542_v34, 7  ;;  %v552_v45 = vrot.slane %v550_v36, 7  ;;  %v559_v46 = vshrl.u32 %v6062_v27, 16  ;;  %v562_v47 = vshll.u32 %v6062_v27, 16  ;;  %v848_v52 = vld [vmem:[#allocation2 + $0x14] sm:$0x1] }
  0x1f   : > { %v530_v48 = vor.u32 %v528_v30, %v527_v38  ;;  %v1140_v49 = vrot.slane %v1138_v40, 1  ;;  %v531_v50 = vrot.slane %v527_v38, 4  ;;  %v538_v51 = vor.u32 %v536_v33, %v535_v41  ;;  %v855_v58 = vld [vmem:[#allocation2 + $0x20] sm:$0x1]  ;;  %v339_v2 = vld [vmem:[#allocation2 + $0x3c] sm:$0x1] }
  0x20   : > { %v540_v54 = vrot.slane %v535_v41, 4  ;;  %v547_v55 = vor.u32 %v545_v35, %v544_v44  ;;  %v548_v56 = vrot.slane %v544_v44, 4  ;;  %v555_v57 = vor.u32 %v553_v37, %v552_v45  ;;  %v387_v8 = vld [vmem:[#allocation2 + $0x38] sm:$0xf]  ;;  %v858_v10 = vld [vmem:[#allocation2 + $0x24] sm:$0xf] }
  0x21   : > { %v845_v60 = vsel %vm6556_vm5, %v530_v48, %v844_v42  ;;  %v6602_v61 = vor.u32 %v1140_v49, %v1136_v39  ;;  %v539_v62 = vsel %vm6595_vm8, %v531_v50, %v538_v51  ;;  %v557_v63 = vrot.slane %v552_v45, 4  ;;  %v390_v19 = vld [vmem:[#allocation2 + $0x44] sm:$0xf]  ;;  %v289_v24 = vld [vmem:[%s6575_s30 + $0x48] sm:$0xff]  ;;  %v290_v35 = vld [vmem:[%s6575_s30 + $0x50] sm:$0xff]  ;;  %s6472_s8 = smov 4  }
  0x22   : > { %846 = vst [vmem:[#allocation2 + $0xc] sm:$0xf] %v845_v60  ;;  %v556_v3 = vsel %vm6595_vm8, %v548_v56, %v555_v57  ;;  %847 = vst.msk [vmem:[#allocation2 + $0x10] sm:$0xf] %vm312_vm0, %v539_v62  ;;  %v849_v5 = vsel %vm6540_vm3, %v540_v54, %v848_v52  ;;  %v852_v6 = vsel %vm6556_vm5, %v547_v55, %v851_v53  ;;  %v561_v7 = vrot.slane %v559_v46, 7  ;;  %v291_v36 = vld [vmem:[%s6575_s30 + $0x58] sm:$0xff] }
  0x23   : > { %850 = vst [vmem:[#allocation2 + $0x14] sm:$0x1] %v849_v5  ;;  %853 = vst [vmem:[#allocation2 + $0x18] sm:$0xf] %v852_v6  ;;  %v856_v9 = vsel %vm6540_vm3, %v557_v63, %v855_v58  ;;  %v567_v11 = vshrl.u32 %v6591_v28, 16  ;;  %v570_v12 = vshll.u32 %v6591_v28, 16  ;;  %v6064_v13 = vpack.c.bf16 %v286_v59, %v286_v59 }
  0x24   : > { %854 = vst.msk [vmem:[#allocation2 + $0x1c] sm:$0xf] %vm312_vm0, %v556_v3  ;;  %v564_v15 = vor.u32 %v562_v47, %v561_v7  ;;  %857 = vst [vmem:[#allocation2 + $0x20] sm:$0x1] %v856_v9  ;;  %v565_v16 = vrot.slane %v561_v7, 4  ;;  %v6065_v17 = vpack.c.bf16 %v287_v0, %v287_v0  ;;  %v340_v18 = vsel %vm6540_vm3, 0, %v339_v2 }
  0x25   : > { %vm9831_vm9 = vsmask.f32 7424  ;;  %v569_v20 = vrot.slane %v567_v11, 7  ;;  %v576_v21 = vshrl.u32 %v6064_v13, 16  ;;  %v579_v22 = vshll.u32 %v6064_v13, 16  ;;  %s6473_s9 = smov 8  }
  0x26   : > { %341 = vst [vmem:[#allocation2 + $0x3c] sm:$0x1] %v340_v18  ;;  %v388_v23 = vsel %vm6556_vm5, 0, %v387_v8  ;;  %v958_v25 = vld [vmem:[#allocation2 + $0x8] sm:$0xf]  ;;  %v859_v26 = vsel %vm6556_vm5, %v564_v15, %v858_v10  ;;  %v584_v28 = vshrl.u32 %v6065_v17, 16  ;;  %v6066_v30 = vpack.c.bf16 %v288_v14, %v288_v14 }
  0x27   : > { %v862_v27 = vld [vmem:[#allocation2 + $0x2c] sm:$0x1]  ;;  %v587_v29 = vshll.u32 %v6065_v17, 16  ;;  %389 = vst [vmem:[#allocation2 + $0x38] sm:$0xf] %v388_v23  ;;  %v572_v31 = vor.u32 %v570_v12, %v569_v20  ;;  %v574_v32 = vrot.slane %v569_v20, 4  ;;  %v6631_v41 = vpack.c.bf16 %v289_v24, %v289_v24 }
  0x28   : > { %860 = vst [vmem:[#allocation2 + $0x24] sm:$0xf] %v859_v26  ;;  %v578_v33 = vrot.slane %v576_v21, 7  ;;  %v391_v34 = vsel %vm6556_vm5, 0, %v390_v19  ;;  %v586_v37 = vrot.slane %v584_v28, 7  ;;  %v593_v39 = vshrl.u32 %v6066_v30, 16 }
  0x29   : > { %v865_v38 = vld [vmem:[#allocation2 + $0x30] sm:$0xf]  ;;  %v596_v40 = vshll.u32 %v6066_v30, 16  ;;  %392 = vst [vmem:[#allocation2 + $0x44] sm:$0xf] %v391_v34  ;;  %v573_v45 = vsel %vm6595_vm8, %v565_v16, %v572_v31  ;;  %v863_v46 = vsel %vm6540_vm3, %v574_v32, %v862_v27  ;;  %v6640_v54 = vpack.c.bf16 %v290_v35, %v290_v35  ;;  %s6474_s12 = smov 12  }
  0x2a   : > { %v959_v42 = vld [vmem:[#allocation2 + $0xc] sm:$0xf]  ;;  %v960_v44 = vld [vmem:[#allocation2 + $0x10] sm:$0xf]  ;;  %v581_v47 = vor.u32 %v579_v22, %v578_v33  ;;  %v582_v48 = vrot.slane %v578_v33, 4  ;;  %v589_v53 = vor.u32 %v587_v29, %v586_v37  ;;  %v6642_v55 = vpack.c.bf16 %v291_v36, %v291_v36  ;;  %s6475_s15 = smov 16  }
  0x2b   : > { %v6637_v49 = vcombine.low %v958_v25, %v959_v42  ;;  %v961_v50 = vld [vmem:[#allocation2 + $0x14] sm:$0xf]  ;;  %v962_v51 = vld [vmem:[#allocation2 + $0x18] sm:$0xf]  ;;  %v963_v52 = vld [vmem:[#allocation2 + $0x1c] sm:$0xf] }
  0x2c   : > { %861 = vst.msk [vmem:[#allocation2 + $0x28] sm:$0xf] %vm312_vm0, %v573_v45  ;;  %864 = vst [vmem:[#allocation2 + $0x2c] sm:$0x1] %v863_v46  ;;  %v6644_v56 = vcombine.low %v960_v44, %v961_v50  ;;  %v6646_v57 = vcombine.low %v962_v51, %v963_v52  ;;  %v964_v58 = vld [vmem:[#allocation2 + $0x20] sm:$0xf]  ;;  %v866_v59 = vsel %vm6556_vm5, %v581_v47, %v865_v38 }
  0x2d   : > { %v591_v60 = vrot.slane %v586_v37, 4  ;;  %v1143_v62 = vshll.u32 %v6637_v49, 16  ;;  %v1147_v63 = vshrl.u32 %v6637_v49, 16  ;;  %v590_v0 = vsel %vm6595_vm8, %v582_v48, %v589_v53  ;;  %867 = vst [vmem:[#allocation2 + $0x30] sm:$0xf] %v866_v59  ;;  %s6476_s18 = smov 20  }
  0x2e   : > { %v595_v2 = vrot.slane %v593_v39, 7  ;;  %v872_v3 = vld [vmem:[#allocation2 + $0x3c] sm:$0xf]  ;;  %v1151_v5 = vshll.u32 %v6644_v56, 16  ;;  %v1155_v6 = vshrl.u32 %v6644_v56, 16  ;;  %v1159_v7 = vshll.u32 %v6646_v57, 16 }
  0x2f   : > { %v1163_v8 = vshrl.u32 %v6646_v57, 16  ;;  %868 = vst.msk [vmem:[#allocation2 + $0x34] sm:$0xf] %vm312_vm0, %v590_v0  ;;  %v869_v9 = vld [vmem:[#allocation2 + $0x38] sm:$0x1]  ;;  %v1145_v10 = vrot.slane %v1143_v62, 1 }
  0x30   : > { %v965_v11 = vld [vmem:[#allocation2 + $0x24] sm:$0xf]  ;;  %v598_v12 = vor.u32 %v596_v40, %v595_v2  ;;  %v870_v13 = vsel %vm6540_vm3, %v591_v60, %v869_v9  ;;  %v599_v14 = vrot.slane %v595_v2, 4  ;;  %v1153_v15 = vrot.slane %v1151_v5, 1  ;;  %v342_v19 = vld [vmem:[#allocation2 + $0x48] sm:$0x1] }
  0x31   : > { %v1161_v16 = vrot.slane %v1159_v7, 1  ;;  %v6661_v17 = vcombine.low %v964_v58, %v965_v11  ;;  %871 = vst [vmem:[#allocation2 + $0x38] sm:$0x1] %v870_v13  ;;  %v601_v18 = vshrl.u32 %v6631_v41, 16  ;;  %v1146_v20 = vsel %vm9831_vm9, %v6602_v61, %v1145_v10  ;;  %v876_v32 = vld [vmem:[#allocation2 + $0x44] sm:$0x1] }
  0x32   : > { %v1149_v21 = vor.u32 %v1147_v63, %v1145_v10  ;;  %v873_v22 = vsel %vm6556_vm5, %v598_v12, %v872_v3  ;;  %v604_v23 = vshll.u32 %v6631_v41, 16  ;;  %1331 = vrot.lane.b32.xlu0 %v1146_v20, %s6472_s8  ;;  %v1157_v24 = vor.u32 %v1155_v6, %v1153_v15  ;;  %v345_v50 = vld [vmem:[#allocation2 + $0x54] sm:$0x1]  ;;  %v393_v59 = vld [vmem:[#allocation2 + $0x50] sm:$0xf]  ;;  %v292_v2 = vld [vmem:[%s6575_s30 + $0x60] sm:$0xff] }
  0x33   : > { %v1165_v25 = vor.u32 %v1163_v8, %v1161_v16  ;;  %v1167_v26 = vshll.u32 %v6661_v17, 16  ;;  %v966_v27 = vld [vmem:[#allocation2 + $0x28] sm:$0xf]  ;;  %v967_v28 = vld [vmem:[#allocation2 + $0x2c] sm:$0xf]  ;;  %v1171_v29 = vshrl.u32 %v6661_v17, 16 }
  0x34   : > { %874 = vst [vmem:[#allocation2 + $0x3c] sm:$0xf] %v873_v22  ;;  %v1154_v61 = vsel %vm9831_vm9, %v1149_v21, %v1153_v15  ;;  %v6673_v30 = vcombine.low %v966_v27, %v967_v28  ;;  %v603_v31 = vrot.slane %v601_v18, 7  ;;  %v343_v33 = vsel %vm6540_vm3, 0, %v342_v19  ;;  %v968_v36 = vld [vmem:[#allocation2 + $0x30] sm:$0xf] }
  0x35   : > { %v1162_v34 = vsel %vm9831_vm9, %v1157_v24, %v1161_v16  ;;  %v1169_v35 = vrot.slane %v1167_v26, 1  ;;  %344 = vst [vmem:[#allocation2 + $0x48] sm:$0x1] %v343_v33  ;;  %v610_v37 = vshrl.u32 %v6640_v54, 16  ;;  %v613_v38 = vshll.u32 %v6640_v54, 16  ;;  %v294_v15 = vld [vmem:[%s6575_s30 + $0x70] sm:$0xff] }
  0x36   : > { %1335 = vrot.lane.b32.xlu1 %v1162_v34, %s6472_s8  ;;  %v1175_v39 = vshll.u32 %v6673_v30, 16  ;;  %v969_v40 = vld [vmem:[#allocation2 + $0x34] sm:$0xf]  ;;  %v1179_v41 = vshrl.u32 %v6673_v30, 16  ;;  %v606_v42 = vor.u32 %v604_v23, %v603_v31  ;;  %v608_v44 = vrot.slane %v603_v31, 4  ;;  %1333 = vrot.lane.b32.xlu0 %v1154_v61, %s6472_s8  ;;  %v295_v26 = vld [vmem:[%s6575_s30 + $0x78] sm:$0xff] }
  0x37   : > { %v6685_v45 = vsel %vm9831_vm9, %v1165_v25, %v1169_v35  ;;  %v1173_v46 = vor.u32 %v1171_v29, %v1169_v35  ;;  %v6687_v47 = vcombine.low %v968_v36, %v969_v40  ;;  %v612_v48 = vrot.slane %v610_v37, 7  ;;  %v396_v3 = vld [vmem:[#allocation2 + $0x5c] sm:$0xf]  ;;  %v348_v21 = vld [vmem:[#allocation2 + $0x60] sm:$0x1]  ;;  %v297_v37 = vld [vmem:[%s6575_s30 + $0x88] sm:$0xff] }
  0x38   : > { %v1177_v51 = vrot.slane %v1175_v39, 1  ;;  %v970_v52 = vld [vmem:[#allocation2 + $0x38] sm:$0xf]  ;;  %v607_v53 = vsel %vm6595_vm8, %v599_v14, %v606_v42  ;;  %v877_v54 = vsel %vm6540_vm3, %v608_v44, %v876_v32  ;;  %v618_v58 = vshrl.u32 %v6642_v55, 16  ;;  %v293_v14 = vld [vmem:[%s6575_s30 + $0x68] sm:$0xff]  ;;  %v296_v27 = vld [vmem:[%s6575_s30 + $0x80] sm:$0xff] }
  0x39   : > { %9839 = vst [vmem:[#allocation4_spill] sm:$0xff] %v6687_v47  ;;  %v1183_v60 = vshll.u32 %v6687_v47, 16  ;;  %v1187_v62 = vshrl.u32 %v6687_v47, 16  ;;  %875 = vst.msk [vmem:[#allocation2 + $0x40] sm:$0xf] %vm312_vm0, %v607_v53  ;;  %v615_v63 = vor.u32 %v613_v38, %v612_v48  ;;  %v616_v0 = vrot.slane %v612_v48, 4 }
  0x3a   : > { %878 = vst [vmem:[#allocation2 + $0x44] sm:$0x1] %v877_v54  ;;  %1337 = vrot.lane.b32.xlu1 %v6685_v45, %s6472_s8  ;;  %v6701_v5 = vsel %vm9831_vm9, %v1173_v46, %v1177_v51  ;;  %v1181_v6 = vor.u32 %v1179_v41, %v1177_v51  ;;  %v6703_v8 = vrot.slane %v618_v58, 7  ;;  %v621_v9 = vshll.u32 %v6642_v55, 16  ;;  %v351_v28 = vld [vmem:[#allocation2 + $0x6c] sm:$0x1] }
  0x3b   : > { %v971_v7 = vld [vmem:[#allocation2 + $0x3c] sm:$0xf]  ;;  %1339 = vrot.lane.b32.xlu0 %v6701_v5, %s6472_s8  ;;  %v1185_v10 = vrot.slane %v1183_v60, 1  ;;  %v346_v12 = vsel %vm6540_vm3, 0, %v345_v50  ;;  %v394_v13 = vsel %vm6556_vm5, 0, %v393_v59  ;;  %v6070_v55 = vpack.c.bf16 %v292_v2, %v292_v2  ;;  %v298_v38 = vld [vmem:[%s6575_s30 + $0x90] sm:$0xff] }
  0x3c   : > { %v6708_v11 = vcombine.low %v970_v52, %v971_v7  ;;  %v623_v16 = vor.u32 %v621_v9, %v6703_v8  ;;  %v879_v18 = vld [vmem:[#allocation2 + $0x48] sm:$0xf]  ;;  %347 = vst [vmem:[#allocation2 + $0x54] sm:$0x1] %v346_v12  ;;  %395 = vst [vmem:[#allocation2 + $0x50] sm:$0xf] %v394_v13  ;;  %v6071_v34 = vpack.c.bf16 %v293_v14, %v293_v14 }
  0x3d   : > { %v625_v19 = vrot.slane %v6703_v8, 4  ;;  %v397_v20 = vsel %vm6556_vm5, 0, %v396_v3  ;;  %v6721_v22 = vsel %vm9831_vm9, %v1181_v6, %v1185_v10  ;;  %v1189_v23 = vor.u32 %v1187_v62, %v1185_v10  ;;  %v299_v60 = vld [vmem:[%s6575_s30 + $0x98] sm:$0xff]  ;;  %v399_v3 = vld [vmem:[#allocation2 + $0x68] sm:$0xf]  ;;  %s6477_s19 = smov 24  }
  0x3e   : > { %v1191_v24 = vshll.u32 %v6708_v11, 16  ;;  %v1195_v25 = vshrl.u32 %v6708_v11, 16  ;;  %398 = vst [vmem:[#allocation2 + $0x5c] sm:$0xf] %v397_v20  ;;  %1341 = vrot.lane.b32.xlu1 %v6721_v22, %s6472_s8  ;;  %v624_v29 = vsel %vm6595_vm8, %v616_v0, %v623_v16  ;;  %v880_v61 = vsel %vm6556_vm5, %v615_v63, %v879_v18  ;;  %s6478_s20 = smov 28   ;;  %s6479_s21 = smov 32  }
  0x3f   : > { %v627_v31 = vshrl.u32 %v6070_v55, 16  ;;  %v630_v32 = vshll.u32 %v6070_v55, 16  ;;  %881 = vst [vmem:[#allocation2 + $0x48] sm:$0xf] %v880_v61  ;;  %882 = vst.msk [vmem:[#allocation2 + $0x4c] sm:$0xf] %vm312_vm0, %v624_v29  ;;  %v6072_v36 = vpack.c.bf16 %v294_v15, %v294_v15  ;;  %v6073_v42 = vpack.c.bf16 %v295_v26, %v295_v26 }
  0x40   : > { %v1193_v33 = vrot.slane %v1191_v24, 1  ;;  %v349_v35 = vsel %vm6540_vm3, 0, %v348_v21  ;;  %v972_v39 = vld [vmem:[#allocation2 + $0x40] sm:$0xf]  ;;  %v352_v44 = vsel %vm6540_vm3, 0, %v351_v28  ;;  %v6740_v46 = vpack.c.bf16 %v296_v27, %v296_v27  ;;  %s6480_s28 = smov 40  }
  0x41   : > { %v973_v40 = vld [vmem:[#allocation2 + $0x44] sm:$0xf]  ;;  %v629_v41 = vrot.slane %v627_v31, 7  ;;  %350 = vst [vmem:[#allocation2 + $0x60] sm:$0x1] %v349_v35  ;;  %v635_v52 = vshrl.u32 %v6071_v34, 16  ;;  %v6752_v6 = vpack.c.bf16 %v297_v37, %v297_v37  ;;  %v6754_v7 = vpack.c.bf16 %v298_v38, %v298_v38 }
  0x42   : > { %v6743_v48 = vsel %vm9831_vm9, %v1189_v23, %v1193_v33  ;;  %v6745_v50 = vcombine.low %v972_v39, %v973_v40  ;;  %v1197_v51 = vor.u32 %v1195_v25, %v1193_v33  ;;  %353 = vst [vmem:[#allocation2 + $0x6c] sm:$0x1] %v352_v44  ;;  %v638_v58 = vshll.u32 %v6071_v34, 16  ;;  %v402_v55 = vld [vmem:[#allocation2 + $0x74] sm:$0xf]  ;;  %v300_v40 = vld [vmem:[%s6575_s30 + $0xa0] sm:$0xff] }
  0x43   : > { %1343 = vrot.lane.b32.xlu0 %v6743_v48, %s6472_s8  ;;  %v632_v53 = vor.u32 %v630_v32, %v629_v41  ;;  %v633_v54 = vrot.slane %v629_v41, 4  ;;  %v644_v59 = vshrl.u32 %v6072_v36, 16  ;;  %v883_v0 = vld [vmem:[#allocation2 + $0x50] sm:$0x1]  ;;  %v886_v2 = vld [vmem:[#allocation2 + $0x54] sm:$0xf]  ;;  %v6760_v26 = vpack.c.bf16 %v299_v60, %v299_v60 }
  0x44   : > { %v1199_v62 = vshll.u32 %v6745_v50, 16  ;;  %v1203_v63 = vshrl.u32 %v6745_v50, 16  ;;  %v884_v8 = vsel %vm6540_vm3, %v625_v19, %v883_v0  ;;  %v637_v10 = vrot.slane %v635_v52, 7  ;;  %v354_v35 = vld [vmem:[#allocation2 + $0x78] sm:$0x1]  ;;  %v301_v60 = vld [vmem:[%s6575_s30 + $0xa8] sm:$0xff] }
  0x45   : > { %v887_v9 = vsel %vm6556_vm5, %v632_v53, %v886_v2  ;;  %v890_v12 = vld [vmem:[#allocation2 + $0x5c] sm:$0x1]  ;;  %v646_v13 = vrot.slane %v644_v59, 7  ;;  %885 = vst [vmem:[#allocation2 + $0x50] sm:$0x1] %v884_v8  ;;  %v647_v15 = vshll.u32 %v6072_v36, 16  ;;  %v6796_v8 = vpack.c.bf16 %v300_v40, %v300_v40 }
  0x46   : > { %v1201_v14 = vrot.slane %v1199_v62, 1  ;;  %888 = vst [vmem:[#allocation2 + $0x54] sm:$0xf] %v887_v9  ;;  %v652_v16 = vshrl.u32 %v6073_v42, 16  ;;  %v655_v18 = vshll.u32 %v6073_v42, 16  ;;  %v640_v23 = vor.u32 %v638_v58, %v637_v10  ;;  %v302_v62 = vld [vmem:[%s6575_s30 + $0xb0] sm:$0xff] }
  0x47   : > { %v974_v20 = vld [vmem:[#allocation2 + $0x48] sm:$0xf]  ;;  %v975_v21 = vld [vmem:[#allocation2 + $0x4c] sm:$0xf]  ;;  %v642_v24 = vrot.slane %v637_v10, 4  ;;  %v650_v25 = vrot.slane %v646_v13, 4  ;;  %v649_v29 = vor.u32 %v647_v15, %v646_v13 }
  0x48   : > { %v6763_v19 = vsel %vm9831_vm9, %v1197_v51, %v1201_v14  ;;  %v6765_v27 = vcombine.low %v974_v20, %v975_v21  ;;  %v1205_v28 = vor.u32 %v1203_v63, %v1201_v14  ;;  %v893_v61 = vld [vmem:[#allocation2 + $0x60] sm:$0xf]  ;;  %v641_v31 = vsel %vm6595_vm8, %v633_v54, %v640_v23  ;;  %v357_v23 = vld [vmem:[#allocation2 + $0x84] sm:$0x1]  ;;  %s6481_s11 = smov 48   ;;  %s6482_s14 = smov 56  }
  0x49   : > { %1345 = vrot.lane.b32.xlu1 %v6763_v19, %s6472_s8  ;;  %v891_v32 = vsel %vm6540_vm3, %v642_v24, %v890_v12  ;;  %v654_v33 = vrot.slane %v652_v16, 7  ;;  %v400_v34 = vsel %vm6556_vm5, 0, %v399_v3  ;;  %889 = vst.msk [vmem:[#allocation2 + $0x58] sm:$0xf] %vm312_vm0, %v641_v31  ;;  %v894_v38 = vsel %vm6556_vm5, %v649_v29, %v893_v61  ;;  %v900_v51 = vld [vmem:[#allocation2 + $0x6c] sm:$0xf] }
  0x4a   : > { %v1207_v36 = vshll.u32 %v6765_v27, 16  ;;  %v1211_v37 = vshrl.u32 %v6765_v27, 16  ;;  %892 = vst [vmem:[#allocation2 + $0x5c] sm:$0x1] %v891_v32  ;;  %401 = vst [vmem:[#allocation2 + $0x68] sm:$0xf] %v400_v34  ;;  %v6819_v32 = vpack.c.bf16 %v302_v62, %v302_v62 }
  0x4b   : > { %v661_v39 = vshrl.u32 %v6740_v46, 16  ;;  %v657_v41 = vor.u32 %v655_v18, %v654_v33  ;;  %895 = vst [vmem:[#allocation2 + $0x60] sm:$0xf] %v894_v38  ;;  %v659_v42 = vrot.slane %v654_v33, 4  ;;  %v664_v44 = vshll.u32 %v6740_v46, 16 }
  0x4c   : > { %v403_v52 = vsel %vm6556_vm5, 0, %v402_v55  ;;  %v1209_v53 = vrot.slane %v1207_v36, 1  ;;  %v669_v58 = vshrl.u32 %v6752_v6, 16  ;;  %v672_v59 = vshll.u32 %v6752_v6, 16  ;;  %v6789_v63 = vld [vmem:[#allocation2 + $0x50] sm:$0xf] }
  0x4d   : > { %v663_v54 = vrot.slane %v661_v39, 7  ;;  %404 = vst [vmem:[#allocation2 + $0x74] sm:$0xf] %v403_v52  ;;  %v977_v0 = vld [vmem:[#allocation2 + $0x54] sm:$0xf]  ;;  %v658_v2 = vsel %vm6595_vm8, %v650_v25, %v657_v41  ;;  %v355_v46 = vsel %vm6540_vm3, 0, %v354_v35 }
  0x4e   : > { %v678_v3 = vshrl.u32 %v6754_v7, 16  ;;  %v6799_v9 = vsel %vm9831_vm9, %v1205_v28, %v1209_v53  ;;  %v6802_v6 = vcombine.low %v6789_v63, %v977_v0  ;;  %v1213_v10 = vor.u32 %v1211_v37, %v1209_v53  ;;  %896 = vst.msk [vmem:[#allocation2 + $0x64] sm:$0xf] %vm312_vm0, %v658_v2  ;;  %356 = vst [vmem:[#allocation2 + $0x78] sm:$0x1] %v355_v46 }
  0x4f   : > { %v666_v12 = vor.u32 %v664_v44, %v663_v54  ;;  %1347 = vrot.lane.b32.xlu0 %v6799_v9, %s6472_s8  ;;  %v667_v13 = vrot.slane %v663_v54, 4  ;;  %v671_v14 = vrot.slane %v669_v58, 7  ;;  %v681_v16 = vshll.u32 %v6754_v7, 16  ;;  %v405_v24 = vld [vmem:[#allocation2 + $0x80] sm:$0xf] }
  0x50   : > { %v680_v15 = vrot.slane %v678_v3, 7  ;;  %v1215_v18 = vshll.u32 %v6802_v6, 16  ;;  %v1219_v55 = vshrl.u32 %v6802_v6, 16  ;;  %v686_v21 = vshrl.u32 %v6760_v26, 16  ;;  %v6813_v25 = vld [vmem:[#allocation2 + $0x58] sm:$0xf] }
  0x51   : > { %v901_v20 = vsel %vm6556_vm5, %v666_v12, %v900_v51  ;;  %v6815_v28 = vld [vmem:[#allocation2 + $0x5c] sm:$0xf]  ;;  %v897_v29 = vld [vmem:[#allocation2 + $0x68] sm:$0x1]  ;;  %v674_v61 = vor.u32 %v672_v59, %v671_v14  ;;  %v6817_v7 = vpack.c.bf16 %v301_v60, %v301_v60  ;;  %v676_v37 = vrot.slane %v671_v14, 4 }
  0x52   : > { %902 = vst [vmem:[#allocation2 + $0x6c] sm:$0xf] %v901_v20  ;;  %v683_v31 = vor.u32 %v681_v16, %v680_v15  ;;  %v1217_v33 = vrot.slane %v1215_v18, 1  ;;  %v6823_v34 = vcombine.low %v6813_v25, %v6815_v28  ;;  %v6825_v35 = vld [vmem:[#allocation2 + $0x60] sm:$0xf]  ;;  %v898_v36 = vsel %vm6540_vm3, %v659_v42, %v897_v29  ;;  %v303_v18 = vld [vmem:[%s6575_s30 + $0xb8] sm:$0xff] }
  0x53   : > { %v408_v38 = vld [vmem:[#allocation2 + $0x8c] sm:$0xf]  ;;  %899 = vst [vmem:[#allocation2 + $0x68] sm:$0x1] %v898_v36  ;;  %v675_v39 = vsel %vm6595_vm8, %v667_v13, %v674_v61  ;;  %v684_v41 = vrot.slane %v680_v15, 4  ;;  %v6831_v44 = vrot.slane %v686_v21, 7 }
  0x54   : > { %v904_v40 = vld [vmem:[#allocation2 + $0x74] sm:$0x1]  ;;  %v689_v51 = vshll.u32 %v6760_v26, 16  ;;  %v6835_v52 = vsel %vm9831_vm9, %v1213_v10, %v1217_v33  ;;  %v1221_v53 = vor.u32 %v1219_v55, %v1217_v33  ;;  %v1223_v54 = vshll.u32 %v6823_v34, 16  ;;  %903 = vst.msk [vmem:[#allocation2 + $0x70] sm:$0xf] %vm312_vm0, %v675_v39 }
  0x55   : > { %v1227_v42 = vshrl.u32 %v6823_v34, 16  ;;  %v360_v58 = vld [vmem:[#allocation2 + $0x90] sm:$0x1]  ;;  %1349 = vrot.lane.b32.xlu1 %v6835_v52, %s6472_s8  ;;  %v6842_v59 = vld [vmem:[#allocation2 + $0x64] sm:$0xf]  ;;  %v905_v60 = vsel %vm6540_vm3, %v676_v37, %v904_v40  ;;  %v358_v0 = vsel %vm6540_vm3, 0, %v357_v23  ;;  %v6081_v37 = vpack.c.bf16 %v303_v18, %v303_v18 }
  0x56   : > { %v691_v26 = vor.u32 %v689_v51, %v6831_v44  ;;  %v907_v62 = vld [vmem:[#allocation2 + $0x78] sm:$0xf]  ;;  %v406_v2 = vsel %vm6556_vm5, 0, %v405_v24  ;;  %v1225_v46 = vrot.slane %v1223_v54, 1  ;;  %v6853_v3 = vcombine.low %v6825_v35, %v6842_v59  ;;  %906 = vst [vmem:[#allocation2 + $0x74] sm:$0x1] %v905_v60 }
  0x57   : > { %v908_v10 = vsel %vm6556_vm5, %v683_v31, %v907_v62  ;;  %359 = vst [vmem:[#allocation2 + $0x84] sm:$0x1] %v358_v0  ;;  %407 = vst [vmem:[#allocation2 + $0x80] sm:$0xf] %v406_v2  ;;  %v693_v12 = vrot.slane %v6831_v44, 4  ;;  %v695_v14 = vshrl.u32 %v6796_v8, 16 }
  0x58   : > { %9840 = vst [vmem:[#allocation5_spill] sm:$0xff] %v6853_v3  ;;  %v692_v13 = vsel %vm6595_vm8, %v684_v41, %v691_v26  ;;  %909 = vst [vmem:[#allocation2 + $0x78] sm:$0xf] %v908_v10  ;;  %v698_v15 = vshll.u32 %v6796_v8, 16  ;;  %v409_v16 = vsel %vm6556_vm5, 0, %v408_v38  ;;  %v6866_v55 = vsel %vm9831_vm9, %v1221_v53, %v1225_v46  ;;  %v304_v40 = vld [vmem:[%s6575_s30 + $0xc0] sm:$0xff] }
  0x59   : > { %v1229_v20 = vor.u32 %v1227_v42, %v1225_v46  ;;  %v1231_v21 = vshll.u32 %v6853_v3, 16  ;;  %v6869_v23 = vld [vmem:[#allocation2 + $0x6c] sm:$0xf]  ;;  %v1235_v24 = vshrl.u32 %v6853_v3, 16  ;;  %910 = vst.msk [vmem:[#allocation2 + $0x7c] sm:$0xf] %vm312_vm0, %v692_v13  ;;  %1351 = vrot.lane.b32.xlu0 %v6866_v55, %s6472_s8  ;;  %v6897_v46 = vpack.c.bf16 %v304_v40, %v304_v40 }
  0x5a   : > { %410 = vst [vmem:[#allocation2 + $0x8c] sm:$0xf] %v409_v16  ;;  %v697_v8 = vrot.slane %v695_v14, 7  ;;  %v703_v29 = vshrl.u32 %v6817_v7, 16  ;;  %v706_v61 = vshll.u32 %v6817_v7, 16  ;;  %v361_v31 = vsel %vm6540_vm3, 0, %v360_v58 }
  0x5b   : > { %v1233_v33 = vrot.slane %v1231_v21, 1  ;;  %v6879_v36 = vld [vmem:[#allocation2 + $0x68] sm:$0xf]  ;;  %362 = vst [vmem:[#allocation2 + $0x90] sm:$0x1] %v361_v31  ;;  %v712_v38 = vshrl.u32 %v6819_v32, 16 }
  0x5c   : > { %v715_v39 = vshll.u32 %v6819_v32, 16  ;;  %v6886_v41 = vcombine.low %v6879_v36, %v6869_v23  ;;  %v6888_v44 = vld [vmem:[#allocation2 + $0x70] sm:$0xf]  ;;  %v700_v7 = vor.u32 %v698_v15, %v697_v8  ;;  %v701_v51 = vrot.slane %v697_v8, 4  ;;  %v411_v40 = vld [vmem:[#allocation2 + $0x98] sm:$0xf] }
  0x5d   : > { %v705_v53 = vrot.slane %v703_v29, 7  ;;  %v6891_v54 = vsel %vm9831_vm9, %v1229_v20, %v1233_v33  ;;  %v1237_v42 = vor.u32 %v1235_v24, %v1233_v33  ;;  %v714_v58 = vrot.slane %v712_v38, 7  ;;  %v985_v26 = vld [vmem:[#allocation2 + $0x74] sm:$0xf] }
  0x5e   : > { %v720_v60 = vshrl.u32 %v6081_v37, 16  ;;  %1353 = vrot.lane.b32.xlu1 %v6891_v54, %s6472_s8  ;;  %v1239_v32 = vshll.u32 %v6886_v41, 16  ;;  %v1243_v62 = vshrl.u32 %v6886_v41, 16  ;;  %v911_v0 = vld [vmem:[#allocation2 + $0x80] sm:$0x1]  ;;  %v6900_v10 = vcombine.low %v6888_v44, %v985_v26 }
  0x5f   : > { %v708_v2 = vor.u32 %v706_v61, %v705_v53  ;;  %v986_v13 = vld [vmem:[#allocation2 + $0x78] sm:$0xf]  ;;  %v912_v14 = vsel %vm6540_vm3, %v693_v12, %v911_v0  ;;  %v914_v15 = vld [vmem:[#allocation2 + $0x84] sm:$0xf]  ;;  %v710_v16 = vrot.slane %v705_v53, 4  ;;  %v717_v18 = vor.u32 %v715_v39, %v714_v58 }
  0x60   : > { %9841 = vst [vmem:[#allocation6_spill] sm:$0xff] %v6900_v10  ;;  %v1241_v20 = vrot.slane %v1239_v32, 1  ;;  %v987_v21 = vld [vmem:[#allocation2 + $0x7c] sm:$0xf]  ;;  %913 = vst [vmem:[#allocation2 + $0x80] sm:$0x1] %v912_v14  ;;  %v915_v24 = vsel %vm6556_vm5, %v700_v7, %v914_v15 }
  0x61   : > { %v709_v8 = vsel %vm6595_vm8, %v701_v51, %v708_v2  ;;  %v918_v29 = vld [vmem:[#allocation2 + $0x8c] sm:$0x1]  ;;  %v718_v61 = vrot.slane %v714_v58, 4  ;;  %v1247_v31 = vshll.u32 %v6900_v10, 16  ;;  %v6909_v33 = vcombine.low %v986_v13, %v987_v21  ;;  %916 = vst [vmem:[#allocation2 + $0x84] sm:$0xf] %v915_v24 }
  0x62   : > { %v1251_v12 = vshrl.u32 %v6900_v10, 16  ;;  %917 = vst.msk [vmem:[#allocation2 + $0x88] sm:$0xf] %vm312_vm0, %v709_v8  ;;  %v919_v38 = vsel %vm6540_vm3, %v710_v16, %v918_v29  ;;  %v363_v39 = vld [vmem:[#allocation2 + $0x9c] sm:$0x1]  ;;  %v6916_v7 = vsel %vm9831_vm9, %v1237_v42, %v1241_v20  ;;  %v1245_v51 = vor.u32 %v1243_v62, %v1241_v20  ;;  %v305_v42 = vld [vmem:[%s6575_s30 + $0xc8] sm:$0xff] }
  0x63   : > { %9842 = vst [vmem:[#allocation7_spill] sm:$0xff] %v6909_v33  ;;  %9843 = vst [vmem:[#allocation8_spill] sm:$0xff] %v6916_v7  ;;  %v6918_v53 = vrot.slane %v720_v60, 7  ;;  %v723_v58 = vshll.u32 %v6081_v37, 16  ;;  %v921_v32 = vld [vmem:[#allocation2 + $0x90] sm:$0xf]  ;;  %1355 = vrot.lane.b32.xlu0 %v6916_v7, %s6472_s8 }
  0x64   : > { %920 = vst [vmem:[#allocation2 + $0x8c] sm:$0x1] %v919_v38  ;;  %v1249_v26 = vrot.slane %v1247_v31, 1  ;;  %v1255_v0 = vshll.u32 %v6909_v33, 16  ;;  %v1259_v2 = vshrl.u32 %v6909_v33, 16  ;;  %v922_v13 = vsel %vm6556_vm5, %v717_v18, %v921_v32  ;;  %v306_v8 = vld [vmem:[%s6575_s30 + $0xd0] sm:$0xff] }
  0x65   : > { %v414_v62 = vld [vmem:[#allocation2 + $0xa4] sm:$0xf]  ;;  %v725_v60 = vor.u32 %v723_v58, %v6918_v53  ;;  %923 = vst [vmem:[#allocation2 + $0x90] sm:$0xf] %v922_v13  ;;  %v364_v37 = vsel %vm6540_vm3, 0, %v363_v39  ;;  %v412_v14 = vsel %vm6556_vm5, 0, %v411_v40  ;;  %v6083_v40 = vpack.c.bf16 %v305_v42, %v305_v42 }
  0x66   : > { %v727_v15 = vrot.slane %v6918_v53, 4  ;;  %v366_v16 = vld [vmem:[#allocation2 + $0xa8] sm:$0x1]  ;;  %v6934_v20 = vsel %vm9831_vm9, %v1245_v51, %v1249_v26  ;;  %v1253_v21 = vor.u32 %v1251_v12, %v1249_v26  ;;  %v1257_v18 = vrot.slane %v1255_v0, 1  ;;  %365 = vst [vmem:[#allocation2 + $0x9c] sm:$0x1] %v364_v37 }
  0x67   : > { %9844 = vst [vmem:[#allocation9_spill] sm:$0xff] %v6934_v20  ;;  %413 = vst [vmem:[#allocation2 + $0x98] sm:$0xf] %v412_v14  ;;  %v729_v24 = vshrl.u32 %v6897_v46, 16  ;;  %v307_v29 = vld [vmem:[%s6575_s30 + $0xd8] sm:$0xff]  ;;  %1357 = vrot.lane.b32.xlu1 %v6934_v20, %s6472_s8  ;;  %v726_v31 = vsel %vm6595_vm8, %v718_v61, %v725_v60  ;;  %v732_v38 = vshll.u32 %v6897_v46, 16  ;;  %v6084_v42 = vpack.c.bf16 %v306_v8, %v306_v8 }
  0x68   : > { %v415_v39 = vsel %vm6556_vm5, 0, %v414_v62  ;;  %v369_v12 = vld [vmem:[#allocation2 + $0xb4] sm:$0x1]  ;;  %v6947_v51 = vsel %vm9831_vm9, %v1253_v21, %v1257_v18  ;;  %v6949_v53 = vld [vmem:[#allocation2 + $0x80] sm:$0xf]  ;;  %v1261_v58 = vor.u32 %v1259_v2, %v1257_v18  ;;  %v367_v61 = vsel %vm6540_vm3, 0, %v366_v16 }
  0x69   : > { %9845 = vst [vmem:[#allocation10_spill] sm:$0xff] %v6947_v51  ;;  %9846 = vst [vmem:[#allocation11_spill] sm:$0xff] %v6949_v53  ;;  %v731_v32 = vrot.slane %v729_v24, 7  ;;  %1359 = vrot.lane.b32.xlu0 %v6947_v51, %s6472_s8  ;;  %v989_v46 = vld [vmem:[#allocation2 + $0x84] sm:$0xf]  ;;  %v737_v0 = vshrl.u32 %v6083_v40, 16  ;;  %v6085_v62 = vpack.c.bf16 %v307_v29, %v307_v29 }
  0x6a   : > { %924 = vst.msk [vmem:[#allocation2 + $0x94] sm:$0xf] %vm312_vm0, %v726_v31  ;;  %416 = vst [vmem:[#allocation2 + $0xa4] sm:$0xf] %v415_v39  ;;  %v990_v26 = vld [vmem:[#allocation2 + $0x88] sm:$0xf]  ;;  %v6957_v2 = vcombine.low %v6949_v53, %v989_v46 }
  0x6b   : > { %v740_v13 = vshll.u32 %v6083_v40, 16  ;;  %368 = vst [vmem:[#allocation2 + $0xa8] sm:$0x1] %v367_v61  ;;  %v991_v60 = vld [vmem:[#allocation2 + $0x8c] sm:$0xf]  ;;  %v734_v37 = vor.u32 %v732_v38, %v731_v32  ;;  %v735_v14 = vrot.slane %v731_v32, 4 }
  0x6c   : > { %9847 = vst [vmem:[#allocation12_spill] sm:$0xff] %v6957_v2  ;;  %v308_v21 = vld [vmem:[%s6575_s30 + $0xe0] sm:$0xff]  ;;  %v370_v16 = vsel %vm6540_vm3, 0, %v369_v12  ;;  %v6962_v18 = vcombine.low %v990_v26, %v991_v60  ;;  %v739_v24 = vrot.slane %v737_v0, 7  ;;  %v746_v31 = vshrl.u32 %v6084_v42, 16  ;;  %v309_v40 = vld [vmem:[%s6575_s30 + $0xe8] sm:$0xff] }
  0x6d   : > { %v749_v39 = vshll.u32 %v6084_v42, 16  ;;  %371 = vst [vmem:[#allocation2 + $0xb4] sm:$0x1] %v370_v16  ;;  %v1263_v8 = vshll.u32 %v6957_v2, 16  ;;  %v1267_v29 = vshrl.u32 %v6957_v2, 16  ;;  %v754_v46 = vshrl.u32 %v6085_v62, 16 }
  0x6e   : > { %9848 = vst [vmem:[#allocation13_spill] sm:$0xff] %v6962_v18  ;;  %v992_v61 = vld [vmem:[#allocation2 + $0x90] sm:$0xf]  ;;  %v757_v53 = vshll.u32 %v6085_v62, 16  ;;  %v1271_v38 = vshll.u32 %v6962_v18, 16  ;;  %v1275_v32 = vshrl.u32 %v6962_v18, 16  ;;  %v742_v26 = vor.u32 %v740_v13, %v739_v24 }
  0x6f   : > { %v925_v51 = vld [vmem:[#allocation2 + $0x98] sm:$0x1]  ;;  %v928_v12 = vld [vmem:[#allocation2 + $0x9c] sm:$0xf]  ;;  %v6086_v60 = vpack.c.bf16 %v308_v21, %v308_v21  ;;  %v1265_v0 = vrot.slane %v1263_v8, 1  ;;  %v744_v20 = vrot.slane %v739_v24, 4  ;;  %v6087_v13 = vpack.c.bf16 %v309_v40, %v309_v40 }
  0x70   : > { %v926_v42 = vsel %vm6540_vm3, %v727_v15, %v925_v51  ;;  %v929_v16 = vsel %vm6556_vm5, %v734_v37, %v928_v12  ;;  %v417_v2 = vld [vmem:[#allocation2 + $0xb0] sm:$0xf]  ;;  %v1273_v33 = vrot.slane %v1271_v38, 1  ;;  %v743_v62 = vsel %vm6595_vm8, %v735_v14, %v742_v26  ;;  %v420_v40 = vld [vmem:[#allocation2 + $0xbc] sm:$0xf] }
  0x71   : > { %v993_v10 = vld [vmem:[#allocation2 + $0x94] sm:$0xf]  ;;  %927 = vst [vmem:[#allocation2 + $0x98] sm:$0x1] %v926_v42  ;;  %930 = vst [vmem:[#allocation2 + $0x9c] sm:$0xf] %v929_v16  ;;  %v6976_v21 = vsel %vm9831_vm9, %v1261_v58, %v1265_v0  ;;  %v1269_v8 = vor.u32 %v1267_v29, %v1265_v0 }
  0x72   : > { %v932_v18 = vld [vmem:[#allocation2 + $0xa4] sm:$0x1]  ;;  %v748_v7 = vrot.slane %v746_v31, 7  ;;  %v6978_v15 = vcombine.low %v992_v61, %v993_v10  ;;  %931 = vst.msk [vmem:[#allocation2 + $0xa0] sm:$0xf] %vm312_vm0, %v743_v62  ;;  %1361 = vrot.lane.b32.xlu1 %v6976_v21, %s6472_s8  ;;  %v756_v31 = vrot.slane %v754_v46, 7  ;;  %v1277_v10 = vor.u32 %v1275_v32, %v1273_v33 }
  0x73   : > { %v933_v51 = vsel %vm6540_vm3, %v744_v20, %v932_v18  ;;  %v935_v37 = vld [vmem:[#allocation2 + $0xa8] sm:$0xf]  ;;  %v6986_v58 = vsel %vm9831_vm9, %v1269_v8, %v1273_v33  ;;  %v418_v61 = vsel %vm6556_vm5, 0, %v417_v2  ;;  %v372_v20 = vld [vmem:[#allocation2 + $0xc0] sm:$0x1]  ;;  %v310_v46 = vld [vmem:[%s6575_s30 + $0xf0] sm:$0xff] }
  0x74   : > { %934 = vst [vmem:[#allocation2 + $0xa4] sm:$0x1] %v933_v51  ;;  %v751_v14 = vor.u32 %v749_v39, %v748_v7  ;;  %v752_v24 = vrot.slane %v748_v7, 4  ;;  %v1279_v29 = vshll.u32 %v6978_v15, 16  ;;  %1363 = vrot.lane.b32.xlu0 %v6986_v58, %s6472_s8  ;;  %v1283_v18 = vshrl.u32 %v6978_v15, 16 }
  0x75   : > { %v759_v38 = vor.u32 %v757_v53, %v756_v31  ;;  %419 = vst [vmem:[#allocation2 + $0xb0] sm:$0xf] %v418_v61  ;;  %v763_v39 = vshrl.u32 %v6086_v60, 16  ;;  %v766_v33 = vshll.u32 %v6086_v60, 16  ;;  %v421_v32 = vsel %vm6556_vm5, 0, %v420_v40 }
  0x76   : > { %v936_v7 = vsel %vm6556_vm5, %v751_v14, %v935_v37  ;;  %v1281_v12 = vrot.slane %v1279_v29, 1  ;;  %v771_v2 = vshrl.u32 %v6087_v13, 16  ;;  %v942_v42 = vld [vmem:[#allocation2 + $0xb4] sm:$0xf]  ;;  %422 = vst [vmem:[#allocation2 + $0xbc] sm:$0xf] %v421_v32  ;;  %v6088_v14 = vpack.c.bf16 %v310_v46, %v310_v46 }
  0x77   : > { %937 = vst [vmem:[#allocation2 + $0xa8] sm:$0xf] %v936_v7  ;;  %v760_v26 = vsel %vm6595_vm8, %v752_v24, %v759_v38  ;;  %v765_v0 = vrot.slane %v763_v39, 7  ;;  %v774_v53 = vshll.u32 %v6087_v13, 16  ;;  %v373_v16 = vsel %vm6540_vm3, 0, %v372_v20 }
  0x78   : > { %v7004_v62 = vsel %vm9831_vm9, %v1277_v10, %v1281_v12  ;;  %v994_v8 = vld [vmem:[#allocation2 + $0x98] sm:$0xf]  ;;  %v995_v51 = vld [vmem:[#allocation2 + $0x9c] sm:$0xf]  ;;  %938 = vst.msk [vmem:[#allocation2 + $0xac] sm:$0xf] %vm312_vm0, %v760_v26  ;;  %v1285_v13 = vor.u32 %v1283_v18, %v1281_v12 }
  0x79   : > { %9849 = vst [vmem:[#allocation14_spill] sm:$0xff] %v7004_v62  ;;  %v761_v60 = vrot.slane %v756_v31, 4  ;;  %v773_v37 = vrot.slane %v771_v2, 7  ;;  %374 = vst [vmem:[#allocation2 + $0xc0] sm:$0x1] %v373_v16  ;;  %1365 = vrot.lane.b32.xlu1 %v7004_v62, %s6472_s8  ;;  %v7009_v24 = vcombine.low %v994_v8, %v995_v51  ;;  %v768_v29 = vor.u32 %v766_v33, %v765_v0 }
  0x7a   : > { %v996_v40 = vld [vmem:[#allocation2 + $0xa0] sm:$0xf]  ;;  %v769_v61 = vrot.slane %v765_v0, 4  ;;  %v780_v7 = vshrl.u32 %v6088_v14, 16  ;;  %v783_v39 = vshll.u32 %v6088_v14, 16  ;;  %vm1379_vm10 = vcmask 1046528  }
  0x7b   : > { %v997_v20 = vld [vmem:[#allocation2 + $0xa4] sm:$0xf]  ;;  %v776_v10 = vor.u32 %v774_v53, %v773_v37  ;;  %v778_v38 = vrot.slane %v773_v37, 4  ;;  %v1287_v32 = vshll.u32 %v7009_v24, 16  ;;  %v1291_v46 = vshrl.u32 %v7009_v24, 16 }
  0x7c   : > { %v7012_v31 = vcombine.low %v996_v40, %v997_v20  ;;  %v943_v2 = vsel %vm6556_vm5, %v768_v29, %v942_v42  ;;  %v939_v26 = vld [vmem:[#allocation2 + $0xb0] sm:$0x1]  ;;  %v7019_v12 = vrot.slane %v780_v7, 7  ;;  %vm2549_vm11 = vcmask 1041408  }
  0x7d   : > { %944 = vst [vmem:[#allocation2 + $0xb4] sm:$0xf] %v943_v2  ;;  %v777_v18 = vsel %vm6595_vm8, %v769_v61, %v776_v10  ;;  %v1289_v33 = vrot.slane %v1287_v32, 1  ;;  %v940_v16 = vsel %vm6540_vm3, %v761_v60, %v939_v26  ;;  %v946_v42 = vld [vmem:[#allocation2 + $0xbc] sm:$0x1]  ;;  %vm2088_vm12 = vcmask 31744  }
  0x7e   : > { %9850 = vst [vmem:[#allocation15_spill] sm:$0xff] %v7012_v31  ;;  %v1295_v0 = vshll.u32 %v7012_v31, 16  ;;  %v998_v53 = vld [vmem:[#allocation2 + $0xa8] sm:$0xf]  ;;  %945 = vst.msk [vmem:[#allocation2 + $0xb8] sm:$0xf] %vm312_vm0, %v777_v18  ;;  %v785_v51 = vor.u32 %v783_v39, %v7019_v12  ;;  %v947_v61 = vsel %vm6540_vm3, %v778_v38, %v946_v42 }
  0x7f   : > { %v1299_v8 = vshrl.u32 %v7012_v31, 16  ;;  %941 = vst [vmem:[#allocation2 + $0xb0] sm:$0x1] %v940_v16  ;;  %v7028_v37 = vsel %vm9831_vm9, %v1285_v13, %v1289_v33  ;;  %v1293_v14 = vor.u32 %v1291_v46, %v1289_v33  ;;  %v999_v29 = vld [vmem:[#allocation2 + $0xac] sm:$0xf]  ;;  %vm9830_vm13 = vcmask 64512  }
  0x80   : > { %9851 = vst [vmem:[#allocation16_spill] sm:$0xff] %v7028_v37  ;;  %v1297_v40 = vrot.slane %v1295_v0, 1  ;;  %v949_v20 = vld [vmem:[#allocation2 + $0xc0] sm:$0xf]  ;;  %1367 = vrot.lane.b32.xlu0 %v7028_v37, %s6472_s8  ;;  %v7034_v60 = vcombine.low %v998_v53, %v999_v29  ;;  %948 = vst [vmem:[#allocation2 + $0xbc] sm:$0x1] %v947_v61 }
  0x81   : > { %v950_v10 = vsel %vm6556_vm5, %v785_v51, %v949_v20  ;;  %vm9829_vm14 = vcmask 97280   ;;  %vm2235_vm15 = vcmask 130048   ;;  %vm2284_vm1 = vcmask 162816  }
  0x82   : > { %9852 = vst [vmem:[#allocation17_spill] sm:$0xff] %v7034_v60  ;;  %v7039_v7 = vsel %vm9831_vm9, %v1293_v14, %v1297_v40  ;;  %951 = vst [vmem:[#allocation2 + $0xc0] sm:$0xf] %v950_v10  ;;  %v1301_v13 = vor.u32 %v1299_v8, %v1297_v40  ;;  %v1303_v38 = vshll.u32 %v7034_v60, 16  ;;  %v1307_v46 = vshrl.u32 %v7034_v60, 16  ;;  %v7061_v10 = vld [vmem:[#allocation2] sm:$0xff]  }
  0x83   : > { %9853 = vst [vmem:[#allocation18_spill] sm:$0xff] %v7039_v7  ;;  %1369 = vrot.lane.b32.xlu1 %v7039_v7, %s6472_s8  ;;  %vm2382_vm7 = vcmask 228352   ;;  %vm2500_vm6 = vcmask 293888  }
  0x84   : > { %v1001_v39 = vld [vmem:[#allocation2 + $0xb4] sm:$0xf]  ;;  %v1305_v32 = vrot.slane %v1303_v38, 1 }
  0x85   : > { %v1002_v26 = vld [vmem:[#allocation2 + $0xb8] sm:$0xf] }
  0x86   : > { %v1000_v2 = vld [vmem:[#allocation2 + $0xb0] sm:$0xf]  ;;  %v7046_v18 = vsel %vm9831_vm9, %v1301_v13, %v1305_v32  ;;  %v1309_v53 = vor.u32 %v1307_v46, %v1305_v32  ;;  %v1380_v13 = vrot.slane %v7061_v10, 1  ;;  %v1381_v46 = vrot.slane %v6637_v49, 1 }
  0x87   : > { %9854 = vst [vmem:[#allocation19_spill] sm:$0xff] %v7046_v18  ;;  %v7048_v33 = vcombine.low %v1000_v2, %v1001_v39  ;;  %1371 = vrot.lane.b32.xlu0 %v7046_v18, %s6472_s8  ;;  %v1003_v0 = vld [vmem:[#allocation2 + $0xbc] sm:$0xf] }
  0x88   : > { %v7053_v8 = vcombine.low %v1002_v26, %v1003_v0 }
  0x89   : > { %9855 = vst [vmem:[#allocation20_spill] sm:$0xff] %v7048_v33  ;;  %v1311_v16 = vshll.u32 %v7048_v33, 16  ;;  %v1315_v42 = vshrl.u32 %v7048_v33, 16  ;;  %v1004_v51 = vld [vmem:[#allocation2 + $0xc0] sm:$0xf] }
  0x8a   : > { %9856 = vst [vmem:[#allocation21_spill] sm:$0xff] %v7053_v8  ;;  %v7056_v14 = vcombine.low %v1004_v51, %v1004_v51  ;;  %v1319_v29 = vshll.u32 %v7053_v8, 16  ;;  %v1323_v61 = vshrl.u32 %v7053_v8, 16  ;;  %v1385_v51 = vrot.slane %v6646_v57, 1  ;;  %v6425_v33 = vld [vmem:[#allocation2 + $0x1c] sm:$0xf] }
  0x8b   : > { %v1313_v40 = vrot.slane %v1311_v16, 1  ;;  %v1383_v16 = vrot.slane %v6644_v56, 1 }
  0x8c   : > { %9857 = vst [vmem:[#allocation22_spill] sm:$0xff] %v7056_v14  ;;  %v1327_v20 = vshll.u32 %v7056_v14, 16  ;;  %v1321_v32 = vrot.slane %v1319_v29, 1  ;;  %v1387_v29 = vrot.slane %v6661_v17, 1  ;;  %v6423_v14 = vld [vmem:[#allocation2 + $0x14] sm:$0xf] }
  0x8d   : > { %v7065_v38 = vsel %vm9831_vm9, %v1309_v53, %v1313_v40  ;;  %v1317_v39 = vor.u32 %v1315_v42, %v1313_v40  ;;  %v1382_v42 = vsel %vm1379_vm10, %v1380_v13, %v1381_v46  ;;  %v1384_v40 = vsel %vm1379_vm10, %v1381_v46, %v1383_v16 }
  0x8e   : > { %9858 = vst [vmem:[#allocation23_spill] sm:$0xff] %v7065_v38  ;;  %1373 = vrot.lane.b32.xlu1 %v7065_v38, %s6472_s8  ;;  %v1329_v2 = vrot.slane %v1327_v20, 1  ;;  %v7073_v0 = vor.u32 %v1323_v61, %v1321_v32  ;;  %v1386_v61 = vsel %vm1379_vm10, %v1383_v16, %v1385_v51  ;;  %v1389_v20 = vrot.slane %v6673_v30, 1 }
  0x8f   : > { %v7071_v26 = vsel %vm9831_vm9, %v1317_v39, %v1321_v32  ;;  %v7090_v39 = vsel %vm1379_vm10, %v1385_v51, %v1387_v29  ;;  %v1391_v13 = vrot.slane %v6687_v47, 1  ;;  %v1393_v46 = vrot.slane %v6708_v11, 1  ;;  %v6421_v51 = vld [vmem:[#allocation2 + $0xc] sm:$0xf] }
  0x90   : > { %9859 = vst [vmem:[#allocation24_spill] sm:$0xff] %v7071_v26  ;;  %9860 = vst [vmem:[#allocation25_spill] sm:$0xff] %v7073_v0  ;;  %1375 = vrot.lane.b32.xlu0 %v7071_v26, %s6472_s8  ;;  %v1330_v53 = vsel %vm9831_vm9, %v7073_v0, %v1329_v2  ;;  %v7095_v32 = vsel %vm1379_vm10, %v1387_v29, %v1389_v20  ;;  %v1395_v16 = vrot.slane %v6745_v50, 1  ;;  %v6424_v0 = vld [vmem:[#allocation2 + $0x18] sm:$0xf]  ;;  %v1401_v38 = vrot.slane %v6823_v34, 1 }
  0x91   : > { %v7101_v2 = vsel %vm1379_vm10, %v1389_v20, %v1391_v13  ;;  %v1399_v20 = vrot.slane %v6802_v6, 1  ;;  %v5848_v26 = vcombine.low %v6423_v14, %v6424_v0  ;;  %v6426_v14 = vld [vmem:[#allocation2 + $0x20] sm:$0xf] }
  0x92   : > { %1377 = vrot.lane.b32.xlu1 %v1330_v53, %s6472_s8  ;;  %v7107_v53 = vsel %vm1379_vm10, %v1391_v13, %v1393_v46  ;;  %v7128_v0 = vcombine.low %v6425_v33, %v6426_v14 }
  0x93   : > { %v1564_v8 = vshll.u32 %v5848_v26, 16  ;;  %v1568_v31 = vshrl.u32 %v5848_v26, 16  ;;  %v1801_v62 = vrot.slane %v5848_v26, 1 }
  0x94   : > { %1429 = vrot.lane.b32.xlu0 %v1382_v42, %s6473_s9  ;;  %v1397_v42 = vrot.slane %v6765_v27, 1  ;;  %v1572_v33 = vshll.u32 %v7128_v0, 16 }
  0x95   : > { %v1566_v60 = vrot.slane %v1564_v8, 1  ;;  %v6371_v8 = vld [vmem:[%s9789_s1 + $0x8] sm:$0xff]  }
  0x96   : > { %1431 = vrot.lane.b32.xlu1 %v1384_v40, %s6473_s9  ;;  %v6422_v40 = vld [vmem:[#allocation2 + $0x10] sm:$0xf]  ;;  %v7119_v13 = vsel %vm1379_vm10, %v1395_v16, %v1397_v42  ;;  %v1574_v37 = vrot.slane %v1572_v33, 1 }
  0x97   : > { %v5847_v29 = vcombine.low %v6421_v51, %v6422_v40  ;;  %v9823_v40 = vrot.slane %v6853_v3, 1  ;;  %v1570_v14 = vor.u32 %v1568_v31, %v1566_v60  ;;  %v1803_v31 = vrot.slane %v7128_v0, 1 }
  0x98   : > { %1433 = vrot.lane.b32.xlu0 %v1386_v61, %s6473_s9  ;;  %v7113_v61 = vsel %vm1379_vm10, %v1393_v46, %v1395_v16  ;;  %v7125_v46 = vsel %vm1379_vm10, %v1397_v42, %v1399_v20  ;;  %v7133_v16 = vsel %vm1379_vm10, %v1399_v20, %v1401_v38  ;;  %v6370_v20 = vld [vmem:[%s9789_s1] sm:$0xff]  }
  0x99   : > { %v1559_v51 = vshll.u32 %v5847_v29, 16  ;;  %v1557_v18 = vshrl.u32 %v5847_v29, 16  ;;  %v7140_v42 = vsel %vm1379_vm10, %v1401_v38, %v9823_v40  ;;  %6210 = vmatprep.subr.bf16.mxu0 %v6370_v20  ;;  %v1800_v40 = vrot.slane %v5847_v29, 1 }
  0x9a   : > { %1435 = vrot.lane.b32.xlu1 %v7090_v39, %s6473_s9  ;;  %6211 = vmatpush3.bf16.msra.mxu0 %v6370_v20  ;;  %v6428_v20 = vld [vmem:[#allocation2 + $0x28] sm:$0xf] }
  0x9b   : > { %v1561_v7 = vrot.slane %v1559_v51, 1  ;;  %6212 = vmatprep.subr.bf16.mxu0 %v6371_v8  ;;  %v1802_v33 = vsel %vm1379_vm10, %v1800_v40, %v1801_v62 }
  0x9c   : > { %1437 = vrot.lane.b32.xlu0 %v7095_v32, %s6473_s9 }
  0x9d   : > { %v1562_v51 = vor.u32 %v1561_v7, %v1557_v18  ;;  %v1575_v7 = vsel %vm9831_vm9, %v1570_v14, %v1574_v37  ;;  %v6372_v18 = vld [vmem:[%s9789_s1 + $0x10] ss:$0 sps:$4 sm:$0x33]   ;;  %v6429_v14 = vld [vmem:[#allocation2 + $0x2c] sm:$0xf] }
  0x9e   : > { %1439 = vrot.lane.b32.xlu1 %v7101_v2, %s6473_s9  ;;  %6213 = vmatpush3.bf16.msra.mxu0 %v6371_v8  ;;  %v6430_v8 = vld [vmem:[#allocation2 + $0x30] sm:$0xf] }
  0x9f   : > { %v1567_v38 = vsel %vm9831_vm9, %v1562_v51, %v1566_v60  ;;  %6322 = vmatprep.subr.msk.bf16.mxu0 %vm2549_vm11, %v6372_v18  ;;  %v2551_v60 = vsel %vm2549_vm11, %v6372_v18, 0  ;;  %vm2431_vm11 = vcmask 261120  }
  0xa0   : > { %1441 = vrot.lane.b32.xlu0 %v7107_v53, %s6473_s9 }
  0xa2   : > { %1443 = vrot.lane.b32.xlu1 %v7113_v61, %s6473_s9  ;;  %6215 = vmatpush3.bf16.msra.mxu0 %v2551_v60 }
  0xa4   : > { %1445 = vrot.lane.b32.xlu0 %v7119_v13, %s6473_s9  ;;  %v7181_v60 = vpop.permute.xlu0 %1331 }
  0xa6   : > { %1447 = vrot.lane.b32.xlu1 %v7125_v46, %s6473_s9 }
  0xa8   : > { %1449 = vrot.lane.b32.xlu0 %v7133_v16, %s6473_s9 }
  0xaa   : > { %1451 = vrot.lane.b32.xlu1 %v7140_v42, %s6473_s9 }
  0xac   : > { %1505 = vrot.lane.b32.xlu0 %v5847_v29, %s6474_s12  ;;  %v6427_v29 = vld [vmem:[#allocation2 + $0x24] sm:$0xf] }
  0xad   : > { %v5850_v51 = vcombine.low %v6427_v29, %v6428_v20 }
  0xae   : > { %1507 = vrot.lane.b32.xlu1 %v5848_v26, %s6474_s12  ;;  %v1804_v26 = vsel %vm1379_vm10, %v1801_v62, %v1803_v31  ;;  %v7171_v62 = vcombine.low %v6429_v14, %v6430_v8  ;;  %v7191_v14 = vpop.permute.xlu0 %1333 }
  0xaf   : > { %v1580_v40 = vshll.u32 %v5850_v51, 16  ;;  %v1584_v18 = vshrl.u32 %v5850_v51, 16 }
  0xb0   : > { %1752 = vrot.lane.b32.xlu0 %v1567_v38, %s6475_s15  ;;  %v1576_v38 = vshrl.u32 %v7128_v0, 16 }
  0xb2   : > { %1754 = vrot.lane.b32.xlu1 %v1575_v7, %s6475_s15  ;;  %v1582_v7 = vrot.slane %v1580_v40, 1  ;;  %v1805_v40 = vrot.slane %v5850_v51, 1 }
  0xb4   : > { %1849 = vrot.lane.b32.xlu0 %v1802_v33, %s6476_s18  ;;  %v1588_v33 = vshll.u32 %v7171_v62, 16 }
  0xb6   : > { %1851 = vrot.lane.b32.xlu1 %v1804_v26, %s6476_s18  ;;  %v1578_v26 = vor.u32 %v1576_v38, %v1574_v37  ;;  %v1590_v29 = vrot.slane %v1588_v33, 1  ;;  %v1807_v37 = vrot.slane %v7171_v62, 1  ;;  %v7202_v38 = vpop.permute.xlu0 %1339 }
  0xb8   : > { %1904 = vrot.lane.b32.xlu0 %v6646_v57, %s6477_s19  ;;  %v1583_v20 = vsel %vm9831_vm9, %v1578_v26, %v1582_v7  ;;  %v1808_v8 = vsel %vm1379_vm10, %v1805_v40, %v1807_v37 }
  0xba   : > { %1906 = vrot.lane.b32.xlu1 %v6661_v17, %s6477_s19 }
  0xbc   : > { %1984 = vrot.lane.b32.xlu0 %v6685_v45, %s6478_s20  ;;  %v1586_v45 = vor.u32 %v1584_v18, %v1582_v7  ;;  %v6432_v7 = vld [vmem:[#allocation2 + $0x38] sm:$0xf] }
  0xbe   : > { %1986 = vrot.lane.b32.xlu1 %v6701_v5, %s6478_s20  ;;  %v7187_v5 = vpop.permute.xlu1 %1335 }
  0xc0   : > { %2040 = vrot.lane.b32.xlu0 %v7090_v39, %s6479_s21  ;;  %v1591_v39 = vsel %vm9831_vm9, %v1586_v45, %v1590_v29  ;;  %v6433_v45 = vld [vmem:[#allocation2 + $0x3c] sm:$0xf] }
  0xc2   : > { %2042 = vrot.lane.b32.xlu1 %v7095_v32, %s6479_s21  ;;  %v1806_v32 = vsel %vm1379_vm10, %v1803_v31, %v1805_v40  ;;  %v7211_v31 = vpop.permute.xlu0 %1343 }
  0xc3   : > { %9861 = vst [vmem:[#allocation26_spill] sm:$0xff] %v7211_v31 }
  0xc4   : > { %1509 = vrot.lane.b32.xlu0 %v7128_v0, %s6474_s12  ;;  %v7198_v0 = vpop.permute.xlu1 %1337 }
  0xc6   : > { %1511 = vrot.lane.b32.xlu1 %v5850_v51, %s6474_s12  ;;  %v6431_v51 = vld [vmem:[#allocation2 + $0x34] sm:$0xf] }
  0xc7   : > { %v5852_v18 = vcombine.low %v6431_v51, %v6432_v7 }
  0xc8   : > { %1756 = vrot.lane.b32.xlu0 %v1583_v20, %s6475_s15  ;;  %v7207_v33 = vpop.permute.xlu1 %1341  ;;  %v6434_v20 = vld [vmem:[#allocation2 + $0x40] sm:$0xf] }
  0xc9   : > { %v1596_v26 = vshll.u32 %v5852_v18, 16  ;;  %v7213_v40 = vcombine.low %v6433_v45, %v6434_v20  ;;  %v1600_v51 = vshrl.u32 %v5852_v18, 16 }
  0xca   : > { %1758 = vrot.lane.b32.xlu1 %v1591_v39, %s6475_s15  ;;  %v1592_v39 = vshrl.u32 %v7171_v62, 16 }
  0xcb   : > { %v1604_v7 = vshll.u32 %v7213_v40, 16 }
  0xcc   : > { %1853 = vrot.lane.b32.xlu0 %v1806_v32, %s6476_s18  ;;  %v7220_v32 = vpop.permute.xlu1 %1345  ;;  %v1594_v45 = vor.u32 %v1592_v39, %v1590_v29  ;;  %v1811_v29 = vrot.slane %v7213_v40, 1 }
  0xcd   : > { %9862 = vst [vmem:[#allocation27_spill] sm:$0xff] %v7220_v32  ;;  %v1606_v20 = vrot.slane %v1604_v7, 1  ;;  %v1809_v32 = vrot.slane %v5852_v18, 1 }
  0xce   : > { %1855 = vrot.lane.b32.xlu1 %v1808_v8, %s6476_s18  ;;  %v1598_v8 = vrot.slane %v1596_v26, 1 }
  0xcf   : > { %v1812_v39 = vsel %vm1379_vm10, %v1809_v32, %v1811_v29 }
  0xd0   : > { %1908 = vrot.lane.b32.xlu0 %v6673_v30, %s6477_s19  ;;  %v1599_v26 = vsel %vm9831_vm9, %v1594_v45, %v1598_v8 }
  0xd2   : > { %1910 = vrot.lane.b32.xlu1 %v6687_v47, %s6477_s19  ;;  %v7225_v47 = vpop.permute.xlu0 %1347 }
  0xd4   : > { %1988 = vrot.lane.b32.xlu0 %v6721_v22, %s6478_s20  ;;  %v1602_v22 = vor.u32 %v1600_v51, %v1598_v8  ;;  %v6436_v51 = vld [vmem:[#allocation2 + $0x48] sm:$0xf] }
  0xd6   : > { %1990 = vrot.lane.b32.xlu1 %v6743_v48, %s6478_s20  ;;  %v7231_v48 = vpop.permute.xlu1 %1349  ;;  %v7235_v31 = vpop.permute.xlu0 %1351 }
  0xd8   : > { %2044 = vrot.lane.b32.xlu0 %v7101_v2, %s6479_s21  ;;  %v1607_v2 = vsel %vm9831_vm9, %v1602_v22, %v1606_v20  ;;  %v6437_v22 = vld [vmem:[#allocation2 + $0x4c] sm:$0xf] }
  0xda   : > { %2046 = vrot.lane.b32.xlu1 %v7107_v53, %s6479_s21  ;;  %v1810_v53 = vsel %vm1379_vm10, %v1807_v37, %v1809_v32  ;;  %v7246_v8 = vpop.permute.xlu0 %1355 }
  0xdb   : > { %9863 = vst [vmem:[#allocation28_spill] sm:$0xff] %v7246_v8 }
  0xdc   : > { %1513 = vrot.lane.b32.xlu0 %v7171_v62, %s6474_s12  ;;  %v7242_v62 = vpop.permute.xlu1 %1353 }
  0xde   : > { %1515 = vrot.lane.b32.xlu1 %v5852_v18, %s6474_s12  ;;  %v6435_v18 = vld [vmem:[#allocation2 + $0x44] sm:$0xf]  ;;  %v7255_v37 = vpop.permute.xlu0 %1359 }
  0xdf   : > { %v5854_v7 = vcombine.low %v6435_v18, %v6436_v51  ;;  %9865 = vst [vmem:[#allocation30_spill] sm:$0xff] %v7255_v37 }
  0xe0   : > { %1760 = vrot.lane.b32.xlu0 %v1599_v26, %s6475_s15  ;;  %v7251_v45 = vpop.permute.xlu1 %1357  ;;  %v7258_v26 = vcombine.low %v6437_v22, %v6789_v63 }
  0xe1   : > { %9864 = vst [vmem:[#allocation29_spill] sm:$0xff] %v7251_v45  ;;  %v1612_v32 = vshll.u32 %v5854_v7, 16  ;;  %v1616_v18 = vshrl.u32 %v5854_v7, 16 }
  0xe2   : > { %1762 = vrot.lane.b32.xlu1 %v1607_v2, %s6475_s15  ;;  %v1608_v2 = vshrl.u32 %v7213_v40, 16  ;;  %v1620_v51 = vshll.u32 %v7258_v26, 16 }
  0xe4   : > { %1857 = vrot.lane.b32.xlu0 %v1810_v53, %s6476_s18  ;;  %v7265_v53 = vpop.permute.xlu1 %1361  ;;  %v1610_v63 = vor.u32 %v1608_v2, %v1606_v20  ;;  %v1622_v22 = vrot.slane %v1620_v51, 1  ;;  %v1815_v20 = vrot.slane %v7258_v26, 1 }
  0xe5   : > { %9866 = vst [vmem:[#allocation31_spill] sm:$0xff] %v7265_v53  ;;  %v1813_v53 = vrot.slane %v5854_v7, 1 }
  0xe6   : > { %1859 = vrot.lane.b32.xlu1 %v1812_v39, %s6476_s18  ;;  %v1614_v39 = vrot.slane %v1612_v32, 1  ;;  %v7270_v37 = vpop.permute.xlu0 %1363 }
  0xe7   : > { %9867 = vst [vmem:[#allocation32_spill] sm:$0xff] %v7270_v37  ;;  %v1816_v2 = vsel %vm1379_vm10, %v1813_v53, %v1815_v20 }
  0xe8   : > { %1912 = vrot.lane.b32.xlu0 %v6708_v11, %s6477_s19  ;;  %v1615_v32 = vsel %vm9831_vm9, %v1610_v63, %v1614_v39  ;;  %v7305_v63 = vcombine.low %v6815_v28, %v6825_v35 }
  0xea   : > { %1914 = vrot.lane.b32.xlu1 %v6745_v50, %s6477_s19 }
  0xec   : > { %1992 = vrot.lane.b32.xlu0 %v6763_v19, %s6478_s20  ;;  %v1618_v19 = vor.u32 %v1616_v18, %v1614_v39 }
  0xee   : > { %1994 = vrot.lane.b32.xlu1 %v6799_v9, %s6478_s20  ;;  %v7276_v9 = vpop.permute.xlu1 %1365 }
  0xef   : > { %9868 = vst [vmem:[#allocation33_spill] sm:$0xff] %v7276_v9 }
  0xf0   : > { %2048 = vrot.lane.b32.xlu0 %v7113_v61, %s6479_s21  ;;  %v1623_v61 = vsel %vm9831_vm9, %v1618_v19, %v1622_v22 }
  0xf2   : > { %2050 = vrot.lane.b32.xlu1 %v7119_v13, %s6479_s21  ;;  %v7280_v45 = vpop.permute.xlu0 %1367  ;;  %v1814_v13 = vsel %vm1379_vm10, %v1811_v29, %v1813_v53 }
  0xf3   : > { %9869 = vst [vmem:[#allocation34_spill] sm:$0xff] %v7280_v45 }
  0xf4   : > { %1517 = vrot.lane.b32.xlu0 %v7213_v40, %s6474_s12 }
  0xf5   : > { %v7287_v40 = vpop.permute.xlu1 %1369 }
  0xf6   : > { %1519 = vrot.lane.b32.xlu1 %v5854_v7, %s6474_s12  ;;  %9870 = vst [vmem:[#allocation35_spill] sm:$0xff] %v7287_v40  ;;  %v6438_v7 = vld [vmem:[#allocation2 + $0x54] sm:$0xf] }
  0xf7   : > { %v5856_v18 = vcombine.low %v6438_v7, %v6813_v25  ;;  %v1624_v25 = vshrl.u32 %v7258_v26, 16 }
  0xf8   : > { %1764 = vrot.lane.b32.xlu0 %v1615_v32, %s6475_s15 }
  0xf9   : > { %v7291_v39 = vpop.permute.xlu0 %1371  ;;  %v1628_v53 = vshll.u32 %v5856_v18, 16  ;;  %v1626_v28 = vor.u32 %v1624_v25, %v1622_v22 }
  0xfa   : > { %1766 = vrot.lane.b32.xlu1 %v1623_v61, %s6475_s15  ;;  %9871 = vst [vmem:[#allocation36_spill] sm:$0xff] %v7291_v39 }
  0xfb   : > { %v1630_v61 = vrot.slane %v1628_v53, 1 }
  0xfc   : > { %1861 = vrot.lane.b32.xlu0 %v1814_v13, %s6476_s18  ;;  %v1632_v13 = vshrl.u32 %v5856_v18, 16 }
  0xfd   : > { %v1631_v53 = vsel %vm9831_vm9, %v1626_v28, %v1630_v61 }
  0xfe   : > { %1863 = vrot.lane.b32.xlu1 %v1816_v2, %s6476_s18  ;;  %v1636_v2 = vshll.u32 %v7305_v63, 16 }
 0x100   : > { %v7295_v51 = vpop.permute.xlu1 %1373  ;;  %1916 = vrot.lane.b32.xlu0 %v6765_v27, %s6477_s19 }
 0x101   : > { %9872 = vst [vmem:[#allocation37_spill] sm:$0xff] %v7295_v51 }
 0x102   : > { %1918 = vrot.lane.b32.xlu1 %v6802_v6, %s6477_s19  ;;  %v7301_v29 = vpop.permute.xlu0 %1375 }
 0x103   : > { %9873 = vst [vmem:[#allocation38_spill] sm:$0xff] %v7301_v29  ;;  %v1817_v29 = vrot.slane %v5856_v18, 1 }
 0x104   : > { %v7307_v19 = vpop.permute.xlu1 %1377  ;;  %1996 = vrot.lane.b32.xlu0 %v6835_v52, %s6478_s20  ;;  %v1634_v52 = vor.u32 %v1632_v13, %v1630_v61 }
 0x105   : > { %9874 = vst [vmem:[#allocation39_spill] sm:$0xff] %v7307_v19  ;;  %v1638_v19 = vrot.slane %v1636_v2, 1  ;;  %v1818_v25 = vsel %vm1379_vm10, %v1815_v20, %v1817_v29  ;;  %v5858_v2 = vcombine.low %v6842_v59, %v6879_v36  ;;  %v1640_v59 = vshrl.u32 %v7305_v63, 16  ;;  %v9875_v36 = vld [vmem:[#allocation8_spill] sm:$0xff] }
 0x106   : > { %1998 = vrot.lane.b32.xlu1 %v6866_v55, %s6478_s20  ;;  %v7314_v32 = vpop.permute.xlu0 %1429 }
 0x108   : > { %v7317_v7 = vpop.permute.xlu1 %1431  ;;  %2052 = vrot.lane.b32.xlu0 %v7125_v46, %s6479_s21  ;;  %v1639_v46 = vsel %vm9831_vm9, %v1634_v52, %v1638_v19  ;;  %v1644_v52 = vshll.u32 %v5858_v2, 16 }
 0x10a   : > { %2054 = vrot.lane.b32.xlu1 %v7133_v16, %s6479_s21  ;;  %v7323_v35 = vpop.permute.xlu0 %1433  ;;  %v1819_v16 = vrot.slane %v7305_v63, 1 }
 0x10c   : > { %v7325_v55 = vpop.permute.xlu1 %1435  ;;  %1521 = vrot.lane.b32.xlu0 %v7258_v26, %s6474_s12  ;;  %v1820_v61 = vsel %vm1379_vm10, %v1817_v29, %v1819_v16  ;;  %v9827_v29 = vrot.slane %v6886_v41, 1 }
 0x10e   : > { %1523 = vrot.lane.b32.xlu1 %v5856_v18, %s6474_s12  ;;  %v7331_v51 = vpop.permute.xlu0 %1437 }
 0x110   : > { %v7335_v22 = vpop.permute.xlu1 %1439  ;;  %1768 = vrot.lane.b32.xlu0 %v1631_v53, %s6475_s15  ;;  %v7362_v53 = vcombine.low %v6869_v23, %v6888_v44  ;;  %v1646_v23 = vrot.slane %v1644_v52, 1  ;;  %v1648_v44 = vshrl.u32 %v5858_v2, 16 }
 0x112   : > { %1770 = vrot.lane.b32.xlu1 %v1639_v46, %s6475_s15  ;;  %v7340_v26 = vpop.permute.xlu0 %1441  ;;  %v1652_v40 = vshll.u32 %v7362_v53, 16  ;;  %v1650_v9 = vor.u32 %v1648_v44, %v1646_v23  ;;  %v423_v44 = vld [vmem:[#allocation2 + $0xc8] sm:$0xf] }
 0x114   : > { %v7343_v13 = vpop.permute.xlu1 %1443  ;;  %1865 = vrot.lane.b32.xlu0 %v1818_v25, %s6476_s18  ;;  %v7383_v37 = vrot.slane %v1652_v40, 1 }
 0x116   : > { %1867 = vrot.lane.b32.xlu1 %v1820_v61, %s6476_s18  ;;  %v7347_v18 = vpop.permute.xlu0 %1445  ;;  %v9876_v61 = vrot.slane %v6853_v3, 1 }
 0x118   : > { %v7351_v28 = vpop.permute.xlu1 %1447  ;;  %1920 = vrot.lane.b32.xlu0 %v6823_v34, %s6477_s19  ;;  %v7376_v39 = vsel %vm1379_vm10, %v9876_v61, %v9827_v29  ;;  %v1821_v61 = vrot.slane %v5858_v2, 1 }
 0x11a   : > { %1922 = vrot.lane.b32.xlu1 %v6853_v3, %s6477_s19  ;;  %v7357_v20 = vpop.permute.xlu0 %1449 }
 0x11c   : > { %v7364_v46 = vpop.permute.xlu1 %1451  ;;  %2000 = vrot.lane.b32.xlu0 %v6891_v54, %s6478_s20  ;;  %v1642_v54 = vor.u32 %v1640_v59, %v1638_v19  ;;  %v1823_v19 = vrot.slane %v7362_v53, 1  ;;  %v311_v59 = vld [vmem:[%s6575_s30 + $0xf8] sm:$0xff] }
 0x11d   : > { %v6089_v40 = vpack.c.bf16 %v311_v59, %v311_v59 }
 0x11e   : > { %2002 = vrot.lane.b32.xlu1 %v9875_v36, %s6478_s20  ;;  %v1506_v25 = vpop.permute.xlu0 %1505  ;;  %v1647_v52 = vsel %vm9831_vm9, %v1642_v54, %v1646_v23  ;;  %v424_v23 = vsel %vm6556_vm5, 0, %v423_v44  ;;  %vm2333_vm5 = vcmask 195584   ;;  %v2092_v44 = vsel %vm2088_vm12, %v6637_v49, %v7191_v14 }
 0x11f   : > { %v788_v54 = vshrl.u32 %v6089_v40, 16  ;;  %425 = vst [vmem:[#allocation2 + $0xc8] sm:$0xf] %v424_v23  ;;  %v791_v59 = vshll.u32 %v6089_v40, 16  ;;  %v2141_v40 = vsel %vm9830_vm13, %v2092_v44, %v7317_v7 }
 0x120   : > { %v1508_v45 = vpop.permute.xlu1 %1507  ;;  %2056 = vrot.lane.b32.xlu0 %v7140_v42, %s6479_s21  ;;  %v1655_v42 = vsel %vm9831_vm9, %v1650_v9, %v7383_v37  ;;  %v1824_v9 = vsel %vm1379_vm10, %v1821_v61, %v1823_v19 }
 0x121   : > { %v790_v4 = vrot.slane %v788_v54, 7 }
 0x122   : > { %2058 = vrot.lane.b32.xlu1 %v7376_v39, %s6479_s21  ;;  %v1753_v36 = vpop.permute.xlu0 %1752 }
 0x123   : > { %v793_v23 = vor.u32 %v791_v59, %v790_v4 }
 0x124   : > { %v1755_v3 = vpop.permute.xlu1 %1754  ;;  %1525 = vrot.lane.b32.xlu0 %v7305_v63, %s6474_s12  ;;  %v1822_v63 = vsel %vm1379_vm10, %v1819_v16, %v1821_v61 }
 0x126   : > { %1527 = vrot.lane.b32.xlu1 %v5858_v2, %s6474_s12  ;;  %v1850_v29 = vpop.permute.xlu0 %1849 }
 0x128   : > { %v1852_v8 = vpop.permute.xlu1 %1851  ;;  %1772 = vrot.lane.b32.xlu0 %v1647_v52, %s6475_s15  ;;  %v2090_v52 = vsel %vm2088_vm12, %v7061_v10, %v7181_v60  ;;  %v786_v60 = vrot.slane %v7019_v12, 4  ;;  %v795_v12 = vrot.slane %v790_v4, 4 }
 0x12a   : > { %1774 = vrot.lane.b32.xlu1 %v1655_v42, %s6475_s15  ;;  %v1905_v2 = vpop.permute.xlu0 %1904  ;;  %v2139_v42 = vsel %vm9830_vm13, %v2090_v52, %v7314_v32  ;;  %v2190_v32 = vsel %vm9829_vm14, %v2141_v40, %v1508_v45  ;;  %v794_v14 = vsel %vm6595_vm8, %v786_v60, %v793_v23  ;;  %v953_v45 = vld [vmem:[#allocation2 + $0xc8] sm:$0x1]  ;;  %v6440_v60 = vld [vmem:[#allocation2 + $0x78] sm:$0xf]  ;;  %v9879_v40 = vld [vmem:[#allocation9_spill] sm:$0xff] }
 0x12b   : > { %v2188_v61 = vsel %vm9829_vm14, %v2139_v42, %v1506_v25  ;;  %v2239_v25 = vsel %vm2235_vm15, %v2190_v32, %v1755_v3  ;;  %952 = vst.msk [vmem:[#allocation2 + $0xc4] sm:$0xf] %vm312_vm0, %v794_v14  ;;  %v954_v4 = vsel %vm6540_vm3, %v795_v12, %v953_v45  ;;  %v9878_v42 = vld [vmem:[#allocation7_spill] sm:$0xff]  ;;  %v9881_v32 = vld [vmem:[#allocation10_spill] sm:$0xff]  ;;  %vm2948_vm0 = vcmask 57344  }
 0x12c   : > { %v1907_v16 = vpop.permute.xlu1 %1906  ;;  %1869 = vrot.lane.b32.xlu0 %v1822_v63, %s6476_s18  ;;  %v2237_v63 = vsel %vm2235_vm15, %v2188_v61, %v1753_v36  ;;  %v9877_v36 = vld [vmem:[#allocation6_spill] sm:$0xff]  ;;  %v1409_v44 = vrot.slane %v9878_v42, 1  ;;  %v6439_v61 = vld [vmem:[#allocation2 + $0x74] sm:$0xf]  ;;  %955 = vst [vmem:[#allocation2 + $0xc8] sm:$0x1] %v954_v4  ;;  %vm7696_vm3 = vmand %vm2948_vm0, %vm325_vm2 }
 0x12d   : > { %v2286_v54 = vsel %vm2284_vm1, %v2237_v63, %v1850_v29  ;;  %v2288_v29 = vsel %vm2284_vm1, %v2239_v25, %v1852_v8  ;;  %v5860_v23 = vcombine.low %v6439_v61, %v6440_v60  ;;  %v6441_v12 = vld [vmem:[#allocation2 + $0x7c] sm:$0xf]  ;;  %v9882_v25 = vld [vmem:[#allocation11_spill] sm:$0xff]  ;;  %vm9902_vm2 = vcmask 64512  }
 0x12e   : > { %1871 = vrot.lane.b32.xlu1 %v1824_v9, %s6476_s18  ;;  %v1985_v10 = vpop.permute.xlu0 %1984  ;;  %v2335_v7 = vsel %vm2333_vm5, %v2286_v54, %v1905_v2  ;;  %v1407_v9 = vrot.slane %v9877_v36, 1  ;;  %v2337_v3 = vsel %vm2333_vm5, %v2288_v29, %v1907_v16  ;;  %v9880_v16 = vrot.slane %v6886_v41, 1 }
 0x12f   : > { %v2384_v52 = vsel %vm2382_vm7, %v2335_v7, %v1985_v10  ;;  %v1660_v14 = vshll.u32 %v5860_v23, 16  ;;  %v7452_v7 = vcombine.low %v6441_v12, %v9882_v25  ;;  %v1656_v29 = vshrl.u32 %v7362_v53, 16 }
 0x130   : > { %v1987_v49 = vpop.permute.xlu1 %1986  ;;  %1924 = vrot.lane.b32.xlu0 %v6886_v41, %s6477_s19  ;;  %v1408_v63 = vsel %vm1379_vm10, %v9880_v16, %v1407_v9  ;;  %v1664_v4 = vshrl.u32 %v5860_v23, 16  ;;  %v2096_v12 = vsel %vm2088_vm12, %v6646_v57, %v7198_v0 }
 0x131   : > { %v2386_v8 = vsel %vm2382_vm7, %v2337_v3, %v1987_v49  ;;  %v7449_v49 = vsel %vm1379_vm10, %v1407_v9, %v1409_v44  ;;  %v1668_v3 = vshll.u32 %v7452_v7, 16 }
 0x132   : > { %1926 = vrot.lane.b32.xlu1 %v9877_v36, %s6477_s19  ;;  %v2041_v59 = vpop.permute.xlu0 %2040 }
 0x133   : > { %v2433_v2 = vsel %vm2431_vm11, %v2384_v52, %v2041_v59  ;;  %v1662_v59 = vrot.slane %v1660_v14, 1 }
 0x134   : > { %v2043_v10 = vpop.permute.xlu1 %2042  ;;  %2004 = vrot.lane.b32.xlu0 %v9879_v40, %s6478_s20  ;;  %6216 = vmatprep.mubr.msk.bf16.mxu0 %vm2500_vm6, %v2433_v2  ;;  %v1658_v2 = vor.u32 %v1656_v29, %v7383_v37  ;;  %v1827_v37 = vrot.slane %v7452_v7, 1 }
 0x135   : > { %v2435_v1 = vsel %vm2431_vm11, %v2386_v8, %v2043_v10  ;;  %v1666_v60 = vor.u32 %v1664_v4, %v1662_v59  ;;  %v7463_v8 = vrot.slane %v1668_v3, 1 }
 0x136   : > { %2006 = vrot.lane.b32.xlu1 %v9881_v32, %s6478_s20  ;;  %6217 = vmatmul.mubr.msk.bf16.vlgmr.msra.gmra.mrb[0].mxu0 %vm2500_vm6, %v2435_v1  ;;  %v1510_v54 = vpop.permute.xlu0 %1509  ;;  %v1663_v40 = vsel %vm9831_vm9, %v1658_v2, %v1662_v59  ;;  %v1825_v1 = vrot.slane %v5860_v23, 1 }
 0x138   : > { %v1512_v45 = vpop.permute.xlu1 %1511  ;;  %2060 = vrot.lane.b32.xlu0 %v1408_v63, %s6479_s21 }
 0x13a   : > { %2062 = vrot.lane.b32.xlu1 %v7449_v49, %s6479_s21  ;;  %v1757_v52 = vpop.permute.xlu0 %1756 }
 0x13c   : > { %v1759_v9 = vpop.permute.xlu1 %1758  ;;  %1453 = vrot.lane.b32.xlu0 %v7376_v39, %s6473_s9  ;;  %v1671_v39 = vsel %vm9831_vm9, %v1666_v60, %v7463_v8 }
 0x13e   : > { %1455 = vrot.lane.b32.xlu1 %v1408_v63, %s6473_s9  ;;  %v1854_v61 = vpop.permute.xlu0 %1853  ;;  %v2094_v63 = vsel %vm2088_vm12, %v6644_v56, %v7187_v5  ;;  %v2145_v56 = vsel %vm9830_vm13, %v2096_v12, %v7325_v55 }
 0x13f   : > { %v2143_v14 = vsel %vm9830_vm13, %v2094_v63, %v7323_v35  ;;  %v1828_v35 = vsel %vm1379_vm10, %v1825_v1, %v1827_v37 }
 0x140   : > { %v1856_v10 = vpop.permute.xlu1 %1855  ;;  %1529 = vrot.lane.b32.xlu0 %v7362_v53, %s6474_s12  ;;  %v2192_v25 = vsel %vm9829_vm14, %v2143_v14, %v1510_v54  ;;  %v2194_v53 = vsel %vm9829_vm14, %v2145_v56, %v1512_v45  ;;  %v6445_v56 = vld [vmem:[#allocation2 + $0x90] sm:$0xf] }
 0x141   : > { %v2241_v5 = vsel %vm2235_vm15, %v2192_v25, %v1757_v52  ;;  %v2243_v57 = vsel %vm2235_vm15, %v2194_v53, %v1759_v9 }
 0x142   : > { %1531 = vrot.lane.b32.xlu1 %v5860_v23, %s6474_s12  ;;  %v1909_v16 = vpop.permute.xlu0 %1908  ;;  %v1826_v23 = vsel %vm1379_vm10, %v1823_v19, %v1825_v1  ;;  %v2290_v19 = vsel %vm2284_vm1, %v2241_v5, %v1854_v61  ;;  %v2292_v54 = vsel %vm2284_vm1, %v2243_v57, %v1856_v10  ;;  %v9883_v61 = vld [vmem:[#allocation12_spill] sm:$0xff] }
 0x143   : > { %v2339_v0 = vsel %vm2333_vm5, %v2290_v19, %v1909_v16  ;;  %v1411_v60 = vrot.slane %v9883_v61, 1  ;;  %v6442_v16 = vld [vmem:[#allocation2 + $0x84] sm:$0xf] }
 0x144   : > { %v1911_v32 = vpop.permute.xlu1 %1910  ;;  %1776 = vrot.lane.b32.xlu0 %v1663_v40, %s6475_s15  ;;  %v9884_v40 = vld [vmem:[#allocation13_spill] sm:$0xff] }
 0x145   : > { %v2341_v4 = vsel %vm2333_vm5, %v2292_v54, %v1911_v32  ;;  %v1413_v1 = vrot.slane %v9884_v40, 1  ;;  %v1412_v14 = vsel %vm1379_vm10, %v1409_v44, %v1411_v60 }
 0x146   : > { %1778 = vrot.lane.b32.xlu1 %v1671_v39, %s6475_s15  ;;  %v1989_v29 = vpop.permute.xlu0 %1988  ;;  %v6443_v39 = vld [vmem:[#allocation2 + $0x88] sm:$0xf] }
 0x147   : > { %v2388_v55 = vsel %vm2382_vm7, %v2339_v0, %v1989_v29  ;;  %v5862_v63 = vcombine.low %v6442_v16, %v6443_v39  ;;  %v7522_v12 = vsel %vm1379_vm10, %v1411_v60, %v1413_v1  ;;  %v6444_v29 = vld [vmem:[#allocation2 + $0x8c] sm:$0xf] }
 0x148   : > { %v1991_v59 = vpop.permute.xlu1 %1990  ;;  %1873 = vrot.lane.b32.xlu0 %v1826_v23, %s6476_s18  ;;  %v7524_v5 = vcombine.low %v6444_v29, %v6445_v56 }
 0x149   : > { %v2390_v3 = vsel %vm2382_vm7, %v2341_v4, %v1991_v59  ;;  %v1676_v25 = vshll.u32 %v5862_v63, 16  ;;  %v1680_v53 = vshrl.u32 %v5862_v63, 16 }
 0x14a   : > { %1875 = vrot.lane.b32.xlu1 %v1828_v35, %s6476_s18  ;;  %v2045_v52 = vpop.permute.xlu0 %2044  ;;  %v1684_v19 = vshll.u32 %v7524_v5, 16  ;;  %v1831_v60 = vrot.slane %v7524_v5, 1 }
 0x14b   : > { %v2437_v45 = vsel %vm2431_vm11, %v2388_v55, %v2045_v52  ;;  %v1678_v44 = vrot.slane %v1676_v25, 1  ;;  %v2098_v52 = vsel %vm2088_vm12, %v6661_v17, %v7202_v38 }
 0x14c   : > { %v2047_v2 = vpop.permute.xlu1 %2046  ;;  %1928 = vrot.lane.b32.xlu0 %v9878_v42, %s6477_s19  ;;  %6220 = vmatprep.mubr.msk.bf16.mxu0 %vm2500_vm6, %v2437_v45  ;;  %v7535_v55 = vrot.slane %v1684_v19, 1  ;;  %v2147_v45 = vsel %vm9830_vm13, %v2098_v52, %v7331_v51  ;;  %v6446_v19 = vld [vmem:[#allocation2 + $0x94] sm:$0xf] }
 0x14d   : > { %v2439_v9 = vsel %vm2431_vm11, %v2390_v3, %v2047_v2  ;;  %v1682_v54 = vor.u32 %v1680_v53, %v1678_v44  ;;  %v2100_v3 = vsel %vm2088_vm12, %v6673_v30, %v7207_v33  ;;  %v1417_v53 = vrot.slane %v7009_v24, 1 }
 0x14e   : > { %1930 = vrot.lane.b32.xlu1 %v9883_v61, %s6477_s19  ;;  %6221 = vmatmul.mubr.msk.bf16.gmra.mrb[4].mxu0 %vm2500_vm6, %v2439_v9  ;;  %v1514_v10 = vpop.permute.xlu0 %1513  ;;  %v2149_v17 = vsel %vm9830_vm13, %v2100_v3, %v7335_v22  ;;  %v6448_v3 = vld [vmem:[#allocation2 + $0x9c] sm:$0xf] }
 0x14f   : > { %v2196_v2 = vsel %vm9829_vm14, %v2147_v45, %v1514_v10  ;;  %v1687_v51 = vsel %vm9831_vm9, %v1682_v54, %v7535_v55  ;;  %v9885_v54 = vld [vmem:[#allocation14_spill] sm:$0xff] }
 0x150   : > { %v1516_v32 = vpop.permute.xlu1 %1515  ;;  %2008 = vrot.lane.b32.xlu0 %v6976_v21, %s6478_s20  ;;  %v1672_v21 = vshrl.u32 %v7452_v7, 16 }
 0x151   : > { %v2198_v16 = vsel %vm9829_vm14, %v2149_v17, %v1516_v32 }
 0x152   : > { %2010 = vrot.lane.b32.xlu1 %v6986_v58, %s6478_s20  ;;  %v1761_v23 = vpop.permute.xlu0 %1760  ;;  %v1674_v57 = vor.u32 %v1672_v21, %v7463_v8  ;;  %v1829_v8 = vrot.slane %v5862_v63, 1 }
 0x153   : > { %v2245_v38 = vsel %vm2235_vm15, %v2196_v2, %v1761_v23  ;;  %v6449_v2 = vld [vmem:[#allocation2 + $0xa0] sm:$0xf] }
 0x154   : > { %v1763_v35 = vpop.permute.xlu1 %1762  ;;  %2064 = vrot.lane.b32.xlu0 %v1412_v14, %s6479_s21  ;;  %v1830_v22 = vsel %vm1379_vm10, %v1827_v37, %v1829_v8  ;;  %v1832_v29 = vsel %vm1379_vm10, %v1829_v8, %v1831_v60 }
 0x155   : > { %v2247_v33 = vsel %vm2235_vm15, %v2198_v16, %v1763_v35 }
 0x156   : > { %2066 = vrot.lane.b32.xlu1 %v7522_v12, %s6479_s21  ;;  %v1858_v58 = vpop.permute.xlu0 %1857 }
 0x157   : > { %v2294_v39 = vsel %vm2284_vm1, %v2245_v38, %v1858_v58  ;;  %v1415_v58 = vrot.slane %v6978_v15, 1  ;;  %v1688_v38 = vshrl.u32 %v7524_v5, 16 }
 0x158   : > { %v1860_v59 = vpop.permute.xlu1 %1859  ;;  %1457 = vrot.lane.b32.xlu0 %v7449_v49, %s6473_s9  ;;  %v1679_v49 = vsel %vm9831_vm9, %v1674_v57, %v1678_v44 }
 0x159   : > { %v1416_v52 = vsel %vm1379_vm10, %v1413_v1, %v1415_v58 }
 0x15a   : > { %1459 = vrot.lane.b32.xlu1 %v1412_v14, %s6473_s9  ;;  %v1913_v0 = vpop.permute.xlu0 %1912 }
 0x15b   : > { %v2343_v10 = vsel %vm2333_vm5, %v2294_v39, %v1913_v0 }
 0x15c   : > { %v1915_v4 = vpop.permute.xlu1 %1914  ;;  %1533 = vrot.lane.b32.xlu0 %v7452_v7, %s6474_s12 }
 0x15e   : > { %1535 = vrot.lane.b32.xlu1 %v5862_v63, %s6474_s12  ;;  %v1993_v9 = vpop.permute.xlu0 %1992  ;;  %v2296_v63 = vsel %vm2284_vm1, %v2247_v33, %v1860_v59  ;;  %v6447_v59 = vld [vmem:[#allocation2 + $0x98] sm:$0xf]  ;;  %v9888_v33 = vld [vmem:[#allocation4_spill] sm:$0xff] }
 0x15f   : > { %v2392_v14 = vsel %vm2382_vm7, %v2343_v10, %v1993_v9  ;;  %v2345_v23 = vsel %vm2333_vm5, %v2296_v63, %v1915_v4  ;;  %v5864_v57 = vcombine.low %v6446_v19, %v6447_v59  ;;  %v9886_v4 = vld [vmem:[#allocation16_spill] sm:$0xff]  ;;  %v7596_v9 = vcombine.low %v6448_v3, %v6449_v2 }
 0x160   : > { %v1995_v30 = vpop.permute.xlu1 %1994  ;;  %1780 = vrot.lane.b32.xlu0 %v1679_v49, %s6475_s15  ;;  %v7594_v49 = vsel %vm1379_vm10, %v1415_v58, %v1417_v53 }
 0x161   : > { %v2394_v56 = vsel %vm2382_vm7, %v2345_v23, %v1995_v30  ;;  %v1692_v8 = vshll.u32 %v5864_v57, 16  ;;  %v1696_v16 = vshrl.u32 %v5864_v57, 16  ;;  %v1700_v39 = vshll.u32 %v7596_v9, 16  ;;  %v9887_v30 = vld [vmem:[#allocation26_spill] sm:$0xff] }
 0x162   : > { %1782 = vrot.lane.b32.xlu1 %v1687_v51, %s6475_s15  ;;  %v2049_v32 = vpop.permute.xlu0 %2048  ;;  %v2102_v10 = vsel %vm2088_vm12, %v9888_v33, %v9887_v30  ;;  %v6451_v30 = vld [vmem:[#allocation2 + $0xa8] sm:$0xf] }
 0x163   : > { %v2441_v25 = vsel %vm2431_vm11, %v2392_v14, %v2049_v32  ;;  %v1694_v51 = vrot.slane %v1692_v8, 1  ;;  %v2151_v63 = vsel %vm9830_vm13, %v2102_v10, %v7340_v26  ;;  %v1690_v14 = vor.u32 %v1688_v38, %v7535_v55  ;;  %v9889_v32 = vld [vmem:[#allocation27_spill] sm:$0xff]  ;;  %v9891_v10 = vld [vmem:[#allocation17_spill] sm:$0xff] }
 0x164   : > { %v2051_v7 = vpop.permute.xlu1 %2050  ;;  %1877 = vrot.lane.b32.xlu0 %v1830_v22, %s6476_s18  ;;  %6224 = vmatprep.mubr.msk.bf16.mxu0 %vm2500_vm6, %v2441_v25  ;;  %v2104_v23 = vsel %vm2088_vm12, %v6708_v11, %v9889_v32 }
 0x165   : > { %v2443_v37 = vsel %vm2431_vm11, %v2394_v56, %v2051_v7  ;;  %v2153_v56 = vsel %vm9830_vm13, %v2104_v23, %v7343_v13  ;;  %v1695_v19 = vsel %vm9831_vm9, %v1690_v14, %v1694_v51  ;;  %v1833_v13 = vrot.slane %v5864_v57, 1  ;;  %v9892_v14 = vld [vmem:[#allocation18_spill] sm:$0xff]  ;;  %v9893_v23 = vld [vmem:[#allocation19_spill] sm:$0xff] }
 0x166   : > { %1879 = vrot.lane.b32.xlu1 %v1832_v29, %s6476_s18  ;;  %6225 = vmatmul.mubr.msk.bf16.gmra.mrb[8].mxu0 %vm2500_vm6, %v2443_v37  ;;  %v1518_v35 = vpop.permute.xlu0 %1517  ;;  %v7619_v37 = vrot.slane %v1700_v39, 1  ;;  %v6450_v39 = vld [vmem:[#allocation2 + $0xa4] sm:$0xf] }
 0x167   : > { %v2200_v25 = vsel %vm9829_vm14, %v2151_v63, %v1518_v35  ;;  %v7655_v33 = vcombine.low %v6450_v39, %v6451_v30 }
 0x168   : > { %v1520_v21 = vpop.permute.xlu1 %1519  ;;  %1932 = vrot.lane.b32.xlu0 %v9884_v40, %s6477_s19 }
 0x169   : > { %v2202_v26 = vsel %vm9829_vm14, %v2153_v56, %v1520_v21 }
 0x16a   : > { %1934 = vrot.lane.b32.xlu1 %v6978_v15, %s6477_s19  ;;  %v1765_v44 = vpop.permute.xlu0 %1764 }
 0x16b   : > { %v2249_v7 = vsel %vm2235_vm15, %v2200_v25, %v1765_v44 }
 0x16c   : > { %v1767_v0 = vpop.permute.xlu1 %1766  ;;  %2012 = vrot.lane.b32.xlu0 %v9885_v54, %s6478_s20 }
 0x16d   : > { %v2251_v11 = vsel %vm2235_vm15, %v2202_v26, %v1767_v0  ;;  %v1835_v0 = vrot.slane %v7596_v9, 1 }
 0x16e   : > { %2014 = vrot.lane.b32.xlu1 %v9886_v4, %s6478_s20  ;;  %v1862_v45 = vpop.permute.xlu0 %1861 }
 0x16f   : > { %v2298_v55 = vsel %vm2284_vm1, %v2249_v7, %v1862_v45  ;;  %v6452_v7 = vld [vmem:[#allocation2 + $0xac] sm:$0xf] }
 0x170   : > { %v1864_v17 = vpop.permute.xlu1 %1863  ;;  %2068 = vrot.lane.b32.xlu0 %v1416_v52, %s6479_s21 }
 0x171   : > { %v2300_v44 = vsel %vm2284_vm1, %v2251_v11, %v1864_v17  ;;  %v1836_v17 = vsel %vm1379_vm10, %v1833_v13, %v1835_v0  ;;  %v1704_v11 = vshrl.u32 %v7596_v9, 16 }
 0x172   : > { %2070 = vrot.lane.b32.xlu1 %v7594_v49, %s6479_s21  ;;  %v1917_v1 = vpop.permute.xlu0 %1916 }
 0x173   : > { %v2347_v35 = vsel %vm2333_vm5, %v2298_v55, %v1917_v1  ;;  %v2106_v55 = vsel %vm2088_vm12, %v6745_v50, %v7225_v47  ;;  %v1712_v47 = vshrl.u32 %v7655_v33, 16 }
 0x174   : > { %v1919_v22 = vpop.permute.xlu1 %1918  ;;  %1461 = vrot.lane.b32.xlu0 %v7522_v12, %s6473_s9  ;;  %v1698_v12 = vor.u32 %v1696_v16, %v1694_v51 }
 0x175   : > { %v2349_v54 = vsel %vm2333_vm5, %v2300_v44, %v1919_v22  ;;  %v1421_v22 = vrot.slane %v9891_v10, 1 }
 0x176   : > { %1463 = vrot.lane.b32.xlu1 %v1416_v52, %s6473_s9  ;;  %v1997_v29 = vpop.permute.xlu0 %1996  ;;  %v1703_v4 = vsel %vm9831_vm9, %v1698_v12, %v7619_v37  ;;  %v6453_v12 = vld [vmem:[#allocation2 + $0xb0] sm:$0xf] }
 0x177   : > { %v2396_v59 = vsel %vm2382_vm7, %v2347_v35, %v1997_v29  ;;  %v1708_v29 = vshll.u32 %v7655_v33, 16  ;;  %v7671_v26 = vcombine.low %v6452_v7, %v6453_v12  ;;  %v2108_v35 = vsel %vm2088_vm12, %v6765_v27, %v7231_v48 }
 0x178   : > { %v1999_v58 = vpop.permute.xlu1 %1998  ;;  %1537 = vrot.lane.b32.xlu0 %v7524_v5, %s6474_s12  ;;  %v9890_v5 = vld [vmem:[#allocation15_spill] sm:$0xff]  ;;  %v2157_v50 = vsel %vm9830_vm13, %v2108_v35, %v7351_v28 }
 0x179   : > { %v2398_v45 = vsel %vm2382_vm7, %v2349_v54, %v1999_v58  ;;  %v2155_v58 = vsel %vm9830_vm13, %v2106_v55, %v7347_v18  ;;  %v1710_v44 = vrot.slane %v1708_v29, 1  ;;  %v1839_v7 = vrot.slane %v7671_v26, 1 }
 0x17a   : > { %1539 = vrot.lane.b32.xlu1 %v5864_v57, %s6474_s12  ;;  %v2053_v21 = vpop.permute.xlu0 %2052  ;;  %v1834_v57 = vsel %vm1379_vm10, %v1831_v60, %v1833_v13  ;;  %v1419_v60 = vrot.slane %v9890_v5, 1 }
 0x17b   : > { %v2445_v52 = vsel %vm2431_vm11, %v2396_v59, %v2053_v21  ;;  %v1716_v59 = vshll.u32 %v7671_v26, 16 }
 0x17c   : > { %v2055_v8 = vpop.permute.xlu1 %2054  ;;  %1784 = vrot.lane.b32.xlu0 %v1695_v19, %s6475_s15  ;;  %6228 = vmatprep.mubr.msk.bf16.mxu0 %vm2500_vm6, %v2445_v52  ;;  %v1420_v32 = vsel %vm1379_vm10, %v1417_v53, %v1419_v60  ;;  %v7669_v56 = vsel %vm1379_vm10, %v1419_v60, %v1421_v22  ;;  %v2950_v52 = vld [vmem:[#allocation3 + $0xc] sm:$0x1] }
 0x17d   : > { %v2447_v3 = vsel %vm2431_vm11, %v2398_v45, %v2055_v8  ;;  %v1706_v45 = vor.u32 %v1704_v11, %v7619_v37  ;;  %v2951_v8 = vsel %vm7696_vm3, 0, %v2950_v52 }
 0x17e   : > { %1786 = vrot.lane.b32.xlu1 %v1703_v4, %s6475_s15  ;;  %6229 = vmatmul.mubr.msk.bf16.gmra.mrb[12].mxu0 %vm2500_vm6, %v2447_v3  ;;  %v1522_v2 = vpop.permute.xlu0 %1521  ;;  %2952 = vst [vmem:[#allocation3 + $0xc] sm:$0x1] %v2951_v8  ;;  %v6456_v8 = vld [vmem:[#allocation2 + $0xbc] sm:$0xf] }
 0x17f   : > { %v2204_v19 = vsel %vm9829_vm14, %v2155_v58, %v1522_v2 }
 0x180   : > { %v1524_v38 = vpop.permute.xlu1 %1523  ;;  %1881 = vrot.lane.b32.xlu0 %v1834_v57, %s6476_s18 }
 0x181   : > { %v2206_v21 = vsel %vm9829_vm14, %v2157_v50, %v1524_v38  ;;  %vm9896_vm14 = vcmask 60416   ;;  %v1714_v38 = vor.u32 %v1712_v47, %v1710_v44  ;;  %v9900_v50 = vld [vmem:[#allocation21_spill] sm:$0xff] }
 0x182   : > { %1883 = vrot.lane.b32.xlu1 %v1836_v17, %s6476_s18  ;;  %v1769_v1 = vpop.permute.xlu0 %1768  ;;  %vm7707_vm13 = vmand %vm9896_vm14, %vm376_vm4  ;;  %vm9903_vm4 = vcmask 97280  }
 0x183   : > { %v2253_v18 = vsel %vm2235_vm15, %v2204_v19, %v1769_v1  ;;  %v3000_v1 = vld [vmem:[#allocation3 + $0x14] sm:$0xf]  ;;  %vm9905_vm14 = vmmov %vm9902_vm2 }
 0x184   : > { %v1771_v51 = vpop.permute.xlu1 %1770  ;;  %1936 = vrot.lane.b32.xlu0 %v7009_v24, %s6477_s19  ;;  %v3001_v39 = vsel %vm7707_vm13, 0, %v3000_v1  ;;  %vm9906_vm0 = vmmov %vm9903_vm4  ;;  %v3003_v1 = vld [vmem:[#allocation3 + $0x20] sm:$0xf] }
 0x185   : > { %v2255_v28 = vsel %vm2235_vm15, %v2206_v21, %v1771_v51  ;;  %3002 = vst [vmem:[#allocation3 + $0x14] sm:$0xf] %v3001_v39  ;;  %v3004_v39 = vsel %vm7707_vm13, 0, %v3003_v1 }
 0x186   : > { %1938 = vrot.lane.b32.xlu1 %v9890_v5, %s6477_s19  ;;  %v1866_v16 = vpop.permute.xlu0 %1865  ;;  %3005 = vst [vmem:[#allocation3 + $0x20] sm:$0xf] %v3004_v39 }
 0x187   : > { %v2302_v27 = vsel %vm2284_vm1, %v2253_v18, %v1866_v16  ;;  %v7718_v16 = vrot.slane %v1716_v59, 1  ;;  %v7753_v18 = vrot.slane %v9900_v50, 1  ;;  %v2110_v59 = vsel %vm2088_vm12, %v6802_v6, %v7235_v31 }
 0x188   : > { %v1868_v63 = vpop.permute.xlu1 %1867  ;;  %2016 = vrot.lane.b32.xlu0 %v9892_v14, %s6478_s20 }
 0x189   : > { %v2304_v57 = vsel %vm2284_vm1, %v2255_v28, %v1868_v63  ;;  %v1719_v29 = vsel %vm9831_vm9, %v1714_v38, %v7718_v16  ;;  %v2112_v28 = vsel %vm2088_vm12, %v6823_v34, %v7242_v62  ;;  %v2956_v62 = vld [vmem:[#allocation3 + $0x24] sm:$0x1] }
 0x18a   : > { %2018 = vrot.lane.b32.xlu1 %v9893_v23, %s6478_s20  ;;  %v1921_v25 = vpop.permute.xlu0 %1920  ;;  %v1837_v23 = vrot.slane %v7655_v33, 1 }
 0x18b   : > { %v2351_v4 = vsel %vm2333_vm5, %v2302_v27, %v1921_v25  ;;  %v9901_v27 = vld [vmem:[#allocation23_spill] sm:$0xff] }
 0x18c   : > { %v1923_v53 = vpop.permute.xlu1 %1922  ;;  %2072 = vrot.lane.b32.xlu0 %v1420_v32, %s6479_s21  ;;  %v1838_v55 = vsel %vm1379_vm10, %v1835_v0, %v1837_v23 }
 0x18d   : > { %v2353_v51 = vsel %vm2333_vm5, %v2304_v57, %v1923_v53 }
 0x18e   : > { %2074 = vrot.lane.b32.xlu1 %v7669_v56, %s6479_s21  ;;  %v2001_v13 = vpop.permute.xlu0 %2000 }
 0x18f   : > { %v2400_v2 = vsel %vm2382_vm7, %v2351_v4, %v2001_v13  ;;  %v6454_v13 = vld [vmem:[#allocation2 + $0xb4] sm:$0xf] }
 0x190   : > { %v2003_v48 = vpop.permute.xlu1 %2002  ;;  %1465 = vrot.lane.b32.xlu0 %v7594_v49, %s6473_s9  ;;  %v2953_v49 = vld [vmem:[#allocation3 + $0x18] sm:$0x1] }
 0x191   : > { %v2954_v37 = vsel %vm7696_vm3, 0, %v2953_v49  ;;  %v2402_v30 = vsel %vm2382_vm7, %v2353_v51, %v2003_v48  ;;  %v2159_v48 = vsel %vm9902_vm2, %v2110_v59, %v7357_v20  ;;  %v6457_v49 = vld [vmem:[#allocation2 + $0xc0] sm:$0xf]  ;;  %v2161_v20 = vsel %vm9905_vm14, %v2112_v28, %v7364_v46  ;;  %vm9913_vm14 = vmmov %vm9902_vm2 }
 0x192   : > { %1467 = vrot.lane.b32.xlu1 %v1420_v32, %s6473_s9  ;;  %v2057_v17 = vpop.permute.xlu0 %2056  ;;  %2955 = vst [vmem:[#allocation3 + $0x18] sm:$0x1] %v2954_v37  ;;  %v1711_v32 = vsel %vm9831_vm9, %v1706_v45, %v1710_v44  ;;  %v6455_v44 = vld [vmem:[#allocation2 + $0xb8] sm:$0xf]  ;;  %v9904_v45 = vld [vmem:[#allocation24_spill] sm:$0xff]  ;;  %v7772_v57 = vcombine.low %v6456_v8, %v6457_v49  ;;  %v2957_v37 = vsel %vm7696_vm3, 0, %v2956_v62 }
 0x193   : > { %v2449_v60 = vsel %vm2431_vm11, %v2400_v2, %v2057_v17  ;;  %v7750_v47 = vcombine.low %v6454_v13, %v6455_v44  ;;  %2958 = vst [vmem:[#allocation3 + $0x24] sm:$0x1] %v2957_v37  ;;  %v9907_v37 = vld [vmem:[#allocation25_spill] sm:$0xff] }
 0x194   : > { %v2059_v63 = vpop.permute.xlu1 %2058  ;;  %1541 = vrot.lane.b32.xlu0 %v7596_v9, %s6474_s12  ;;  %6232 = vmatprep.mubr.msk.bf16.mxu0 %vm2500_vm6, %v2449_v60  ;;  %v9899_v9 = vld [vmem:[#allocation20_spill] sm:$0xff]  ;;  %v1720_v60 = vshrl.u32 %v7671_v26, 16 }
 0x195   : > { %v2451_v14 = vsel %vm2431_vm11, %v2402_v30, %v2059_v63  ;;  %v1423_v19 = vrot.slane %v9899_v9, 1  ;;  %v1724_v31 = vshll.u32 %v7750_v47, 16  ;;  %v3006_v30 = vld [vmem:[#allocation3 + $0x2c] sm:$0xf]  ;;  %v1841_v28 = vrot.slane %v7750_v47, 1 }
 0x196   : > { %1543 = vrot.lane.b32.xlu1 %v7655_v33, %s6474_s12  ;;  %6233 = vmatmul.mubr.msk.bf16.gmra.mrb[16].mxu0 %vm2500_vm6, %v2451_v14  ;;  %v1526_v25 = vpop.permute.xlu0 %1525  ;;  %v1840_v33 = vsel %vm1379_vm10, %v1837_v23, %v1839_v7 }
 0x197   : > { %v1424_v52 = vsel %vm1379_vm10, %v1421_v22, %v1423_v19  ;;  %v2208_v4 = vsel %vm9903_vm4, %v2159_v48, %v1526_v25  ;;  %v7779_v34 = vsel %vm1379_vm10, %v1423_v19, %v7753_v18  ;;  %v1726_v23 = vrot.slane %v1724_v31, 1  ;;  %vm9911_vm4 = vmmov %vm9906_vm0 }
 0x198   : > { %v1528_v12 = vpop.permute.xlu1 %1527  ;;  %1788 = vrot.lane.b32.xlu0 %v1711_v32, %s6475_s15  ;;  %v3007_v25 = vsel %vm7707_vm13, 0, %v3006_v30  ;;  %v1722_v19 = vor.u32 %v1720_v60, %v7718_v16  ;;  %v1842_v8 = vsel %vm1379_vm10, %v1839_v7, %v1841_v28 }
 0x199   : > { %v2210_v2 = vsel %vm9906_vm0, %v2161_v20, %v1528_v12  ;;  %3008 = vst [vmem:[#allocation3 + $0x2c] sm:$0xf] %v3007_v25  ;;  %v3009_v25 = vld [vmem:[#allocation3 + $0x38] sm:$0xf] }
 0x19a   : > { %1790 = vrot.lane.b32.xlu1 %v1719_v29, %s6475_s15  ;;  %v1773_v53 = vpop.permute.xlu0 %1772  ;;  %v1727_v48 = vsel %vm9831_vm9, %v1722_v19, %v1726_v23 }
 0x19b   : > { %v2257_v22 = vsel %vm2235_vm15, %v2208_v4, %v1773_v53  ;;  %v1732_v53 = vshll.u32 %v7772_v57, 16  ;;  %v1843_v4 = vrot.slane %v7772_v57, 1 }
 0x19c   : > { %v1775_v58 = vpop.permute.xlu1 %1774  ;;  %1885 = vrot.lane.b32.xlu0 %v1838_v55, %s6476_s18  ;;  %v1728_v55 = vshrl.u32 %v7750_v47, 16 }
 0x19d   : > { %v2259_v46 = vsel %vm2235_vm15, %v2210_v2, %v1775_v58  ;;  %v7809_v44 = vrot.slane %v1732_v53, 1  ;;  %v9910_v53 = vld [vmem:[#allocation29_spill] sm:$0xff] }
 0x19e   : > { %1887 = vrot.lane.b32.xlu1 %v1840_v33, %s6476_s18  ;;  %v1870_v11 = vpop.permute.xlu0 %1869  ;;  %v1730_v13 = vor.u32 %v1728_v55, %v1726_v23  ;;  %v3010_v55 = vsel %vm7707_vm13, 0, %v3009_v25 }
 0x19f   : > { %v2306_v17 = vsel %vm2284_vm1, %v2257_v22, %v1870_v11  ;;  %v1005_v11 = vld [vmem:[#allocation2 + $0xc4] sm:$0xf]  ;;  %3011 = vst [vmem:[#allocation3 + $0x38] sm:$0xf] %v3010_v55 }
 0x1a0   : > { %v1872_v35 = vpop.permute.xlu1 %1871  ;;  %1940 = vrot.lane.b32.xlu0 %v9891_v10, %s6477_s19  ;;  %v5872_v59 = vcombine.low %v6457_v49, %v1005_v11 }
 0x1a1   : > { %v2308_v63 = vsel %vm2284_vm1, %v2259_v46, %v1872_v35 }
 0x1a2   : > { %1942 = vrot.lane.b32.xlu1 %v9899_v9, %s6477_s19  ;;  %v1925_v0 = vpop.permute.xlu0 %1924  ;;  %v1960_v22 = vshrl.u32 %v5872_v59, 16  ;;  %v2032_v46 = vrot.slane %v5872_v59, 1 }
 0x1a3   : > { %v2355_v51 = vsel %vm2333_vm5, %v2306_v17, %v1925_v0 }
 0x1a4   : > { %v1927_v21 = vpop.permute.xlu1 %1926  ;;  %2020 = vrot.lane.b32.xlu0 %v9901_v27, %s6478_s20  ;;  %v1007_v27 = vld [vmem:[#allocation2 + $0xcc] sm:$0xf] }
 0x1a5   : > { %v2357_v29 = vsel %vm2333_vm5, %v2308_v63, %v1927_v21  ;;  %v9908_v63 = vld [vmem:[#allocation28_spill] sm:$0xff] }
 0x1a6   : > { %2022 = vrot.lane.b32.xlu1 %v9904_v45, %s6478_s20  ;;  %v2005_v6 = vpop.permute.xlu0 %2004  ;;  %v1956_v45 = vshll.u32 %v5872_v59, 16 }
 0x1a7   : > { %v2404_v14 = vsel %vm2382_vm7, %v2355_v51, %v2005_v6 }
 0x1a8   : > { %v2007_v38 = vpop.permute.xlu1 %2006  ;;  %2076 = vrot.lane.b32.xlu0 %v1424_v52, %s6479_s21  ;;  %v1958_v20 = vrot.slane %v1956_v45, 1 }
 0x1a9   : > { %v2406_v33 = vsel %vm2382_vm7, %v2357_v29, %v2007_v38 }
 0x1aa   : > { %2078 = vrot.lane.b32.xlu1 %v7779_v34, %s6479_s21  ;;  %v2061_v32 = vpop.permute.xlu0 %2060  ;;  %v1959_v1 = vsel %vm9831_vm9, %v9907_v37, %v1958_v20 }
 0x1ab   : > { %v2453_v12 = vsel %vm2431_vm11, %v2404_v14, %v2061_v32  ;;  %v9909_v14 = vld [vmem:[#allocation5_spill] sm:$0xff] }
 0x1ac   : > { %v2063_v58 = vpop.permute.xlu1 %2062  ;;  %1469 = vrot.lane.b32.xlu0 %v7669_v56, %s6473_s9  ;;  %6236 = vmatprep.mubr.msk.bf16.mxu0 %vm2500_vm6, %v2453_v12  ;;  %v1006_v56 = vld [vmem:[#allocation2 + $0xc8] sm:$0xf]  ;;  %v2114_v32 = vsel %vm2088_vm12, %v9909_v14, %v9908_v63  ;;  %v2033_v12 = vsel %vm1379_vm10, %v7753_v18, %v2032_v46 }
 0x1ad   : > { %v2455_v35 = vsel %vm2431_vm11, %v2406_v33, %v2063_v58  ;;  %v7820_v6 = vcombine.low %v1006_v56, %v1007_v27  ;;  %v7840_v60 = vcombine.low %v1005_v11, %v1006_v56  ;;  %v2116_v33 = vsel %vm2088_vm12, %v6886_v41, %v9910_v53 }
 0x1ae   : > { %1471 = vrot.lane.b32.xlu1 %v1424_v52, %s6473_s9  ;;  %6237 = vmatmul.mubr.msk.bf16.gmra.mrb[20].mxu0 %vm2500_vm6, %v2455_v35  ;;  %v1454_v0 = vpop.permute.xlu0 %1453  ;;  %v1735_v52 = vsel %vm9831_vm9, %v1730_v13, %v7809_v44  ;;  %v9912_v35 = vld [vmem:[#allocation22_spill] sm:$0xff] }
 0x1af   : > { %v1964_v62 = vshll.u32 %v7820_v6, 16  ;;  %v2034_v30 = vrot.slane %v7820_v6, 1  ;;  %v2163_v29 = vsel %vm9902_vm2, %v2114_v32, %v1454_v0  ;;  %v1427_v19 = vrot.slane %v9912_v35, 1 }
 0x1b0   : > { %v1456_v21 = vpop.permute.xlu1 %1455  ;;  %1545 = vrot.lane.b32.xlu0 %v7671_v26, %s6474_s12  ;;  %v1962_v26 = vor.u32 %v1960_v22, %v1958_v20  ;;  %v1740_v13 = vshll.u32 %v7840_v60, 16 }
 0x1b1   : > { %v7833_v38 = vrot.slane %v1964_v62, 1  ;;  %v2165_v0 = vsel %vm9913_vm14, %v2116_v33, %v1456_v21  ;;  %v2035_v56 = vsel %vm1379_vm10, %v2032_v46, %v2034_v30  ;;  %v1736_v21 = vshrl.u32 %v7772_v57, 16  ;;  %vm9917_vm14 = vmmov %vm9902_vm2 }
 0x1b2   : > { %1547 = vrot.lane.b32.xlu1 %v7750_v47, %s6474_s12  ;;  %v1530_v16 = vpop.permute.xlu0 %1529  ;;  %v1844_v47 = vsel %vm1379_vm10, %v1841_v28, %v1843_v4  ;;  %v1744_v62 = vshrl.u32 %v7840_v60, 16  ;;  %v1968_v33 = vshrl.u32 %v7820_v6, 16 }
 0x1b3   : > { %v1967_v39 = vsel %vm9831_vm9, %v1962_v26, %v7833_v38  ;;  %v2212_v58 = vsel %vm9911_vm4, %v2163_v29, %v1530_v16  ;;  %vm9916_vm4 = vmmov %vm9906_vm0 }
 0x1b4   : > { %v1532_v31 = vpop.permute.xlu1 %1531  ;;  %1792 = vrot.lane.b32.xlu0 %v1727_v48, %s6475_s15  ;;  %v5871_v48 = vcombine.low %v1007_v27, %v1007_v27 }
 0x1b5   : > { %v2214_v41 = vsel %vm9906_vm0, %v2165_v0, %v1532_v31  ;;  %v1428_v31 = vsel %vm1379_vm10, %v7753_v18, %v1427_v19  ;;  %v1738_v18 = vor.u32 %v1736_v21, %v7809_v44  ;;  %v1845_v44 = vrot.slane %v7840_v60, 1  ;;  %v9914_v21 = vld [vmem:[#allocation30_spill] sm:$0xff] }
 0x1b6   : > { %1794 = vrot.lane.b32.xlu1 %v1735_v52, %s6475_s15  ;;  %v1777_v49 = vpop.permute.xlu0 %1776  ;;  %v1847_v25 = vrot.slane %v5871_v48, 1  ;;  %v1970_v0 = vor.u32 %v1968_v33, %v7833_v38 }
 0x1b7   : > { %v1846_v53 = vsel %vm1379_vm10, %v1843_v4, %v1845_v44 }
 0x1b8   : > { %v1779_v2 = vpop.permute.xlu1 %1778  ;;  %1889 = vrot.lane.b32.xlu0 %v1842_v8, %s6476_s18 }
 0x1b9   : > { %v2263_v52 = vsel %vm2235_vm15, %v2214_v41, %v1779_v2  ;;  %v1748_v2 = vshll.u32 %v5871_v48, 16 }
 0x1ba   : > { %1891 = vrot.lane.b32.xlu1 %v1844_v47, %s6476_s18  ;;  %v1874_v17 = vpop.permute.xlu0 %1873  ;;  %v1742_v47 = vrot.slane %v1740_v13, 1 }
 0x1bc   : > { %v1876_v7 = vpop.permute.xlu1 %1875  ;;  %1944 = vrot.lane.b32.xlu0 %v9900_v50, %s6477_s19  ;;  %v1746_v46 = vor.u32 %v1744_v62, %v1742_v47 }
 0x1bd   : > { %v2312_v8 = vsel %vm2284_vm1, %v2263_v52, %v1876_v7 }
 0x1be   : > { %1946 = vrot.lane.b32.xlu1 %v5872_v59, %s6477_s19  ;;  %v1929_v51 = vpop.permute.xlu0 %1928  ;;  %v2261_v59 = vsel %vm2235_vm15, %v2212_v58, %v1777_v49 }
 0x1bf   : > { %v2310_v28 = vsel %vm2284_vm1, %v2261_v59, %v1874_v17 }
 0x1c0   : > { %v1931_v23 = vpop.permute.xlu1 %1930  ;;  %2024 = vrot.lane.b32.xlu0 %v1959_v1, %s6478_s20  ;;  %v2359_v45 = vsel %vm2333_vm5, %v2310_v28, %v1929_v51  ;;  %v2959_v1 = vld [vmem:[#allocation3 + $0x30] sm:$0x1]  ;;  %v1750_v51 = vrot.slane %v1748_v2, 1  ;;  %v2962_v28 = vld [vmem:[#allocation3 + $0x3c] sm:$0x1] }
 0x1c1   : > { %v2361_v20 = vsel %vm2333_vm5, %v2312_v8, %v1931_v23  ;;  %v2960_v63 = vsel %vm7696_vm3, 0, %v2959_v1  ;;  %v2963_v52 = vsel %vm7696_vm3, 0, %v2962_v28  ;;  %v2118_v8 = vsel %vm2088_vm12, %v9877_v36, %v9914_v21  ;;  %v3015_v28 = vld [vmem:[#allocation3 + $0x50] sm:$0xf] }
 0x1c2   : > { %2026 = vrot.lane.b32.xlu1 %v1967_v39, %s6478_s20  ;;  %v2009_v11 = vpop.permute.xlu0 %2008  ;;  %v6375_v39 = vld [vmem:[#allocation2 + $0xd0] sm:$0xff]   ;;  %2961 = vst [vmem:[#allocation3 + $0x30] sm:$0x1] %v2960_v63  ;;  %v1751_v23 = vsel %vm9831_vm9, %v1746_v46, %v1750_v51  ;;  %2964 = vst [vmem:[#allocation3 + $0x3c] sm:$0x1] %v2963_v52 }
 0x1c3   : > { %v2408_v49 = vsel %vm2382_vm7, %v2359_v45, %v2009_v11  ;;  %v1972_v29 = vshll.u32 %v6375_v39, 16  ;;  %v1976_v35 = vshrl.u32 %v6375_v39, 16  ;;  %v2036_v41 = vrot.slane %v6375_v39, 1 }
 0x1c4   : > { %v2011_v16 = vpop.permute.xlu1 %2010  ;;  %2080 = vrot.lane.b32.xlu0 %v2033_v12, %s6479_s21  ;;  %v6376_v12 = vld [vmem:[#allocation2 + $0xd8] ss:$0 sps:$4 sm:$0xff]  }
 0x1c5   : > { %v2410_v17 = vsel %vm2382_vm7, %v2361_v20, %v2011_v16  ;;  %v1974_v11 = vrot.slane %v1972_v29, 1  ;;  %v1980_v19 = vshll.u32 %v6376_v12, 16  ;;  %v2038_v45 = vrot.slane %v6376_v12, 1 }
 0x1c6   : > { %2082 = vrot.lane.b32.xlu1 %v2035_v56, %s6479_s21  ;;  %v2065_v27 = vpop.permute.xlu0 %2064 }
 0x1c7   : > { %v2457_v22 = vsel %vm2431_vm11, %v2408_v49, %v2065_v27  ;;  %v1978_v59 = vor.u32 %v1976_v35, %v1974_v11  ;;  %v1982_v4 = vrot.slane %v1980_v19, 1  ;;  %v1975_v48 = vsel %vm9831_vm9, %v1970_v0, %v1974_v11 }
 0x1c8   : > { %v2067_v26 = vpop.permute.xlu1 %2066  ;;  %1473 = vrot.lane.b32.xlu0 %v7779_v34, %s6473_s9  ;;  %6240 = vmatprep.mubr.msk.bf16.mxu0 %vm2500_vm6, %v2457_v22  ;;  %v1743_v34 = vsel %vm9831_vm9, %v1738_v18, %v1742_v47  ;;  %v9915_v47 = vld [vmem:[#allocation31_spill] sm:$0xff] }
 0x1c9   : > { %v2459_v7 = vsel %vm2431_vm11, %v2410_v17, %v2067_v26  ;;  %v1983_v38 = vsel %vm9831_vm9, %v1978_v59, %v1982_v4  ;;  %v2120_v20 = vsel %vm2088_vm12, %v9878_v42, %v9915_v47  ;;  %v2039_v17 = vsel %vm1379_vm10, %v2036_v41, %v2038_v45  ;;  %v9919_v4 = vld [vmem:[#allocation33_spill] sm:$0xff]  ;;  %v3018_v45 = vld [vmem:[#allocation3 + $0x5c] sm:$0xf] }
 0x1ca   : > { %1475 = vrot.lane.b32.xlu1 %v1428_v31, %s6473_s9  ;;  %6241 = vmatmul.mubr.msk.bf16.gmra.mrb[24].mxu0 %vm2500_vm6, %v2459_v7  ;;  %v1458_v37 = vpop.permute.xlu0 %1457  ;;  %v2037_v31 = vsel %vm1379_vm10, %v2034_v30, %v2036_v41 }
 0x1cb   : > { %v2167_v27 = vsel %vm9902_vm2, %v2118_v8, %v1458_v37 }
 0x1cc   : > { %v1460_v14 = vpop.permute.xlu1 %1459  ;;  %1549 = vrot.lane.b32.xlu0 %v7772_v57, %s6474_s12 }
 0x1cd   : > { %v2169_v36 = vsel %vm9917_vm14, %v2120_v20, %v1460_v14  ;;  %vm9921_vm14 = vmmov %vm9902_vm2 }
 0x1ce   : > { %1551 = vrot.lane.b32.xlu1 %v7840_v60, %s6474_s12  ;;  %v1534_v32 = vpop.permute.xlu0 %1533  ;;  %v1848_v60 = vsel %vm1379_vm10, %v1845_v44, %v1847_v25  ;;  %v3012_v44 = vld [vmem:[#allocation3 + $0x44] sm:$0xf] }
 0x1cf   : > { %v2216_v22 = vsel %vm9916_vm4, %v2167_v27, %v1534_v32  ;;  %vm9920_vm4 = vmmov %vm9906_vm0 }
 0x1d0   : > { %v1536_v55 = vpop.permute.xlu1 %1535  ;;  %1796 = vrot.lane.b32.xlu0 %v1743_v34, %s6475_s15 }
 0x1d1   : > { %v2218_v26 = vsel %vm9906_vm0, %v2169_v36, %v1536_v55 }
 0x1d2   : > { %1798 = vrot.lane.b32.xlu1 %v1751_v23, %s6475_s15  ;;  %v1781_v58 = vpop.permute.xlu0 %1780  ;;  %v3013_v23 = vsel %vm7707_vm13, 0, %v3012_v44 }
 0x1d3   : > { %v2265_v2 = vsel %vm2235_vm15, %v2216_v22, %v1781_v58  ;;  %3014 = vst [vmem:[#allocation3 + $0x44] sm:$0xf] %v3013_v23  ;;  %v2968_v58 = vld [vmem:[#allocation3 + $0x54] sm:$0x1] }
 0x1d4   : > { %v1783_v13 = vpop.permute.xlu1 %1782  ;;  %1893 = vrot.lane.b32.xlu0 %v1846_v53, %s6476_s18 }
 0x1d5   : > { %v2267_v42 = vsel %vm2235_vm15, %v2218_v26, %v1783_v13  ;;  %v9918_v13 = vld [vmem:[#allocation32_spill] sm:$0xff] }
 0x1d6   : > { %1895 = vrot.lane.b32.xlu1 %v1848_v60, %s6476_s18  ;;  %v1878_v57 = vpop.permute.xlu0 %1877  ;;  %v2969_v60 = vsel %vm7696_vm3, 0, %v2968_v58  ;;  %v2122_v0 = vsel %vm2088_vm12, %v9883_v61, %v9918_v13  ;;  %s6483_s18 = smov 64  }
 0x1d7   : > { %2970 = vst [vmem:[#allocation3 + $0x54] sm:$0x1] %v2969_v60 }
 0x1d8   : > { %v1880_v56 = vpop.permute.xlu1 %1879  ;;  %1948 = vrot.lane.b32.xlu0 %v7820_v6, %s6477_s19  ;;  %v2314_v6 = vsel %vm2284_vm1, %v2265_v2, %v1878_v57 }
 0x1d9   : > { %v2316_v18 = vsel %vm2284_vm1, %v2267_v42, %v1880_v56  ;;  %v2124_v56 = vsel %vm2088_vm12, %v9884_v40, %v9919_v4  ;;  %v3019_v40 = vsel %vm7707_vm13, 0, %v3018_v45  ;;  %v9923_v4 = vld [vmem:[#allocation35_spill] sm:$0xff] }
 0x1da   : > { %1950 = vrot.lane.b32.xlu1 %v6375_v39, %s6477_s19  ;;  %v1933_v16 = vpop.permute.xlu0 %1932  ;;  %v2965_v39 = vld [vmem:[#allocation3 + $0x48] sm:$0x1]  ;;  %3020 = vst [vmem:[#allocation3 + $0x5c] sm:$0xf] %v3019_v40 }
 0x1db   : > { %v2363_v7 = vsel %vm2333_vm5, %v2314_v6, %v1933_v16  ;;  %v2966_v34 = vsel %vm7696_vm3, 0, %v2965_v39 }
 0x1dc   : > { %v1935_v49 = vpop.permute.xlu1 %1934  ;;  %2028 = vrot.lane.b32.xlu0 %v1975_v48, %s6478_s20  ;;  %2967 = vst [vmem:[#allocation3 + $0x48] sm:$0x1] %v2966_v34 }
 0x1dd   : > { %v2365_v46 = vsel %vm2333_vm5, %v2316_v18, %v1935_v49  ;;  %v3021_v18 = vld [vmem:[#allocation3 + $0x68] sm:$0xf] }
 0x1de   : > { %2030 = vrot.lane.b32.xlu1 %v1983_v38, %s6478_s20  ;;  %v2013_v62 = vpop.permute.xlu0 %2012  ;;  %v3016_v38 = vsel %vm7707_vm13, 0, %v3015_v28 }
 0x1df   : > { %v2412_v37 = vsel %vm2382_vm7, %v2363_v7, %v2013_v62  ;;  %3017 = vst [vmem:[#allocation3 + $0x50] sm:$0xf] %v3016_v38  ;;  %v7979_v7 = vld [vmem:[%s9790_s2] ss:$0 sm:$0xff] }
 0x1e0   : > { %v2015_v30 = vpop.permute.xlu1 %2014  ;;  %2084 = vrot.lane.b32.xlu0 %v2037_v31, %s6479_s21 }
 0x1e1   : > { %v2414_v63 = vsel %vm2382_vm7, %v2365_v46, %v2015_v30 }
 0x1e2   : > { %2086 = vrot.lane.b32.xlu1 %v2039_v17, %s6479_s21  ;;  %v2069_v1 = vpop.permute.xlu0 %2068 }
 0x1e3   : > { %v2461_v51 = vsel %vm2431_vm11, %v2412_v37, %v2069_v1  ;;  %v3022_v1 = vsel %vm7707_vm13, 0, %v3021_v18 }
 0x1e4   : > { %v2071_v14 = vpop.permute.xlu1 %2070  ;;  %6244 = vmatprep.mubr.msk.bf16.mxu0 %vm2500_vm6, %v2461_v51  ;;  %v7986_v51 = vld [vmem:[%s9791_s3] ss:$0 sm:$0xff]  ;;  %3023 = vst [vmem:[#allocation3 + $0x68] sm:$0xf] %v3022_v1 }
 0x1e5   : > { %v2463_v32 = vsel %vm2431_vm11, %v2414_v63, %v2071_v14 }
 0x1e6   : > { %6245 = vmatmul.mubr.msk.bf16.gmra.mrb[28].mxu0 %vm2500_vm6, %v2463_v32  ;;  %v1462_v25 = vpop.permute.xlu0 %1461 }
 0x1e7   : > { %v2171_v59 = vsel %vm9902_vm2, %v2122_v0, %v1462_v25 }
 0x1e8   : > { %v1464_v29 = vpop.permute.xlu1 %1463 }
 0x1e9   : > { %v2173_v16 = vsel %vm9921_vm14, %v2124_v56, %v1464_v29  ;;  %v2128_v56 = vsel %vm2088_vm12, %v7009_v24, %v9923_v4 }
 0x1ea   : > { %v1538_v12 = vpop.permute.xlu0 %1537 }
 0x1eb   : > { %v2220_v48 = vsel %vm9920_vm4, %v2171_v59, %v1538_v12  ;;  %v2971_v59 = vld [vmem:[#allocation3 + $0x60] sm:$0x1] }
 0x1ec   : > { %v1540_v55 = vpop.permute.xlu1 %1539  ;;  %v2972_v28 = vsel %vm7696_vm3, 0, %v2971_v59 }
 0x1ed   : > { %v2222_v61 = vsel %vm9906_vm0, %v2173_v16, %v1540_v55  ;;  %vm9924_vm0 = vcmask 64512   ;;  %2973 = vst [vmem:[#allocation3 + $0x60] sm:$0x1] %v2972_v28 }
 0x1ee   : > { %v1785_v53 = vpop.permute.xlu0 %1784 }
 0x1ef   : > { %v2269_v52 = vsel %vm2235_vm15, %v2220_v48, %v1785_v53 }
 0x1f0   : > { %v1787_v33 = vpop.permute.xlu1 %1786 }
 0x1f1   : > { %v2271_v49 = vsel %vm2235_vm15, %v2222_v61, %v1787_v33 }
 0x1f2   : > { %v1882_v11 = vpop.permute.xlu0 %1881 }
 0x1f3   : > { %v2318_v21 = vsel %vm2284_vm1, %v2269_v52, %v1882_v11 }
 0x1f4   : > { %v1884_v35 = vpop.permute.xlu1 %1883 }
 0x1f5   : > { %v2320_v31 = vsel %vm2284_vm1, %v2271_v49, %v1884_v35  ;;  %v9922_v35 = vld [vmem:[#allocation34_spill] sm:$0xff] }
 0x1f6   : > { %v1937_v19 = vpop.permute.xlu0 %1936 }
 0x1f7   : > { %v2367_v27 = vsel %vm2333_vm5, %v2318_v21, %v1937_v19  ;;  %v2126_v19 = vsel %vm2088_vm12, %v6978_v15, %v9922_v35 }
 0x1f8   : > { %v1939_v57 = vpop.permute.xlu1 %1938 }
 0x1f9   : > { %v2369_v22 = vsel %vm2333_vm5, %v2320_v31, %v1939_v57 }
 0x1fa   : > { %v2017_v41 = vpop.permute.xlu0 %2016 }
 0x1fb   : > { %v2416_v47 = vsel %vm2382_vm7, %v2367_v27, %v2017_v41 }
 0x1fc   : > { %v2019_v8 = vpop.permute.xlu1 %2018 }
 0x1fd   : > { %v2418_v36 = vsel %vm2382_vm7, %v2369_v22, %v2019_v8 }
 0x1fe   : > { %v2073_v20 = vpop.permute.xlu0 %2072 }
 0x1ff   : > { %v2465_v62 = vsel %vm2431_vm11, %v2416_v47, %v2073_v20  ;;  %v3464_v47 = vld [vmem:[#allocation3 + $0xc] sm:$0xf] }
 0x200   : > { %v2075_v2 = vpop.permute.xlu1 %2074  ;;  %6248 = vmatprep.mubr.msk.bf16.mxu0 %vm2500_vm6, %v2465_v62 }
 0x201   : > { %v2467_v17 = vsel %vm2431_vm11, %v2418_v36, %v2075_v2 }
 0x202   : > { %6249 = vmatmul.mubr.msk.bf16.gmra.mrb[32].mxu0 %vm2500_vm6, %v2467_v17  ;;  %v1466_v26 = vpop.permute.xlu0 %1465  ;;  %v3471_v17 = vld [vmem:[#allocation3 + $0x18] sm:$0xf] }
 0x203   : > { %v2175_v16 = vsel %vm9924_vm0, %v2126_v19, %v1466_v26  ;;  %v3578_v19 = vld [vmem:[#allocation3 + $0x8] sm:$0xf] }
 0x204   : > { %v1468_v6 = vpop.permute.xlu1 %1467 }
 0x206   : > { %v1542_v30 = vpop.permute.xlu0 %1541 }
 0x208   : > { %v1544_v42 = vpop.permute.xlu1 %1543 }
 0x209   : > { %v6218_v37 = vpop.f32.mrb[0].mxu0 }
 0x20a   : > { %v2587_v46 = vpop.f32.mrb[1].mxu0  ;;  %v1789_v39 = vpop.permute.xlu0 %1788  ;;  %v3468_v37 = vld [vmem:[#allocation3 + $0x14] sm:$0x1] }
 0x20b   : > { %v2769_v63 = vmul.f32 %v7979_v7, %v2587_v46  ;;  %v6219_v14 = vpop.f32.mrb[2].mxu0 }
 0x20c   : > { %v2771_v34 = vmul.f32 %v6219_v14, %v7979_v7  ;;  %v1791_v44 = vpop.permute.xlu1 %1790  ;;  %v2590_v32 = vpop.f32.mrb[3].mxu0 }
 0x20d   : > { %v2808_v23 = vadd.f32 %v7986_v51, %v2769_v63  ;;  %v2770_v25 = vmul.f32 %v7979_v7, %v2590_v32 }
 0x20e   : > { %v2810_v29 = vadd.f32 %v7986_v51, %v2771_v34  ;;  %v1886_v12 = vpop.permute.xlu0 %1885 }
 0x20f   : > { %vm2840_vm2 = vcmp.ge.f32.partialorder %v2808_v23, 0.0  ;;  %v2872_v55 = vmul.f32 0.01, %v2808_v23  ;;  %v2809_v53 = vadd.f32 %v7986_v51, %v2770_v25 }
 0x210   : > { %vm2842_vm4 = vcmp.ge.f32.partialorder %v2810_v29, 0.0  ;;  %v2874_v33 = vmul.f32 0.01, %v2810_v29  ;;  %v1888_v58 = vpop.permute.xlu1 %1887 }
 0x211   : > { %v2904_v60 = vsel %vm2840_vm2, %v2808_v23, %v2872_v55  ;;  %vm2841_vm14 = vcmp.ge.f32.partialorder %v2809_v53, 0.0  ;;  %v2873_v11 = vmul.f32 0.01, %v2809_v53  ;;  %vm9925_vm2 = vmmov %vm9924_vm0 }
 0x212   : > { %v6090_v13 = vpack.c.bf16 %v2904_v60, %v2904_v60  ;;  %v2906_v0 = vsel %vm2842_vm4, %v2810_v29, %v2874_v33  ;;  %v1941_v57 = vpop.permute.xlu0 %1940  ;;  %v2177_v52 = vsel %vm9925_vm2, %v2128_v56, %v1468_v6  ;;  %vm9926_vm4 = vcmask 97280   ;;  %v6383_v29 = vld [vmem:[#allocation3] sm:$0xff]  }
 0x213   : > { %v6092_v48 = vpack.c.bf16 %v2906_v0, %v2906_v0  ;;  %v2905_v41 = vsel %vm2841_vm14, %v2809_v53, %v2873_v11  ;;  %v2224_v61 = vsel %vm9926_vm4, %v2175_v16, %v1542_v30  ;;  %vm9927_vm9 = vmmov %vm9926_vm4  ;;  %v3757_v11 = vshll.u32 %v6383_v29, 16 }
 0x214   : > { %v3145_v38 = vshrl.u32 %v6090_v13, 16  ;;  %v6091_v45 = vpack.c.bf16 %v2905_v41, %v2905_v41  ;;  %v1943_v15 = vpop.permute.xlu1 %1942  ;;  %v2226_v21 = vsel %vm9927_vm9, %v2177_v52, %v1544_v42  ;;  %v3148_v24 = vshll.u32 %v6090_v13, 16 }
 0x215   : > { %v3162_v8 = vshrl.u32 %v6092_v48, 16  ;;  %v2273_v49 = vsel %vm2235_vm15, %v2224_v61, %v1789_v39  ;;  %v3165_v22 = vshll.u32 %v6092_v48, 16  ;;  %v2275_v62 = vsel %vm2235_vm15, %v2226_v21, %v1791_v44 }
 0x216   : > { %v3147_v40 = vrot.slane %v3145_v38, 7  ;;  %v3153_v27 = vshrl.u32 %v6091_v45, 16  ;;  %v2021_v31 = vpop.permute.xlu0 %2020  ;;  %v2322_v36 = vsel %vm2284_vm1, %v2273_v49, %v1886_v12  ;;  %v3156_v6 = vshll.u32 %v6091_v45, 16 }
 0x217   : > { %v8007_v20 = vrot.slane %v3162_v8, 7  ;;  %v2371_v30 = vsel %vm2333_vm5, %v2322_v36, %v1941_v57  ;;  %v2324_v1 = vsel %vm2284_vm1, %v2275_v62, %v1888_v58  ;;  %vm9928_vm9 = vcmask 60416  }
 0x218   : > { %v3150_v2 = vor.u32 %v3148_v24, %v3147_v40  ;;  %v3155_v26 = vrot.slane %v3153_v27, 7  ;;  %v2023_v42 = vpop.permute.xlu1 %2022  ;;  %v2420_v46 = vsel %vm2382_vm7, %v2371_v30, %v2021_v31  ;;  %v3151_v39 = vrot.slane %v3147_v40, 4 }
 0x219   : > { %v3167_v18 = vor.u32 %v3165_v22, %v8007_v20  ;;  %v2373_v23 = vsel %vm2333_vm5, %v2324_v1, %v1943_v15  ;;  %v3755_v16 = vshrl.u32 %v6383_v29, 16  ;;  %v3759_v52 = vrot.slane %v3757_v11, 1 }
 0x21a   : > { %v3465_v63 = vsel %vm7707_vm13, %v3150_v2, %v3464_v47  ;;  %v3158_v14 = vor.u32 %v3156_v6, %v3155_v26  ;;  %v3160_v34 = vrot.slane %v3155_v26, 4  ;;  %v2077_v44 = vpop.permute.xlu0 %2076  ;;  %v2422_v53 = vsel %vm2382_vm7, %v2373_v23, %v2023_v42  ;;  %v9930_v23 = vld [vmem:[#allocation37_spill] sm:$0xff] }
 0x21b   : > { %3466 = vst [vmem:[#allocation3 + $0xc] sm:$0xf] %v3465_v63  ;;  %v3472_v32 = vsel %vm7707_vm13, %v3167_v18, %v3471_v17  ;;  %v2469_v25 = vsel %vm2431_vm11, %v2420_v46, %v2077_v44  ;;  %v3998_v49 = vrot.slane %v6383_v29, 1  ;;  %v3760_v2 = vor.u32 %v3759_v52, %v3755_v16  ;;  %v9929_v44 = vld [vmem:[#allocation36_spill] sm:$0xff]  ;;  %v3475_v52 = vld [vmem:[#allocation3 + $0x20] sm:$0x1] }
 0x21c   : > { %3473 = vst [vmem:[#allocation3 + $0x18] sm:$0xf] %v3472_v32  ;;  %v3159_v12 = vsel %vm6595_vm8, %v3151_v39, %v3158_v14  ;;  %v3469_v55 = vsel %vm7696_vm3, %v3160_v34, %v3468_v37  ;;  %v2079_v33 = vpop.permute.xlu1 %2078  ;;  %6252 = vmatprep.mubr.msk.bf16.mxu0 %vm2500_vm6, %v2469_v25  ;;  %v2130_v32 = vsel %vm2088_vm12, %v9890_v5, %v9929_v44  ;;  %vm9931_vm4 = vsmask.f32 7424 }
 0x21d   : > { %3467 = vst.msk [vmem:[#allocation3 + $0x10] sm:$0xf] %vm9928_vm9, %v3159_v12  ;;  %3470 = vst [vmem:[#allocation3 + $0x14] sm:$0x1] %v3469_v55  ;;  %v2471_v58 = vsel %vm2431_vm11, %v2422_v53, %v2079_v33  ;;  %v2132_v25 = vsel %vm2088_vm12, %v9891_v10, %v9930_v23  ;;  %v3168_v55 = vrot.slane %v8007_v20, 4  ;;  %vm9932_vm9 = vcmask 64512  }
 0x21e   : > { %6253 = vmatmul.mubr.msk.bf16.gmra.mrb[36].mxu0 %vm2500_vm6, %v2471_v58  ;;  %v1470_v60 = vpop.permute.xlu0 %1469  ;;  %v3478_v10 = vld [vmem:[#allocation3 + $0x24] sm:$0xf] }
 0x220   : > { %v8030_v35 = vpop.permute.xlu1 %1471 }
 0x221   : > { %v6222_v13 = vpop.f32.mrb[4].mxu0 }
 0x222   : > { %v2773_v0 = vmul.f32 %v6222_v13, %v7979_v7  ;;  %v2602_v57 = vpop.f32.mrb[5].mxu0  ;;  %v8033_v59 = vpop.permute.xlu0 %1545  ;;  %v3579_v4 = vld [vmem:[#allocation3 + $0xc] sm:$0xf] }
 0x223   : > { %v2772_v56 = vmul.f32 %v7979_v7, %v2602_v57  ;;  %v6223_v48 = vpop.f32.mrb[6].mxu0  ;;  %v8036_v41 = vcombine.low %v3578_v19, %v3579_v4  ;;  %v8038_v28 = vld [vmem:[#allocation3 + $0x18] sm:$0xf]  ;;  %v2179_v19 = vsel %vm9932_vm9, %v2130_v32, %v1470_v60 }
 0x224   : > { %v2812_v38 = vadd.f32 %v7986_v51, %v2773_v0  ;;  %v2774_v45 = vmul.f32 %v6223_v48, %v7979_v7  ;;  %v8042_v15 = vpop.permute.xlu1 %1547  ;;  %v2605_v61 = vpop.f32.mrb[7].mxu0  ;;  %v3580_v21 = vld [vmem:[#allocation3 + $0x10] sm:$0xf]  ;;  %v3581_v8 = vld [vmem:[#allocation3 + $0x14] sm:$0xf] }
 0x225   : > { %v2811_v40 = vadd.f32 %v7986_v51, %v2772_v56  ;;  %v8045_v24 = vcombine.low %v3579_v4, %v3580_v21  ;;  %v8051_v22 = vcombine.low %v3581_v8, %v8038_v28  ;;  %v3999_v36 = vrot.slane %v8036_v41, 1 }
 0x226   : > { %vm2844_vm14 = vcmp.ge.f32.partialorder %v2812_v38, 0.0  ;;  %v2876_v27 = vmul.f32 0.01, %v2812_v38  ;;  %v2813_v31 = vadd.f32 %v7986_v51, %v2774_v45  ;;  %v8048_v47 = vpop.permute.xlu0 %1792  ;;  %v3762_v30 = vshll.u32 %v8036_v41, 16 }
 0x227   : > { %vm2843_vm0 = vcmp.ge.f32.partialorder %v2811_v40, 0.0  ;;  %v2875_v62 = vmul.f32 0.01, %v2811_v40  ;;  %4123 = vrot.lane.b32.xlu1 %v8045_v24, %s6477_s19  ;;  %4125 = vrot.lane.b32.xlu0 %v8051_v22, %s6477_s19  ;;  %v8061_v37 = vcombine.low %v3580_v21, %v3581_v8  ;;  %v4000_v1 = vsel %vm1379_vm10, %v3998_v49, %v3999_v36  ;;  %v3482_v8 = vld [vmem:[#allocation3 + $0x2c] sm:$0x1] }
 0x228   : > { %v2908_v17 = vsel %vm2844_vm14, %v2812_v38, %v2876_v27  ;;  %vm2845_vm2 = vcmp.ge.f32.partialorder %v2813_v31, 0.0  ;;  %v2877_v26 = vmul.f32 0.01, %v2813_v31  ;;  %v8058_v6 = vpop.permute.xlu1 %1794  ;;  %v3764_v14 = vrot.slane %v3762_v30, 1 }
 0x229   : > { %v6094_v42 = vpack.c.bf16 %v2908_v17, %v2908_v17  ;;  %v2907_v18 = vsel %vm2843_vm0, %v2811_v40, %v2875_v62  ;;  %v4418_v34 = vrot.slane %v8045_v24, 1  ;;  %v4419_v11 = vrot.slane %v8051_v22, 1  ;;  %v6392_v17 = vld [vmem:[%s9792_s4] sm:$0xff]   ;;  %vm9934_vm0 = vmmov %vm9932_vm9 }
 0x22a   : > { %v6093_v46 = vpack.c.bf16 %v2907_v18, %v2907_v18  ;;  %v2909_v39 = vsel %vm2845_vm2, %v2813_v31, %v2877_v26  ;;  %v8064_v63 = vpop.permute.xlu0 %1889  ;;  %v3765_v33 = vsel %vm9931_vm4, %v3760_v2, %v3764_v14  ;;  %v4001_v48 = vrot.slane %v8061_v37, 1  ;;  %6264 = vmatprep.subr.bf16.mxu1 %v6392_v17 }
 0x22b   : > { %v3179_v29 = vshrl.u32 %v6094_v42, 16  ;;  %v6095_v12 = vpack.c.bf16 %v2909_v39, %v2909_v39  ;;  %4047 = vrot.lane.b32.xlu1 %v4000_v1, %s6475_s15  ;;  %v3182_v5 = vshll.u32 %v6094_v42, 16  ;;  %3950 = vrot.lane.b32.xlu0 %v3765_v33, %s6473_s9  ;;  %v4420_v20 = vsel %vm1379_vm10, %v4418_v34, %v4419_v11  ;;  %v2974_v1 = vld [vmem:[#allocation3 + $0x6c] sm:$0x1] }
 0x22c   : > { %v3170_v53 = vshrl.u32 %v6093_v46, 16  ;;  %v1892_v58 = vpop.permute.xlu1 %1891  ;;  %v3173_v4 = vshll.u32 %v6093_v46, 16  ;;  %vm9933_vm14 = vcmask 97280   ;;  %v4002_v40 = vsel %vm1379_vm10, %v3999_v36, %v4001_v48  ;;  %v2977_v46 = vld [vmem:[#allocation3 + $0x78] sm:$0x1]  ;;  %6265 = vmatpush3.bf16.msra.mxu1 %v6392_v17 }
 0x22d   : > { %v3181_v13 = vrot.slane %v3179_v29, 7  ;;  %v3187_v0 = vshrl.u32 %v6095_v12, 16  ;;  %v2228_v60 = vsel %vm9933_vm14, %v2179_v19, %v8033_v59  ;;  %v3190_v45 = vshll.u32 %v6095_v12, 16  ;;  %vm9937_vm9 = vmmov %vm9933_vm14 }
 0x22e   : > { %v3172_v57 = vrot.slane %v3170_v53, 7  ;;  %v1945_v56 = vpop.permute.xlu0 %1944  ;;  %v3766_v27 = vshrl.u32 %v8036_v41, 16  ;;  %v3770_v18 = vshll.u32 %v8061_v37, 16  ;;  %v2181_v39 = vsel %vm9934_vm0, %v2132_v25, %v8030_v35 }
 0x22f   : > { %v3184_v16 = vor.u32 %v3182_v5, %v3181_v13  ;;  %v3189_v38 = vrot.slane %v3187_v0, 7  ;;  %4467 = vrot.lane.b32.xlu1 %v4420_v20, %s6480_s28  ;;  %v3185_v31 = vrot.slane %v3181_v13, 4  ;;  %4049 = vrot.lane.b32.xlu0 %v4002_v40, %s6475_s15  ;;  %vm9935_vm2 = vcmask 60416  }
 0x230   : > { %v3175_v61 = vor.u32 %v3173_v4, %v3172_v57  ;;  %v3177_v21 = vrot.slane %v3172_v57, 4  ;;  %v1947_v49 = vpop.permute.xlu1 %1946  ;;  %v3768_v42 = vor.u32 %v3766_v27, %v3764_v14  ;;  %v2277_v32 = vsel %vm2235_vm15, %v2228_v60, %v8048_v47  ;;  %v3024_v14 = vld [vmem:[#allocation3 + $0x74] sm:$0xf]  ;;  %vm9936_vm4 = vmmov %vm9935_vm2 }
 0x231   : > { %v3479_v62 = vsel %vm7707_vm13, %v3184_v16, %v3478_v10  ;;  %v3192_v59 = vor.u32 %v3190_v45, %v3189_v38  ;;  %v3194_v2 = vrot.slane %v3189_v38, 4  ;;  %v2230_v35 = vsel %vm9937_vm9, %v2181_v39, %v8042_v15 }
 0x232   : > { %3480 = vst [vmem:[#allocation3 + $0x24] sm:$0xf] %v3479_v62  ;;  %v3176_v26 = vsel %vm6595_vm8, %v3168_v55, %v3175_v61  ;;  %v3476_v36 = vsel %vm7696_vm3, %v3177_v21, %v3475_v52  ;;  %v2025_v30 = vpop.permute.xlu0 %2024  ;;  %v2326_v23 = vsel %vm2284_vm1, %v2277_v32, %v8064_v63  ;;  %v8115_v25 = vrot.slane %v3770_v18, 1  ;;  %v6394_v63 = vld [vmem:[%s9792_s4 + $0x8] sm:$0xff]  }
 0x233   : > { %3474 = vst.msk [vmem:[#allocation3 + $0x1c] sm:$0xf] %vm9935_vm2, %v3176_v26  ;;  %3477 = vst [vmem:[#allocation3 + $0x20] sm:$0x1] %v3476_v36  ;;  %v3193_v34 = vsel %vm6595_vm8, %v3185_v31, %v3192_v59  ;;  %v3483_v44 = vsel %vm7696_vm3, %v3194_v2, %v3482_v8  ;;  %v4177_v12 = vshll.u32 %v8045_v24, 16  ;;  %v2279_v47 = vsel %vm2235_vm15, %v2230_v35, %v8058_v6 }
 0x234   : > { %3481 = vst.msk [vmem:[#allocation3 + $0x28] sm:$0xf] %vm9936_vm4, %v3193_v34  ;;  %3484 = vst [vmem:[#allocation3 + $0x2c] sm:$0x1] %v3483_v44  ;;  %v2027_v29 = vpop.permute.xlu1 %2026  ;;  %v2375_v55 = vsel %vm2333_vm5, %v2326_v23, %v1945_v56  ;;  %v2975_v53 = vsel %vm7696_vm3, 0, %v2974_v1  ;;  %v2978_v15 = vsel %vm7696_vm3, 0, %v2977_v46  ;;  %v2328_v33 = vsel %vm2284_vm1, %v2279_v47, %v1892_v58  ;;  %6266 = vmatprep.subr.bf16.mxu1 %v6394_v63 }
 0x235   : > { %v2424_v19 = vsel %vm2382_vm7, %v2375_v55, %v2025_v30  ;;  %vm9938_vm14 = vsmask.f32 7424  ;;  %2976 = vst [vmem:[#allocation3 + $0x6c] sm:$0x1] %v2975_v53  ;;  %2979 = vst [vmem:[#allocation3 + $0x78] sm:$0x1] %v2978_v15  ;;  %v2377_v0 = vsel %vm2333_vm5, %v2328_v33, %v1947_v49  ;;  %6267 = vmatpush3.bf16.msra.mxu1 %v6394_v63 }
 0x236   : > { %v3773_v13 = vsel %vm9938_vm14, %v3768_v42, %v8115_v25  ;;  %v2081_v6 = vpop.permute.xlu0 %2080  ;;  %v3025_v5 = vsel %vm7707_vm13, 0, %v3024_v14  ;;  %v2426_v58 = vsel %vm2382_vm7, %v2377_v0, %v2027_v29  ;;  %v4179_v4 = vrot.slane %v4177_v12, 1  ;;  %vm9939_vm2 = vmmov %vm9938_vm14 }
 0x237   : > { %3952 = vrot.lane.b32.xlu1 %v3773_v13, %s6473_s9  ;;  %v2473_v10 = vsel %vm2431_vm11, %v2424_v19, %v2081_v6  ;;  %3026 = vst [vmem:[#allocation3 + $0x74] sm:$0xf] %v3025_v5  ;;  %v4182_v52 = vshll.u32 %v8051_v22, 16  ;;  %v4175_v8 = vshrl.u32 %v8045_v24, 16  ;;  %v3774_v32 = vshrl.u32 %v8061_v37, 16  ;;  %vm9940_vm9 = vmmov %vm9939_vm2 }
 0x238   : > { %v2083_v57 = vpop.permute.xlu1 %2082  ;;  %6256 = vmatprep.mubr.msk.bf16.mxu0 %vm2500_vm6, %v2473_v10  ;;  %v4186_v12 = vshrl.u32 %v8051_v22, 16  ;;  %vm9941_vm14 = vmmov %vm9939_vm2 }
 0x239   : > { %v2475_v56 = vsel %vm2431_vm11, %v2426_v58, %v2083_v57  ;;  %v6226_v20 = vpop.f32.mrb[8].mxu0  ;;  %v8140_v16 = vld [vmem:[#allocation3 + $0x24] sm:$0xf]  ;;  %v4180_v17 = vor.u32 %v4179_v4, %v4175_v8  ;;  %v3776_v33 = vor.u32 %v3774_v32, %v8115_v25  ;;  %v6395_v25 = vld [vmem:[%s9792_s4 + $0x10] sm:$0xff]  }
 0x23a   : > { %v3583_v60 = vld [vmem:[#allocation3 + $0x1c] sm:$0xf]  ;;  %v3584_v38 = vld [vmem:[#allocation3 + $0x20] sm:$0xf]  ;;  %v2776_v45 = vmul.f32 %v6226_v20, %v7979_v7  ;;  %v2617_v61 = vpop.f32.mrb[9].mxu0  ;;  %6257 = vmatmul.mubr.msk.bf16.gmra.mrb[40].mxu0 %vm2500_vm6, %v2475_v56  ;;  %v8145_v21 = vpop.permute.xlu0 %1473  ;;  %6268 = vmatprep.subr.bf16.mxu1 %v6395_v25 }
 0x23b   : > { %v8149_v40 = vcombine.low %v8038_v28, %v3583_v60  ;;  %v8151_v49 = vcombine.low %v3583_v60, %v3584_v38  ;;  %v6227_v27 = vpop.f32.mrb[10].mxu0  ;;  %v8154_v31 = vcombine.low %v3584_v38, %v8140_v16  ;;  %v4184_v28 = vrot.slane %v4182_v52, 1  ;;  %v8166_v30 = vld [vmem:[#allocation3 + $0x28] sm:$0xf]  ;;  %v8171_v46 = vld [vmem:[#allocation3 + $0x2c] sm:$0xf]  ;;  %6269 = vmatpush3.bf16.msra.mxu1 %v6395_v25 }
 0x23c   : > { %v2815_v62 = vadd.f32 %v7986_v51, %v2776_v45  ;;  %v8157_v59 = vpop.permute.xlu1 %1475  ;;  %v2619_v2 = vpop.f32.mrb[11].mxu0  ;;  %v3489_v52 = vld [vmem:[#allocation3 + $0x38] sm:$0x1] }
 0x23d   : > { %v2775_v26 = vmul.f32 %v7979_v7, %v2619_v2  ;;  %4522 = vrot.lane.b32.xlu1 %v8149_v40, %s6481_s11  ;;  %4524 = vrot.lane.b32.xlu0 %v8154_v31, %s6481_s11  ;;  %v4421_v24 = vrot.slane %v8151_v49, 1  ;;  %v3778_v36 = vshll.u32 %v8149_v40, 16  ;;  %v3786_v1 = vshll.u32 %v8154_v31, 16 }
 0x23e   : > { %vm2847_vm0 = vcmp.ge.f32.partialorder %v2815_v62, 0.0  ;;  %v2879_v42 = vmul.f32 0.01, %v2815_v62  ;;  %v8168_v18 = vpop.permute.xlu0 %1549  ;;  %v4185_v23 = vsel %vm9939_vm2, %v4180_v17, %v4184_v28  ;;  %v3782_v29 = vshrl.u32 %v8149_v40, 16 }
 0x23f   : > { %v2814_v39 = vadd.f32 %v7986_v51, %v2775_v26  ;;  %v4422_v34 = vsel %vm1379_vm10, %v4419_v11, %v4421_v24  ;;  %v3780_v44 = vrot.slane %v3778_v36, 1  ;;  %v8189_v11 = vcombine.low %v8166_v30, %v8171_v46 }
 0x240   : > { %v2911_v14 = vsel %vm2847_vm0, %v2815_v62, %v2879_v42  ;;  %v8180_v35 = vpop.permute.xlu1 %1551  ;;  %v3788_v63 = vrot.slane %v3786_v1, 1  ;;  %v4190_v19 = vshll.u32 %v8151_v49, 16  ;;  %v4003_v6 = vrot.slane %v8149_v40, 1  ;;  %vm9942_vm0 = vmmov %vm9939_vm2  ;;  %v2980_v1 = vld [vmem:[#allocation3 + $0x84] sm:$0x1] }
 0x241   : > { %v6097_v47 = vpack.c.bf16 %v2911_v14, %v2911_v14  ;;  %vm2846_vm4 = vcmp.ge.f32.partialorder %v2814_v39, 0.0  ;;  %v2878_v55 = vmul.f32 0.01, %v2814_v39  ;;  %4370 = vrot.lane.b32.xlu1 %v4185_v23, %s6479_s21  ;;  %4469 = vrot.lane.b32.xlu0 %v4422_v34, %s6480_s28  ;;  %v3784_v15 = vor.u32 %v3782_v29, %v3780_v44  ;;  %vm9944_vm2 = vmmov %vm9942_vm0 }
 0x242   : > { %v8191_v53 = vpop.permute.xlu0 %1796  ;;  %v4005_v5 = vrot.slane %v8154_v31, 1  ;;  %v3781_v57 = vsel %vm9941_vm14, %v3776_v33, %v3780_v44  ;;  %v8201_v4 = vrot.slane %v4190_v19, 1  ;;  %v3794_v20 = vshll.u32 %v8189_v11, 16  ;;  %v3485_v44 = vld [vmem:[#allocation3 + $0x30] sm:$0xf] }
 0x243   : > { %v3204_v22 = vshrl.u32 %v6097_v47, 16  ;;  %v2910_v13 = vsel %vm2846_vm4, %v2814_v39, %v2878_v55  ;;  %v3789_v58 = vsel %vm9940_vm9, %v3784_v15, %v3788_v63  ;;  %v4188_v45 = vor.u32 %v4186_v12, %v4184_v28  ;;  %v6396_v39 = vld [vmem:[%s9792_s4 + $0x18] sm:$0xff]   ;;  %v3027_v12 = vld [vmem:[#allocation3 + $0x80] sm:$0xf] }
 0x244   : > { %v6096_v0 = vpack.c.bf16 %v2910_v13, %v2910_v13  ;;  %v8197_v10 = vpop.permute.xlu1 %1798  ;;  %v3790_v61 = vshrl.u32 %v8154_v31, 16  ;;  %v3207_v8 = vshll.u32 %v6097_v47, 16  ;;  %v4006_v2 = vsel %vm1379_vm10, %v4003_v6, %v4005_v5  ;;  %6270 = vmatprep.subr.bf16.mxu1 %v6396_v39  ;;  %v9943_v47 = vld [vmem:[#allocation38_spill] sm:$0xff] }
 0x245   : > { %v3206_v56 = vrot.slane %v3204_v22, 7  ;;  %4602 = vrot.lane.b32.xlu1 %v3789_v58, %s6482_s14  ;;  %3954 = vrot.lane.b32.xlu0 %v3781_v57, %s6473_s9  ;;  %v4193_v36 = vsel %vm9942_vm0, %v4188_v45, %v8201_v4  ;;  %v8217_v28 = vrot.slane %v3794_v20, 1  ;;  %v2134_v55 = vsel %vm2088_vm12, %v9899_v9, %v9943_v47  ;;  %v6397_v9 = vld [vmem:[%s9792_s4 + $0x20] ss:$0 sps:$4 sm:$0xff]  }
 0x246   : > { %v3196_v60 = vshrl.u32 %v6096_v0, 16  ;;  %v1894_v38 = vpop.permute.xlu0 %1893  ;;  %v3199_v62 = vshll.u32 %v6096_v0, 16  ;;  %v3792_v42 = vor.u32 %v3790_v61, %v3788_v63  ;;  %v2981_v15 = vsel %vm7696_vm3, 0, %v2980_v1  ;;  %v3030_v63 = vld [vmem:[#allocation3 + $0x8c] sm:$0xf]  ;;  %6271 = vmatpush3.bf16.msra.mxu1 %v6396_v39 }
 0x247   : > { %v3211_v27 = vrot.slane %v3206_v56, 4  ;;  %v3209_v32 = vor.u32 %v3207_v8, %v3206_v56  ;;  %v4007_v0 = vrot.slane %v8189_v11, 1  ;;  %2982 = vst [vmem:[#allocation3 + $0x84] sm:$0x1] %v2981_v15  ;;  %vm9945_vm4 = vcmask 64512   ;;  %v9947_v56 = vld [vmem:[#allocation39_spill] sm:$0xff] }
 0x248   : > { %v3198_v17 = vrot.slane %v3196_v60, 7  ;;  %v1896_v26 = vpop.permute.xlu1 %1895  ;;  %v8237_v13 = vsel %vm9944_vm2, %v3792_v42, %v8217_v28  ;;  %v2183_v57 = vsel %vm9945_vm4, %v2134_v55, %v8145_v21  ;;  %vm9946_vm9 = vcmask 60416   ;;  %vm9949_vm0 = vmmov %vm9945_vm4 }
 0x249   : > { %v3490_v34 = vsel %vm7696_vm3, %v3211_v27, %v3489_v52  ;;  %4658 = vrot.lane.b32.xlu1 %v4006_v2, %s6483_s18  ;;  %4372 = vrot.lane.b32.xlu0 %v4193_v36, %s6479_s21  ;;  %v3028_v25 = vsel %vm7707_vm13, 0, %v3027_v12  ;;  %v2136_v20 = vsel %vm2088_vm12, %v9900_v50, %v9947_v56  ;;  %vm9948_vm14 = vcmask 97280  }
 0x24a   : > { %3491 = vst [vmem:[#allocation3 + $0x38] sm:$0x1] %v3490_v34  ;;  %v3201_v14 = vor.u32 %v3199_v62, %v3198_v17  ;;  %v3202_v23 = vrot.slane %v3198_v17, 4  ;;  %v1949_v29 = vpop.permute.xlu0 %1948  ;;  %v2232_v52 = vsel %vm9948_vm14, %v2183_v57, %v8168_v18  ;;  %v8258_v21 = vcombine.low %v8140_v16, %v8166_v30  ;;  %3029 = vst [vmem:[#allocation3 + $0x80] sm:$0xf] %v3028_v25 }
 0x24b   : > { %v2185_v45 = vsel %vm9949_vm0, %v2136_v20, %v8157_v59  ;;  %v2281_v61 = vsel %vm2235_vm15, %v2232_v52, %v8191_v53  ;;  %vm5179_vm12 = vcmask 1043456   ;;  %vm9950_vm2 = vmmov %vm9948_vm14  ;;  %v8274_v16 = vsel %vm1379_vm10, %v4005_v5, %v4007_v0 }
 0x24c   : > { %v3210_v33 = vsel %vm6595_vm8, %v3202_v23, %v3209_v32  ;;  %v3486_v19 = vsel %vm7707_vm13, %v3201_v14, %v3485_v44  ;;  %v1951_v22 = vpop.permute.xlu1 %1950  ;;  %v2234_v50 = vsel %vm9950_vm2, %v2185_v45, %v8180_v35  ;;  %v2330_v18 = vsel %vm2284_vm1, %v2281_v61, %v1894_v38  ;;  %6323 = vmatprep.subr.msk.bf16.mxu1 %vm5179_vm12, %v6397_v9 }
 0x24d   : > { %3487 = vst [vmem:[#allocation3 + $0x30] sm:$0xf] %v3486_v19  ;;  %3488 = vst.msk [vmem:[#allocation3 + $0x34] sm:$0xf] %vm9946_vm9, %v3210_v33  ;;  %3956 = vrot.lane.b32.xlu1 %v3789_v58, %s6473_s9  ;;  %4604 = vrot.lane.b32.xlu0 %v8237_v13, %s6482_s14  ;;  %v3031_v58 = vsel %vm7707_vm13, 0, %v3030_v63  ;;  %v5181_v59 = vsel %vm5179_vm12, %v6397_v9, 0  ;;  %v2283_v30 = vsel %vm2235_vm15, %v2234_v50, %v8197_v10 }
 0x24e   : > { %v2029_v60 = vpop.permute.xlu0 %2028  ;;  %3032 = vst [vmem:[#allocation3 + $0x8c] sm:$0xf] %v3031_v58  ;;  %v2379_v53 = vsel %vm2333_vm5, %v2330_v18, %v1949_v29  ;;  %v2332_v38 = vsel %vm2284_vm1, %v2283_v30, %v1896_v26  ;;  %v4198_v17 = vshll.u32 %v8258_v21, 16  ;;  %6273 = vmatpush3.bf16.msra.mxu1 %v5181_v59  ;;  %v4004_v44 = vsel %vm1379_vm10, %v4001_v48, %v4003_v6 }
 0x24f   : > { %v2428_v27 = vsel %vm2382_vm7, %v2379_v53, %v2029_v60  ;;  %v2381_v36 = vsel %vm2333_vm5, %v2332_v38, %v1951_v22  ;;  %v4194_v12 = vshrl.u32 %v8151_v49, 16  ;;  %v4202_v55 = vshrl.u32 %v8258_v21, 16  ;;  %v3492_v38 = vld [vmem:[#allocation3 + $0x3c] sm:$0xf] }
 0x250   : > { %v2031_v8 = vpop.permute.xlu1 %2030  ;;  %v4200_v6 = vrot.slane %v4198_v17, 1  ;;  %vm9951_vm4 = vsmask.f32 7424  ;;  %vm9953_vm14 = vcmask 60416  }
 0x251   : > { %4053 = vrot.lane.b32.xlu1 %v4006_v2, %s6475_s15  ;;  %v6230_v35 = vpop.f32.mrb[12].mxu0  ;;  %4660 = vrot.lane.b32.xlu0 %v8274_v16, %s6483_s18  ;;  %v2430_v1 = vsel %vm2382_vm7, %v2381_v36, %v2031_v8  ;;  %v4196_v33 = vor.u32 %v4194_v12, %v8201_v4  ;;  %vm9952_vm9 = vmmov %vm9951_vm4 }
 0x252   : > { %v2631_v62 = vpop.f32.mrb[13].mxu0  ;;  %v2085_v5 = vpop.permute.xlu0 %2084  ;;  %v4204_v52 = vor.u32 %v4202_v55, %v4200_v6  ;;  %vm9954_vm0 = vmmov %vm9951_vm4 }
 0x253   : > { %v2777_v10 = vmul.f32 %v7979_v7, %v2631_v62  ;;  %v2477_v42 = vsel %vm2431_vm11, %v2428_v27, %v2085_v5  ;;  %v6231_v2 = vpop.f32.mrb[14].mxu0  ;;  %v4201_v45 = vsel %vm9951_vm4, %v4196_v33, %v4200_v6 }
 0x254   : > { %v2779_v39 = vmul.f32 %v6231_v2, %v7979_v7  ;;  %v2087_v34 = vpop.permute.xlu1 %2086  ;;  %v2634_v26 = vpop.f32.mrb[15].mxu0  ;;  %6260 = vmatprep.mubr.msk.bf16.mxu0 %vm2500_vm6, %v2477_v42  ;;  %v3588_v32 = vld [vmem:[#allocation3 + $0x30] sm:$0xf]  ;;  %v8312_v9 = vld [vmem:[#allocation3 + $0x34] sm:$0xf] }
 0x255   : > { %v2816_v14 = vadd.f32 %v7986_v51, %v2777_v10  ;;  %v2479_v23 = vsel %vm2431_vm11, %v2430_v1, %v2087_v34  ;;  %v2778_v29 = vmul.f32 %v7979_v7, %v2634_v26  ;;  %4129 = vrot.lane.b32.xlu1 %v8258_v21, %s6477_s19  ;;  %4051 = vrot.lane.b32.xlu0 %v4004_v44, %s6475_s15  ;;  %v3499_v10 = vld [vmem:[#allocation3 + $0x48] sm:$0xf]  ;;  %v3496_v26 = vld [vmem:[#allocation3 + $0x44] sm:$0x1] }
 0x256   : > { %v2818_v47 = vadd.f32 %v7986_v51, %v2779_v39  ;;  %6261 = vmatmul.mubr.msk.bf16.gmra.mrb[44].mxu0 %vm2500_vm6, %v2479_v23  ;;  %v8306_v48 = vcombine.low %v8171_v46, %v3588_v32  ;;  %v4423_v46 = vrot.slane %v8258_v21, 1  ;;  %v8321_v61 = vcombine.low %v3588_v32, %v8312_v9  ;;  %v3033_v39 = vld [vmem:[#allocation3 + $0x98] sm:$0xf] }
 0x257   : > { %vm2848_vm1 = vcmp.ge.f32.partialorder %v2816_v14, 0.0  ;;  %v2880_v15 = vmul.f32 0.01, %v2816_v14  ;;  %v2817_v63 = vadd.f32 %v7986_v51, %v2778_v29  ;;  %v3034_v23 = vsel %vm7707_vm13, 0, %v3033_v39 }
 0x258   : > { %vm2850_vm7 = vcmp.ge.f32.partialorder %v2818_v47, 0.0  ;;  %v2882_v19 = vmul.f32 0.01, %v2818_v47  ;;  %v4206_v22 = vshll.u32 %v8306_v48, 16  ;;  %v4425_v59 = vrot.slane %v8306_v48, 1 }
 0x259   : > { %v2912_v57 = vsel %vm2848_vm1, %v2816_v14, %v2880_v15  ;;  %vm2849_vm6 = vcmp.ge.f32.partialorder %v2817_v63, 0.0  ;;  %v2881_v25 = vmul.f32 0.01, %v2817_v63  ;;  %4127 = vrot.lane.b32.xlu0 %v8151_v49, %s6477_s19  ;;  %v4424_v5 = vsel %vm1379_vm10, %v4421_v24, %v4423_v46  ;;  %3035 = vst [vmem:[#allocation3 + $0x98] sm:$0xf] %v3034_v23 }
 0x25a   : > { %v6098_v56 = vpack.c.bf16 %v2912_v57, %v2912_v57  ;;  %v2914_v20 = vsel %vm2850_vm7, %v2818_v47, %v2882_v19  ;;  %v8317_v60 = vrot.slane %v4206_v22, 1  ;;  %v3802_v17 = vshll.u32 %v8321_v61, 16  ;;  %v2983_v15 = vld [vmem:[#allocation3 + $0x90] sm:$0x1]  ;;  %v3590_v57 = vld [vmem:[#allocation3 + $0x38] sm:$0xf]  ;;  %vm9955_vm7 = vmmov %vm9954_vm0 }
 0x25b   : > { %v6100_v4 = vpack.c.bf16 %v2914_v20, %v2914_v20  ;;  %v2913_v58 = vsel %vm2849_vm6, %v2817_v63, %v2881_v25  ;;  %v4426_v1 = vsel %vm1379_vm10, %v4423_v46, %v4425_v59  ;;  %v3798_v47 = vshrl.u32 %v8189_v11, 16  ;;  %vm9956_vm6 = vmmov %vm9953_vm14 }
 0x25c   : > { %v3213_v50 = vshrl.u32 %v6098_v56, 16  ;;  %v6099_v18 = vpack.c.bf16 %v2913_v58, %v2913_v58  ;;  %v4209_v8 = vsel %vm9952_vm9, %v4204_v52, %v8317_v60  ;;  %v3216_v53 = vshll.u32 %v6098_v56, 16  ;;  %vm9957_vm4 = vmmov %vm9956_vm6 }
 0x25d   : > { %v3230_v21 = vshrl.u32 %v6100_v4, 16  ;;  %4376 = vrot.lane.b32.xlu1 %v4209_v8, %s6479_s21  ;;  %4374 = vrot.lane.b32.xlu0 %v4201_v45, %s6479_s21  ;;  %v3233_v62 = vshll.u32 %v6100_v4, 16  ;;  %v3804_v6 = vrot.slane %v3802_v17, 1  ;;  %v3800_v55 = vor.u32 %v3798_v47, %v8217_v28  ;;  %vm9958_vm9 = vmmov %vm9954_vm0 }
 0x25e   : > { %v3215_v30 = vrot.slane %v3213_v50, 7  ;;  %v3221_v35 = vshrl.u32 %v6099_v18, 16  ;;  %v3224_v2 = vshll.u32 %v6099_v18, 16  ;;  %v2984_v63 = vsel %vm7696_vm3, 0, %v2983_v15 }
 0x25f   : > { %v8328_v27 = vrot.slane %v3230_v21, 7  ;;  %v8360_v33 = vsel %vm9954_vm0, %v3800_v55, %v3804_v6  ;;  %v4009_v19 = vrot.slane %v8321_v61, 1  ;;  %2985 = vst [vmem:[#allocation3 + $0x90] sm:$0x1] %v2984_v63  ;;  %v3806_v18 = vshrl.u32 %v8321_v61, 16 }
 0x260   : > { %v3218_v36 = vor.u32 %v3216_v53, %v3215_v30  ;;  %v3223_v42 = vrot.slane %v3221_v35, 7  ;;  %v3219_v49 = vrot.slane %v3215_v30, 4  ;;  %v3503_v55 = vld [vmem:[#allocation3 + $0x50] sm:$0x1] }
 0x261   : > { %v3235_v34 = vor.u32 %v3233_v62, %v8328_v27  ;;  %4473 = vrot.lane.b32.xlu1 %v4426_v1, %s6480_s28  ;;  %4471 = vrot.lane.b32.xlu0 %v4424_v5, %s6480_s28  ;;  %v8374_v50 = vsel %vm1379_vm10, %v4007_v0, %v4009_v19  ;;  %v3808_v35 = vor.u32 %v3806_v18, %v3804_v6  ;;  %v3236_v47 = vrot.slane %v8328_v27, 4 }
 0x262   : > { %v3493_v24 = vsel %vm7707_vm13, %v3218_v36, %v3492_v38  ;;  %v3226_v44 = vor.u32 %v3224_v2, %v3223_v42  ;;  %v3228_v32 = vrot.slane %v3223_v42, 4  ;;  %v8397_v42 = vcombine.low %v8312_v9, %v3590_v57 }
 0x263   : > { %3494 = vst [vmem:[#allocation3 + $0x3c] sm:$0xf] %v3493_v24  ;;  %v3500_v14 = vsel %vm7707_vm13, %v3235_v34, %v3499_v10  ;;  %v4210_v9 = vshrl.u32 %v8306_v48, 16 }
 0x264   : > { %3501 = vst [vmem:[#allocation3 + $0x48] sm:$0xf] %v3500_v14  ;;  %v3227_v29 = vsel %vm6595_vm8, %v3219_v49, %v3226_v44  ;;  %v3497_v12 = vsel %vm7696_vm3, %v3228_v32, %v3496_v26  ;;  %v3506_v14 = vld [vmem:[#allocation3 + $0x54] sm:$0xf] }
 0x265   : > { %3495 = vst.msk [vmem:[#allocation3 + $0x40] sm:$0xf] %vm9953_vm14, %v3227_v29  ;;  %3498 = vst [vmem:[#allocation3 + $0x44] sm:$0x1] %v3497_v12  ;;  %4528 = vrot.lane.b32.xlu1 %v8321_v61, %s6481_s11  ;;  %4526 = vrot.lane.b32.xlu0 %v8189_v11, %s6481_s11  ;;  %v4214_v12 = vshll.u32 %v8397_v42, 16 }
 0x266   : > { %vm9959_vm14 = vmmov %vm9954_vm0 }
 0x269   : > { %v6234_v22 = vpop.f32.mrb[16].mxu0  ;;  %4606 = vrot.lane.b32.xlu0 %v8360_v33, %s6482_s14 }
 0x26a   : > { %v3591_v25 = vld [vmem:[#allocation3 + $0x3c] sm:$0xf]  ;;  %v2781_v46 = vmul.f32 %v6234_v22, %v7979_v7  ;;  %v2646_v56 = vpop.f32.mrb[17].mxu0 }
 0x26b   : > { %v8366_v28 = vcombine.low %v3590_v57, %v3591_v25  ;;  %v2780_v20 = vmul.f32 %v7979_v7, %v2646_v56  ;;  %v6235_v52 = vpop.f32.mrb[18].mxu0  ;;  %v4212_v57 = vor.u32 %v4210_v9, %v8317_v60 }
 0x26c   : > { %v2820_v4 = vadd.f32 %v7986_v51, %v2781_v46  ;;  %v2782_v58 = vmul.f32 %v6235_v52, %v7979_v7  ;;  %v2649_v45 = vpop.f32.mrb[19].mxu0  ;;  %v3592_v32 = vld [vmem:[#allocation3 + $0x40] sm:$0xf]  ;;  %v8415_v27 = vld [vmem:[#allocation3 + $0x44] sm:$0xf] }
 0x26d   : > { %v2819_v8 = vadd.f32 %v7986_v51, %v2780_v20  ;;  %4662 = vrot.lane.b32.xlu0 %v8374_v50, %s6483_s18  ;;  %v4011_v21 = vrot.slane %v8366_v28, 1  ;;  %v3810_v30 = vshll.u32 %v8366_v28, 16  ;;  %v8409_v46 = vcombine.low %v3591_v25, %v3592_v32 }
 0x26e   : > { %vm2852_vm12 = vcmp.ge.f32.partialorder %v2820_v4, 0.0  ;;  %v2884_v53 = vmul.f32 0.01, %v2820_v4  ;;  %v2821_v7 = vadd.f32 %v7986_v51, %v2782_v58  ;;  %v4216_v25 = vrot.slane %v4214_v12, 1 }
 0x26f   : > { %vm2851_vm2 = vcmp.ge.f32.partialorder %v2819_v8, 0.0  ;;  %v2883_v38 = vmul.f32 0.01, %v2819_v8  ;;  %v8386_v0 = vsel %vm1379_vm10, %v4009_v19, %v4011_v21  ;;  %v8388_v62 = vrot.slane %v3810_v30, 1 }
 0x270   : > { %v2916_v5 = vsel %vm2852_vm12, %v2820_v4, %v2884_v53  ;;  %vm2853_vm1 = vcmp.ge.f32.partialorder %v2821_v7, 0.0  ;;  %v2885_v17 = vmul.f32 0.01, %v2821_v7  ;;  %v2986_v4 = vld [vmem:[#allocation3 + $0x9c] sm:$0x1]  ;;  %v4217_v30 = vsel %vm9958_vm9, %v4212_v57, %v4216_v25  ;;  %vm9960_vm12 = vmmov %vm9955_vm7 }
 0x271   : > { %v6102_v36 = vpack.c.bf16 %v2916_v5, %v2916_v5  ;;  %v2915_v10 = vsel %vm2851_vm2, %v2819_v8, %v2883_v38  ;;  %4664 = vrot.lane.b32.xlu0 %v8386_v0, %s6483_s18  ;;  %v8394_v51 = vsel %vm9955_vm7, %v3808_v35, %v8388_v62  ;;  %v2987_v45 = vsel %vm7696_vm3, 0, %v2986_v4 }
 0x272   : > { %v6101_v2 = vpack.c.bf16 %v2915_v10, %v2915_v10  ;;  %v2917_v1 = vsel %vm2853_vm1, %v2821_v7, %v2885_v17  ;;  %4608 = vrot.lane.b32.xlu1 %v8394_v51, %s6482_s14  ;;  %2988 = vst [vmem:[#allocation3 + $0x9c] sm:$0x1] %v2987_v45  ;;  %v8434_v53 = vcombine.low %v3592_v32, %v8415_v27  ;;  %v4222_v7 = vshll.u32 %v8409_v46, 16  ;;  %v8451_v10 = vld [vmem:[%s9790_s2] ss:$0 sm:$0xff]  ;;  %vm9961_vm1 = vmmov %vm9955_vm7 }
 0x273   : > { %v3247_v39 = vshrl.u32 %v6102_v36, 16  ;;  %v6103_v34 = vpack.c.bf16 %v2917_v1, %v2917_v1  ;;  %v3250_v24 = vshll.u32 %v6102_v36, 16  ;;  %v4218_v17 = vshrl.u32 %v8397_v42, 16  ;;  %v3594_v32 = vld [vmem:[#allocation3 + $0x48] sm:$0xf]  ;;  %vm9962_vm7 = vmmov %vm9957_vm4 }
 0x274   : > { %v3238_v26 = vshrl.u32 %v6101_v2, 16  ;;  %v3241_v29 = vshll.u32 %v6101_v2, 16  ;;  %v3818_v38 = vshll.u32 %v8434_v53, 16  ;;  %v8446_v36 = vrot.slane %v4222_v7, 1  ;;  %v3036_v7 = vld [vmem:[#allocation3 + $0xa4] sm:$0xf] }
 0x275   : > { %v3249_v49 = vrot.slane %v3247_v39, 7  ;;  %v3255_v44 = vshrl.u32 %v6103_v34, 16  ;;  %4055 = vrot.lane.b32.xlu0 %v8274_v16, %s6475_s15  ;;  %v3258_v63 = vshll.u32 %v6103_v34, 16  ;;  %v3510_v16 = vld [vmem:[#allocation3 + $0x5c] sm:$0x1]  ;;  %v4220_v39 = vor.u32 %v4218_v17, %v4216_v25 }
 0x276   : > { %v3240_v23 = vrot.slane %v3238_v26, 7  ;;  %3958 = vrot.lane.b32.xlu1 %v8237_v13, %s6473_s9  ;;  %v8462_v34 = vld [vmem:[%s9791_s3] ss:$0 sm:$0xff]  ;;  %v2989_v25 = vld [vmem:[#allocation3 + $0xa8] sm:$0x1] }
 0x277   : > { %v3252_v6 = vor.u32 %v3250_v24, %v3249_v49  ;;  %v3257_v15 = vrot.slane %v3255_v44, 7  ;;  %v3253_v56 = vrot.slane %v3249_v49, 4  ;;  %v3820_v44 = vrot.slane %v3818_v38, 1  ;;  %v3513_v38 = vld [vmem:[#allocation3 + $0x60] sm:$0xf] }
 0x278   : > { %v3243_v19 = vor.u32 %v3241_v29, %v3240_v23  ;;  %v3245_v22 = vrot.slane %v3240_v23, 4  ;;  %v4225_v23 = vsel %vm9959_vm14, %v4220_v39, %v8446_v36  ;;  %v2990_v17 = vsel %vm7696_vm3, 0, %v2989_v25 }
 0x279   : > { %v3507_v13 = vsel %vm7707_vm13, %v3252_v6, %v3506_v14  ;;  %v3260_v20 = vor.u32 %v3258_v63, %v3257_v15  ;;  %v3262_v52 = vrot.slane %v3257_v15, 4  ;;  %4131 = vrot.lane.b32.xlu0 %v8306_v48, %s6477_s19  ;;  %2991 = vst [vmem:[#allocation3 + $0xa8] sm:$0x1] %v2990_v17  ;;  %v3037_v39 = vsel %vm7707_vm13, 0, %v3036_v7 }
 0x27a   : > { %3508 = vst [vmem:[#allocation3 + $0x54] sm:$0xf] %v3507_v13  ;;  %v3244_v58 = vsel %vm6595_vm8, %v3236_v47, %v3243_v19  ;;  %v3504_v60 = vsel %vm7696_vm3, %v3245_v22, %v3503_v55  ;;  %3960 = vrot.lane.b32.xlu1 %v8360_v33, %s6473_s9  ;;  %v4427_v33 = vrot.slane %v8397_v42, 1  ;;  %v4013_v55 = vrot.slane %v8434_v53, 1  ;;  %3038 = vst [vmem:[#allocation3 + $0xa4] sm:$0xf] %v3037_v39 }
 0x27b   : > { %3502 = vst.msk [vmem:[#allocation3 + $0x4c] sm:$0xf] %vm9956_vm6, %v3244_v58  ;;  %3505 = vst [vmem:[#allocation3 + $0x50] sm:$0x1] %v3504_v60  ;;  %v3261_v18 = vsel %vm6595_vm8, %v3253_v56, %v3260_v20  ;;  %v3511_v8 = vsel %vm7696_vm3, %v3262_v52, %v3510_v16  ;;  %v3822_v52 = vshrl.u32 %v8434_v53, 16 }
 0x27c   : > { %3509 = vst.msk [vmem:[#allocation3 + $0x58] sm:$0xf] %vm9957_vm4, %v3261_v18  ;;  %3512 = vst [vmem:[#allocation3 + $0x5c] sm:$0x1] %v3511_v8  ;;  %v4428_v35 = vsel %vm1379_vm10, %v4425_v59, %v4427_v33  ;;  %v3814_v59 = vshrl.u32 %v8366_v28, 16  ;;  %v4014_v56 = vsel %vm1379_vm10, %v4011_v21, %v4013_v55 }
 0x27d   : > { %4378 = vrot.lane.b32.xlu0 %v4217_v30, %s6479_s21  ;;  %v3517_v58 = vld [vmem:[#allocation3 + $0x68] sm:$0x1]  ;;  %v3824_v18 = vor.u32 %v3822_v52, %v3820_v44  ;;  %vm9963_vm6 = vmmov %vm9961_vm1 }
 0x27e   : > { %4057 = vrot.lane.b32.xlu1 %v8374_v50, %s6475_s15  ;;  %v3816_v24 = vor.u32 %v3814_v59, %v8388_v62 }
 0x280   : > { %v3821_v47 = vsel %vm9960_vm12, %v3816_v24, %v3820_v44  ;;  %v2992_v24 = vld [vmem:[#allocation3 + $0xb4] sm:$0x1]  ;;  %v4226_v44 = vshrl.u32 %v8409_v46, 16 }
 0x281   : > { %v6238_v5 = vpop.f32.mrb[20].mxu0  ;;  %4475 = vrot.lane.b32.xlu0 %v4428_v35, %s6480_s28 }
 0x282   : > { %v2784_v50 = vmul.f32 %v8451_v10, %v6238_v5  ;;  %4133 = vrot.lane.b32.xlu1 %v8397_v42, %s6477_s19  ;;  %v2661_v48 = vpop.f32.mrb[21].mxu0  ;;  %v8457_v2 = vld [vmem:[#allocation3 + $0x4c] sm:$0xf]  ;;  %v4429_v42 = vrot.slane %v8409_v46, 1 }
 0x283   : > { %v6239_v1 = vpop.f32.mrb[22].mxu0  ;;  %v8473_v29 = vcombine.low %v3594_v32, %v8457_v2 }
 0x284   : > { %v2823_v26 = vadd.f32 %v8462_v34, %v2784_v50  ;;  %v2663_v49 = vpop.f32.mrb[23].mxu0  ;;  %v4430_v6 = vsel %vm1379_vm10, %v4427_v33, %v4429_v42  ;;  %v8513_v1 = vcombine.low %v8415_v27, %v3594_v32  ;;  %v2993_v27 = vsel %vm7696_vm3, 0, %v2992_v24 }
 0x285   : > { %v2783_v14 = vmul.f32 %v8451_v10, %v2663_v49  ;;  %4530 = vrot.lane.b32.xlu0 %v8366_v28, %s6481_s11  ;;  %v3826_v19 = vshll.u32 %v8473_v29, 16  ;;  %v4015_v13 = vrot.slane %v8473_v29, 1  ;;  %2994 = vst [vmem:[#allocation3 + $0xb4] sm:$0x1] %v2993_v27 }
 0x286   : > { %vm2855_vm0 = vcmp.ge.f32.partialorder %v2823_v26, 0.0  ;;  %v2887_v9 = vmul.f32 0.01, %v2823_v26  ;;  %4380 = vrot.lane.b32.xlu1 %v4225_v23, %s6479_s21  ;;  %v4230_v32 = vshll.u32 %v8513_v1, 16  ;;  %v4228_v23 = vor.u32 %v4226_v44, %v8446_v36 }
 0x287   : > { %v2822_v62 = vadd.f32 %v8462_v34, %v2783_v14  ;;  %v8491_v4 = vrot.slane %v3826_v19, 1  ;;  %v8498_v33 = vsel %vm1379_vm10, %v4013_v55, %v4015_v13  ;;  %v3596_v14 = vld [vmem:[#allocation3 + $0x50] sm:$0xf]  ;;  %v4234_v52 = vshrl.u32 %v8513_v1, 16 }
 0x288   : > { %v2919_v12 = vsel %vm2855_vm0, %v2823_v26, %v2887_v9  ;;  %vm9964_vm0 = vmmov %vm9961_vm1 }
 0x289   : > { %v6105_v15 = vpack.c.bf16 %v2919_v12, %v2919_v12  ;;  %vm2854_vm2 = vcmp.ge.f32.partialorder %v2822_v62, 0.0  ;;  %v2886_v63 = vmul.f32 0.01, %v2822_v62  ;;  %4610 = vrot.lane.b32.xlu0 %v3821_v47, %s6482_s14  ;;  %v8506_v5 = vsel %vm9961_vm1, %v3824_v18, %v8491_v4  ;;  %vm9965_vm12 = vmmov %vm9964_vm0 }
 0x28a   : > { %4477 = vrot.lane.b32.xlu1 %v4430_v6, %s6480_s28  ;;  %v4431_v6 = vrot.slane %v8513_v1, 1  ;;  %vm9967_vm1 = vmmov %vm9962_vm7 }
 0x28b   : > { %v3272_v22 = vshrl.u32 %v6105_v15, 16  ;;  %v2918_v16 = vsel %vm2854_vm2, %v2822_v62, %v2886_v63  ;;  %v3275_v8 = vshll.u32 %v6105_v15, 16  ;;  %v4232_v62 = vrot.slane %v4230_v32, 1 }
 0x28c   : > { %v6104_v57 = vpack.c.bf16 %v2918_v16, %v2918_v16  ;;  %vm9966_vm2 = vcmask 64512  }
 0x28d   : > { %v3274_v20 = vrot.slane %v3272_v22, 7  ;;  %4666 = vrot.lane.b32.xlu0 %v4014_v56, %s6483_s18  ;;  %v4233_v12 = vsel %vm9963_vm6, %v4228_v23, %v4232_v62  ;;  %vm4898_vm6 = vcmask 326656  }
 0x28e   : > { %v3264_v60 = vshrl.u32 %v6104_v57, 16  ;;  %4532 = vrot.lane.b32.xlu1 %v8434_v53, %s6481_s11  ;;  %v3267_v21 = vshll.u32 %v6104_v57, 16 }
 0x28f   : > { %v3279_v45 = vrot.slane %v3274_v20, 4  ;;  %v3277_v50 = vor.u32 %v3275_v8, %v3274_v20  ;;  %v4432_v20 = vsel %vm1379_vm10, %v4429_v42, %v4431_v6  ;;  %v3830_v42 = vshrl.u32 %v8473_v29, 16 }
 0x290   : > { %v3266_v30 = vrot.slane %v3264_v60, 7  ;;  %v8556_v60 = vld [vmem:[#allocation3 + $0x5c] sm:$0xf] }
 0x291   : > { %v3518_v35 = vsel %vm7696_vm3, %v3279_v45, %v3517_v58  ;;  %4668 = vrot.lane.b32.xlu0 %v8498_v33, %s6483_s18  ;;  %v3598_v58 = vld [vmem:[#allocation3 + $0x58] sm:$0xf] }
 0x292   : > { %3519 = vst [vmem:[#allocation3 + $0x68] sm:$0x1] %v3518_v35  ;;  %v3269_v48 = vor.u32 %v3267_v21, %v3266_v30  ;;  %v3270_v59 = vrot.slane %v3266_v30, 4  ;;  %4612 = vrot.lane.b32.xlu1 %v8506_v5, %s6482_s14  ;;  %v8570_v7 = vcombine.low %v3598_v58, %v8556_v60 }
 0x294   : > { %v3278_v26 = vsel %vm6595_vm8, %v3270_v59, %v3277_v50  ;;  %v3514_v49 = vsel %vm7707_vm13, %v3269_v48, %v3513_v38  ;;  %v3832_v38 = vor.u32 %v3830_v42, %v8491_v4 }
 0x295   : > { %3515 = vst [vmem:[#allocation3 + $0x60] sm:$0xf] %v3514_v49  ;;  %3516 = vst.msk [vmem:[#allocation3 + $0x64] sm:$0xf] %vm9962_vm7, %v3278_v26  ;;  %4059 = vrot.lane.b32.xlu0 %v8386_v0, %s6475_s15  ;;  %v8536_v0 = vcombine.low %v8457_v2, %v3596_v14 }
 0x296   : > { %3962 = vrot.lane.b32.xlu1 %v8394_v51, %s6473_s9  ;;  %v3597_v51 = vld [vmem:[#allocation3 + $0x54] sm:$0xf]  ;;  %vm9968_vm7 = vmmov %vm9964_vm0 }
 0x297   : > { %v4238_v36 = vshll.u32 %v8536_v0, 16  ;;  %v8546_v2 = vcombine.low %v3596_v14, %v3597_v51  ;;  %v4433_v17 = vrot.slane %v8536_v0, 1 }
 0x299   : > { %v8531_v9 = vpop.permute.xlu1 %4123  ;;  %4135 = vrot.lane.b32.xlu0 %v8409_v46, %s6477_s19  ;;  %v8543_v15 = vpop.permute.xlu0 %4125  ;;  %v8561_v45 = vrot.slane %v4238_v36, 1  ;;  %v4236_v46 = vor.u32 %v4234_v52, %v4232_v62  ;;  %v3834_v8 = vshll.u32 %v8546_v2, 16  ;;  %v4017_v4 = vrot.slane %v8546_v2, 1  ;;  %v3042_v52 = vld [vmem:[#allocation3 + $0xbc] sm:$0xf] }
 0x29a   : > { %3964 = vrot.lane.b32.xlu1 %v3821_v47, %s6473_s9  ;;  %v3842_v62 = vshll.u32 %v8570_v7, 16  ;;  %v3838_v36 = vshrl.u32 %v8546_v2, 16 }
 0x29b   : > { %v4241_v39 = vsel %vm9964_vm0, %v4236_v46, %v8561_v45  ;;  %v3836_v24 = vrot.slane %v3834_v8, 1  ;;  %v3527_v8 = vld [vmem:[#allocation3 + $0x78] sm:$0xf]  ;;  %vm5045_vm0 = vcmask 523264  }
 0x29d   : > { %v6242_v55 = vpop.f32.mrb[24].mxu0  ;;  %4382 = vrot.lane.b32.xlu0 %v4233_v12, %s6479_s21  ;;  %v8548_v19 = vpop.permute.xlu1 %4047  ;;  %v8583_v23 = vsel %vm9965_vm12, %v3832_v38, %v3836_v24  ;;  %v6460_v38 = vld [vmem:[#allocation3] sm:$0xff]   ;;  %vm9970_vm12 = vmmov %vm9968_vm7 }
 0x29e   : > { %4061 = vrot.lane.b32.xlu1 %v4014_v56, %s6475_s15  ;;  %v2675_v63 = vpop.f32.mrb[25].mxu0  ;;  %v3951_v50 = vpop.permute.xlu0 %3950  ;;  %v4434_v55 = vsel %vm1379_vm10, %v4431_v6, %v4433_v17 }
 0x29f   : > { %v2785_v47 = vmul.f32 %v8451_v10, %v2675_v63  ;;  %v6243_v22 = vpop.f32.mrb[26].mxu0  ;;  %v8592_v63 = vcombine.low %v3597_v51, %v3598_v58  ;;  %v4019_v51 = vrot.slane %v8570_v7, 1  ;;  %v3840_v58 = vor.u32 %v3838_v36, %v3836_v24 }
 0x2a0   : > { %v2787_v16 = vmul.f32 %v8451_v10, %v6243_v22  ;;  %v2678_v57 = vpop.f32.mrb[27].mxu0 }
 0x2a1   : > { %v2824_v56 = vadd.f32 %v8462_v34, %v2785_v47  ;;  %v2786_v25 = vmul.f32 %v8451_v10, %v2678_v57  ;;  %4479 = vrot.lane.b32.xlu0 %v4432_v20, %s6480_s28  ;;  %v3039_v47 = vld [vmem:[#allocation3 + $0xb0] sm:$0xf]  ;;  %v8598_v20 = vsel %vm1379_vm10, %v4015_v13, %v4017_v4  ;;  %v4707_v13 = vsel %vm9966_vm2, %v6460_v38, %v3951_v50 }
 0x2a2   : > { %v2826_v18 = vadd.f32 %v8462_v34, %v2787_v16  ;;  %4137 = vrot.lane.b32.xlu1 %v8513_v1, %s6477_s19  ;;  %v8574_v1 = vpop.permute.xlu1 %4467  ;;  %v8630_v36 = vsel %vm1379_vm10, %v4017_v4, %v4019_v51  ;;  %v4246_v4 = vshll.u32 %v8592_v63, 16 }
 0x2a3   : > { %vm2856_vm4 = vcmp.ge.f32.partialorder %v2824_v56, 0.0  ;;  %v2888_v30 = vmul.f32 0.01, %v2824_v56  ;;  %v2825_v21 = vadd.f32 %v8462_v34, %v2786_v25 }
 0x2a4   : > { %vm2858_vm9 = vcmp.ge.f32.partialorder %v2826_v18, 0.0  ;;  %v2890_v35 = vmul.f32 0.01, %v2826_v18 }
 0x2a5   : > { %v2920_v48 = vsel %vm2856_vm4, %v2824_v56, %v2888_v30  ;;  %vm2857_vm14 = vcmp.ge.f32.partialorder %v2825_v21, 0.0  ;;  %v2889_v59 = vmul.f32 0.01, %v2825_v21  ;;  %4534 = vrot.lane.b32.xlu0 %v8473_v29, %s6481_s11  ;;  %v3520_v56 = vld [vmem:[#allocation3 + $0x6c] sm:$0xf]  ;;  %vm4947_vm4 = vcmask 392192  }
 0x2a6   : > { %v6106_v26 = vpack.c.bf16 %v2920_v48, %v2920_v48  ;;  %v2922_v49 = vsel %vm2858_vm9, %v2826_v18, %v2890_v35  ;;  %4384 = vrot.lane.b32.xlu1 %v4241_v39, %s6479_s21  ;;  %v4050_v18 = vpop.permute.xlu0 %4049  ;;  %v8603_v35 = vrot.slane %v3842_v62, 1  ;;  %v3040_v39 = vsel %vm7707_vm13, 0, %v3039_v47  ;;  %v3045_v47 = vld [vmem:[#allocation3 + $0xc8] sm:$0xf]  ;;  %vm9969_vm9 = vmmov %vm9966_vm2 }
 0x2a7   : > { %v6108_v27 = vpack.c.bf16 %v2922_v49, %v2922_v49  ;;  %v2921_v44 = vsel %vm2857_vm14, %v2825_v21, %v2889_v59  ;;  %v3524_v59 = vld [vmem:[#allocation3 + $0x74] sm:$0x1]  ;;  %3041 = vst [vmem:[#allocation3 + $0xb0] sm:$0xf] %v3040_v39  ;;  %v4755_v62 = vsel %vm2235_vm15, %v4707_v13, %v8548_v19  ;;  %vm4996_vm14 = vcmask 457728  }
 0x2a8   : > { %v3281_v32 = vshrl.u32 %v6106_v26, 16  ;;  %v6107_v14 = vpack.c.bf16 %v2921_v44, %v2921_v44  ;;  %v3284_v16 = vshll.u32 %v6106_v26, 16  ;;  %v3043_v26 = vsel %vm7707_vm13, 0, %v3042_v52 }
 0x2a9   : > { %v3298_v12 = vshrl.u32 %v6108_v27, 16  ;;  %4614 = vrot.lane.b32.xlu0 %v8583_v23, %s6482_s14  ;;  %v3301_v6 = vshll.u32 %v6108_v27, 16  ;;  %v3953_v46 = vpop.permute.xlu1 %3952  ;;  %3044 = vst [vmem:[#allocation3 + $0xbc] sm:$0xf] %v3043_v26  ;;  %v8637_v19 = vsel %vm9968_vm7, %v3840_v58, %v8603_v35  ;;  %v3600_v58 = vld [vmem:[#allocation3 + $0x60] sm:$0xf] }
 0x2aa   : > { %v3283_v22 = vrot.slane %v3281_v32, 7  ;;  %v3289_v57 = vshrl.u32 %v6107_v14, 16  ;;  %4481 = vrot.lane.b32.xlu1 %v4434_v55, %s6480_s28  ;;  %v3292_v21 = vshll.u32 %v6107_v14, 16  ;;  %v8660_v13 = vcombine.low %v8556_v60, %v3600_v58 }
 0x2ab   : > { %v8600_v25 = vrot.slane %v3298_v12, 7  ;;  %vm5130_vm2 = vcmask 588800  }
 0x2ac   : > { %v3286_v42 = vor.u32 %v3284_v16, %v3283_v22  ;;  %v3291_v30 = vrot.slane %v3289_v57, 7  ;;  %v3287_v49 = vrot.slane %v3283_v22, 4  ;;  %v3046_v22 = vsel %vm7707_vm13, 0, %v3045_v47 }
 0x2ad   : > { %v3303_v48 = vor.u32 %v3301_v6, %v8600_v25  ;;  %4670 = vrot.lane.b32.xlu0 %v8598_v20, %s6483_s18  ;;  %3047 = vst [vmem:[#allocation3 + $0xc8] sm:$0xf] %v3046_v22  ;;  %v4803_v57 = vsel %vm2333_vm5, %v4755_v62, %v8531_v9  ;;  %v4242_v6 = vshrl.u32 %v8536_v0, 16  ;;  %v4250_v47 = vshrl.u32 %v8592_v63, 16 }
 0x2ae   : > { %v3521_v24 = vsel %vm7707_vm13, %v3286_v42, %v3520_v56  ;;  %v3294_v27 = vor.u32 %v3292_v21, %v3291_v30  ;;  %v3296_v44 = vrot.slane %v3291_v30, 4  ;;  %4536 = vrot.lane.b32.xlu1 %v8546_v2, %s6481_s11  ;;  %v4248_v30 = vrot.slane %v4246_v4, 1 }
 0x2af   : > { %3522 = vst [vmem:[#allocation3 + $0x6c] sm:$0xf] %v3521_v24  ;;  %v3528_v50 = vsel %vm7707_vm13, %v3303_v48, %v3527_v8  ;;  %v4523_v32 = vpop.permute.xlu1 %4522  ;;  %v8619_v14 = vpop.permute.xlu0 %4524  ;;  %v4709_v8 = vsel %vm9969_vm9, %v8036_v41, %v3953_v46  ;;  %v4244_v9 = vor.u32 %v4242_v6, %v8561_v45  ;;  %v4435_v46 = vrot.slane %v8592_v63, 1 }
 0x2b0   : > { %3529 = vst [vmem:[#allocation3 + $0x78] sm:$0xf] %v3528_v50  ;;  %v3295_v12 = vsel %vm6595_vm8, %v3287_v49, %v3294_v27  ;;  %v3525_v55 = vsel %vm7696_vm3, %v3296_v44, %v3524_v59  ;;  %v4757_v48 = vsel %vm2235_vm15, %v4709_v8, %v4050_v18  ;;  %v4254_v49 = vshll.u32 %v8660_v13, 16 }
 0x2b1   : > { %3523 = vst.msk [vmem:[#allocation3 + $0x70] sm:$0xf] %vm9967_vm1, %v3295_v12  ;;  %3526 = vst [vmem:[#allocation3 + $0x74] sm:$0x1] %v3525_v55  ;;  %4672 = vrot.lane.b32.xlu0 %v8630_v36, %s6483_s18  ;;  %v4249_v60 = vsel %vm9970_vm12, %v4244_v9, %v4248_v30  ;;  %v4805_v44 = vsel %vm2333_vm5, %v4757_v48, %v8543_v15  ;;  %v4252_v48 = vor.u32 %v4250_v47, %v4248_v30 }
 0x2b2   : > { %4616 = vrot.lane.b32.xlu1 %v8637_v19, %s6482_s14  ;;  %v8699_v8 = vrot.slane %v4254_v49, 1 }
 0x2b3   : > { %v4371_v16 = vpop.permute.xlu1 %4370  ;;  %v4470_v52 = vpop.permute.xlu0 %4469 }
 0x2b4   : > { %v4851_v56 = vsel %vm2431_vm11, %v4803_v57, %v4371_v16  ;;  %v4436_v57 = vsel %vm1379_vm10, %v4433_v17, %v4435_v46 }
 0x2b5   : > { %v4900_v42 = vsel %vm4898_vm6, %v4851_v56, %v8574_v1  ;;  %4063 = vrot.lane.b32.xlu0 %v8498_v33, %s6475_s15  ;;  %v8663_v33 = vld [vmem:[#allocation3 + $0x64] sm:$0xf] }
 0x2b6   : > { %3966 = vrot.lane.b32.xlu1 %v8506_v5, %s6473_s9  ;;  %v4949_v1 = vsel %vm4947_vm4, %v4900_v42, %v4523_v32  ;;  %v8677_v24 = vcombine.low %v3600_v58, %v8663_v33 }
 0x2b7   : > { %v4603_v21 = vpop.permute.xlu1 %4602  ;;  %v8657_v38 = vpop.permute.xlu0 %3954 }
 0x2b8   : > { %v4998_v59 = vsel %vm4996_vm14, %v4949_v1, %v4603_v21  ;;  %v3850_v56 = vshll.u32 %v8677_v24, 16  ;;  %v3846_v21 = vshrl.u32 %v8570_v7, 16  ;;  %v4021_v47 = vrot.slane %v8677_v24, 1 }
 0x2b9   : > { %v6246_v41 = vpop.f32.mrb[28].mxu0  ;;  %4139 = vrot.lane.b32.xlu0 %v8536_v0, %s6477_s19  ;;  %v8705_v0 = vld [vmem:[#allocation3 + $0x6c] sm:$0xf] }
 0x2ba   : > { %v2789_v5 = vmul.f32 %v8451_v10, %v6246_v41  ;;  %3968 = vrot.lane.b32.xlu1 %v8583_v23, %s6473_s9  ;;  %v2690_v45 = vpop.f32.mrb[29].mxu0  ;;  %v4437_v41 = vrot.slane %v8660_v13, 1 }
 0x2bb   : > { %v2788_v18 = vmul.f32 %v8451_v10, %v2690_v45  ;;  %v4659_v39 = vpop.permute.xlu1 %4658  ;;  %v6247_v26 = vpop.f32.mrb[30].mxu0 }
 0x2bc   : > { %v2828_v27 = vadd.f32 %v8462_v34, %v2789_v5  ;;  %v2790_v23 = vmul.f32 %v8451_v10, %v6247_v26  ;;  %v4373_v50 = vpop.permute.xlu0 %4372  ;;  %v2693_v32 = vpop.f32.mrb[31].mxu0  ;;  %v5047_v62 = vsel %vm5045_vm0, %v4998_v59, %v4659_v39  ;;  %v3852_v59 = vrot.slane %v3850_v56, 1 }
 0x2bd   : > { %v2827_v12 = vadd.f32 %v8462_v34, %v2788_v18  ;;  %v4853_v55 = vsel %vm2431_vm11, %v4805_v44, %v4373_v50  ;;  %4386 = vrot.lane.b32.xlu0 %v4249_v60, %s6479_s21  ;;  %6274 = vmatprep.mubr.msk.bf16.mxu1 %vm5130_vm2, %v5047_v62  ;;  %v3848_v60 = vor.u32 %v3846_v21, %v8603_v35  ;;  %v3534_v32 = vld [vmem:[#allocation3 + $0x84] sm:$0xf]  ;;  %v3304_v56 = vrot.slane %v8600_v25, 4 }
 0x2be   : > { %vm2860_vm1 = vcmp.ge.f32.partialorder %v2828_v27, 0.0  ;;  %v2892_v22 = vmul.f32 0.01, %v2828_v27  ;;  %v2829_v4 = vadd.f32 %v8462_v34, %v2790_v23  ;;  %v4902_v15 = vsel %vm4898_vm6, %v4853_v55, %v4470_v52  ;;  %4065 = vrot.lane.b32.xlu1 %v8598_v20, %s6475_s15 }
 0x2bf   : > { %vm2859_vm7 = vcmp.ge.f32.partialorder %v2827_v12, 0.0  ;;  %v2891_v16 = vmul.f32 0.01, %v2827_v12  ;;  %v4951_v20 = vsel %vm4947_vm4, %v4902_v15, %v8619_v14  ;;  %v8711_v14 = vld [vmem:[#allocation3 + $0x68] sm:$0xf]  ;;  %v8713_v39 = vpop.permute.xlu1 %3956  ;;  %v4438_v55 = vsel %vm1379_vm10, %v4435_v46, %v4437_v41 }
 0x2c0   : > { %v2924_v6 = vsel %vm2860_vm1, %v2828_v27, %v2892_v22  ;;  %vm2861_vm9 = vcmp.ge.f32.partialorder %v2829_v4, 0.0  ;;  %v2893_v58 = vmul.f32 0.01, %v2829_v4  ;;  %v4605_v42 = vpop.permute.xlu0 %4604  ;;  %v4257_v27 = vsel %vm9970_vm12, %v4252_v48, %v8699_v8  ;;  %vm9971_vm1 = vmmov %vm9970_vm12 }
 0x2c1   : > { %v6110_v52 = vpack.c.bf16 %v2924_v6, %v2924_v6  ;;  %v2923_v9 = vsel %vm2859_vm7, %v2827_v12, %v2891_v16  ;;  %4483 = vrot.lane.b32.xlu0 %v4436_v57, %s6480_s28  ;;  %v5000_v26 = vsel %vm4996_vm14, %v4951_v20, %v4605_v42  ;;  %v8720_v30 = vcombine.low %v8711_v14, %v8705_v0  ;;  %v3538_v42 = vld [vmem:[#allocation3 + $0x8c] sm:$0x1]  ;;  %vm9974_vm12 = vmmov %vm9971_vm1 }
 0x2c2   : > { %v6109_v17 = vpack.c.bf16 %v2923_v9, %v2923_v9  ;;  %v2925_v1 = vsel %vm2861_vm9, %v2829_v4, %v2893_v58  ;;  %4141 = vrot.lane.b32.xlu1 %v8592_v63, %s6477_s19  ;;  %v3531_v4 = vld [vmem:[#allocation3 + $0x80] sm:$0x1]  ;;  %v8734_v57 = vsel %vm9971_vm1, %v3848_v60, %v3852_v59  ;;  %vm9972_vm7 = vcmask 60416  }
 0x2c3   : > { %v3315_v5 = vshrl.u32 %v6110_v52, 16  ;;  %v6111_v45 = vpack.c.bf16 %v2925_v1, %v2925_v1  ;;  %v3318_v44 = vshll.u32 %v6110_v52, 16  ;;  %v3858_v63 = vshll.u32 %v8720_v30, 16  ;;  %v8748_v48 = vpop.permute.xlu1 %4053  ;;  %vm9973_vm9 = vmmov %vm9972_vm7 }
 0x2c4   : > { %v3306_v18 = vshrl.u32 %v6109_v17, 16  ;;  %v4661_v49 = vpop.permute.xlu0 %4660  ;;  %v3309_v12 = vshll.u32 %v6109_v17, 16  ;;  %v2995_v17 = vld [vmem:[#allocation3 + $0xc0] sm:$0x1]  ;;  %vm9975_vm1 = vcmask 64512  }
 0x2c5   : > { %v3317_v23 = vrot.slane %v3315_v5, 7  ;;  %v3323_v50 = vshrl.u32 %v6111_v45, 16  ;;  %v5049_v35 = vsel %vm5045_vm0, %v5000_v26, %v4661_v49  ;;  %4538 = vrot.lane.b32.xlu0 %v8570_v7, %s6481_s11  ;;  %v3326_v16 = vshll.u32 %v6111_v45, 16 }
 0x2c6   : > { %v3308_v62 = vrot.slane %v3306_v18, 7  ;;  %6275 = vmatmul.mubr.msk.bf16.vlgmr.msra.gmra.mrb[0].mxu1 %vm5130_vm2, %v5049_v35  ;;  %4388 = vrot.lane.b32.xlu1 %v4257_v27, %s6479_s21  ;;  %v4022_v18 = vsel %vm1379_vm10, %v4019_v51, %v4021_v47  ;;  %v4023_v26 = vrot.slane %v8720_v30, 1  ;;  %v2996_v49 = vsel %vm7696_vm3, 0, %v2995_v17 }
 0x2c7   : > { %v3320_v22 = vor.u32 %v3318_v44, %v3317_v23  ;;  %v3325_v15 = vrot.slane %v3323_v50, 7  ;;  %v3321_v9 = vrot.slane %v3317_v23, 4  ;;  %v3854_v27 = vshrl.u32 %v8677_v24, 16  ;;  %2997 = vst [vmem:[#allocation3 + $0xc0] sm:$0x1] %v2996_v49  ;;  %v8769_v50 = vpop.permute.xlu1 %4129 }
 0x2c8   : > { %v3311_v6 = vor.u32 %v3309_v12, %v3308_v62  ;;  %v3313_v58 = vrot.slane %v3308_v62, 4  ;;  %v8737_v52 = vpop.permute.xlu0 %4051  ;;  %v8765_v23 = vrot.slane %v3858_v63, 1  ;;  %v8774_v51 = vsel %vm1379_vm10, %v4021_v47, %v4023_v26 }
 0x2c9   : > { %v3535_v46 = vsel %vm7707_vm13, %v3320_v22, %v3534_v32  ;;  %v3328_v20 = vor.u32 %v3326_v16, %v3325_v15  ;;  %v3330_v21 = vrot.slane %v3325_v15, 4  ;;  %4618 = vrot.lane.b32.xlu0 %v8734_v57, %s6482_s14  ;;  %v3856_v44 = vor.u32 %v3854_v27, %v3852_v59  ;;  %v3604_v59 = vld [vmem:[#allocation3 + $0x70] sm:$0xf] }
 0x2ca   : > { %3536 = vst [vmem:[#allocation3 + $0x84] sm:$0xf] %v3535_v46  ;;  %v3312_v25 = vsel %vm6595_vm8, %v3304_v56, %v3311_v6  ;;  %v3532_v1 = vsel %vm7696_vm3, %v3313_v58, %v3531_v4  ;;  %4485 = vrot.lane.b32.xlu1 %v4438_v55, %s6480_s28  ;;  %v8784_v62 = vcombine.low %v8663_v33, %v8711_v14  ;;  %v4258_v33 = vshrl.u32 %v8660_v13, 16  ;;  %v8798_v56 = vld [vmem:[#allocation3 + $0x74] sm:$0xf] }
 0x2cb   : > { %3530 = vst.msk [vmem:[#allocation3 + $0x7c] sm:$0xf] %vm9972_vm7, %v3312_v25  ;;  %3533 = vst [vmem:[#allocation3 + $0x80] sm:$0x1] %v3532_v1  ;;  %v3329_v5 = vsel %vm6595_vm8, %v3321_v9, %v3328_v20  ;;  %v3539_v45 = vsel %vm7696_vm3, %v3330_v21, %v3538_v42  ;;  %v8780_v32 = vsel %vm9974_vm12, %v3856_v44, %v8765_v23 }
 0x2cc   : > { %3537 = vst.msk [vmem:[#allocation3 + $0x88] sm:$0xf] %vm9973_vm9, %v3329_v5  ;;  %3540 = vst [vmem:[#allocation3 + $0x8c] sm:$0x1] %v3539_v45  ;;  %v4128_v60 = vpop.permute.xlu0 %4127  ;;  %v4262_v47 = vshll.u32 %v8784_v62, 16  ;;  %v8796_v14 = vcombine.low %v8705_v0, %v3604_v59  ;;  %v4260_v42 = vor.u32 %v4258_v33, %v8699_v8  ;;  %v4711_v63 = vsel %vm9975_vm1, %v8061_v37, %v8657_v38 }
 0x2cd   : > { %4674 = vrot.lane.b32.xlu0 %v4022_v18, %s6483_s18  ;;  %v4439_v9 = vrot.slane %v8784_v62, 1  ;;  %v8813_v21 = vcombine.low %v3604_v59, %v8798_v56  ;;  %v4759_v37 = vsel %vm2235_vm15, %v4711_v63, %v8737_v52  ;;  %vm9976_vm9 = vmmov %vm9974_vm12  ;;  %v4266_v45 = vshrl.u32 %v8784_v62, 16 }
 0x2ce   : > { %4540 = vrot.lane.b32.xlu1 %v8677_v24, %s6481_s11  ;;  %v4264_v0 = vrot.slane %v4262_v47, 1  ;;  %v4270_v8 = vshll.u32 %v8796_v14, 16  ;;  %v4807_v17 = vsel %vm2333_vm5, %v4759_v37, %v4128_v60 }
 0x2cf   : > { %v4377_v12 = vpop.permute.xlu1 %4376  ;;  %v4440_v52 = vsel %vm1379_vm10, %v4437_v41, %v4439_v9  ;;  %v3866_v59 = vshll.u32 %v8813_v21, 16 }
 0x2d0   : > { %v4375_v35 = vpop.permute.xlu0 %4374  ;;  %v4265_v5 = vsel %vm9976_vm9, %v4260_v42, %v4264_v0  ;;  %v8830_v60 = vrot.slane %v4270_v8, 1  ;;  %v4268_v33 = vor.u32 %v4266_v45, %v4264_v0  ;;  %v3541_v45 = vld [vmem:[#allocation3 + $0x90] sm:$0xf] }
 0x2d1   : > { %4676 = vrot.lane.b32.xlu0 %v8774_v51, %s6483_s18 }
 0x2d2   : > { %4620 = vrot.lane.b32.xlu1 %v8780_v32, %s6482_s14 }
 0x2d3   : > { %v4474_v46 = vpop.permute.xlu1 %4473 }
 0x2d4   : > { %v4472_v55 = vpop.permute.xlu0 %4471 }
 0x2d5   : > { %v6250_v22 = vpop.f32.mrb[32].mxu0  ;;  %4067 = vrot.lane.b32.xlu0 %v8630_v36, %s6475_s15 }
 0x2d6   : > { %v2792_v4 = vmul.f32 %v8451_v10, %v6250_v22  ;;  %3970 = vrot.lane.b32.xlu1 %v8637_v19, %s6473_s9  ;;  %v2705_v15 = vpop.f32.mrb[33].mxu0 }
 0x2d7   : > { %v6251_v16 = vpop.f32.mrb[34].mxu0 }
 0x2d8   : > { %v2831_v6 = vadd.f32 %v8462_v34, %v2792_v4  ;;  %v4527_v58 = vpop.permute.xlu0 %4526  ;;  %v2707_v36 = vpop.f32.mrb[35].mxu0 }
 0x2d9   : > { %v2791_v19 = vmul.f32 %v8451_v10, %v2707_v36  ;;  %4143 = vrot.lane.b32.xlu0 %v8660_v13, %s6477_s19  ;;  %v4529_v4 = vpop.permute.xlu1 %4528 }
 0x2da   : > { %vm2863_vm7 = vcmp.ge.f32.partialorder %v2831_v6, 0.0  ;;  %v2895_v20 = vmul.f32 0.01, %v2831_v6  ;;  %3972 = vrot.lane.b32.xlu1 %v8734_v57, %s6473_s9  ;;  %v4855_v57 = vsel %vm2431_vm11, %v4807_v17, %v4375_v35  ;;  %v4713_v35 = vsel %vm9975_vm1, %v8149_v40, %v8713_v39 }
 0x2db   : > { %v2830_v38 = vadd.f32 %v8462_v34, %v2791_v19  ;;  %v4904_v44 = vsel %vm4898_vm6, %v4855_v57, %v4472_v55  ;;  %v3862_v40 = vshrl.u32 %v8720_v30, 16 }
 0x2dc   : > { %v2927_v25 = vsel %vm2863_vm7, %v2831_v6, %v2895_v20  ;;  %v4607_v1 = vpop.permute.xlu0 %4606  ;;  %v4953_v47 = vsel %vm4947_vm4, %v4904_v44, %v4527_v58  ;;  %v3545_v58 = vld [vmem:[#allocation3 + $0x98] sm:$0x1]  ;;  %vm9977_vm7 = vmmov %vm9976_vm9  ;;  %v3868_v20 = vrot.slane %v3866_v59, 1 }
 0x2dd   : > { %v6113_v49 = vpack.c.bf16 %v2927_v25, %v2927_v25  ;;  %vm2862_vm12 = vcmp.ge.f32.partialorder %v2830_v38, 0.0  ;;  %v2894_v27 = vmul.f32 0.01, %v2830_v38  ;;  %4390 = vrot.lane.b32.xlu0 %v4265_v5, %s6479_s21  ;;  %v5002_v13 = vsel %vm4996_vm14, %v4953_v47, %v4607_v1  ;;  %v3606_v1 = vld [vmem:[#allocation3 + $0x78] sm:$0xf]  ;;  %vm9978_vm9 = vmmov %vm9977_vm7 }
 0x2de   : > { %4069 = vrot.lane.b32.xlu1 %v4022_v18, %s6475_s15  ;;  %v4761_v18 = vsel %vm2235_vm15, %v4713_v35, %v8748_v48  ;;  %v4273_v42 = vsel %vm9977_vm7, %v4268_v33, %v8830_v60  ;;  %v3864_v0 = vor.u32 %v3862_v40, %v8765_v23  ;;  %v4441_v23 = vrot.slane %v8796_v14, 1  ;;  %vm9980_vm1 = vmmov %vm9977_vm7 }
 0x2df   : > { %v3340_v22 = vshrl.u32 %v6113_v49, 16  ;;  %v2926_v55 = vsel %vm2862_vm12, %v2830_v38, %v2894_v27  ;;  %v4809_v16 = vsel %vm2333_vm5, %v4761_v18, %v8769_v50  ;;  %v8851_v50 = vld [vmem:[#allocation3 + $0x7c] sm:$0xf]  ;;  %v3343_v8 = vshll.u32 %v6113_v49, 16 }
 0x2e0   : > { %v6112_v15 = vpack.c.bf16 %v2926_v55, %v2926_v55  ;;  %v4663_v41 = vpop.permute.xlu0 %4662  ;;  %v4857_v39 = vsel %vm2431_vm11, %v4809_v16, %v4377_v12  ;;  %v3869_v55 = vsel %vm9978_vm9, %v3864_v0, %v3868_v20  ;;  %v4025_v18 = vrot.slane %v8813_v21, 1 }
 0x2e1   : > { %v3342_v6 = vrot.slane %v3340_v22, 7  ;;  %v5051_v36 = vsel %vm5045_vm0, %v5002_v13, %v4663_v41  ;;  %4487 = vrot.lane.b32.xlu0 %v4440_v52, %s6480_s28  ;;  %v4906_v63 = vsel %vm4898_vm6, %v4857_v39, %v4474_v46  ;;  %v8863_v46 = vcombine.low %v3606_v1, %v8851_v50 }
 0x2e2   : > { %v3332_v48 = vshrl.u32 %v6112_v15, 16  ;;  %6278 = vmatprep.mubr.msk.bf16.mxu1 %vm5130_vm2, %v5051_v36  ;;  %4145 = vrot.lane.b32.xlu1 %v8784_v62, %s6477_s19  ;;  %v4955_v12 = vsel %vm4947_vm4, %v4906_v63, %v4529_v4  ;;  %v3335_v38 = vshll.u32 %v6112_v15, 16  ;;  %vm9979_vm12 = vcmask 60416  }
 0x2e3   : > { %v3347_v19 = vrot.slane %v3342_v6, 4  ;;  %v3345_v49 = vor.u32 %v3343_v8, %v3342_v6  ;;  %v4442_v4 = vsel %vm1379_vm10, %v4439_v9, %v4441_v23  ;;  %v3874_v15 = vshll.u32 %v8863_v46, 16 }
 0x2e4   : > { %v3334_v37 = vrot.slane %v3332_v48, 7  ;;  %v4665_v17 = vpop.permute.xlu0 %4664  ;;  %v4609_v25 = vpop.permute.xlu1 %4608  ;;  %v8886_v33 = vsel %vm1379_vm10, %v4023_v26, %v4025_v18  ;;  %v4027_v16 = vrot.slane %v8863_v46, 1  ;;  %v3870_v62 = vshrl.u32 %v8813_v21, 16 }
 0x2e5   : > { %v3546_v5 = vsel %vm7696_vm3, %v3347_v19, %v3545_v58  ;;  %v5004_v57 = vsel %vm4996_vm14, %v4955_v12, %v4609_v25  ;;  %4542 = vrot.lane.b32.xlu0 %v8720_v30, %s6481_s11  ;;  %v8892_v6 = vrot.slane %v3874_v15, 1  ;;  %v8897_v36 = vcombine.low %v8798_v56, %v3606_v1 }
 0x2e6   : > { %3547 = vst [vmem:[#allocation3 + $0x98] sm:$0x1] %v3546_v5  ;;  %v3337_v27 = vor.u32 %v3335_v38, %v3334_v37  ;;  %v3338_v44 = vrot.slane %v3334_v37, 4  ;;  %4392 = vrot.lane.b32.xlu1 %v4273_v42, %s6479_s21  ;;  %v5053_v52 = vsel %vm5045_vm0, %v5004_v57, %v4665_v17  ;;  %v3872_v9 = vor.u32 %v3870_v62, %v3868_v20  ;;  %v3608_v37 = vld [vmem:[#allocation3 + $0x80] sm:$0xf] }
 0x2e7   : > { %6279 = vmatmul.mubr.msk.bf16.gmra.mrb[4].mxu1 %vm5130_vm2, %v5053_v52  ;;  %v8902_v26 = vsel %vm1379_vm10, %v4025_v18, %v4027_v16  ;;  %v4274_v19 = vshrl.u32 %v8796_v14, 16  ;;  %v4278_v0 = vshll.u32 %v8897_v36, 16  ;;  %v4443_v1 = vrot.slane %v8897_v36, 1 }
 0x2e8   : > { %v3346_v59 = vsel %vm6595_vm8, %v3338_v44, %v3345_v49  ;;  %v3542_v35 = vsel %vm7707_vm13, %v3337_v27, %v3541_v45  ;;  %v4056_v22 = vpop.permute.xlu0 %4055  ;;  %v3959_v47 = vpop.permute.xlu1 %3958  ;;  %v8908_v48 = vsel %vm9980_vm1, %v3872_v9, %v8892_v6  ;;  %vm9981_vm7 = vcmask 64512  }
 0x2e9   : > { %3543 = vst [vmem:[#allocation3 + $0x90] sm:$0xf] %v3542_v35  ;;  %3544 = vst.msk [vmem:[#allocation3 + $0x94] sm:$0xf] %vm9979_vm12, %v3346_v59  ;;  %4622 = vrot.lane.b32.xlu0 %v3869_v55, %s6482_s14  ;;  %v4276_v25 = vor.u32 %v4274_v19, %v8830_v60  ;;  %v4715_v5 = vsel %vm9981_vm7, %v8154_v31, %v3959_v47  ;;  %v4280_v27 = vrot.slane %v4278_v0, 1  ;;  %v4282_v35 = vshrl.u32 %v8897_v36, 16 }
 0x2ea   : > { %4489 = vrot.lane.b32.xlu1 %v4442_v4, %s6480_s28  ;;  %v8928_v44 = vcombine.low %v8851_v50, %v3608_v37  ;;  %v8931_v31 = vld [vmem:[#allocation3 + $0x84] sm:$0xf] }
 0x2eb   : > { %v4284_v62 = vor.u32 %v4282_v35, %v4280_v27 }
 0x2ec   : > { %v4132_v13 = vpop.permute.xlu0 %4131  ;;  %v3961_v41 = vpop.permute.xlu1 %3960  ;;  %v4286_v9 = vshll.u32 %v8928_v44, 16 }
 0x2ed   : > { %4678 = vrot.lane.b32.xlu0 %v8886_v33, %s6483_s18 }
 0x2ee   : > { %4544 = vrot.lane.b32.xlu1 %v8813_v21, %s6481_s11 }
 0x2f0   : > { %v4379_v40 = vpop.permute.xlu0 %4378  ;;  %v4058_v39 = vpop.permute.xlu1 %4057 }
 0x2f1   : > { %v6254_v58 = vpop.f32.mrb[36].mxu0  ;;  %4680 = vrot.lane.b32.xlu0 %v8902_v26, %s6483_s18 }
 0x2f2   : > { %4624 = vrot.lane.b32.xlu1 %v8908_v48, %s6482_s14  ;;  %v2719_v56 = vpop.f32.mrb[37].mxu0 }
 0x2f3   : > { %v2793_v42 = vmul.f32 %v8451_v10, %v2719_v56  ;;  %v6255_v63 = vpop.f32.mrb[38].mxu0 }
 0x2f4   : > { %v2795_v20 = vmul.f32 %v8451_v10, %v6255_v63  ;;  %v4476_v8 = vpop.permute.xlu0 %4475  ;;  %v4134_v12 = vpop.permute.xlu1 %4133 }
 0x2f5   : > { %v2832_v38 = vadd.f32 %v8462_v34, %v2793_v42  ;;  %v2722_v17 = vpop.f32.mrb[39].mxu0  ;;  %4071 = vrot.lane.b32.xlu0 %v8774_v51, %s6475_s15 }
 0x2f6   : > { %v2834_v45 = vadd.f32 %v8462_v34, %v2795_v20  ;;  %v2794_v57 = vmul.f32 %v8451_v10, %v2722_v17  ;;  %3974 = vrot.lane.b32.xlu1 %v8780_v32, %s6473_s9  ;;  %v4763_v10 = vsel %vm2235_vm15, %v4715_v5, %v4056_v22  ;;  %v4281_v32 = vsel %vm9980_vm1, %v4276_v25, %v4280_v27 }
 0x2f7   : > { %vm2864_vm9 = vcmp.ge.f32.partialorder %v2832_v38, 0.0  ;;  %v2896_v49 = vmul.f32 0.01, %v2832_v38  ;;  %v8945_v22 = vcombine.low %v3608_v37, %v8931_v31  ;;  %v4811_v58 = vsel %vm2333_vm5, %v4763_v10, %v4132_v13  ;;  %v3610_v10 = vld [vmem:[#allocation3 + $0x88] sm:$0xf] }
 0x2f8   : > { %vm2866_vm12 = vcmp.ge.f32.partialorder %v2834_v45, 0.0  ;;  %v2898_v51 = vmul.f32 0.01, %v2834_v45  ;;  %v2833_v60 = vadd.f32 %v8462_v34, %v2794_v57  ;;  %v4531_v52 = vpop.permute.xlu0 %4530  ;;  %v4381_v59 = vpop.permute.xlu1 %4380  ;;  %v4444_v34 = vsel %vm1379_vm10, %v4441_v23, %v4443_v1 }
 0x2f9   : > { %v2928_v47 = vsel %vm2864_vm9, %v2832_v38, %v2896_v49  ;;  %4147 = vrot.lane.b32.xlu0 %v8796_v14, %s6477_s19  ;;  %vm9982_vm9 = vcmask 64512   ;;  %v4859_v19 = vsel %vm2431_vm11, %v4811_v58, %v4379_v40 }
 0x2fa   : > { %v6114_v50 = vpack.c.bf16 %v2928_v47, %v2928_v47  ;;  %v2930_v18 = vsel %vm2866_vm12, %v2834_v45, %v2898_v51  ;;  %vm2865_vm7 = vcmp.ge.f32.partialorder %v2833_v60, 0.0  ;;  %v2897_v4 = vmul.f32 0.01, %v2833_v60  ;;  %3976 = vrot.lane.b32.xlu1 %v3869_v55, %s6473_s9  ;;  %v3555_v45 = vld [vmem:[#allocation3 + $0xa8] sm:$0xf]  ;;  %vm9983_vm12 = vmmov %vm9980_vm1 }
 0x2fb   : > { %v6116_v15 = vpack.c.bf16 %v2930_v18, %v2930_v18  ;;  %v4717_v14 = vsel %vm9982_vm9, %v8189_v11, %v3961_v41  ;;  %v4908_v17 = vsel %vm4898_vm6, %v4859_v19, %v4476_v8  ;;  %v3548_v11 = vld [vmem:[#allocation3 + $0x9c] sm:$0xf]  ;;  %v8963_v51 = vrot.slane %v4286_v9, 1  ;;  %v3552_v47 = vld [vmem:[#allocation3 + $0xa4] sm:$0x1] }
 0x2fc   : > { %v3349_v56 = vshrl.u32 %v6114_v50, 16  ;;  %v2929_v23 = vsel %vm2865_vm7, %v2833_v60, %v2897_v4  ;;  %v4611_v42 = vpop.permute.xlu0 %4610  ;;  %v4478_v63 = vpop.permute.xlu1 %4477  ;;  %v4765_v55 = vsel %vm2235_vm15, %v4717_v14, %v4058_v39  ;;  %v3352_v38 = vshll.u32 %v6114_v50, 16  ;;  %vm9985_vm7 = vmmov %vm9983_vm12 }
 0x2fd   : > { %v3366_v0 = vshrl.u32 %v6116_v15, 16  ;;  %v6115_v20 = vpack.c.bf16 %v2929_v23, %v2929_v23  ;;  %4394 = vrot.lane.b32.xlu0 %v4281_v32, %s6479_s21  ;;  %v4813_v13 = vsel %vm2333_vm5, %v4765_v55, %v4134_v12  ;;  %v3369_v25 = vshll.u32 %v6116_v15, 16  ;;  %vm9986_vm9 = vmmov %vm9985_vm7 }
 0x2fe   : > { %v3351_v37 = vrot.slane %v3349_v56, 7  ;;  %4073 = vrot.lane.b32.xlu1 %v8886_v33, %s6475_s15  ;;  %v4957_v39 = vsel %vm4947_vm4, %v4908_v17, %v4531_v52  ;;  %v4861_v57 = vsel %vm2431_vm11, %v4813_v13, %v4381_v59  ;;  %v8968_v52 = vld [vmem:[#allocation3 + $0x8c] sm:$0xf]  ;;  %v3878_v50 = vshrl.u32 %v8863_v46, 16 }
 0x2ff   : > { %v8958_v41 = vrot.slane %v3366_v0, 7  ;;  %v3357_v40 = vshrl.u32 %v6115_v20, 16  ;;  %v5006_v49 = vsel %vm4996_vm14, %v4957_v39, %v4611_v42  ;;  %v3360_v60 = vshll.u32 %v6115_v20, 16 }
 0x300   : > { %v3354_v5 = vor.u32 %v3352_v38, %v3351_v37  ;;  %v4667_v27 = vpop.permute.xlu0 %4666  ;;  %v4533_v8 = vpop.permute.xlu1 %4532  ;;  %v4910_v32 = vsel %vm4898_vm6, %v4861_v57, %v4478_v63  ;;  %v3882_v18 = vshll.u32 %v8945_v22, 16  ;;  %v3355_v4 = vrot.slane %v3351_v37, 4 }
 0x301   : > { %v3371_v12 = vor.u32 %v3369_v25, %v8958_v41  ;;  %v3359_v33 = vrot.slane %v3357_v40, 7  ;;  %v5055_v35 = vsel %vm5045_vm0, %v5006_v49, %v4667_v27  ;;  %4491 = vrot.lane.b32.xlu0 %v4444_v34, %s6480_s28  ;;  %v4959_v58 = vsel %vm4947_vm4, %v4910_v32, %v4533_v8  ;;  %v9033_v8 = vld [vmem:[%s9790_s2] ss:$0 sm:$0xff] }
 0x302   : > { %v3549_v59 = vsel %vm7707_vm13, %v3354_v5, %v3548_v11  ;;  %6282 = vmatprep.mubr.msk.bf16.mxu1 %vm5130_vm2, %v5055_v35  ;;  %4149 = vrot.lane.b32.xlu1 %v8897_v36, %s6477_s19  ;;  %v3880_v23 = vor.u32 %v3878_v50, %v8892_v6  ;;  %v4445_v42 = vrot.slane %v8928_v44, 1  ;;  %v8984_v63 = vcombine.low %v3610_v10, %v8968_v52  ;;  %v9042_v35 = vld [vmem:[%s9791_s3] ss:$0 sm:$0xff] }
 0x303   : > { %3550 = vst [vmem:[#allocation3 + $0x9c] sm:$0xf] %v3549_v59  ;;  %v3556_v34 = vsel %vm7707_vm13, %v3371_v12, %v3555_v45  ;;  %v3362_v15 = vor.u32 %v3360_v60, %v3359_v33  ;;  %v3364_v9 = vrot.slane %v3359_v33, 4  ;;  %v4289_v20 = vsel %vm9983_vm12, %v4284_v62, %v8963_v51 }
 0x304   : > { %3557 = vst [vmem:[#allocation3 + $0xa8] sm:$0xf] %v3556_v34  ;;  %v4669_v14 = vpop.permute.xlu0 %4668  ;;  %v4613_v56 = vpop.permute.xlu1 %4612  ;;  %vm9984_vm1 = vcmask 60416   ;;  %v3884_v37 = vrot.slane %v3882_v18, 1  ;;  %v4029_v11 = vrot.slane %v8945_v22, 1  ;;  %v4446_v62 = vsel %vm1379_vm10, %v4443_v1, %v4445_v42 }
 0x305   : > { %v3363_v19 = vsel %vm6595_vm8, %v3355_v4, %v3362_v15  ;;  %v3553_v55 = vsel %vm7696_vm3, %v3364_v9, %v3552_v47  ;;  %v5008_v0 = vsel %vm4996_vm14, %v4959_v58, %v4613_v56  ;;  %4546 = vrot.lane.b32.xlu0 %v8863_v46, %s6481_s11  ;;  %v3890_v25 = vshll.u32 %v8984_v63, 16  ;;  %v3612_v56 = vld [vmem:[#allocation3 + $0x90] sm:$0xf] }
 0x306   : > { %3551 = vst.msk [vmem:[#allocation3 + $0xa0] sm:$0xf] %vm9984_vm1, %v3363_v19  ;;  %3554 = vst [vmem:[#allocation3 + $0xa4] sm:$0x1] %v3553_v55  ;;  %4396 = vrot.lane.b32.xlu1 %v4289_v20, %s6479_s21  ;;  %v5057_v6 = vsel %vm5045_vm0, %v5008_v0, %v4669_v14  ;;  %v9000_v13 = vsel %vm9985_vm7, %v3880_v23, %v3884_v37  ;;  %v3886_v40 = vshrl.u32 %v8945_v22, 16  ;;  %v4031_v57 = vrot.slane %v8984_v63, 1 }
 0x307   : > { %6283 = vmatmul.mubr.msk.bf16.gmra.mrb[8].mxu1 %vm5130_vm2, %v5057_v6  ;;  %v9020_v45 = vsel %vm1379_vm10, %v4027_v16, %v4029_v11  ;;  %v9025_v49 = vrot.slane %v3890_v25, 1  ;;  %v9028_v27 = vcombine.low %v8931_v31, %v3610_v10  ;;  %v4290_v58 = vshrl.u32 %v8928_v44, 16 }
 0x308   : > { %v4060_v38 = vpop.permute.xlu0 %4059  ;;  %v3963_v17 = vpop.permute.xlu1 %3962  ;;  %v3888_v1 = vor.u32 %v3886_v40, %v3884_v37  ;;  %v9051_v32 = vsel %vm1379_vm10, %v4029_v11, %v4031_v57 }
 0x309   : > { %4626 = vrot.lane.b32.xlu0 %v9000_v13, %s6482_s14  ;;  %v4294_v34 = vshll.u32 %v9028_v27, 16  ;;  %v4292_v20 = vor.u32 %v4290_v58, %v8963_v51  ;;  %v3559_v58 = vld [vmem:[#allocation3 + $0xb0] sm:$0x1] }
 0x30a   : > { %4493 = vrot.lane.b32.xlu1 %v4446_v62, %s6480_s28  ;;  %v9058_v4 = vsel %vm9986_vm9, %v3888_v1, %v9025_v49  ;;  %vm9987_vm9 = vcmask 64512  }
 0x30b   : > { %v4719_v6 = vsel %vm9987_vm9, %v8321_v61, %v3963_v17  ;;  %v9072_v62 = vrot.slane %v4294_v34, 1 }
 0x30c   : > { %v9013_v39 = vpop.permute.xlu0 %4135  ;;  %v9015_v5 = vpop.permute.xlu1 %3964  ;;  %v4767_v61 = vsel %vm2235_vm15, %v4719_v6, %v4060_v38 }
 0x30d   : > { %v6258_v36 = vpop.f32.mrb[40].mxu0  ;;  %4682 = vrot.lane.b32.xlu0 %v9020_v45, %s6483_s18 }
 0x30e   : > { %v2797_v16 = vmul.f32 %v9033_v8, %v6258_v36  ;;  %4548 = vrot.lane.b32.xlu1 %v8945_v22, %s6481_s11  ;;  %v2734_v12 = vpop.f32.mrb[41].mxu0  ;;  %v9077_v36 = vcombine.low %v8968_v52, %v3612_v56  ;;  %v3562_v52 = vld [vmem:[#allocation3 + $0xb4] sm:$0xf] }
 0x30f   : > { %v2796_v33 = vmul.f32 %v9033_v8, %v2734_v12  ;;  %v6259_v60 = vpop.f32.mrb[42].mxu0 }
 0x310   : > { %v2836_v31 = vadd.f32 %v9042_v35, %v2797_v16  ;;  %v2798_v10 = vmul.f32 %v9033_v8, %v6259_v60  ;;  %v4383_v59 = vpop.permute.xlu0 %4382  ;;  %v9046_v47 = vpop.permute.xlu1 %4061  ;;  %v9079_v16 = vld [vmem:[#allocation3 + $0x94] sm:$0xf]  ;;  %v4302_v38 = vshll.u32 %v9077_v36, 16 }
 0x311   : > { %v2835_v50 = vadd.f32 %v9042_v35, %v2796_v33  ;;  %v2737_v18 = vpop.f32.mrb[43].mxu0  ;;  %4684 = vrot.lane.b32.xlu0 %v9051_v32, %s6483_s18  ;;  %v9091_v34 = vcombine.low %v3612_v56, %v9079_v16 }
 0x312   : > { %vm2868_vm12 = vcmp.ge.f32.partialorder %v2836_v31, 0.0  ;;  %v2900_v15 = vmul.f32 0.01, %v2836_v31  ;;  %v2837_v9 = vadd.f32 %v9042_v35, %v2798_v10  ;;  %4628 = vrot.lane.b32.xlu1 %v9058_v4, %s6482_s14 }
 0x313   : > { %vm2867_vm1 = vcmp.ge.f32.partialorder %v2835_v50, 0.0  ;;  %v2899_v14 = vmul.f32 0.01, %v2835_v50 }
 0x314   : > { %v2932_v23 = vsel %vm2868_vm12, %v2836_v31, %v2900_v15  ;;  %vm2869_vm7 = vcmp.ge.f32.partialorder %v2837_v9, 0.0  ;;  %v2901_v19 = vmul.f32 0.01, %v2837_v9  ;;  %v4480_v55 = vpop.permute.xlu0 %4479  ;;  %v9065_v0 = vpop.permute.xlu1 %4137  ;;  %vm9988_vm12 = vsmask.f32 7424 }
 0x315   : > { %v6118_v37 = vpack.c.bf16 %v2932_v23, %v2932_v23  ;;  %v2931_v11 = vsel %vm2867_vm1, %v2835_v50, %v2899_v14  ;;  %4075 = vrot.lane.b32.xlu0 %v8902_v26, %s6475_s15  ;;  %v4447_v26 = vrot.slane %v9028_v27, 1  ;;  %v4815_v15 = vsel %vm2333_vm5, %v4767_v61, %v9013_v39  ;;  %vm9989_vm1 = vmmov %vm9987_vm9 }
 0x316   : > { %v6117_v25 = vpack.c.bf16 %v2931_v11, %v2931_v11  ;;  %v2933_v40 = vsel %vm2869_vm7, %v2837_v9, %v2901_v19  ;;  %3978 = vrot.lane.b32.xlu1 %v8908_v48, %s6473_s9  ;;  %v4297_v48 = vsel %vm9988_vm12, %v4292_v20, %v9072_v62  ;;  %v3372_v19 = vrot.slane %v8958_v41, 4 }
 0x317   : > { %v3383_v1 = vshrl.u32 %v6118_v37, 16  ;;  %v6119_v51 = vpack.c.bf16 %v2933_v40, %v2933_v40  ;;  %v3386_v31 = vshll.u32 %v6118_v37, 16  ;;  %v3566_v37 = vld [vmem:[#allocation3 + $0xbc] sm:$0x1]  ;;  %v4863_v11 = vsel %vm2431_vm11, %v4815_v15, %v4383_v59 }
 0x318   : > { %v3374_v17 = vshrl.u32 %v6117_v25, 16  ;;  %v4535_v12 = vpop.permute.xlu0 %4534  ;;  %v4385_v33 = vpop.permute.xlu1 %4384  ;;  %v3377_v18 = vshll.u32 %v6117_v25, 16  ;;  %v4721_v59 = vsel %vm9989_vm1, %v8366_v28, %v9015_v5  ;;  %vm9990_vm7 = vcmask 60416   ;;  %vm9992_vm1 = vmmov %vm9988_vm12 }
 0x319   : > { %v3385_v60 = vrot.slane %v3383_v1, 7  ;;  %v3391_v10 = vshrl.u32 %v6119_v51, 16  ;;  %4151 = vrot.lane.b32.xlu0 %v8928_v44, %s6477_s19  ;;  %v3394_v23 = vshll.u32 %v6119_v51, 16  ;;  %v4912_v51 = vsel %vm4898_vm6, %v4863_v11, %v4480_v55  ;;  %vm9991_vm9 = vmmov %vm9990_vm7  ;;  %v9137_v44 = vld [vmem:[#allocation3 + $0x9c] sm:$0xf] }
 0x31a   : > { %v3376_v50 = vrot.slane %v3374_v17, 7  ;;  %3980 = vrot.lane.b32.xlu1 %v9000_v13, %s6473_s9 }
 0x31b   : > { %v3388_v9 = vor.u32 %v3386_v31, %v3385_v60  ;;  %v3393_v14 = vrot.slane %v3391_v10, 7  ;;  %v3389_v40 = vrot.slane %v3385_v60, 4  ;;  %v4961_v31 = vsel %vm4947_vm4, %v4912_v51, %v4535_v12 }
 0x31c   : > { %v3379_v20 = vor.u32 %v3377_v18, %v3376_v50  ;;  %v3381_v6 = vrot.slane %v3376_v50, 4  ;;  %v4615_v13 = vpop.permute.xlu0 %4614  ;;  %v4482_v25 = vpop.permute.xlu1 %4481  ;;  %v4448_v10 = vsel %vm1379_vm10, %v4445_v42, %v4447_v26  ;;  %v9131_v50 = vrot.slane %v4302_v38, 1 }
 0x31d   : > { %v3563_v56 = vsel %vm7707_vm13, %v3388_v9, %v3562_v52  ;;  %v3396_v1 = vor.u32 %v3394_v23, %v3393_v14  ;;  %v3398_v17 = vrot.slane %v3393_v14, 4  ;;  %4398 = vrot.lane.b32.xlu0 %v4297_v48, %s6479_s21  ;;  %v5010_v55 = vsel %vm4996_vm14, %v4961_v31, %v4615_v13  ;;  %v3614_v23 = vld [vmem:[#allocation3 + $0x98] sm:$0xf] }
 0x31e   : > { %3564 = vst [vmem:[#allocation3 + $0xb4] sm:$0xf] %v3563_v56  ;;  %v3380_v39 = vsel %vm6595_vm8, %v3372_v19, %v3379_v20  ;;  %v3560_v41 = vsel %vm7696_vm3, %v3381_v6, %v3559_v58  ;;  %4077 = vrot.lane.b32.xlu1 %v9020_v45, %s6475_s15  ;;  %v4769_v45 = vsel %vm2235_vm15, %v4721_v59, %v9046_v47  ;;  %v3898_v48 = vshll.u32 %v9091_v34, 16 }
 0x31f   : > { %3558 = vst.msk [vmem:[#allocation3 + $0xac] sm:$0xf] %vm9990_vm7, %v3380_v39  ;;  %3561 = vst [vmem:[#allocation3 + $0xb0] sm:$0x1] %v3560_v41  ;;  %v3397_v61 = vsel %vm6595_vm8, %v3389_v40, %v3396_v1  ;;  %v3567_v60 = vsel %vm7696_vm3, %v3398_v17, %v3566_v37  ;;  %v4817_v12 = vsel %vm2333_vm5, %v4769_v45, %v9065_v0  ;;  %v4298_v47 = vshrl.u32 %v9028_v27, 16 }
 0x320   : > { %3565 = vst.msk [vmem:[#allocation3 + $0xb8] sm:$0xf] %vm9991_vm9, %v3397_v61  ;;  %3568 = vst [vmem:[#allocation3 + $0xbc] sm:$0x1] %v3567_v60  ;;  %v4671_v28 = vpop.permute.xlu0 %4670  ;;  %v4537_v5 = vpop.permute.xlu1 %4536  ;;  %v4865_v18 = vsel %vm2431_vm11, %v4817_v12, %v4385_v33  ;;  %v3894_v38 = vshrl.u32 %v8984_v63, 16  ;;  %v3900_v14 = vrot.slane %v3898_v48, 1 }
 0x321   : > { %v5059_v52 = vsel %vm5045_vm0, %v5010_v55, %v4671_v28  ;;  %4495 = vrot.lane.b32.xlu0 %v4448_v10, %s6480_s28  ;;  %v4914_v42 = vsel %vm4898_vm6, %v4865_v18, %v4482_v25  ;;  %v4300_v0 = vor.u32 %v4298_v47, %v9072_v62  ;;  %v4449_v20 = vrot.slane %v9077_v36, 1  ;;  %vm9993_vm9 = vmmov %vm9992_vm1 }
 0x322   : > { %6286 = vmatprep.mubr.msk.bf16.mxu1 %vm5130_vm2, %v5059_v52  ;;  %4153 = vrot.lane.b32.xlu1 %v9028_v27, %s6477_s19  ;;  %v4963_v15 = vsel %vm4947_vm4, %v4914_v42, %v4537_v5  ;;  %v9150_v62 = vcombine.low %v3614_v23, %v9137_v44  ;;  %v3896_v37 = vor.u32 %v3894_v38, %v9025_v49  ;;  %v4033_v40 = vrot.slane %v9091_v34, 1 }
 0x323   : > { %v4305_v19 = vsel %vm9988_vm12, %v4300_v0, %v9131_v50  ;;  %v4450_v1 = vsel %vm1379_vm10, %v4447_v26, %v4449_v20  ;;  %v3902_v31 = vshrl.u32 %v9091_v34, 16 }
 0x324   : > { %v4673_v9 = vpop.permute.xlu0 %4672  ;;  %v4617_v58 = vpop.permute.xlu1 %4616  ;;  %v9157_v25 = vsel %vm9992_vm1, %v3896_v37, %v3900_v14  ;;  %v3906_v49 = vshll.u32 %v9150_v62, 16  ;;  %v9176_v60 = vsel %vm1379_vm10, %v4031_v57, %v4033_v40  ;;  %v4035_v27 = vrot.slane %v9150_v62, 1 }
 0x325   : > { %v5012_v33 = vsel %vm4996_vm14, %v4963_v15, %v4617_v58  ;;  %4550 = vrot.lane.b32.xlu0 %v8984_v63, %s6481_s11  ;;  %v3904_v5 = vor.u32 %v3902_v31, %v3900_v14  ;;  %vm9994_vm1 = vcmask 64512  }
 0x326   : > { %4400 = vrot.lane.b32.xlu1 %v4305_v19, %s6479_s21  ;;  %v5061_v6 = vsel %vm5045_vm0, %v5012_v33, %v4673_v9  ;;  %v9182_v45 = vrot.slane %v3906_v49, 1  ;;  %v9191_v52 = vsel %vm1379_vm10, %v4033_v40, %v4035_v27  ;;  %v3616_v33 = vld [vmem:[#allocation3 + $0xa0] sm:$0xf]  ;;  %v3573_v19 = vld [vmem:[#allocation3 + $0xc8] sm:$0x1] }
 0x327   : > { %6287 = vmatmul.mubr.msk.bf16.gmra.mrb[12].mxu1 %vm5130_vm2, %v5061_v6 }
 0x328   : > { %v4064_v11 = vpop.permute.xlu0 %4063  ;;  %v3967_v13 = vpop.permute.xlu1 %3966 }
 0x329   : > { %v6262_v56 = vpop.f32.mrb[44].mxu0  ;;  %4630 = vrot.lane.b32.xlu0 %v9157_v25, %s6482_s14  ;;  %v4723_v58 = vsel %vm9994_vm1, %v8434_v53, %v3967_v13 }
 0x32a   : > { %v2800_v17 = vmul.f32 %v9033_v8, %v6262_v56  ;;  %4497 = vrot.lane.b32.xlu1 %v4450_v1, %s6480_s28  ;;  %v2749_v39 = vpop.f32.mrb[45].mxu0  ;;  %v4771_v40 = vsel %vm2235_vm15, %v4723_v58, %v4064_v11  ;;  %v9215_v1 = vcombine.low %v9137_v44, %v3616_v33  ;;  %v3569_v11 = vld [vmem:[#allocation3 + $0xc0] sm:$0xf] }
 0x32b   : > { %v6263_v41 = vpop.f32.mrb[46].mxu0  ;;  %v9221_v39 = vld [vmem:[#allocation3 + $0xa4] sm:$0xf] }
 0x32c   : > { %v2839_v51 = vadd.f32 %v9042_v35, %v2800_v17  ;;  %v4140_v59 = vpop.permute.xlu0 %4139  ;;  %v9171_v61 = vpop.permute.xlu1 %3968 }
 0x32d   : > { %v2751_v26 = vpop.f32.mrb[47].mxu0  ;;  %4686 = vrot.lane.b32.xlu0 %v9176_v60, %s6483_s18 }
 0x32e   : > { %vm2871_vm7 = vcmp.ge.f32.partialorder %v2839_v51, 0.0  ;;  %v2903_v55 = vmul.f32 0.01, %v2839_v51  ;;  %v2799_v28 = vmul.f32 %v9033_v8, %v2751_v26  ;;  %4552 = vrot.lane.b32.xlu1 %v9091_v34, %s6481_s11  ;;  %v9197_v8 = vsel %vm9993_vm9, %v3904_v5, %v9182_v45 }
 0x32f   : > { %v4819_v26 = vsel %vm2333_vm5, %v4771_v40, %v4140_v59  ;;  %v9229_v5 = vcombine.low %v3616_v33, %v9221_v39  ;;  %v4318_v59 = vshll.u32 %v9215_v1, 16 }
 0x330   : > { %v2935_v57 = vsel %vm2871_vm7, %v2839_v51, %v2903_v55  ;;  %v2838_v10 = vadd.f32 %v9042_v35, %v2799_v28  ;;  %v4387_v48 = vpop.permute.xlu0 %4386  ;;  %v4066_v12 = vpop.permute.xlu1 %4065  ;;  %v9202_v35 = vcombine.low %v9079_v16, %v3614_v23  ;;  %v4306_v16 = vshrl.u32 %v9077_v36, 16 }
 0x331   : > { %v6121_v47 = vpack.c.bf16 %v2935_v57, %v2935_v57  ;;  %4688 = vrot.lane.b32.xlu0 %v9191_v52, %s6483_s18  ;;  %vm9996_vm7 = vcmask 60416  }
 0x332   : > { %vm2870_vm12 = vcmp.ge.f32.partialorder %v2838_v10, 0.0  ;;  %v2902_v18 = vmul.f32 0.01, %v2838_v10  ;;  %4632 = vrot.lane.b32.xlu1 %v9197_v8, %s6482_s14  ;;  %v4310_v23 = vshll.u32 %v9202_v35, 16  ;;  %v4308_v13 = vor.u32 %v4306_v16, %v9131_v50 }
 0x333   : > { %v3408_v42 = vshrl.u32 %v6121_v47, 16  ;;  %v4451_v28 = vrot.slane %v9202_v35, 1 }
 0x334   : > { %v2934_v0 = vsel %vm2870_vm12, %v2838_v10, %v2902_v18  ;;  %v4484_v15 = vpop.permute.xlu0 %4483  ;;  %v4142_v9 = vpop.permute.xlu1 %4141  ;;  %v4312_v50 = vrot.slane %v4310_v23, 1  ;;  %v4867_v10 = vsel %vm2431_vm11, %v4819_v26, %v4387_v48  ;;  %v3918_v26 = vshrl.u32 %v9229_v5, 16 }
 0x335   : > { %v3410_v38 = vrot.slane %v3408_v42, 7  ;;  %v6120_v14 = vpack.c.bf16 %v2934_v0, %v2934_v0  ;;  %4079 = vrot.lane.b32.xlu0 %v9051_v32, %s6475_s15  ;;  %v3411_v32 = vshll.u32 %v6121_v47, 16  ;;  %v4916_v47 = vsel %vm4898_vm6, %v4867_v10, %v4484_v15 }
 0x336   : > { %3982 = vrot.lane.b32.xlu1 %v9058_v4, %s6473_s9  ;;  %v4452_v58 = vsel %vm1379_vm10, %v4449_v20, %v4451_v28  ;;  %v3914_v15 = vshll.u32 %v9229_v5, 16  ;;  %v3619_v20 = vld [vmem:[#allocation3 + $0xac] sm:$0xf] }
 0x337   : > { %v3415_v6 = vrot.slane %v3410_v38, 4  ;;  %v3400_v37 = vshrl.u32 %v6120_v14, 16  ;;  %v3403_v17 = vshll.u32 %v6120_v14, 16  ;;  %v3413_v41 = vor.u32 %v3411_v32, %v3410_v38 }
 0x338   : > { %v4539_v56 = vpop.permute.xlu0 %4538  ;;  %v4389_v53 = vpop.permute.xlu1 %4388 }
 0x339   : > { %v3574_v49 = vsel %vm7696_vm3, %v3415_v6, %v3573_v19  ;;  %v3402_v4 = vrot.slane %v3400_v37, 7  ;;  %4155 = vrot.lane.b32.xlu0 %v9077_v36, %s6477_s19  ;;  %vm9995_vm3 = vmmov %vm9993_vm9  ;;  %v4965_v3 = vsel %vm4947_vm4, %v4916_v47, %v4539_v56  ;;  %v3910_v36 = vshrl.u32 %v9150_v62, 16  ;;  %v3618_v37 = vld [vmem:[#allocation3 + $0xa8] sm:$0xf] }
 0x33a   : > { %3575 = vst [vmem:[#allocation3 + $0xc8] sm:$0x1] %v3574_v49  ;;  %3984 = vrot.lane.b32.xlu1 %v9157_v25, %s6473_s9  ;;  %v4313_v55 = vsel %vm9995_vm3, %v4308_v13, %v4312_v50  ;;  %v3916_v6 = vrot.slane %v3914_v15, 1  ;;  %v4453_v56 = vrot.slane %v9215_v1, 1  ;;  %vm9999_vm9 = vmmov %vm9995_vm3 }
 0x33b   : > { %v3405_v44 = vor.u32 %v3403_v17, %v3402_v4  ;;  %v3406_v51 = vrot.slane %v3402_v4, 4  ;;  %v3912_v23 = vor.u32 %v3910_v36, %v9182_v45  ;;  %v4037_v4 = vrot.slane %v9229_v5, 1  ;;  %vm10000_vm12 = vmmov %vm9995_vm3 }
 0x33c   : > { %v4619_v54 = vpop.permute.xlu0 %4618  ;;  %v4486_v31 = vpop.permute.xlu1 %4485  ;;  %v4454_v17 = vsel %vm1379_vm10, %v4451_v28, %v4453_v56 }
 0x33d   : > { %v3414_v57 = vsel %vm6595_vm8, %v3406_v51, %v3413_v41  ;;  %v3570_v25 = vsel %vm7707_vm13, %v3405_v44, %v3569_v11  ;;  %4402 = vrot.lane.b32.xlu0 %v4313_v55, %s6479_s21  ;;  %vm9997_vm8 = vmmov %vm9994_vm1  ;;  %v5014_v18 = vsel %vm4996_vm14, %v4965_v3, %v4619_v54  ;;  %v3917_v49 = vsel %vm9999_vm9, %v3912_v23, %v3916_v6 }
 0x33e   : > { %3571 = vst [vmem:[#allocation3 + $0xc0] sm:$0xf] %v3570_v25  ;;  %3572 = vst.msk [vmem:[#allocation3 + $0xc4] sm:$0xf] %vm9996_vm7, %v3414_v57  ;;  %4081 = vrot.lane.b32.xlu1 %v9176_v60, %s6475_s15  ;;  %v4725_v43 = vsel %vm9997_vm8, %v8473_v29, %v9171_v61  ;;  %v4314_v29 = vshrl.u32 %v9202_v35, 16  ;;  %v4320_v61 = vrot.slane %v4318_v59, 1  ;;  %v4038_v44 = vsel %vm1379_vm10, %v4035_v27, %v4037_v4 }
 0x33f   : > { %v4773_v48 = vsel %vm2235_vm15, %v4725_v43, %v4066_v12  ;;  %vm9998_vm13 = vmmov %vm9995_vm3  ;;  %v9303_v25 = vcombine.low %v9221_v39, %v3618_v37  ;;  %v4322_v43 = vshrl.u32 %v9215_v1, 16 }
 0x340   : > { %v4675_v42 = vpop.permute.xlu0 %4674  ;;  %v4541_v0 = vpop.permute.xlu1 %4540  ;;  %v4821_v60 = vsel %vm2333_vm5, %v4773_v48, %v4142_v9  ;;  %v4316_v9 = vor.u32 %v4314_v29, %v4312_v50  ;;  %v3620_v48 = vld [vmem:[#allocation3 + $0xb0] sm:$0xf]  ;;  %vm10001_vm7 = vmmov %vm9994_vm1 }
 0x341   : > { %v5063_v38 = vsel %vm5045_vm0, %v5014_v18, %v4675_v42  ;;  %4499 = vrot.lane.b32.xlu0 %v4452_v58, %s6480_s28  ;;  %v4869_v12 = vsel %vm2431_vm11, %v4821_v60, %v4389_v53  ;;  %v9269_v53 = vcombine.low %v3618_v37, %v3619_v20  ;;  %v4326_v3 = vshll.u32 %v9303_v25, 16  ;;  %v9319_v58 = vld [vmem:[#allocation3 + $0xb4] sm:$0xf]  ;;  %vm10002_vm8 = vmmov %vm9995_vm3 }
 0x342   : > { %6290 = vmatprep.mubr.msk.bf16.mxu1 %vm5130_vm2, %v5063_v38  ;;  %4157 = vrot.lane.b32.xlu1 %v9202_v35, %s6477_s19  ;;  %v4918_v14 = vsel %vm4898_vm6, %v4869_v12, %v4486_v31  ;;  %v4321_v35 = vsel %vm9998_vm13, %v4316_v9, %v4320_v61  ;;  %v3920_v31 = vor.u32 %v3918_v26, %v3916_v6  ;;  %v4455_v29 = vrot.slane %v9303_v25, 1  ;;  %vm10003_vm13 = vmmov %vm9995_vm3 }
 0x343   : > { %v4967_v33 = vsel %vm4947_vm4, %v4918_v14, %v4541_v0  ;;  %v3922_v11 = vshll.u32 %v9269_v53, 16  ;;  %v4039_v51 = vrot.slane %v9269_v53, 1  ;;  %v4324_v39 = vor.u32 %v4322_v43, %v4320_v61  ;;  %vm10004_vm9 = vmmov %vm9995_vm3 }
 0x344   : > { %v4677_v19 = vpop.permute.xlu0 %4676  ;;  %v4621_v16 = vpop.permute.xlu1 %4620  ;;  %v4456_v6 = vsel %vm1379_vm10, %v4453_v56, %v4455_v29 }
 0x345   : > { %v5016_v40 = vsel %vm4996_vm14, %v4967_v33, %v4621_v16  ;;  %4554 = vrot.lane.b32.xlu0 %v9150_v62, %s6481_s11  ;;  %v3924_v54 = vrot.slane %v3922_v11, 1  ;;  %v9293_v57 = vsel %vm1379_vm10, %v4037_v4, %v4039_v51 }
 0x346   : > { %4404 = vrot.lane.b32.xlu1 %v4321_v35, %s6479_s21  ;;  %v5065_v13 = vsel %vm5045_vm0, %v5016_v40, %v4677_v19 }
 0x347   : > { %6291 = vmatmul.mubr.msk.bf16.gmra.mrb[16].mxu1 %vm5130_vm2, %v5065_v13  ;;  %v9298_v27 = vsel %vm10000_vm12, %v3920_v31, %v3924_v54  ;;  %vm10005_vm12 = vmmov %vm9994_vm1 }
 0x348   : > { %v4068_v45 = vpop.permute.xlu0 %4067  ;;  %v3971_v32 = vpop.permute.xlu1 %3970 }
 0x349   : > { %4634 = vrot.lane.b32.xlu0 %v3917_v49, %s6482_s14  ;;  %v4727_v47 = vsel %vm9994_vm1, %v8546_v2, %v3971_v32  ;;  %v4328_v2 = vrot.slane %v4326_v3, 1  ;;  %v3623_v32 = vld [vmem:[#allocation3 + $0xbc] sm:$0xf]  ;;  %vm10006_vm1 = vmmov %vm9995_vm3 }
 0x34a   : > { %4501 = vrot.lane.b32.xlu1 %v4454_v17, %s6480_s28  ;;  %v4775_v0 = vsel %vm2235_vm15, %v4727_v47, %v4068_v45  ;;  %v3622_v45 = vld [vmem:[#allocation3 + $0xb8] sm:$0xf] }
 0x34b   : > { %v4329_v38 = vsel %vm9995_vm3, %v4324_v39, %v4328_v2  ;;  %vm10007_vm3 = vmmov %vm10001_vm7 }
 0x34c   : > { %v4144_v50 = vpop.permute.xlu0 %4143  ;;  %v3973_v41 = vpop.permute.xlu1 %3972 }
 0x34d   : > { %4690 = vrot.lane.b32.xlu0 %v4038_v44, %s6483_s18  ;;  %v4729_v14 = vsel %vm10001_vm7, %v8570_v7, %v3973_v41  ;;  %v4330_v7 = vshrl.u32 %v9303_v25, 16  ;;  %vm10008_vm7 = vmmov %vm10006_vm1 }
 0x34e   : > { %4556 = vrot.lane.b32.xlu1 %v9229_v5, %s6481_s11 }
 0x34f   : > { %v4332_v4 = vor.u32 %v4330_v7, %v4328_v2 }
 0x350   : > { %v4391_v55 = vpop.permute.xlu0 %4390  ;;  %v4070_v28 = vpop.permute.xlu1 %4069 }
 0x351   : > { %4692 = vrot.lane.b32.xlu0 %v9293_v57, %s6483_s18  ;;  %v4777_v33 = vsel %vm2235_vm15, %v4729_v14, %v4070_v28 }
 0x352   : > { %4636 = vrot.lane.b32.xlu1 %v9298_v27, %s6482_s14 }
 0x354   : > { %v4488_v10 = vpop.permute.xlu0 %4487  ;;  %v4146_v59 = vpop.permute.xlu1 %4145 }
 0x355   : > { %4083 = vrot.lane.b32.xlu0 %v9191_v52, %s6475_s15  ;;  %v9316_v52 = vcombine.low %v3619_v20, %v3620_v48  ;;  %v9330_v20 = vcombine.low %v3620_v48, %v9319_v58  ;;  %v4825_v37 = vsel %vm2333_vm5, %v4777_v33, %v4146_v59 }
 0x356   : > { %3986 = vrot.lane.b32.xlu1 %v9197_v8, %s6473_s9  ;;  %v4823_v8 = vsel %vm2333_vm5, %v4775_v0, %v4144_v50 }
 0x357   : > { %v4871_v61 = vsel %vm2431_vm11, %v4823_v8, %v4391_v55  ;;  %v4334_v12 = vshll.u32 %v9316_v52, 16  ;;  %v3930_v56 = vshll.u32 %v9330_v20, 16  ;;  %v4457_v31 = vrot.slane %v9316_v52, 1 }
 0x358   : > { %v4543_v18 = vpop.permute.xlu0 %4542  ;;  %v4393_v42 = vpop.permute.xlu1 %4392  ;;  %v4920_v36 = vsel %vm4898_vm6, %v4871_v61, %v4488_v10  ;;  %v9357_v55 = vcombine.low %v3622_v45, %v3623_v32  ;;  %v4041_v47 = vrot.slane %v9330_v20, 1  ;;  %v3934_v48 = vshrl.u32 %v9330_v20, 16 }
 0x359   : > { %4159 = vrot.lane.b32.xlu0 %v9215_v1, %s6477_s19  ;;  %v4969_v9 = vsel %vm4947_vm4, %v4920_v36, %v4543_v18  ;;  %v4336_v35 = vrot.slane %v4334_v12, 1  ;;  %v4873_v13 = vsel %vm2431_vm11, %v4825_v37, %v4393_v42  ;;  %v3926_v1 = vshrl.u32 %v9269_v53, 16 }
 0x35a   : > { %3988 = vrot.lane.b32.xlu1 %v3917_v49, %s6473_s9  ;;  %v4458_v43 = vsel %vm1379_vm10, %v4455_v29, %v4457_v31  ;;  %v3938_v3 = vshll.u32 %v9357_v55, 16  ;;  %v4042_v39 = vsel %vm1379_vm10, %v4039_v51, %v4041_v47  ;;  %v9375_v0 = vrot.slane %v9357_v55, 1 }
 0x35b   : > { %v3928_v41 = vor.u32 %v3926_v1, %v3924_v54  ;;  %v4337_v26 = vsel %vm10002_vm8, %v4332_v4, %v4336_v35  ;;  %v9387_v29 = vcombine.low %v9319_v58, %v3622_v45  ;;  %v4338_v14 = vshrl.u32 %v9316_v52, 16  ;;  %vm10009_vm8 = vmmov %vm10006_vm1 }
 0x35c   : > { %v4623_v15 = vpop.permute.xlu0 %4622  ;;  %v4490_v60 = vpop.permute.xlu1 %4489  ;;  %v9378_v8 = vrot.slane %v3938_v3, 1 }
 0x35d   : > { %4406 = vrot.lane.b32.xlu0 %v4329_v38, %s6479_s21  ;;  %v5018_v19 = vsel %vm4996_vm14, %v4969_v9, %v4623_v15  ;;  %v4922_v49 = vsel %vm4898_vm6, %v4873_v13, %v4490_v60  ;;  %v9384_v38 = vsel %vm1379_vm10, %v4041_v47, %v9375_v0  ;;  %v4342_v36 = vshll.u32 %v9387_v29, 16  ;;  %v9405_v9 = vld [vmem:[#allocation3 + $0xc0] sm:$0xf] }
 0x35e   : > { %4085 = vrot.lane.b32.xlu1 %v4038_v44, %s6475_s15 }
 0x360   : > { %v4679_v16 = vpop.permute.xlu0 %4678  ;;  %v4545_v23 = vpop.permute.xlu1 %4544 }
 0x361   : > { %v5067_v40 = vsel %vm5045_vm0, %v5018_v19, %v4679_v16  ;;  %4503 = vrot.lane.b32.xlu0 %v4456_v6, %s6480_s28  ;;  %v4971_v17 = vsel %vm4947_vm4, %v4922_v49, %v4545_v23  ;;  %v4340_v16 = vor.u32 %v4338_v14, %v4336_v35  ;;  %v4344_v23 = vrot.slane %v4342_v36, 1 }
 0x362   : > { %6294 = vmatprep.mubr.msk.bf16.mxu1 %vm5130_vm2, %v5067_v40  ;;  %4161 = vrot.lane.b32.xlu1 %v9303_v25, %s6477_s19  ;;  %v3932_v25 = vrot.slane %v3930_v56, 1  ;;  %v4459_v35 = vrot.slane %v9387_v29, 1 }
 0x363   : > { %v4345_v7 = vsel %vm10006_vm1, %v4340_v16, %v4344_v23 }
 0x364   : > { %v4681_v11 = vpop.permute.xlu0 %4680  ;;  %v4625_v50 = vpop.permute.xlu1 %4624  ;;  %v3933_v59 = vsel %vm10003_vm13, %v3928_v41, %v3932_v25  ;;  %v3936_v2 = vor.u32 %v3934_v48, %v3932_v25  ;;  %v4460_v41 = vsel %vm1379_vm10, %v4457_v31, %v4459_v35  ;;  %v3626_v48 = vld [vmem:[#allocation3 + $0xc8] sm:$0xf]  ;;  %vm10010_vm13 = vmmov %vm10006_vm1 }
 0x365   : > { %v5020_v44 = vsel %vm4996_vm14, %v4971_v17, %v4625_v50  ;;  %4558 = vrot.lane.b32.xlu0 %v9269_v53, %s6481_s11 }
 0x366   : > { %4408 = vrot.lane.b32.xlu1 %v4337_v26, %s6479_s21  ;;  %v5069_v28 = vsel %vm5045_vm0, %v5020_v44, %v4681_v11  ;;  %v9393_v51 = vsel %vm10004_vm9, %v3936_v2, %v9378_v8  ;;  %vm10011_vm9 = vmmov %vm10007_vm3 }
 0x367   : > { %6295 = vmatmul.mubr.msk.bf16.gmra.mrb[20].mxu1 %vm5130_vm2, %v5069_v28 }
 0x368   : > { %v4072_v10 = vpop.permute.xlu0 %4071  ;;  %v3975_v54 = vpop.permute.xlu1 %3974 }
 0x369   : > { %4638 = vrot.lane.b32.xlu0 %v3933_v59, %s6482_s14  ;;  %v4731_v58 = vsel %vm10005_vm12, %v8677_v24, %v3975_v54  ;;  %v9413_v24 = vld [vmem:[#allocation3 + $0xc4] sm:$0xf]  ;;  %vm10012_vm12 = vmmov %vm10006_vm1 }
 0x36a   : > { %4505 = vrot.lane.b32.xlu1 %v4458_v43, %s6480_s28  ;;  %v4779_v6 = vsel %vm2235_vm15, %v4731_v58, %v4072_v10  ;;  %v5987_v13 = vcombine.low %v9405_v9, %v9413_v24  ;;  %v3942_v43 = vshrl.u32 %v9357_v55, 16 }
 0x36c   : > { %v4148_v18 = vpop.permute.xlu0 %4147  ;;  %v3977_v42 = vpop.permute.xlu1 %3976  ;;  %v4574_v44 = vshll.u32 %v5987_v13, 16  ;;  %v4650_v58 = vrot.slane %v5987_v13, 1 }
 0x36d   : > { %4694 = vrot.lane.b32.xlu0 %v4042_v39, %s6483_s18 }
 0x36e   : > { %4560 = vrot.lane.b32.xlu1 %v9330_v20, %s6481_s11  ;;  %v4576_v3 = vrot.slane %v4574_v44, 1 }
 0x370   : > { %v4395_v15 = vpop.permute.xlu0 %4394  ;;  %v4074_v60 = vpop.permute.xlu1 %4073 }
 0x371   : > { %4696 = vrot.lane.b32.xlu0 %v9384_v38, %s6483_s18 }
 0x372   : > { %4640 = vrot.lane.b32.xlu1 %v9393_v51, %s6482_s14 }
 0x374   : > { %v4492_v61 = vpop.permute.xlu0 %4491  ;;  %v4150_v12 = vpop.permute.xlu1 %4149 }
 0x375   : > { %4087 = vrot.lane.b32.xlu0 %v9293_v57, %s6475_s15  ;;  %v9411_v57 = vcombine.low %v3623_v32, %v9405_v9  ;;  %v4733_v32 = vsel %vm10007_vm3, %v8720_v30, %v3977_v42  ;;  %v4346_v30 = vshrl.u32 %v9387_v29, 16 }
 0x376   : > { %3990 = vrot.lane.b32.xlu1 %v9298_v27, %s6473_s9  ;;  %v4827_v27 = vsel %vm2333_vm5, %v4779_v6, %v4148_v18  ;;  %v4781_v4 = vsel %vm2235_vm15, %v4733_v32, %v4074_v60  ;;  %v3627_v18 = vld [vmem:[#allocation3 + $0xcc] sm:$0xf]  ;;  %v3944_v60 = vor.u32 %v3942_v43, %v9378_v8 }
 0x377   : > { %v4875_v1 = vsel %vm2431_vm11, %v4827_v27, %v4395_v15  ;;  %v4350_v56 = vshll.u32 %v9411_v57, 16  ;;  %v4829_v26 = vsel %vm2333_vm5, %v4781_v4, %v4150_v12  ;;  %v4348_v31 = vor.u32 %v4346_v30, %v4344_v23 }
 0x378   : > { %v4547_v33 = vpop.permute.xlu0 %4546  ;;  %v4397_v19 = vpop.permute.xlu1 %4396  ;;  %v4924_v45 = vsel %vm4898_vm6, %v4875_v1, %v4492_v61  ;;  %v4461_v2 = vrot.slane %v9411_v57, 1  ;;  %v4577_v36 = vsel %vm10009_vm8, %v3944_v60, %v4576_v3  ;;  %v4651_v23 = vsel %vm1379_vm10, %v9375_v0, %v4650_v58 }
 0x379   : > { %4163 = vrot.lane.b32.xlu0 %v9316_v52, %s6477_s19  ;;  %v4973_v49 = vsel %vm4947_vm4, %v4924_v45, %v4547_v33  ;;  %v4352_v25 = vrot.slane %v4350_v56, 1  ;;  %v4877_v10 = vsel %vm2431_vm11, %v4829_v26, %v4397_v19  ;;  %v4578_v33 = vshrl.u32 %v5987_v13, 16 }
 0x37a   : > { %3992 = vrot.lane.b32.xlu1 %v3933_v59, %s6473_s9  ;;  %v4462_v14 = vsel %vm1379_vm10, %v4459_v35, %v4461_v2  ;;  %v5961_v27 = vcombine.low %v9405_v9, %v9405_v9  ;;  %v9480_v9 = vcombine.low %v9413_v24, %v3626_v48  ;;  %v9486_v4 = vcombine.low %v3627_v18, %v3627_v18 }
 0x37b   : > { %v4580_v6 = vor.u32 %v4578_v33, %v4576_v3 }
 0x37c   : > { %v4627_v37 = vpop.permute.xlu0 %4626  ;;  %v4494_v40 = vpop.permute.xlu1 %4493  ;;  %v3946_v45 = vshll.u32 %v5961_v27, 16  ;;  %v4358_v24 = vshll.u32 %v9480_v9, 16  ;;  %v4362_v43 = vshrl.u32 %v9480_v9, 16 }
 0x37d   : > { %4410 = vrot.lane.b32.xlu0 %v4345_v7, %s6479_s21  ;;  %v5022_v17 = vsel %vm4996_vm14, %v4973_v49, %v4627_v37  ;;  %v4926_v52 = vsel %vm4898_vm6, %v4877_v10, %v4494_v40  ;;  %v4463_v10 = vrot.slane %v9480_v9, 1 }
 0x37e   : > { %4089 = vrot.lane.b32.xlu1 %v4042_v39, %s6475_s15  ;;  %v4353_v39 = vsel %vm10008_vm7, %v4348_v31, %v4352_v25  ;;  %v3948_v49 = vrot.slane %v3946_v45, 1 }
 0x37f   : > { %v4464_v33 = vsel %vm1379_vm10, %v4461_v2, %v4463_v10 }
 0x380   : > { %v4683_v11 = vpop.permute.xlu0 %4682  ;;  %v4549_v50 = vpop.permute.xlu1 %4548 }
 0x381   : > { %v5071_v28 = vsel %vm5045_vm0, %v5022_v17, %v4683_v11  ;;  %4507 = vrot.lane.b32.xlu0 %v4460_v41, %s6480_s28  ;;  %v4975_v54 = vsel %vm4947_vm4, %v4926_v52, %v4549_v50  ;;  %v4354_v11 = vshrl.u32 %v9411_v57, 16  ;;  %v4366_v50 = vshll.u32 %v9486_v4, 16  ;;  %v9505_v52 = vld [vmem:[#allocation3 + $0xd0] sm:$0xff]  }
 0x382   : > { %6298 = vmatprep.mubr.msk.bf16.mxu1 %vm5130_vm2, %v5071_v28  ;;  %4165 = vrot.lane.b32.xlu1 %v9387_v29, %s6477_s19  ;;  %v9454_v29 = vcombine.low %v3626_v48, %v3627_v18  ;;  %v4045_v28 = vrot.slane %v5961_v27, 1  ;;  %v4590_v48 = vshll.u32 %v9505_v52, 16 }
 0x383   : > { %v4356_v26 = vor.u32 %v4354_v11, %v4352_v25  ;;  %v4360_v25 = vrot.slane %v4358_v24, 1  ;;  %v4368_v3 = vrot.slane %v4366_v50, 1 }
 0x384   : > { %v4685_v59 = vpop.permute.xlu0 %4684  ;;  %v4629_v47 = vpop.permute.xlu1 %4628  ;;  %v4582_v8 = vshll.u32 %v9454_v29, 16  ;;  %v4652_v37 = vrot.slane %v9454_v29, 1  ;;  %v4586_v11 = vshrl.u32 %v9454_v29, 16 }
 0x385   : > { %v5024_v42 = vsel %vm4996_vm14, %v4975_v54, %v4629_v47  ;;  %4562 = vrot.lane.b32.xlu0 %v9357_v55, %s6481_s11  ;;  %v9510_v54 = vld [vmem:[%s9794_s6] ss:$0 sm:$0xff] }
 0x386   : > { %4412 = vrot.lane.b32.xlu1 %v4353_v39, %s6479_s21  ;;  %v5073_v15 = vsel %vm5045_vm0, %v5024_v42, %v4685_v59  ;;  %v9470_v40 = vrot.slane %v4582_v8, 1  ;;  %v4653_v1 = vsel %vm1379_vm10, %v4650_v58, %v4652_v37 }
 0x387   : > { %6299 = vmatmul.mubr.msk.bf16.gmra.mrb[24].mxu1 %vm5130_vm2, %v5073_v15 }
 0x388   : > { %v4076_v61 = vpop.permute.xlu0 %4075  ;;  %v3979_v12 = vpop.permute.xlu1 %3978  ;;  %v4585_v56 = vsel %vm10010_vm13, %v4580_v6, %v9470_v40 }
 0x389   : > { %4642 = vrot.lane.b32.xlu0 %v4577_v36, %s6482_s14  ;;  %v4735_v17 = vsel %vm10011_vm9, %v8813_v21, %v3979_v12  ;;  %vm10013_vm9 = vcmask 60416  }
 0x38a   : > { %4509 = vrot.lane.b32.xlu1 %v4462_v14, %s6480_s28  ;;  %v4783_v21 = vsel %vm2235_vm15, %v4735_v17, %v4076_v61  ;;  %v4046_v61 = vsel %vm1379_vm10, %v9375_v0, %v4045_v28 }
 0x38c   : > { %v4152_v19 = vpop.permute.xlu0 %4151  ;;  %v3981_v16 = vpop.permute.xlu1 %3980 }
 0x38d   : > { %4698 = vrot.lane.b32.xlu0 %v4651_v23, %s6483_s18  ;;  %v4831_v18 = vsel %vm2333_vm5, %v4783_v21, %v4152_v19  ;;  %v4737_v8 = vsel %vm10007_vm3, %v8863_v46, %v3981_v16  ;;  %v4364_v23 = vor.u32 %v4362_v43, %v4360_v25  ;;  %vm10015_vm3 = vmmov %vm10013_vm9  ;;  %v4594_v43 = vshrl.u32 %v9505_v52, 16 }
 0x38e   : > { %4564 = vrot.lane.b32.xlu1 %v5987_v13, %s6481_s11 }
 0x390   : > { %v4399_v7 = vpop.permute.xlu0 %4398  ;;  %v4078_v35 = vpop.permute.xlu1 %4077 }
 0x391   : > { %4700 = vrot.lane.b32.xlu0 %v4653_v1, %s6483_s18  ;;  %v4879_v12 = vsel %vm2431_vm11, %v4831_v18, %v4399_v7 }
 0x392   : > { %4644 = vrot.lane.b32.xlu1 %v4585_v56, %s6482_s14 }
 0x394   : > { %v4496_v13 = vpop.permute.xlu0 %4495  ;;  %v9482_v32 = vpop.permute.xlu1 %4153 }
 0x395   : > { %4091 = vrot.lane.b32.xlu0 %v9384_v38, %s6475_s15  ;;  %v9498_v38 = vld [vmem:[%s9793_s5] ss:$0 sm:$0xff]  ;;  %v4928_v0 = vsel %vm4898_vm6, %v4879_v12, %v4496_v13 }
 0x396   : > { %3994 = vrot.lane.b32.xlu1 %v9393_v51, %s6473_s9  ;;  %v3949_v51 = vsel %vm10012_vm12, %v3944_v60, %v3948_v49  ;;  %v4361_v60 = vsel %vm10006_vm1, %v4356_v26, %v4360_v25  ;;  %v6419_v26 = vld [vmem:[#allocation3 + $0xd8] ss:$0 sps:$4 sm:$0xff]   ;;  %vm10014_vm12 = vmmov %vm10013_vm9 }
 0x398   : > { %v4551_v41 = vpop.permute.xlu0 %4550  ;;  %v4401_v44 = vpop.permute.xlu1 %4400 }
 0x399   : > { %v6276_v30 = vpop.f32.mrb[0].mxu1  ;;  %4167 = vrot.lane.b32.xlu0 %v9411_v57, %s6477_s19  ;;  %v4977_v6 = vsel %vm4947_vm4, %v4928_v0, %v4551_v41  ;;  %v4785_v57 = vsel %vm2235_vm15, %v4737_v8, %v4078_v35 }
 0x39a   : > { %v5217_v31 = vpop.f32.mrb[1].mxu1  ;;  %3996 = vrot.lane.b32.xlu1 %v3949_v51, %s6473_s9  ;;  %s6057_s9 = sshll.u32 %s10050_s25, 7  ;;  %v4833_v35 = vsel %vm2333_vm5, %v4785_v57, %v9482_v32  ;;  %v4588_v30 = vor.u32 %v4586_v11, %v9470_v40  ;;  %v4592_v51 = vrot.slane %v4590_v48, 1  ;;  %v4598_v48 = vshll.u32 %v6419_v26, 16 }
 0x39b   : > { %v5399_v59 = vmul.f32 %v9498_v38, %v5217_v31  ;;  %v6277_v47 = vpop.f32.mrb[2].mxu1  ;;  %s9543_s23 = scalar_lea.vmem %s9795_s7, %s6057_s9  ;;  %v4881_v24 = vsel %vm2431_vm11, %v4833_v35, %v4401_v44  ;;  %v4369_v44 = vsel %vm10006_vm1, %v4364_v23, %v4368_v3  ;;  %v4654_v3 = vrot.slane %v9505_v52, 1 }
 0x39c   : > { %v5401_v42 = vmul.f32 %v6277_v47, %v9498_v38  ;;  %v5220_v39 = vpop.f32.mrb[3].mxu1  ;;  %v4631_v15 = vpop.permute.xlu0 %4630 }
 0x39d   : > { %v5438_v36 = vadd.f32 %v9510_v54, %v5399_v59  ;;  %v5400_v58 = vmul.f32 %v9498_v38, %v5220_v39  ;;  %v4498_v14 = vpop.permute.xlu1 %4497  ;;  %4414 = vrot.lane.b32.xlu0 %v4361_v60, %s6479_s21  ;;  %v5026_v46 = vsel %vm4996_vm14, %v4977_v6, %v4631_v15  ;;  %v4465_v59 = vrot.slane %v9486_v4, 1 }
 0x39e   : > { %v5440_v19 = vadd.f32 %v9510_v54, %v5401_v42  ;;  %4093 = vrot.lane.b32.xlu1 %v4046_v61, %s6475_s15  ;;  %v4930_v32 = vsel %vm4898_vm6, %v4881_v24, %v4498_v14  ;;  %v4596_v15 = vor.u32 %v4594_v43, %v4592_v51  ;;  %v4600_v60 = vrot.slane %v4598_v48, 1 }
 0x39f   : > { %vm5470_vm7 = vcmp.ge.f32.partialorder %v5438_v36, 0.0  ;;  %v5502_v27 = vmul.f32 0.01, %v5438_v36  ;;  %v5439_v7 = vadd.f32 %v9510_v54, %v5400_v58  ;;  %v4466_v4 = vsel %vm1379_vm10, %v4463_v10, %v4465_v59 }
 0x3a0   : > { %vm5472_vm8 = vcmp.ge.f32.partialorder %v5440_v19, 0.0  ;;  %v5504_v2 = vmul.f32 0.01, %v5440_v19  ;;  %v4687_v16 = vpop.permute.xlu0 %4686  ;;  %v4655_v12 = vsel %vm1379_vm10, %v4652_v37, %v4654_v3 }
 0x3a1   : > { %v5534_v1 = vsel %vm5470_vm7, %v5438_v36, %v5502_v27  ;;  %vm5471_vm13 = vcmp.ge.f32.partialorder %v5439_v7, 0.0  ;;  %v5503_v56 = vmul.f32 0.01, %v5439_v7  ;;  %v5075_v45 = vsel %vm5045_vm0, %v5026_v46, %v4687_v16  ;;  %v4553_v13 = vpop.permute.xlu1 %4552  ;;  %4511 = vrot.lane.b32.xlu0 %v4464_v33, %s6480_s28  ;;  %vm10016_vm7 = vmmov %vm10006_vm1 }
 0x3a2   : > { %v6122_v49 = vpack.c.bf16 %v5534_v1, %v5534_v1  ;;  %v5536_v17 = vsel %vm5472_vm8, %v5440_v19, %v5504_v2  ;;  %6302 = vmatprep.mubr.msk.bf16.mxu1 %vm5130_vm2, %v5075_v45  ;;  %4169 = vrot.lane.b32.xlu1 %v9480_v9, %s6477_s19  ;;  %v4979_v31 = vsel %vm4947_vm4, %v4930_v32, %v4553_v13  ;;  %vm10017_vm8 = vmmov %vm10006_vm1  ;;  %v4656_v9 = vrot.slane %v6419_v26, 1 }
 0x3a3   : > { %v6124_v50 = vpack.c.bf16 %v5536_v17, %v5536_v17  ;;  %v5535_v41 = vsel %vm5471_vm13, %v5439_v7, %v5503_v56  ;;  %v4593_v42 = vsel %vm10016_vm7, %v4588_v30, %v4592_v51  ;;  %v4601_v58 = vsel %vm10017_vm8, %v4596_v15, %v4600_v60  ;;  %vm10020_vm7 = vmmov %vm10015_vm3 }
 0x3a4   : > { %5694 = vst.msk [vmem:[%s9543_s23] sm:$0xf] %vm10013_vm9, %v6122_v49  ;;  %v6123_v28 = vpack.c.bf16 %v5535_v41, %v5535_v41  ;;  %v4689_v21 = vpop.permute.xlu0 %4688  ;;  %v4657_v33 = vsel %vm1379_vm10, %v4654_v3, %v4656_v9  ;;  %vm10018_vm13 = vcmask 64512   ;;  %vm10021_vm8 = vmmov %vm10015_vm3 }
 0x3a5   : > { %5696 = vst.msk [vmem:[%s9543_s23 + $0x8] sm:$0xf] %vm10014_vm12, %v6124_v50  ;;  %v4633_v25 = vpop.permute.xlu1 %4632  ;;  %4566 = vrot.lane.b32.xlu0 %v9454_v29, %s6481_s11  ;;  %vm10019_vm10 = vmmov %vm10018_vm13 }
 0x3a6   : > { %5695 = vst.msk [vmem:[%s9543_s23 + $0x4] sm:$0xf] %vm10015_vm3, %v6123_v28  ;;  %v5028_v47 = vsel %vm4996_vm14, %v4979_v31, %v4633_v25  ;;  %4416 = vrot.lane.b32.xlu1 %v4369_v44, %s6479_s21 }
 0x3a7   : > { %v5077_v40 = vsel %vm5045_vm0, %v5028_v47, %v4689_v21 }
 0x3a8   : > { %6303 = vmatmul.mubr.msk.bf16.gmra.mrb[28].mxu1 %vm5130_vm2, %v5077_v40  ;;  %v4080_v18 = vpop.permute.xlu0 %4079 }
 0x3a9   : > { %v3983_v39 = vpop.permute.xlu1 %3982  ;;  %4646 = vrot.lane.b32.xlu0 %v4593_v42, %s6482_s14 }
 0x3aa   : > { %4513 = vrot.lane.b32.xlu1 %v4466_v4, %s6480_s28  ;;  %v4739_v29 = vsel %vm10018_vm13, %v8945_v22, %v3983_v39  ;;  %vm10022_vm13 = vmmov %vm10019_vm10 }
 0x3ab   : > { %v4787_v19 = vsel %vm2235_vm15, %v4739_v29, %v4080_v18 }
 0x3ac   : > { %v4156_v61 = vpop.permute.xlu0 %4155 }
 0x3ad   : > { %v3985_v36 = vpop.permute.xlu1 %3984  ;;  %4702 = vrot.lane.b32.xlu0 %v4655_v12, %s6483_s18  ;;  %v4835_v7 = vsel %vm2333_vm5, %v4787_v19, %v4156_v61 }
 0x3ae   : > { %4568 = vrot.lane.b32.xlu1 %v9505_v52, %s6481_s11  ;;  %v4741_v13 = vsel %vm10019_vm10, %v8984_v63, %v3985_v36 }
 0x3b0   : > { %v4403_v14 = vpop.permute.xlu0 %4402 }
 0x3b1   : > { %v4082_v10 = vpop.permute.xlu1 %4081  ;;  %v4883_v16 = vsel %vm2431_vm11, %v4835_v7, %v4403_v14 }
 0x3b2   : > { %4648 = vrot.lane.b32.xlu1 %v4601_v58, %s6482_s14  ;;  %v4789_v50 = vsel %vm2235_vm15, %v4741_v13, %v4082_v10 }
 0x3b4   : > { %v4500_v8 = vpop.permute.xlu0 %4499 }
 0x3b5   : > { %v4158_v0 = vpop.permute.xlu1 %4157  ;;  %v4932_v35 = vsel %vm4898_vm6, %v4883_v16, %v4500_v8 }
 0x3b6   : > { %4704 = vrot.lane.b32.xlu1 %v4657_v33, %s6483_s18  ;;  %v4837_v51 = vsel %vm2333_vm5, %v4789_v50, %v4158_v0 }
 0x3b8   : > { %v4555_v37 = vpop.permute.xlu0 %4554 }
 0x3b9   : > { %v4405_v52 = vpop.permute.xlu1 %4404  ;;  %v4981_v17 = vsel %vm4947_vm4, %v4932_v35, %v4555_v37 }
 0x3ba   : > { %v6280_v23 = vpop.f32.mrb[4].mxu1  ;;  %v4885_v44 = vsel %vm2431_vm11, %v4837_v51, %v4405_v52 }
 0x3bb   : > { %v5403_v6 = vmul.f32 %v6280_v23, %v9498_v38  ;;  %v5232_v27 = vpop.f32.mrb[5].mxu1 }
 0x3bc   : > { %v5402_v57 = vmul.f32 %v9498_v38, %v5232_v27  ;;  %v4635_v2 = vpop.permute.xlu0 %4634  ;;  %v6281_v46 = vpop.f32.mrb[6].mxu1 }
 0x3bd   : > { %v5442_v22 = vadd.f32 %v9510_v54, %v5403_v6  ;;  %v4502_v1 = vpop.permute.xlu1 %4501  ;;  %v5404_v56 = vmul.f32 %v6281_v46, %v9498_v38  ;;  %v5235_v45 = vpop.f32.mrb[7].mxu1  ;;  %v5030_v26 = vsel %vm4996_vm14, %v4981_v17, %v4635_v2 }
 0x3be   : > { %v5441_v49 = vadd.f32 %v9510_v54, %v5402_v57  ;;  %v4934_v40 = vsel %vm4898_vm6, %v4885_v44, %v4502_v1 }
 0x3bf   : > { %vm5474_vm9 = vcmp.ge.f32.partialorder %v5442_v22, 0.0  ;;  %v5506_v11 = vmul.f32 0.01, %v5442_v22  ;;  %v5443_v24 = vadd.f32 %v9510_v54, %v5404_v56 }
 0x3c0   : > { %vm5473_vm12 = vcmp.ge.f32.partialorder %v5441_v49, 0.0  ;;  %v5505_v41 = vmul.f32 0.01, %v5441_v49  ;;  %v4691_v28 = vpop.permute.xlu0 %4690 }
 0x3c1   : > { %v5538_v32 = vsel %vm5474_vm9, %v5442_v22, %v5506_v11  ;;  %vm5475_vm1 = vcmp.ge.f32.partialorder %v5443_v24, 0.0  ;;  %v5507_v63 = vmul.f32 0.01, %v5443_v24  ;;  %v5079_v21 = vsel %vm5045_vm0, %v5030_v26, %v4691_v28  ;;  %v4557_v30 = vpop.permute.xlu1 %4556  ;;  %vm10023_vm9 = vmmov %vm10022_vm13 }
 0x3c2   : > { %v6126_v31 = vpack.c.bf16 %v5538_v32, %v5538_v32  ;;  %v5537_v25 = vsel %vm5473_vm12, %v5441_v49, %v5505_v41  ;;  %6306 = vmatprep.mubr.msk.bf16.mxu1 %vm5130_vm2, %v5079_v21  ;;  %v4983_v18 = vsel %vm4947_vm4, %v4934_v40, %v4557_v30 }
 0x3c3   : > { %v6125_v59 = vpack.c.bf16 %v5537_v25, %v5537_v25  ;;  %v5539_v47 = vsel %vm5475_vm1, %v5443_v24, %v5507_v63  ;;  %vm10024_vm1 = vmmov %vm10015_vm3 }
 0x3c4   : > { %5698 = vst.msk [vmem:[%s9543_s23 + $0x10] sm:$0xf] %vm10015_vm3, %v6126_v31  ;;  %v6127_v43 = vpack.c.bf16 %v5539_v47, %v5539_v47  ;;  %v4693_v48 = vpop.permute.xlu0 %4692  ;;  %vm10025_vm3 = vmmov %vm10024_vm1 }
 0x3c5   : > { %5697 = vst.msk [vmem:[%s9543_s23 + $0xc] sm:$0xf] %vm10020_vm7, %v6125_v59  ;;  %v4637_v42 = vpop.permute.xlu1 %4636  ;;  %vm10026_vm7 = vmmov %vm10023_vm9 }
 0x3c6   : > { %5699 = vst.msk [vmem:[%s9543_s23 + $0x14] sm:$0xf] %vm10021_vm8, %v6127_v43  ;;  %v5032_v3 = vsel %vm4996_vm14, %v4983_v18, %v4637_v42  ;;  %vm10027_vm8 = vmmov %vm10026_vm7 }
 0x3c7   : > { %v5081_v39 = vsel %vm5045_vm0, %v5032_v3, %v4693_v48 }
 0x3c8   : > { %6307 = vmatmul.mubr.msk.bf16.gmra.mrb[32].mxu1 %vm5130_vm2, %v5081_v39  ;;  %v4084_v4 = vpop.permute.xlu0 %4083 }
 0x3c9   : > { %v3987_v15 = vpop.permute.xlu1 %3986 }
 0x3ca   : > { %v4743_v14 = vsel %vm10022_vm13, %v9091_v34, %v3987_v15 }
 0x3cb   : > { %v4791_v33 = vsel %vm2235_vm15, %v4743_v14, %v4084_v4 }
 0x3cc   : > { %v4160_v60 = vpop.permute.xlu0 %4159 }
 0x3cd   : > { %v3989_v61 = vpop.permute.xlu1 %3988  ;;  %v4839_v19 = vsel %vm2333_vm5, %v4791_v33, %v4160_v60 }
 0x3ce   : > { %v4745_v22 = vsel %vm10023_vm9, %v9150_v62, %v3989_v61 }
 0x3d0   : > { %v4407_v12 = vpop.permute.xlu0 %4406 }
 0x3d1   : > { %v4086_v36 = vpop.permute.xlu1 %4085  ;;  %v4887_v6 = vsel %vm2431_vm11, %v4839_v19, %v4407_v12 }
 0x3d2   : > { %v4793_v13 = vsel %vm2235_vm15, %v4745_v22, %v4086_v36 }
 0x3d4   : > { %v4504_v58 = vpop.permute.xlu0 %4503 }
 0x3d5   : > { %v4162_v9 = vpop.permute.xlu1 %4161  ;;  %v4936_v34 = vsel %vm4898_vm6, %v4887_v6, %v4504_v58 }
 0x3d6   : > { %v4841_v11 = vsel %vm2333_vm5, %v4793_v13, %v4162_v9 }
 0x3d8   : > { %v4559_v10 = vpop.permute.xlu0 %4558 }
 0x3d9   : > { %v4409_v8 = vpop.permute.xlu1 %4408  ;;  %v4985_v46 = vsel %vm4947_vm4, %v4936_v34, %v4559_v10 }
 0x3da   : > { %v6284_v0 = vpop.f32.mrb[8].mxu1  ;;  %v4889_v62 = vsel %vm2431_vm11, %v4841_v11, %v4409_v8 }
 0x3db   : > { %v5406_v29 = vmul.f32 %v6284_v0, %v9498_v38  ;;  %v5247_v37 = vpop.f32.mrb[9].mxu1 }
 0x3dc   : > { %v4639_v52 = vpop.permute.xlu0 %4638  ;;  %v6285_v23 = vpop.f32.mrb[10].mxu1 }
 0x3dd   : > { %v5445_v27 = vadd.f32 %v9510_v54, %v5406_v29  ;;  %v4506_v7 = vpop.permute.xlu1 %4505  ;;  %v5249_v57 = vpop.f32.mrb[11].mxu1  ;;  %v5034_v1 = vsel %vm4996_vm14, %v4985_v46, %v4639_v52 }
 0x3de   : > { %v5405_v2 = vmul.f32 %v9498_v38, %v5249_v57  ;;  %v4938_v41 = vsel %vm4898_vm6, %v4889_v62, %v4506_v7 }
 0x3df   : > { %vm5477_vm10 = vcmp.ge.f32.partialorder %v5445_v27, 0.0  ;;  %v5509_v16 = vmul.f32 0.01, %v5445_v27 }
 0x3e0   : > { %v5444_v56 = vadd.f32 %v9510_v54, %v5405_v2  ;;  %v4695_v45 = vpop.permute.xlu0 %4694 }
 0x3e1   : > { %v5541_v35 = vsel %vm5477_vm10, %v5445_v27, %v5509_v16  ;;  %v5083_v49 = vsel %vm5045_vm0, %v5034_v1, %v4695_v45  ;;  %v4561_v17 = vpop.permute.xlu1 %4560 }
 0x3e2   : > { %v6129_v24 = vpack.c.bf16 %v5541_v35, %v5541_v35  ;;  %vm5476_vm12 = vcmp.ge.f32.partialorder %v5444_v56, 0.0  ;;  %v5508_v50 = vmul.f32 0.01, %v5444_v56  ;;  %6310 = vmatprep.mubr.msk.bf16.mxu1 %vm5130_vm2, %v5083_v49  ;;  %v4987_v63 = vsel %vm4947_vm4, %v4938_v41, %v4561_v17 }
 0x3e4   : > { %5701 = vst.msk [vmem:[%s9543_s23 + $0x1c] sm:$0xf] %vm10024_vm1, %v6129_v24  ;;  %v5540_v26 = vsel %vm5476_vm12, %v5444_v56, %v5508_v50  ;;  %v4697_v28 = vpop.permute.xlu0 %4696  ;;  %vm10028_vm12 = vmmov %vm10024_vm1 }
 0x3e5   : > { %v6128_v32 = vpack.c.bf16 %v5540_v26, %v5540_v26  ;;  %v4641_v21 = vpop.permute.xlu1 %4640 }
 0x3e6   : > { %v5036_v30 = vsel %vm4996_vm14, %v4987_v63, %v4641_v21 }
 0x3e7   : > { %5700 = vst.msk [vmem:[%s9543_s23 + $0x18] sm:$0xf] %vm10025_vm3, %v6128_v32  ;;  %v5085_v51 = vsel %vm5045_vm0, %v5036_v30, %v4697_v28  ;;  %vm10029_vm3 = vmmov %vm10024_vm1 }
 0x3e8   : > { %6311 = vmatmul.mubr.msk.bf16.gmra.mrb[36].mxu1 %vm5130_vm2, %v5085_v51  ;;  %v4088_v31 = vpop.permute.xlu0 %4087 }
 0x3e9   : > { %v3991_v25 = vpop.permute.xlu1 %3990 }
 0x3ea   : > { %v4747_v18 = vsel %vm10026_vm7, %v9229_v5, %v3991_v25 }
 0x3eb   : > { %v4795_v3 = vsel %vm2235_vm15, %v4747_v18, %v4088_v31 }
 0x3ec   : > { %v4164_v44 = vpop.permute.xlu0 %4163 }
 0x3ed   : > { %v3993_v59 = vpop.permute.xlu1 %3992  ;;  %v4843_v60 = vsel %vm2333_vm5, %v4795_v3, %v4164_v44 }
 0x3ee   : > { %v4749_v0 = vsel %vm10027_vm8, %v9269_v53, %v3993_v59 }
 0x3f0   : > { %v4411_v47 = vpop.permute.xlu0 %4410 }
 0x3f1   : > { %v4090_v40 = vpop.permute.xlu1 %4089  ;;  %v4891_v58 = vsel %vm2431_vm11, %v4843_v60, %v4411_v47 }
 0x3f2   : > { %v4797_v27 = vsel %vm2235_vm15, %v4749_v0, %v4090_v40 }
 0x3f4   : > { %v4508_v43 = vpop.permute.xlu0 %4507 }
 0x3f5   : > { %v4166_v48 = vpop.permute.xlu1 %4165  ;;  %v4940_v5 = vsel %vm4898_vm6, %v4891_v58, %v4508_v43 }
 0x3f6   : > { %v4845_v53 = vsel %vm2333_vm5, %v4797_v27, %v4166_v48 }
 0x3f8   : > { %v4563_v42 = vpop.permute.xlu0 %4562 }
 0x3f9   : > { %v4413_v39 = vpop.permute.xlu1 %4412  ;;  %v4989_v29 = vsel %vm4947_vm4, %v4940_v5, %v4563_v42 }
 0x3fa   : > { %v6288_v4 = vpop.f32.mrb[12].mxu1  ;;  %v4893_v16 = vsel %vm2431_vm11, %v4845_v53, %v4413_v39 }
 0x3fb   : > { %v5261_v15 = vpop.f32.mrb[13].mxu1 }
 0x3fc   : > { %v5407_v61 = vmul.f32 %v9498_v38, %v5261_v15  ;;  %v4643_v12 = vpop.permute.xlu0 %4642  ;;  %v6289_v36 = vpop.f32.mrb[14].mxu1 }
 0x3fd   : > { %v4510_v9 = vpop.permute.xlu1 %4509  ;;  %v5409_v14 = vmul.f32 %v6289_v36, %v9498_v38  ;;  %v5264_v10 = vpop.f32.mrb[15].mxu1  ;;  %v5038_v52 = vsel %vm4996_vm14, %v4989_v29, %v4643_v12 }
 0x3fe   : > { %v5446_v33 = vadd.f32 %v9510_v54, %v5407_v61  ;;  %v5408_v8 = vmul.f32 %v9498_v38, %v5264_v10  ;;  %v4942_v56 = vsel %vm4898_vm6, %v4893_v16, %v4510_v9 }
 0x3ff   : > { %v5448_v37 = vadd.f32 %v9510_v54, %v5409_v14 }
 0x400   : > { %vm5478_vm13 = vcmp.ge.f32.partialorder %v5446_v33, 0.0  ;;  %v5510_v19 = vmul.f32 0.01, %v5446_v33  ;;  %v5447_v23 = vadd.f32 %v9510_v54, %v5408_v8  ;;  %v4699_v6 = vpop.permute.xlu0 %4698 }
 0x401   : > { %vm5480_vm10 = vcmp.ge.f32.partialorder %v5448_v37, 0.0  ;;  %v5512_v7 = vmul.f32 0.01, %v5448_v37  ;;  %v5087_v57 = vsel %vm5045_vm0, %v5038_v52, %v4699_v6  ;;  %v4565_v34 = vpop.permute.xlu1 %4564 }
 0x402   : > { %v5542_v2 = vsel %vm5478_vm13, %v5446_v33, %v5510_v19  ;;  %vm5479_vm9 = vcmp.ge.f32.partialorder %v5447_v23, 0.0  ;;  %v5511_v46 = vmul.f32 0.01, %v5447_v23  ;;  %6314 = vmatprep.mubr.msk.bf16.mxu1 %vm5130_vm2, %v5087_v57  ;;  %v4991_v17 = vsel %vm4947_vm4, %v4942_v56, %v4565_v34 }
 0x403   : > { %v6130_v22 = vpack.c.bf16 %v5542_v2, %v5542_v2  ;;  %v5544_v1 = vsel %vm5480_vm10, %v5448_v37, %v5512_v7 }
 0x404   : > { %v6132_v45 = vpack.c.bf16 %v5544_v1, %v5544_v1  ;;  %v5543_v13 = vsel %vm5479_vm9, %v5447_v23, %v5511_v46  ;;  %v4701_v35 = vpop.permute.xlu0 %4700  ;;  %vm10030_vm9 = vmmov %vm10026_vm7 }
 0x405   : > { %5702 = vst.msk [vmem:[%s9543_s23 + $0x20] sm:$0xf] %vm10028_vm12, %v6130_v22  ;;  %v6131_v49 = vpack.c.bf16 %v5543_v13, %v5543_v13  ;;  %v4645_v11 = vpop.permute.xlu1 %4644  ;;  %vm10031_vm12 = vmmov %vm10024_vm1 }
 0x406   : > { %5704 = vst.msk [vmem:[%s9543_s23 + $0x28] sm:$0xf] %vm10024_vm1, %v6132_v45  ;;  %v5040_v24 = vsel %vm4996_vm14, %v4991_v17, %v4645_v11 }
 0x407   : > { %5703 = vst.msk [vmem:[%s9543_s23 + $0x24] sm:$0xf] %vm10029_vm3, %v6131_v49  ;;  %v5089_v50 = vsel %vm5045_vm0, %v5040_v24, %v4701_v35  ;;  %vm10032_vm3 = vmmov %vm10024_vm1 }
 0x408   : > { %6315 = vmatmul.mubr.msk.bf16.gmra.mrb[40].mxu1 %vm5130_vm2, %v5089_v50  ;;  %v4092_v62 = vpop.permute.xlu0 %4091 }
 0x409   : > { %v3995_v41 = vpop.permute.xlu1 %3994 }
 0x40a   : > { %v4751_v51 = vsel %vm10026_vm7, %v9330_v20, %v3995_v41  ;;  %vm10036_vm7 = vmmov %vm10024_vm1 }
 0x40b   : > { %v4799_v25 = vsel %vm2235_vm15, %v4751_v51, %v4092_v62 }
 0x40c   : > { %v4168_v26 = vpop.permute.xlu0 %4167 }
 0x40d   : > { %v3997_v28 = vpop.permute.xlu1 %3996  ;;  %v4847_v43 = vsel %vm2333_vm5, %v4799_v25, %v4168_v26 }
 0x40e   : > { %v4753_v19 = vsel %vm10030_vm9, %v9357_v55, %v3997_v28 }
 0x410   : > { %v4415_v32 = vpop.permute.xlu0 %4414 }
 0x411   : > { %v4094_v63 = vpop.permute.xlu1 %4093  ;;  %v4895_v3 = vsel %vm2431_vm11, %v4847_v43, %v4415_v32 }
 0x412   : > { %v4801_v6 = vsel %vm2235_vm15, %v4753_v19, %v4094_v63 }
 0x414   : > { %v4512_v21 = vpop.permute.xlu0 %4511 }
 0x415   : > { %v4170_v30 = vpop.permute.xlu1 %4169  ;;  %v4944_v60 = vsel %vm4898_vm6, %v4895_v3, %v4512_v21 }
 0x416   : > { %v4849_v7 = vsel %vm2333_vm5, %v4801_v6, %v4170_v30 }
 0x418   : > { %v4567_v31 = vpop.permute.xlu0 %4566 }
 0x419   : > { %v4417_v44 = vpop.permute.xlu1 %4416  ;;  %v4993_v12 = vsel %vm4947_vm4, %v4944_v60, %v4567_v31 }
 0x41a   : > { %v6292_v59 = vpop.f32.mrb[16].mxu1  ;;  %v4897_v34 = vsel %vm2431_vm11, %v4849_v7, %v4417_v44  ;;  %vm10033_vm11 = vmmov %vm10024_vm1 }
 0x41b   : > { %v5411_v47 = vmul.f32 %v6292_v59, %v9498_v38  ;;  %v5276_v40 = vpop.f32.mrb[17].mxu1 }
 0x41c   : > { %v5410_v48 = vmul.f32 %v9498_v38, %v5276_v40  ;;  %v4647_v18 = vpop.permute.xlu0 %4646  ;;  %v6293_v42 = vpop.f32.mrb[18].mxu1 }
 0x41d   : > { %v5450_v39 = vadd.f32 %v9510_v54, %v5411_v47  ;;  %v4514_v4 = vpop.permute.xlu1 %4513  ;;  %v5412_v20 = vmul.f32 %v6293_v42, %v9498_v38  ;;  %v5279_v15 = vpop.f32.mrb[19].mxu1  ;;  %v5042_v14 = vsel %vm4996_vm14, %v4993_v12, %v4647_v18 }
 0x41e   : > { %v5449_v61 = vadd.f32 %v9510_v54, %v5410_v48  ;;  %v4946_v53 = vsel %vm4898_vm6, %v4897_v34, %v4514_v4  ;;  %vm10034_vm6 = vmmov %vm10024_vm1 }
 0x41f   : > { %vm5482_vm8 = vcmp.ge.f32.partialorder %v5450_v39, 0.0  ;;  %v5514_v36 = vmul.f32 0.01, %v5450_v39  ;;  %v5451_v58 = vadd.f32 %v9510_v54, %v5412_v20 }
 0x420   : > { %vm5481_vm13 = vcmp.ge.f32.partialorder %v5449_v61, 0.0  ;;  %v5513_v9 = vmul.f32 0.01, %v5449_v61  ;;  %v4703_v10 = vpop.permute.xlu0 %4702 }
 0x421   : > { %v5546_v5 = vsel %vm5482_vm8, %v5450_v39, %v5514_v36  ;;  %vm5483_vm10 = vcmp.ge.f32.partialorder %v5451_v58, 0.0  ;;  %v5515_v33 = vmul.f32 0.01, %v5451_v58  ;;  %v5091_v8 = vsel %vm5045_vm0, %v5042_v14, %v4703_v10  ;;  %v4569_v0 = vpop.permute.xlu1 %4568  ;;  %vm10037_vm8 = vmmov %vm10024_vm1 }
 0x422   : > { %v6134_v29 = vpack.c.bf16 %v5546_v5, %v5546_v5  ;;  %v5545_v37 = vsel %vm5481_vm13, %v5449_v61, %v5513_v9  ;;  %6318 = vmatprep.mubr.msk.bf16.mxu1 %vm5130_vm2, %v5091_v8  ;;  %v4995_v55 = vsel %vm4947_vm4, %v4946_v53, %v4569_v0 }
 0x423   : > { %v6133_v52 = vpack.c.bf16 %v5545_v37, %v5545_v37  ;;  %v5547_v23 = vsel %vm5483_vm10, %v5451_v58, %v5515_v33 }
 0x424   : > { %5706 = vst.msk [vmem:[%s9543_s23 + $0x30] sm:$0xf] %vm10031_vm12, %v6134_v29  ;;  %v6135_v27 = vpack.c.bf16 %v5547_v23, %v5547_v23  ;;  %vm10038_vm12 = vmmov %vm10024_vm1 }
 0x425   : > { %5705 = vst.msk [vmem:[%s9543_s23 + $0x2c] sm:$0xf] %vm10024_vm1, %v6133_v52  ;;  %v4649_v57 = vpop.permute.xlu1 %4648 }
 0x426   : > { %5707 = vst.msk [vmem:[%s9543_s23 + $0x34] sm:$0xf] %vm10032_vm3, %v6135_v27  ;;  %v5044_v2 = vsel %vm4996_vm14, %v4995_v55, %v4649_v57  ;;  %vm10039_vm3 = vmmov %vm10024_vm1 }
 0x429   : > { %v4705_v46 = vpop.permute.xlu1 %4704 }
 0x42a   : > { %v5093_v16 = vsel %vm5045_vm0, %v5044_v2, %v4705_v46 }
 0x42b   : > { %6319 = vmatmul.mubr.msk.bf16.gmra.mrb[44].mxu1 %vm5130_vm2, %v5093_v16  ;;  %vm10035_vm2 = vmmov %vm10024_vm1 }
 0x43a   : > { %v6296_v22 = vpop.f32.mrb[20].mxu1 }
 0x43b   : > { %v5414_v1 = vmul.f32 %v6296_v22, %v9498_v38  ;;  %v5291_v56 = vpop.f32.mrb[21].mxu1 }
 0x43c   : > { %v6297_v45 = vpop.f32.mrb[22].mxu1 }
 0x43d   : > { %v5453_v13 = vadd.f32 %v9510_v54, %v5414_v1  ;;  %v5293_v35 = vpop.f32.mrb[23].mxu1 }
 0x43e   : > { %v5413_v49 = vmul.f32 %v9498_v38, %v5293_v35 }
 0x43f   : > { %vm5485_vm15 = vcmp.ge.f32.partialorder %v5453_v13, 0.0  ;;  %v5517_v17 = vmul.f32 0.01, %v5453_v13 }
 0x440   : > { %v5452_v11 = vadd.f32 %v9510_v54, %v5413_v49 }
 0x441   : > { %v5549_v24 = vsel %vm5485_vm15, %v5453_v13, %v5517_v17 }
 0x442   : > { %v6137_v50 = vpack.c.bf16 %v5549_v24, %v5549_v24  ;;  %vm5484_vm5 = vcmp.ge.f32.partialorder %v5452_v11, 0.0  ;;  %v5516_v62 = vmul.f32 0.01, %v5452_v11 }
 0x444   : > { %5709 = vst.msk [vmem:[%s9543_s23 + $0x3c] sm:$0xf] %vm10033_vm11, %v6137_v50  ;;  %v5548_v41 = vsel %vm5484_vm5, %v5452_v11, %v5516_v62  ;;  %vm10040_vm11 = vmmov %vm10024_vm1 }
 0x445   : > { %v6136_v26 = vpack.c.bf16 %v5548_v41, %v5548_v41 }
 0x447   : > { %5708 = vst.msk [vmem:[%s9543_s23 + $0x38] sm:$0xf] %vm10034_vm6, %v6136_v26  ;;  %vm10041_vm6 = vmmov %vm10024_vm1 }
 0x45a   : > { %v6300_v28 = vpop.f32.mrb[24].mxu1 }
 0x45b   : > { %v5305_v32 = vpop.f32.mrb[25].mxu1 }
 0x45c   : > { %v5415_v63 = vmul.f32 %v9498_v38, %v5305_v32  ;;  %v6301_v21 = vpop.f32.mrb[26].mxu1 }
 0x45d   : > { %v5417_v30 = vmul.f32 %v6301_v21, %v9498_v38  ;;  %v5308_v51 = vpop.f32.mrb[27].mxu1 }
 0x45e   : > { %v5454_v31 = vadd.f32 %v9510_v54, %v5415_v63  ;;  %v5416_v25 = vmul.f32 %v9498_v38, %v5308_v51 }
 0x45f   : > { %v5456_v44 = vadd.f32 %v9510_v54, %v5417_v30 }
 0x460   : > { %vm5486_vm4 = vcmp.ge.f32.partialorder %v5454_v31, 0.0  ;;  %v5518_v59 = vmul.f32 0.01, %v5454_v31  ;;  %v5455_v47 = vadd.f32 %v9510_v54, %v5416_v25 }
 0x461   : > { %vm5488_vm14 = vcmp.ge.f32.partialorder %v5456_v44, 0.0  ;;  %v5520_v40 = vmul.f32 0.01, %v5456_v44 }
 0x462   : > { %v5550_v43 = vsel %vm5486_vm4, %v5454_v31, %v5518_v59  ;;  %vm5487_vm0 = vcmp.ge.f32.partialorder %v5455_v47, 0.0  ;;  %v5519_v48 = vmul.f32 0.01, %v5455_v47 }
 0x463   : > { %v6138_v18 = vpack.c.bf16 %v5550_v43, %v5550_v43  ;;  %v5552_v42 = vsel %vm5488_vm14, %v5456_v44, %v5520_v40 }
 0x464   : > { %v6140_v3 = vpack.c.bf16 %v5552_v42, %v5552_v42  ;;  %v5551_v39 = vsel %vm5487_vm0, %v5455_v47, %v5519_v48 }
 0x465   : > { %5710 = vst.msk [vmem:[%s9543_s23 + $0x40] sm:$0xf] %vm10035_vm2, %v6138_v18  ;;  %v6139_v4 = vpack.c.bf16 %v5551_v39, %v5551_v39  ;;  %vm10042_vm2 = vmmov %vm10024_vm1 }
 0x466   : > { %5712 = vst.msk [vmem:[%s9543_s23 + $0x48] sm:$0xf] %vm10036_vm7, %v6140_v3  ;;  %vm10043_vm7 = vmmov %vm10024_vm1 }
 0x467   : > { %5711 = vst.msk [vmem:[%s9543_s23 + $0x44] sm:$0xf] %vm10037_vm8, %v6139_v4  ;;  %vm10044_vm8 = vmmov %vm10024_vm1 }
 0x47b   : > { %v6304_v20 = vpop.f32.mrb[28].mxu1 }
 0x47c   : > { %v5419_v15 = vmul.f32 %v6304_v20, %v9498_v38  ;;  %v5320_v60 = vpop.f32.mrb[29].mxu1 }
 0x47d   : > { %v5418_v61 = vmul.f32 %v9498_v38, %v5320_v60  ;;  %v6305_v12 = vpop.f32.mrb[30].mxu1 }
 0x47e   : > { %v5458_v36 = vadd.f32 %v9510_v54, %v5419_v15  ;;  %v5420_v58 = vmul.f32 %v6305_v12, %v9498_v38  ;;  %v5323_v9 = vpop.f32.mrb[31].mxu1 }
 0x47f   : > { %v5457_v14 = vadd.f32 %v9510_v54, %v5418_v61 }
 0x480   : > { %vm5490_vm13 = vcmp.ge.f32.partialorder %v5458_v36, 0.0  ;;  %v5522_v10 = vmul.f32 0.01, %v5458_v36  ;;  %v5459_v5 = vadd.f32 %v9510_v54, %v5420_v58 }
 0x481   : > { %vm5489_vm10 = vcmp.ge.f32.partialorder %v5457_v14, 0.0  ;;  %v5521_v33 = vmul.f32 0.01, %v5457_v14 }
 0x482   : > { %v5554_v8 = vsel %vm5490_vm13, %v5458_v36, %v5522_v10  ;;  %vm5491_vm9 = vcmp.ge.f32.partialorder %v5459_v5, 0.0  ;;  %v5523_v0 = vmul.f32 0.01, %v5459_v5 }
 0x483   : > { %v6142_v29 = vpack.c.bf16 %v5554_v8, %v5554_v8  ;;  %v5553_v37 = vsel %vm5489_vm10, %v5457_v14, %v5521_v33 }
 0x484   : > { %v6141_v19 = vpack.c.bf16 %v5553_v37, %v5553_v37  ;;  %v5555_v52 = vsel %vm5491_vm9, %v5459_v5, %v5523_v0 }
 0x485   : > { %5714 = vst.msk [vmem:[%s9543_s23 + $0x50] sm:$0xf] %vm10038_vm12, %v6142_v29  ;;  %v6143_v23 = vpack.c.bf16 %v5555_v52, %v5555_v52  ;;  %vm10045_vm12 = vmmov %vm10024_vm1 }
 0x486   : > { %5713 = vst.msk [vmem:[%s9543_s23 + $0x4c] sm:$0xf] %vm10024_vm1, %v6141_v19 }
 0x487   : > { %5715 = vst.msk [vmem:[%s9543_s23 + $0x54] sm:$0xf] %vm10039_vm3, %v6143_v23  ;;  %vm10046_vm3 = vmmov %vm10024_vm1 }
 0x49b   : > { %v6308_v6 = vpop.f32.mrb[32].mxu1 }
 0x49c   : > { %v5422_v27 = vmul.f32 %v6308_v6, %v9498_v38  ;;  %v5335_v7 = vpop.f32.mrb[33].mxu1 }
 0x49d   : > { %v6309_v57 = vpop.f32.mrb[34].mxu1 }
 0x49e   : > { %v5461_v34 = vadd.f32 %v9510_v54, %v5422_v27  ;;  %v5337_v53 = vpop.f32.mrb[35].mxu1 }
 0x49f   : > { %v5421_v55 = vmul.f32 %v9498_v38, %v5337_v53 }
 0x4a0   : > { %vm5493_vm15 = vcmp.ge.f32.partialorder %v5461_v34, 0.0  ;;  %v5525_v2 = vmul.f32 0.01, %v5461_v34 }
 0x4a1   : > { %v5460_v46 = vadd.f32 %v9510_v54, %v5421_v55 }
 0x4a2   : > { %v5557_v16 = vsel %vm5493_vm15, %v5461_v34, %v5525_v2 }
 0x4a3   : > { %v6145_v22 = vpack.c.bf16 %v5557_v16, %v5557_v16  ;;  %vm5492_vm5 = vcmp.ge.f32.partialorder %v5460_v46, 0.0  ;;  %v5524_v1 = vmul.f32 0.01, %v5460_v46 }
 0x4a5   : > { %5717 = vst.msk [vmem:[%s9543_s23 + $0x5c] sm:$0xf] %vm10040_vm11, %v6145_v22  ;;  %v5556_v56 = vsel %vm5492_vm5, %v5460_v46, %v5524_v1  ;;  %vm10047_vm11 = vmmov %vm10024_vm1 }
 0x4a6   : > { %v6144_v45 = vpack.c.bf16 %v5556_v56, %v5556_v56 }
 0x4a8   : > { %5716 = vst.msk [vmem:[%s9543_s23 + $0x58] sm:$0xf] %vm10041_vm6, %v6144_v45  ;;  %vm10048_vm6 = vmmov %vm10024_vm1 }
 0x4bb   : > { %v6312_v13 = vpop.f32.mrb[36].mxu1 }
 0x4bc   : > { %v5349_v35 = vpop.f32.mrb[37].mxu1 }
 0x4bd   : > { %v5423_v49 = vmul.f32 %v9498_v38, %v5349_v35  ;;  %v6313_v17 = vpop.f32.mrb[38].mxu1 }
 0x4be   : > { %v5425_v11 = vmul.f32 %v6313_v17, %v9498_v38  ;;  %v5352_v24 = vpop.f32.mrb[39].mxu1 }
 0x4bf   : > { %v5462_v50 = vadd.f32 %v9510_v54, %v5423_v49  ;;  %v5424_v62 = vmul.f32 %v9498_v38, %v5352_v24 }
 0x4c0   : > { %v5464_v41 = vadd.f32 %v9510_v54, %v5425_v11 }
 0x4c1   : > { %vm5494_vm4 = vcmp.ge.f32.partialorder %v5462_v50, 0.0  ;;  %v5526_v26 = vmul.f32 0.01, %v5462_v50  ;;  %v5463_v28 = vadd.f32 %v9510_v54, %v5424_v62 }
 0x4c2   : > { %vm5496_vm14 = vcmp.ge.f32.partialorder %v5464_v41, 0.0  ;;  %v5528_v32 = vmul.f32 0.01, %v5464_v41 }
 0x4c3   : > { %v5558_v63 = vsel %vm5494_vm4, %v5462_v50, %v5526_v26  ;;  %vm5495_vm0 = vcmp.ge.f32.partialorder %v5463_v28, 0.0  ;;  %v5527_v21 = vmul.f32 0.01, %v5463_v28 }
 0x4c4   : > { %v6146_v30 = vpack.c.bf16 %v5558_v63, %v5558_v63  ;;  %v5560_v51 = vsel %vm5496_vm14, %v5464_v41, %v5528_v32 }
 0x4c5   : > { %v6148_v31 = vpack.c.bf16 %v5560_v51, %v5560_v51  ;;  %v5559_v25 = vsel %vm5495_vm0, %v5463_v28, %v5527_v21 }
 0x4c6   : > { %5718 = vst.msk [vmem:[%s9543_s23 + $0x60] sm:$0xf] %vm10042_vm2, %v6146_v30  ;;  %v6147_v44 = vpack.c.bf16 %v5559_v25, %v5559_v25 }
 0x4c7   : > { %5720 = vst.msk [vmem:[%s9543_s23 + $0x68] sm:$0xf] %vm10043_vm7, %v6148_v31 }
 0x4c8   : > { %5719 = vst.msk [vmem:[%s9543_s23 + $0x64] sm:$0xf] %vm10044_vm8, %v6147_v44 }
 0x4db   : > { %v6316_v59 = vpop.f32.mrb[40].mxu1 }
 0x4dc   : > { %v5427_v47 = vmul.f32 %v6316_v59, %v9498_v38  ;;  %v5364_v40 = vpop.f32.mrb[41].mxu1 }
 0x4dd   : > { %v5426_v43 = vmul.f32 %v9498_v38, %v5364_v40  ;;  %v6317_v48 = vpop.f32.mrb[42].mxu1 }
 0x4de   : > { %v5466_v18 = vadd.f32 %v9510_v54, %v5427_v47  ;;  %v5428_v42 = vmul.f32 %v6317_v48, %v9498_v38  ;;  %v5367_v3 = vpop.f32.mrb[43].mxu1 }
 0x4df   : > { %v5465_v39 = vadd.f32 %v9510_v54, %v5426_v43 }
 0x4e0   : > { %vm5498_vm13 = vcmp.ge.f32.partialorder %v5466_v18, 0.0  ;;  %v5530_v4 = vmul.f32 0.01, %v5466_v18  ;;  %v5467_v20 = vadd.f32 %v9510_v54, %v5428_v42 }
 0x4e1   : > { %vm5497_vm10 = vcmp.ge.f32.partialorder %v5465_v39, 0.0  ;;  %v5529_v15 = vmul.f32 0.01, %v5465_v39 }
 0x4e2   : > { %v5562_v60 = vsel %vm5498_vm13, %v5466_v18, %v5530_v4  ;;  %vm5499_vm9 = vcmp.ge.f32.partialorder %v5467_v20, 0.0  ;;  %v5531_v61 = vmul.f32 0.01, %v5467_v20 }
 0x4e3   : > { %v6150_v12 = vpack.c.bf16 %v5562_v60, %v5562_v60  ;;  %v5561_v36 = vsel %vm5497_vm10, %v5465_v39, %v5529_v15 }
 0x4e4   : > { %v6149_v58 = vpack.c.bf16 %v5561_v36, %v5561_v36  ;;  %v5563_v9 = vsel %vm5499_vm9, %v5467_v20, %v5531_v61 }
 0x4e5   : > { %5722 = vst.msk [vmem:[%s9543_s23 + $0x70] sm:$0xf] %vm10045_vm12, %v6150_v12  ;;  %v6151_v14 = vpack.c.bf16 %v5563_v9, %v5563_v9 }
 0x4e6   : > { %5721 = vst.msk [vmem:[%s9543_s23 + $0x6c] sm:$0xf] %vm10024_vm1, %v6149_v58 }
 0x4e7   : > { %5723 = vst.msk [vmem:[%s9543_s23 + $0x74] sm:$0xf] %vm10046_vm3, %v6151_v14 }
 0x4fe   : > { %v6320_v10 = vpop.f32.mrb[44].mxu1 }
 0x4ff   : > { %v5430_v5 = vmul.f32 %v6320_v10, %v9498_v38  ;;  %v5379_v33 = vpop.f32.mrb[45].mxu1 }
 0x500   : > { %v6321_v8 = vpop.f32.mrb[46].mxu1 }
 0x501   : > { %v5469_v0 = vadd.f32 %v9510_v54, %v5430_v5  ;;  %v5381_v29 = vpop.f32.mrb[47].mxu1 }
 0x502   : > { %v5429_v37 = vmul.f32 %v9498_v38, %v5381_v29 }
 0x503   : > { %vm5501_vm15 = vcmp.ge.f32.partialorder %v5469_v0, 0.0  ;;  %v5533_v19 = vmul.f32 0.01, %v5469_v0 }
 0x504   : > { %v5468_v52 = vadd.f32 %v9510_v54, %v5429_v37 }
 0x505   : > { %v5565_v23 = vsel %vm5501_vm15, %v5469_v0, %v5533_v19 }
 0x506   : > { %v6153_v6 = vpack.c.bf16 %v5565_v23, %v5565_v23  ;;  %vm5500_vm5 = vcmp.ge.f32.partialorder %v5468_v52, 0.0  ;;  %v5532_v27 = vmul.f32 0.01, %v5468_v52 }
 0x508   : > { %5725 = vst.msk [vmem:[%s9543_s23 + $0x7c] sm:$0xf] %vm10047_vm11, %v6153_v6  ;;  %v5564_v7 = vsel %vm5500_vm5, %v5468_v52, %v5532_v27 }
 0x509   : > { %v6152_v57 = vpack.c.bf16 %v5564_v7, %v5564_v7 }
 0x50b   : > { %5724 = vst.msk [vmem:[%s9543_s23 + $0x78] sm:$0xf] %vm10048_vm6, %v6152_v57 }
 0x50c PF: > { %s17_s24 = sadd.s32 1, %s6469_s24  }
 0x50d   : > { %p14_p4 = scmp.ge.s32.totalorder %s17_s24, 4  }
 0x50f   :  { %16 = sbr.rel (!%p14_p4) target bundleno = 1 (0x1), region = 82 }

</bundles_post_ra>
